<compile_context>
chip_gen: v5e
topology: v5e:2x2
jax: 0.10.0
libtpu: 0.0.40
codegen_flags: <defaults>
</compile_context>

<pallas_src>
import functools

import jax
import jax.numpy as jnp
from jax import lax
from jax.experimental import pallas as pl
from jax.experimental.pallas import tpu as pltpu

VMEM_SPEC = pl.BlockSpec(memory_space=pltpu.MemorySpace.VMEM)


# --------------------------------------------------------------------------
# Fully fused forward kernel.  Input is time-major embedded tokens (T, B, D).
# Weight layout (packed once at init):
#   w_ih : (Din, G)  with G = 4 gates * 128 lanes; each 128-lane gate block is
#          [fwd_H | zero-pad to 64 | bwd_H | zero-pad to 64]
#   w_hh : (2*HP, G) block-diagonal (fwd rows -> fwd cols, bwd rows -> bwd
#          cols, zeros elsewhere), HP = H rounded up to 64
#   b    : (1, G)    combined b_ih + b_hh in the same padded layout
# PyTorch gate order i, f, g, o is preserved inside each gate block.
# --------------------------------------------------------------------------
def _enhanced_lstm_kernel(
        x_ref,
        l1_wih_ref, l1_whh_ref, l1_b_ref, ln1_g_ref, ln1_b_ref,
        l2_wih_ref, l2_whh_ref, l2_b_ref, ln2_g_ref, ln2_b_ref,
        wqkv_ref, bqkv_ref, wo_ref, bo_ref,
        cw1_ref, cb1_ref, cw2_ref, cb2_ref, cw3_ref, cb3_ref,
        o_ref, *, hidden, hidden_pad, num_heads):
    T, B, _ = x_ref.shape
    H, HP = hidden, hidden_pad
    GB = 2 * HP            # one 128-lane-aligned gate block: [fwd|pad|bwd|pad]
    G = 4 * GB             # i, f, g, o

    # ---------------- fused BiLSTM + LayerNorm (one per layer) -------------
    def bilstm_ln(x, wih_ref, whh_ref, b_ref, gam_ref, bet_ref):
        Tl, Bl, Din = x.shape
        # Hoisted input projection: ONE matmul for both directions & 4 gates.
        xw = (jnp.dot(x.reshape(Tl * Bl, Din).astype(jnp.bfloat16),
                      wih_ref[...].astype(jnp.bfloat16),
                      preferred_element_type=jnp.float32)
              + b_ref[...]).reshape(Tl, Bl, G)
        whh = whh_ref[...].astype(jnp.bfloat16)        # loaded/cast once

        # forward lanes = low half of every 128-lane gate block
        lane = lax.broadcasted_iota(jnp.int32, (Bl, G), 1)
        fwd_mask = (lane % GB) < HP

        h = jnp.zeros((Bl, 2 * HP), jnp.float32)       # [h_f | 0 | h_b | 0]
        c = jnp.zeros((Bl, 2 * HP), jnp.float32)
        hs = []
        for t in range(Tl):                            # static unrolled, small T
            # fwd gates use x-projection at time t, bwd gates at time T-1-t
            pre = jnp.where(fwd_mask, xw[t], xw[Tl - 1 - t])
            gts = pre + jnp.dot(h.astype(jnp.bfloat16), whh,
                                preferred_element_type=jnp.float32)
            i_g = jax.nn.sigmoid(gts[:, 0 * GB:1 * GB])    # vreg-aligned slices
            f_g = jax.nn.sigmoid(gts[:, 1 * GB:2 * GB])
            g_g = jnp.tanh(gts[:, 2 * GB:3 * GB])
            o_g = jax.nn.sigmoid(gts[:, 3 * GB:4 * GB])
            c = f_g * c + i_g * g_g
            h = o_g * jnp.tanh(c)
            hs.append(h)

        hf = jnp.stack(hs, axis=0)                     # (T, B, 2*HP)
        hb = jnp.stack(hs[::-1], axis=0)               # trace-time reverse: free
        y = jnp.concatenate([hf[:, :, 0:H], hb[:, :, HP:HP + H]], axis=-1)
        mu = jnp.mean(y, axis=-1, keepdims=True)
        var = jnp.mean((y - mu) ** 2, axis=-1, keepdims=True)
        return (y - mu) * lax.rsqrt(var + 1e-5) * gam_ref[...] + bet_ref[...]

    l1 = bilstm_ln(x_ref[...], l1_wih_ref, l1_whh_ref, l1_b_ref,
                   ln1_g_ref, ln1_b_ref)
    l2 = bilstm_ln(l1, l2_wih_ref, l2_whh_ref, l2_b_ref,
                   ln2_g_ref, ln2_b_ref)

    # ---------------- multihead self-attention (merged heads) --------------
    E = 2 * H
    hd = E // num_heads
    qkv = (jnp.dot(l2.reshape(T * B, E).astype(jnp.bfloat16),
                   wqkv_ref[...].astype(jnp.bfloat16),
                   preferred_element_type=jnp.float32)
           + bqkv_ref[...]).reshape(T, B, 3 * E)

    def split_heads(z):                                # (T,B,E) -> (B*h, T, hd)
        z = z.reshape(T, B, num_heads, hd)
        z = jnp.transpose(z, (1, 2, 0, 3))             # minor dim stays in place
        return z.reshape(B * num_heads, T, hd)

    q = split_heads(qkv[..., 0:E])
    k = split_heads(qkv[..., E:2 * E])
    v = split_heads(qkv[..., 2 * E:3 * E])
    scale = 1.0 / jnp.sqrt(jnp.float32(hd))
    s = jnp.einsum("bqd,bkd->bqk", q.astype(jnp.bfloat16),
                   k.astype(jnp.bfloat16),
                   preferred_element_type=jnp.float32) * scale   # (B*h, T, T)
    p = jax.nn.softmax(s, axis=-1)                               # f32
    ctx = jnp.einsum("bqk,bkd->bqd", p.astype(jnp.bfloat16),
                     v.astype(jnp.bfloat16),
                     preferred_element_type=jnp.float32)         # (B*h, T, hd)
    ctx = ctx.reshape(B, num_heads, T, hd)
    ctx = jnp.transpose(ctx, (2, 0, 1, 3)).reshape(T * B, E)     # time-major
    attn = (jnp.dot(ctx.astype(jnp.bfloat16), wo_ref[...].astype(jnp.bfloat16),
                    preferred_element_type=jnp.float32)
            + bo_ref[...]).reshape(T, B, E)

    # ---------------- mean / max pooling + 3-layer classifier --------------
    mean_p = jnp.mean(attn, axis=0)                              # (B, E)
    max_p = jnp.max(attn, axis=0)                                # (B, E)
    comb = jnp.concatenate([mean_p, max_p], axis=-1)             # (B, 2E)
    h1 = jnp.maximum(
        jnp.dot(comb.astype(jnp.bfloat16), cw1_ref[...].astype(jnp.bfloat16),
                preferred_element_type=jnp.float32) + cb1_ref[...], 0.0)
    h2 = jnp.maximum(
        jnp.dot(h1.astype(jnp.bfloat16), cw2_ref[...].astype(jnp.bfloat16),
                preferred_element_type=jnp.float32) + cb2_ref[...], 0.0)
    o_ref[...] = (jnp.dot(h2.astype(jnp.bfloat16),
                          cw3_ref[...].astype(jnp.bfloat16),
                          preferred_element_type=jnp.float32) + cb3_ref[...])


# --------------------------------------------------------------------------
# Full forward pass (attention_mask=None branch of the PyTorch forward).
# Everything stays time-major (T, B, D): zero activation transposes in glue.
# --------------------------------------------------------------------------
@jax.jit
def enhanced_lstm_forward(params, token_ids):
    B, T = token_ids.shape
    D = params["embedding"].shape[1]
    H = params["ln1_g"].shape[0] // 2
    HP = params["lstm1"]["w_hh"].shape[0] // 2
    C = params["cls"]["b3"].shape[-1]
    E = 2 * H

    # Embedding lookup kept in plain JAX glue (row gather), emitted time-major.
    emb = jnp.take(params["embedding"], token_ids.T.reshape(-1),
                   axis=0).reshape(T, B, D)
    # dropout1/2/3: identity (eval)

    kern = functools.partial(_enhanced_lstm_kernel,
                             hidden=H, hidden_pad=HP, num_heads=8)
    return pl.pallas_call(
        kern,
        out_shape=jax.ShapeDtypeStruct((B, C), jnp.float32),
        in_specs=[VMEM_SPEC] * 21,
        out_specs=VMEM_SPEC,
    )(emb,
      params["lstm1"]["w_ih"], params["lstm1"]["w_hh"], params["lstm1"]["b"],
      params["ln1_g"].reshape(1, 1, E), params["ln1_b"].reshape(1, 1, E),
      params["lstm2"]["w_ih"], params["lstm2"]["w_hh"], params["lstm2"]["b"],
      params["ln2_g"].reshape(1, 1, E), params["ln2_b"].reshape(1, 1, E),
      params["mha"]["wqkv"], params["mha"]["bqkv"].reshape(1, 3 * E),
      params["mha"]["wo"], params["mha"]["bo"].reshape(1, E),
      params["cls"]["w1"], params["cls"]["b1"],
      params["cls"]["w2"], params["cls"]["b2"],
      params["cls"]["w3"], params["cls"]["b3"])


# --------------------------------------------------------------------------
# Deterministic parameter init (mirrors _init_weights: xavier-style weights,
# zero biases, LayerNorm gamma=1/beta=0), packed into the lane-aligned
# block-diagonal layout the kernel expects.  Synthetic — not a checkpoint.
# --------------------------------------------------------------------------
def init_params(key, vocab_size, embed_dim, hidden, num_classes):
    ks = jax.random.split(key, 10)

    def xavier(k, out_dim, in_dim):
        a = jnp.sqrt(6.0 / (in_dim + out_dim))
        return jax.random.uniform(k, (out_dim, in_dim), jnp.float32, -a, a)

    H = hidden
    E = 2 * H                                   # bidirectional feature width
    HP = ((H + 63) // 64) * 64                  # pad per-direction width to 64
    GB = 2 * HP                                 # 128-lane gate block
    G = 4 * GB

    def lstm_packed(k, in_dim):
        k1, k2, k3, k4 = jax.random.split(k, 4)
        wih_f = xavier(k1, 4 * H, in_dim).T     # (Din, 4H)
        whh_f = xavier(k2, 4 * H, H).T          # (H, 4H)
        wih_b = xavier(k3, 4 * H, in_dim).T
        whh_b = xavier(k4, 4 * H, H).T
        w_ih = jnp.zeros((in_dim, G), jnp.float32)
        w_hh = jnp.zeros((2 * HP, G), jnp.float32)
        for g in range(4):                      # gate order i, f, g, o
            cf, cb = g * GB, g * GB + HP
            w_ih = w_ih.at[:, cf:cf + H].set(wih_f[:, g * H:(g + 1) * H])
            w_ih = w_ih.at[:, cb:cb + H].set(wih_b[:, g * H:(g + 1) * H])
            w_hh = w_hh.at[0:H, cf:cf + H].set(whh_f[:, g * H:(g + 1) * H])
            w_hh = w_hh.at[HP:HP + H, cb:cb + H].set(whh_b[:, g * H:(g + 1) * H])
        # b_ih + b_hh are zero-initialised (padded lanes stay exactly zero)
        return {"w_ih": w_ih, "w_hh": w_hh, "b": jnp.zeros((1, G), jnp.float32)}

    emb = 0.1 * jax.random.normal(ks[0], (vocab_size, embed_dim), jnp.float32)
    emb = emb.at[0].set(0.0)                                    # padding_idx=0

    return {
        "embedding": emb,
        "lstm1": lstm_packed(ks[1], embed_dim),
        "lstm2": lstm_packed(ks[2], E),
        "ln1_g": jnp.ones((E,), jnp.float32),
        "ln1_b": jnp.zeros((E,), jnp.float32),
        "ln2_g": jnp.ones((E,), jnp.float32),
        "ln2_b": jnp.zeros((E,), jnp.float32),
        "mha": {
            "wqkv": xavier(ks[3], 3 * E, E).T,                  # (E, 3E)
            "bqkv": jnp.zeros((3 * E,), jnp.float32),
            "wo": xavier(ks[4], E, E).T,                        # (E, E)
            "bo": jnp.zeros((E,), jnp.float32),
        },
        "cls": {
            "w1": xavier(ks[5], H, 2 * E).T,                    # (4H, H)
            "b1": jnp.zeros((1, H), jnp.float32),
            "w2": xavier(ks[6], H // 2, H).T,                   # (H, H/2)
            "b2": jnp.zeros((1, H // 2), jnp.float32),
            "w3": xavier(ks[7], num_classes, H // 2).T,         # (H/2, C)
            "b3": jnp.zeros((1, num_classes), jnp.float32),
        },
    }


if __name__ == "__main__":
    VOCAB, EMBED_DIM, HIDDEN, NUM_CLASSES = 50, 64, 32, 2
    B, T = 2, 8

    key = jax.random.PRNGKey(0)
    k_params, k_ids = jax.random.split(key)
    params = init_params(k_params, VOCAB, EMBED_DIM, HIDDEN, NUM_CLASSES)
    token_ids = jax.random.randint(k_ids, (B, T), 0, VOCAB, dtype=jnp.int32)

    logits = enhanced_lstm_forward(params, token_ids)
    logits = jax.block_until_ready(logits)
    assert logits.shape == (B, NUM_CLASSES)
    assert bool(jnp.all(jnp.isfinite(logits)))
    print("KERNEL_OK")
</pallas_src>

<mosaic_0001>
module attributes {stable_mosaic.version = 11 : i64} {
  func.func @_enhanced_lstm_kernel(%arg0: memref<8x2x64xf32, #tpu.memory_space<vmem>>, %arg1: memref<64x512xf32, #tpu.memory_space<vmem>>, %arg2: memref<128x512xf32, #tpu.memory_space<vmem>>, %arg3: memref<1x512xf32, #tpu.memory_space<vmem>>, %arg4: memref<1x1x64xf32, #tpu.memory_space<vmem>>, %arg5: memref<1x1x64xf32, #tpu.memory_space<vmem>>, %arg6: memref<64x512xf32, #tpu.memory_space<vmem>>, %arg7: memref<128x512xf32, #tpu.memory_space<vmem>>, %arg8: memref<1x512xf32, #tpu.memory_space<vmem>>, %arg9: memref<1x1x64xf32, #tpu.memory_space<vmem>>, %arg10: memref<1x1x64xf32, #tpu.memory_space<vmem>>, %arg11: memref<64x192xf32, #tpu.memory_space<vmem>>, %arg12: memref<1x192xf32, #tpu.memory_space<vmem>>, %arg13: memref<64x64xf32, #tpu.memory_space<vmem>>, %arg14: memref<1x64xf32, #tpu.memory_space<vmem>>, %arg15: memref<128x32xf32, #tpu.memory_space<vmem>>, %arg16: memref<1x32xf32, #tpu.memory_space<vmem>>, %arg17: memref<32x16xf32, #tpu.memory_space<vmem>>, %arg18: memref<1x16xf32, #tpu.memory_space<vmem>>, %arg19: memref<16x2xf32, #tpu.memory_space<vmem>>, %arg20: memref<1x2xf32, #tpu.memory_space<vmem>>, %arg21: memref<2x2xf32, #tpu.memory_space<vmem>>) attributes {dimension_semantics = [], scalar_prefetch = 0 : i64, scratch_operands = 0 : i64, tpu.core_type = #tpu.core_type<tc>} {
    %c0 = arith.constant 0 : index
    %c0_0 = arith.constant 0 : index
    %c0_1 = arith.constant 0 : index
    %0 = vector.load %arg0[%c0, %c0_0, %c0_1] : memref<8x2x64xf32, #tpu.memory_space<vmem>>, vector<8x2x64xf32>
    %1 = vector.shape_cast %0 : vector<8x2x64xf32> to vector<16x64xf32>
    %2 = arith.truncf %1 : vector<16x64xf32> to vector<16x64xbf16>
    %c0_2 = arith.constant 0 : index
    %c0_3 = arith.constant 0 : index
    %3 = vector.load %arg1[%c0_2, %c0_3] : memref<64x512xf32, #tpu.memory_space<vmem>>, vector<64x512xf32>
    %4 = arith.truncf %3 : vector<64x512xf32> to vector<64x512xbf16>
    %cst = arith.constant dense<0.000000e+00> : vector<16x512xf32>
    %5 = tpu.matmul %2, %4, %cst {dimension_numbers = #tpu.dot_dimension_numbers<[1], [0], [0], [1], [0, 0, 1, 1], [], []>} : vector<16x64xbf16>, vector<64x512xbf16>, vector<16x512xf32> -> vector<16x512xf32>
    %c0_4 = arith.constant 0 : index
    %c0_5 = arith.constant 0 : index
    %6 = vector.load %arg3[%c0_4, %c0_5] : memref<1x512xf32, #tpu.memory_space<vmem>>, vector<1x512xf32>
    %7 = vector.broadcast %6 : vector<1x512xf32> to vector<16x512xf32>
    %8 = arith.addf %5, %7 : vector<16x512xf32>
    %9 = vector.shape_cast %8 : vector<16x512xf32> to vector<8x2x512xf32>
    %c0_6 = arith.constant 0 : index
    %c0_7 = arith.constant 0 : index
    %10 = vector.load %arg2[%c0_6, %c0_7] : memref<128x512xf32, #tpu.memory_space<vmem>>, vector<128x512xf32>
    %11 = arith.truncf %10 : vector<128x512xf32> to vector<128x512xbf16>
    %12 = tpu.iota {dimensions = array<i32: 1>} : vector<2x512xi32>
    %c128_i32 = arith.constant 128 : i32
    %c0_i32 = arith.constant 0 : i32
    %13 = arith.cmpi eq, %c128_i32, %c0_i32 : i32
    %c1_i32 = arith.constant 1 : i32
    %14 = arith.select %13, %c1_i32, %c128_i32 : i32
    %15 = vector.broadcast %14 : i32 to vector<2x512xi32>
    %16 = arith.remsi %12, %15 : vector<2x512xi32>
    %c0_i32_8 = arith.constant 0 : i32
    %17 = vector.broadcast %c0_i32_8 : i32 to vector<2x512xi32>
    %18 = arith.cmpi ne, %16, %17 : vector<2x512xi32>
    %c0_i32_9 = arith.constant 0 : i32
    %19 = vector.broadcast %c0_i32_9 : i32 to vector<2x512xi32>
    %20 = arith.cmpi slt, %16, %19 : vector<2x512xi32>
    %c0_i32_10 = arith.constant 0 : i32
    %21 = arith.cmpi slt, %14, %c0_i32_10 : i32
    %22 = vector.broadcast %21 : i1 to vector<2x512xi1>
    %23 = vector.broadcast %22 : vector<2x512xi1> to vector<2x512xi1>
    %24 = arith.xori %20, %23 : vector<2x512xi1>
    %25 = arith.andi %24, %18 : vector<2x512xi1>
    %26 = vector.broadcast %14 : i32 to vector<2x512xi32>
    %27 = arith.addi %16, %26 : vector<2x512xi32>
    %28 = arith.select %25, %27, %16 : vector<2x512xi1>, vector<2x512xi32>
    %c64_i32 = arith.constant 64 : i32
    %29 = vector.broadcast %c64_i32 : i32 to vector<2x512xi32>
    %30 = arith.cmpi slt, %28, %29 : vector<2x512xi32>
    %cst_11 = arith.constant 0.000000e+00 : f32
    %31 = vector.broadcast %cst_11 : f32 to vector<2x128xf32>
    %cst_12 = arith.constant 0.000000e+00 : f32
    %32 = vector.broadcast %cst_12 : f32 to vector<2x128xf32>
    %33 = vector.extract_strided_slice %9 {offsets = [0, 0, 0], sizes = [1, 2, 512], strides = [1, 1, 1]} : vector<8x2x512xf32> to vector<1x2x512xf32>
    %34 = vector.shape_cast %33 : vector<1x2x512xf32> to vector<2x512xf32>
    %35 = vector.extract_strided_slice %9 {offsets = [7, 0, 0], sizes = [1, 2, 512], strides = [1, 1, 1]} : vector<8x2x512xf32> to vector<1x2x512xf32>
    %36 = vector.shape_cast %35 : vector<1x2x512xf32> to vector<2x512xf32>
    %37 = arith.select %30, %34, %36 : vector<2x512xi1>, vector<2x512xf32>
    %38 = arith.truncf %31 : vector<2x128xf32> to vector<2x128xbf16>
    %cst_13 = arith.constant dense<0.000000e+00> : vector<2x512xf32>
    %39 = tpu.matmul %38, %11, %cst_13 {dimension_numbers = #tpu.dot_dimension_numbers<[1], [0], [0], [1], [0, 0, 1, 1], [], []>} : vector<2x128xbf16>, vector<128x512xbf16>, vector<2x512xf32> -> vector<2x512xf32>
    %40 = arith.addf %37, %39 : vector<2x512xf32>
    %41 = vector.extract_strided_slice %40 {offsets = [0, 0], sizes = [2, 128], strides = [1, 1]} : vector<2x512xf32> to vector<2x128xf32>
    %42 = arith.negf %41 : vector<2x128xf32>
    %43 = math.exp %42 : vector<2x128xf32>
    %cst_14 = arith.constant 1.000000e+00 : f32
    %44 = vector.broadcast %cst_14 : f32 to vector<2x128xf32>
    %45 = arith.addf %44, %43 : vector<2x128xf32>
    %46 = arith.divf %44, %45 : vector<2x128xf32>
    %47 = vector.extract_strided_slice %40 {offsets = [0, 128], sizes = [2, 128], strides = [1, 1]} : vector<2x512xf32> to vector<2x128xf32>
    %48 = arith.negf %47 : vector<2x128xf32>
    %49 = math.exp %48 : vector<2x128xf32>
    %cst_15 = arith.constant 1.000000e+00 : f32
    %50 = vector.broadcast %cst_15 : f32 to vector<2x128xf32>
    %51 = arith.addf %50, %49 : vector<2x128xf32>
    %52 = arith.divf %50, %51 : vector<2x128xf32>
    %53 = vector.extract_strided_slice %40 {offsets = [0, 256], sizes = [2, 128], strides = [1, 1]} : vector<2x512xf32> to vector<2x128xf32>
    %54 = math.tanh %53 : vector<2x128xf32>
    %55 = vector.extract_strided_slice %40 {offsets = [0, 384], sizes = [2, 128], strides = [1, 1]} : vector<2x512xf32> to vector<2x128xf32>
    %56 = arith.negf %55 : vector<2x128xf32>
    %57 = math.exp %56 : vector<2x128xf32>
    %cst_16 = arith.constant 1.000000e+00 : f32
    %58 = vector.broadcast %cst_16 : f32 to vector<2x128xf32>
    %59 = arith.addf %58, %57 : vector<2x128xf32>
    %60 = arith.divf %58, %59 : vector<2x128xf32>
    %61 = arith.mulf %52, %32 : vector<2x128xf32>
    %62 = arith.mulf %46, %54 : vector<2x128xf32>
    %63 = arith.addf %61, %62 : vector<2x128xf32>
    %64 = math.tanh %63 : vector<2x128xf32>
    %65 = arith.mulf %60, %64 : vector<2x128xf32>
    %66 = vector.extract_strided_slice %9 {offsets = [1, 0, 0], sizes = [1, 2, 512], strides = [1, 1, 1]} : vector<8x2x512xf32> to vector<1x2x512xf32>
    %67 = vector.shape_cast %66 : vector<1x2x512xf32> to vector<2x512xf32>
    %68 = vector.extract_strided_slice %9 {offsets = [6, 0, 0], sizes = [1, 2, 512], strides = [1, 1, 1]} : vector<8x2x512xf32> to vector<1x2x512xf32>
    %69 = vector.shape_cast %68 : vector<1x2x512xf32> to vector<2x512xf32>
    %70 = arith.select %30, %67, %69 : vector<2x512xi1>, vector<2x512xf32>
    %71 = arith.truncf %65 : vector<2x128xf32> to vector<2x128xbf16>
    %cst_17 = arith.constant dense<0.000000e+00> : vector<2x512xf32>
    %72 = tpu.matmul %71, %11, %cst_17 {dimension_numbers = #tpu.dot_dimension_numbers<[1], [0], [0], [1], [0, 0, 1, 1], [], []>} : vector<2x128xbf16>, vector<128x512xbf16>, vector<2x512xf32> -> vector<2x512xf32>
    %73 = arith.addf %70, %72 : vector<2x512xf32>
    %74 = vector.extract_strided_slice %73 {offsets = [0, 0], sizes = [2, 128], strides = [1, 1]} : vector<2x512xf32> to vector<2x128xf32>
    %75 = arith.negf %74 : vector<2x128xf32>
    %76 = math.exp %75 : vector<2x128xf32>
    %cst_18 = arith.constant 1.000000e+00 : f32
    %77 = vector.broadcast %cst_18 : f32 to vector<2x128xf32>
    %78 = arith.addf %77, %76 : vector<2x128xf32>
    %79 = arith.divf %77, %78 : vector<2x128xf32>
    %80 = vector.extract_strided_slice %73 {offsets = [0, 128], sizes = [2, 128], strides = [1, 1]} : vector<2x512xf32> to vector<2x128xf32>
    %81 = arith.negf %80 : vector<2x128xf32>
    %82 = math.exp %81 : vector<2x128xf32>
    %cst_19 = arith.constant 1.000000e+00 : f32
    %83 = vector.broadcast %cst_19 : f32 to vector<2x128xf32>
    %84 = arith.addf %83, %82 : vector<2x128xf32>
    %85 = arith.divf %83, %84 : vector<2x128xf32>
    %86 = vector.extract_strided_slice %73 {offsets = [0, 256], sizes = [2, 128], strides = [1, 1]} : vector<2x512xf32> to vector<2x128xf32>
    %87 = math.tanh %86 : vector<2x128xf32>
    %88 = vector.extract_strided_slice %73 {offsets = [0, 384], sizes = [2, 128], strides = [1, 1]} : vector<2x512xf32> to vector<2x128xf32>
    %89 = arith.negf %88 : vector<2x128xf32>
    %90 = math.exp %89 : vector<2x128xf32>
    %cst_20 = arith.constant 1.000000e+00 : f32
    %91 = vector.broadcast %cst_20 : f32 to vector<2x128xf32>
    %92 = arith.addf %91, %90 : vector<2x128xf32>
    %93 = arith.divf %91, %92 : vector<2x128xf32>
    %94 = arith.mulf %85, %63 : vector<2x128xf32>
    %95 = arith.mulf %79, %87 : vector<2x128xf32>
    %96 = arith.addf %94, %95 : vector<2x128xf32>
    %97 = math.tanh %96 : vector<2x128xf32>
    %98 = arith.mulf %93, %97 : vector<2x128xf32>
    %99 = vector.extract_strided_slice %9 {offsets = [2, 0, 0], sizes = [1, 2, 512], strides = [1, 1, 1]} : vector<8x2x512xf32> to vector<1x2x512xf32>
    %100 = vector.shape_cast %99 : vector<1x2x512xf32> to vector<2x512xf32>
    %101 = vector.extract_strided_slice %9 {offsets = [5, 0, 0], sizes = [1, 2, 512], strides = [1, 1, 1]} : vector<8x2x512xf32> to vector<1x2x512xf32>
    %102 = vector.shape_cast %101 : vector<1x2x512xf32> to vector<2x512xf32>
    %103 = arith.select %30, %100, %102 : vector<2x512xi1>, vector<2x512xf32>
    %104 = arith.truncf %98 : vector<2x128xf32> to vector<2x128xbf16>
    %cst_21 = arith.constant dense<0.000000e+00> : vector<2x512xf32>
    %105 = tpu.matmul %104, %11, %cst_21 {dimension_numbers = #tpu.dot_dimension_numbers<[1], [0], [0], [1], [0, 0, 1, 1], [], []>} : vector<2x128xbf16>, vector<128x512xbf16>, vector<2x512xf32> -> vector<2x512xf32>
    %106 = arith.addf %103, %105 : vector<2x512xf32>
    %107 = vector.extract_strided_slice %106 {offsets = [0, 0], sizes = [2, 128], strides = [1, 1]} : vector<2x512xf32> to vector<2x128xf32>
    %108 = arith.negf %107 : vector<2x128xf32>
    %109 = math.exp %108 : vector<2x128xf32>
    %cst_22 = arith.constant 1.000000e+00 : f32
    %110 = vector.broadcast %cst_22 : f32 to vector<2x128xf32>
    %111 = arith.addf %110, %109 : vector<2x128xf32>
    %112 = arith.divf %110, %111 : vector<2x128xf32>
    %113 = vector.extract_strided_slice %106 {offsets = [0, 128], sizes = [2, 128], strides = [1, 1]} : vector<2x512xf32> to vector<2x128xf32>
    %114 = arith.negf %113 : vector<2x128xf32>
    %115 = math.exp %114 : vector<2x128xf32>
    %cst_23 = arith.constant 1.000000e+00 : f32
    %116 = vector.broadcast %cst_23 : f32 to vector<2x128xf32>
    %117 = arith.addf %116, %115 : vector<2x128xf32>
    %118 = arith.divf %116, %117 : vector<2x128xf32>
    %119 = vector.extract_strided_slice %106 {offsets = [0, 256], sizes = [2, 128], strides = [1, 1]} : vector<2x512xf32> to vector<2x128xf32>
    %120 = math.tanh %119 : vector<2x128xf32>
    %121 = vector.extract_strided_slice %106 {offsets = [0, 384], sizes = [2, 128], strides = [1, 1]} : vector<2x512xf32> to vector<2x128xf32>
    %122 = arith.negf %121 : vector<2x128xf32>
    %123 = math.exp %122 : vector<2x128xf32>
    %cst_24 = arith.constant 1.000000e+00 : f32
    %124 = vector.broadcast %cst_24 : f32 to vector<2x128xf32>
    %125 = arith.addf %124, %123 : vector<2x128xf32>
    %126 = arith.divf %124, %125 : vector<2x128xf32>
    %127 = arith.mulf %118, %96 : vector<2x128xf32>
    %128 = arith.mulf %112, %120 : vector<2x128xf32>
    %129 = arith.addf %127, %128 : vector<2x128xf32>
    %130 = math.tanh %129 : vector<2x128xf32>
    %131 = arith.mulf %126, %130 : vector<2x128xf32>
    %132 = vector.extract_strided_slice %9 {offsets = [3, 0, 0], sizes = [1, 2, 512], strides = [1, 1, 1]} : vector<8x2x512xf32> to vector<1x2x512xf32>
    %133 = vector.shape_cast %132 : vector<1x2x512xf32> to vector<2x512xf32>
    %134 = vector.extract_strided_slice %9 {offsets = [4, 0, 0], sizes = [1, 2, 512], strides = [1, 1, 1]} : vector<8x2x512xf32> to vector<1x2x512xf32>
    %135 = vector.shape_cast %134 : vector<1x2x512xf32> to vector<2x512xf32>
    %136 = arith.select %30, %133, %135 : vector<2x512xi1>, vector<2x512xf32>
    %137 = arith.truncf %131 : vector<2x128xf32> to vector<2x128xbf16>
    %cst_25 = arith.constant dense<0.000000e+00> : vector<2x512xf32>
    %138 = tpu.matmul %137, %11, %cst_25 {dimension_numbers = #tpu.dot_dimension_numbers<[1], [0], [0], [1], [0, 0, 1, 1], [], []>} : vector<2x128xbf16>, vector<128x512xbf16>, vector<2x512xf32> -> vector<2x512xf32>
    %139 = arith.addf %136, %138 : vector<2x512xf32>
    %140 = vector.extract_strided_slice %139 {offsets = [0, 0], sizes = [2, 128], strides = [1, 1]} : vector<2x512xf32> to vector<2x128xf32>
    %141 = arith.negf %140 : vector<2x128xf32>
    %142 = math.exp %141 : vector<2x128xf32>
    %cst_26 = arith.constant 1.000000e+00 : f32
    %143 = vector.broadcast %cst_26 : f32 to vector<2x128xf32>
    %144 = arith.addf %143, %142 : vector<2x128xf32>
    %145 = arith.divf %143, %144 : vector<2x128xf32>
    %146 = vector.extract_strided_slice %139 {offsets = [0, 128], sizes = [2, 128], strides = [1, 1]} : vector<2x512xf32> to vector<2x128xf32>
    %147 = arith.negf %146 : vector<2x128xf32>
    %148 = math.exp %147 : vector<2x128xf32>
    %cst_27 = arith.constant 1.000000e+00 : f32
    %149 = vector.broadcast %cst_27 : f32 to vector<2x128xf32>
    %150 = arith.addf %149, %148 : vector<2x128xf32>
    %151 = arith.divf %149, %150 : vector<2x128xf32>
    %152 = vector.extract_strided_slice %139 {offsets = [0, 256], sizes = [2, 128], strides = [1, 1]} : vector<2x512xf32> to vector<2x128xf32>
    %153 = math.tanh %152 : vector<2x128xf32>
    %154 = vector.extract_strided_slice %139 {offsets = [0, 384], sizes = [2, 128], strides = [1, 1]} : vector<2x512xf32> to vector<2x128xf32>
    %155 = arith.negf %154 : vector<2x128xf32>
    %156 = math.exp %155 : vector<2x128xf32>
    %cst_28 = arith.constant 1.000000e+00 : f32
    %157 = vector.broadcast %cst_28 : f32 to vector<2x128xf32>
    %158 = arith.addf %157, %156 : vector<2x128xf32>
    %159 = arith.divf %157, %158 : vector<2x128xf32>
    %160 = arith.mulf %151, %129 : vector<2x128xf32>
    %161 = arith.mulf %145, %153 : vector<2x128xf32>
    %162 = arith.addf %160, %161 : vector<2x128xf32>
    %163 = math.tanh %162 : vector<2x128xf32>
    %164 = arith.mulf %159, %163 : vector<2x128xf32>
    %165 = vector.extract_strided_slice %9 {offsets = [4, 0, 0], sizes = [1, 2, 512], strides = [1, 1, 1]} : vector<8x2x512xf32> to vector<1x2x512xf32>
    %166 = vector.shape_cast %165 : vector<1x2x512xf32> to vector<2x512xf32>
    %167 = vector.extract_strided_slice %9 {offsets = [3, 0, 0], sizes = [1, 2, 512], strides = [1, 1, 1]} : vector<8x2x512xf32> to vector<1x2x512xf32>
    %168 = vector.shape_cast %167 : vector<1x2x512xf32> to vector<2x512xf32>
    %169 = arith.select %30, %166, %168 : vector<2x512xi1>, vector<2x512xf32>
    %170 = arith.truncf %164 : vector<2x128xf32> to vector<2x128xbf16>
    %cst_29 = arith.constant dense<0.000000e+00> : vector<2x512xf32>
    %171 = tpu.matmul %170, %11, %cst_29 {dimension_numbers = #tpu.dot_dimension_numbers<[1], [0], [0], [1], [0, 0, 1, 1], [], []>} : vector<2x128xbf16>, vector<128x512xbf16>, vector<2x512xf32> -> vector<2x512xf32>
    %172 = arith.addf %169, %171 : vector<2x512xf32>
    %173 = vector.extract_strided_slice %172 {offsets = [0, 0], sizes = [2, 128], strides = [1, 1]} : vector<2x512xf32> to vector<2x128xf32>
    %174 = arith.negf %173 : vector<2x128xf32>
    %175 = math.exp %174 : vector<2x128xf32>
    %cst_30 = arith.constant 1.000000e+00 : f32
    %176 = vector.broadcast %cst_30 : f32 to vector<2x128xf32>
    %177 = arith.addf %176, %175 : vector<2x128xf32>
    %178 = arith.divf %176, %177 : vector<2x128xf32>
    %179 = vector.extract_strided_slice %172 {offsets = [0, 128], sizes = [2, 128], strides = [1, 1]} : vector<2x512xf32> to vector<2x128xf32>
    %180 = arith.negf %179 : vector<2x128xf32>
    %181 = math.exp %180 : vector<2x128xf32>
    %cst_31 = arith.constant 1.000000e+00 : f32
    %182 = vector.broadcast %cst_31 : f32 to vector<2x128xf32>
    %183 = arith.addf %182, %181 : vector<2x128xf32>
    %184 = arith.divf %182, %183 : vector<2x128xf32>
    %185 = vector.extract_strided_slice %172 {offsets = [0, 256], sizes = [2, 128], strides = [1, 1]} : vector<2x512xf32> to vector<2x128xf32>
    %186 = math.tanh %185 : vector<2x128xf32>
    %187 = vector.extract_strided_slice %172 {offsets = [0, 384], sizes = [2, 128], strides = [1, 1]} : vector<2x512xf32> to vector<2x128xf32>
    %188 = arith.negf %187 : vector<2x128xf32>
    %189 = math.exp %188 : vector<2x128xf32>
    %cst_32 = arith.constant 1.000000e+00 : f32
    %190 = vector.broadcast %cst_32 : f32 to vector<2x128xf32>
    %191 = arith.addf %190, %189 : vector<2x128xf32>
    %192 = arith.divf %190, %191 : vector<2x128xf32>
    %193 = arith.mulf %184, %162 : vector<2x128xf32>
    %194 = arith.mulf %178, %186 : vector<2x128xf32>
    %195 = arith.addf %193, %194 : vector<2x128xf32>
    %196 = math.tanh %195 : vector<2x128xf32>
    %197 = arith.mulf %192, %196 : vector<2x128xf32>
    %198 = vector.extract_strided_slice %9 {offsets = [5, 0, 0], sizes = [1, 2, 512], strides = [1, 1, 1]} : vector<8x2x512xf32> to vector<1x2x512xf32>
    %199 = vector.shape_cast %198 : vector<1x2x512xf32> to vector<2x512xf32>
    %200 = vector.extract_strided_slice %9 {offsets = [2, 0, 0], sizes = [1, 2, 512], strides = [1, 1, 1]} : vector<8x2x512xf32> to vector<1x2x512xf32>
    %201 = vector.shape_cast %200 : vector<1x2x512xf32> to vector<2x512xf32>
    %202 = arith.select %30, %199, %201 : vector<2x512xi1>, vector<2x512xf32>
    %203 = arith.truncf %197 : vector<2x128xf32> to vector<2x128xbf16>
    %cst_33 = arith.constant dense<0.000000e+00> : vector<2x512xf32>
    %204 = tpu.matmul %203, %11, %cst_33 {dimension_numbers = #tpu.dot_dimension_numbers<[1], [0], [0], [1], [0, 0, 1, 1], [], []>} : vector<2x128xbf16>, vector<128x512xbf16>, vector<2x512xf32> -> vector<2x512xf32>
    %205 = arith.addf %202, %204 : vector<2x512xf32>
    %206 = vector.extract_strided_slice %205 {offsets = [0, 0], sizes = [2, 128], strides = [1, 1]} : vector<2x512xf32> to vector<2x128xf32>
    %207 = arith.negf %206 : vector<2x128xf32>
    %208 = math.exp %207 : vector<2x128xf32>
    %cst_34 = arith.constant 1.000000e+00 : f32
    %209 = vector.broadcast %cst_34 : f32 to vector<2x128xf32>
    %210 = arith.addf %209, %208 : vector<2x128xf32>
    %211 = arith.divf %209, %210 : vector<2x128xf32>
    %212 = vector.extract_strided_slice %205 {offsets = [0, 128], sizes = [2, 128], strides = [1, 1]} : vector<2x512xf32> to vector<2x128xf32>
    %213 = arith.negf %212 : vector<2x128xf32>
    %214 = math.exp %213 : vector<2x128xf32>
    %cst_35 = arith.constant 1.000000e+00 : f32
    %215 = vector.broadcast %cst_35 : f32 to vector<2x128xf32>
    %216 = arith.addf %215, %214 : vector<2x128xf32>
    %217 = arith.divf %215, %216 : vector<2x128xf32>
    %218 = vector.extract_strided_slice %205 {offsets = [0, 256], sizes = [2, 128], strides = [1, 1]} : vector<2x512xf32> to vector<2x128xf32>
    %219 = math.tanh %218 : vector<2x128xf32>
    %220 = vector.extract_strided_slice %205 {offsets = [0, 384], sizes = [2, 128], strides = [1, 1]} : vector<2x512xf32> to vector<2x128xf32>
    %221 = arith.negf %220 : vector<2x128xf32>
    %222 = math.exp %221 : vector<2x128xf32>
    %cst_36 = arith.constant 1.000000e+00 : f32
    %223 = vector.broadcast %cst_36 : f32 to vector<2x128xf32>
    %224 = arith.addf %223, %222 : vector<2x128xf32>
    %225 = arith.divf %223, %224 : vector<2x128xf32>
    %226 = arith.mulf %217, %195 : vector<2x128xf32>
    %227 = arith.mulf %211, %219 : vector<2x128xf32>
    %228 = arith.addf %226, %227 : vector<2x128xf32>
    %229 = math.tanh %228 : vector<2x128xf32>
    %230 = arith.mulf %225, %229 : vector<2x128xf32>
    %231 = vector.extract_strided_slice %9 {offsets = [6, 0, 0], sizes = [1, 2, 512], strides = [1, 1, 1]} : vector<8x2x512xf32> to vector<1x2x512xf32>
    %232 = vector.shape_cast %231 : vector<1x2x512xf32> to vector<2x512xf32>
    %233 = vector.extract_strided_slice %9 {offsets = [1, 0, 0], sizes = [1, 2, 512], strides = [1, 1, 1]} : vector<8x2x512xf32> to vector<1x2x512xf32>
    %234 = vector.shape_cast %233 : vector<1x2x512xf32> to vector<2x512xf32>
    %235 = arith.select %30, %232, %234 : vector<2x512xi1>, vector<2x512xf32>
    %236 = arith.truncf %230 : vector<2x128xf32> to vector<2x128xbf16>
    %cst_37 = arith.constant dense<0.000000e+00> : vector<2x512xf32>
    %237 = tpu.matmul %236, %11, %cst_37 {dimension_numbers = #tpu.dot_dimension_numbers<[1], [0], [0], [1], [0, 0, 1, 1], [], []>} : vector<2x128xbf16>, vector<128x512xbf16>, vector<2x512xf32> -> vector<2x512xf32>
    %238 = arith.addf %235, %237 : vector<2x512xf32>
    %239 = vector.extract_strided_slice %238 {offsets = [0, 0], sizes = [2, 128], strides = [1, 1]} : vector<2x512xf32> to vector<2x128xf32>
    %240 = arith.negf %239 : vector<2x128xf32>
    %241 = math.exp %240 : vector<2x128xf32>
    %cst_38 = arith.constant 1.000000e+00 : f32
    %242 = vector.broadcast %cst_38 : f32 to vector<2x128xf32>
    %243 = arith.addf %242, %241 : vector<2x128xf32>
    %244 = arith.divf %242, %243 : vector<2x128xf32>
    %245 = vector.extract_strided_slice %238 {offsets = [0, 128], sizes = [2, 128], strides = [1, 1]} : vector<2x512xf32> to vector<2x128xf32>
    %246 = arith.negf %245 : vector<2x128xf32>
    %247 = math.exp %246 : vector<2x128xf32>
    %cst_39 = arith.constant 1.000000e+00 : f32
    %248 = vector.broadcast %cst_39 : f32 to vector<2x128xf32>
    %249 = arith.addf %248, %247 : vector<2x128xf32>
    %250 = arith.divf %248, %249 : vector<2x128xf32>
    %251 = vector.extract_strided_slice %238 {offsets = [0, 256], sizes = [2, 128], strides = [1, 1]} : vector<2x512xf32> to vector<2x128xf32>
    %252 = math.tanh %251 : vector<2x128xf32>
    %253 = vector.extract_strided_slice %238 {offsets = [0, 384], sizes = [2, 128], strides = [1, 1]} : vector<2x512xf32> to vector<2x128xf32>
    %254 = arith.negf %253 : vector<2x128xf32>
    %255 = math.exp %254 : vector<2x128xf32>
    %cst_40 = arith.constant 1.000000e+00 : f32
    %256 = vector.broadcast %cst_40 : f32 to vector<2x128xf32>
    %257 = arith.addf %256, %255 : vector<2x128xf32>
    %258 = arith.divf %256, %257 : vector<2x128xf32>
    %259 = arith.mulf %250, %228 : vector<2x128xf32>
    %260 = arith.mulf %244, %252 : vector<2x128xf32>
    %261 = arith.addf %259, %260 : vector<2x128xf32>
    %262 = math.tanh %261 : vector<2x128xf32>
    %263 = arith.mulf %258, %262 : vector<2x128xf32>
    %264 = vector.extract_strided_slice %9 {offsets = [7, 0, 0], sizes = [1, 2, 512], strides = [1, 1, 1]} : vector<8x2x512xf32> to vector<1x2x512xf32>
    %265 = vector.shape_cast %264 : vector<1x2x512xf32> to vector<2x512xf32>
    %266 = vector.extract_strided_slice %9 {offsets = [0, 0, 0], sizes = [1, 2, 512], strides = [1, 1, 1]} : vector<8x2x512xf32> to vector<1x2x512xf32>
    %267 = vector.shape_cast %266 : vector<1x2x512xf32> to vector<2x512xf32>
    %268 = arith.select %30, %265, %267 : vector<2x512xi1>, vector<2x512xf32>
    %269 = arith.truncf %263 : vector<2x128xf32> to vector<2x128xbf16>
    %cst_41 = arith.constant dense<0.000000e+00> : vector<2x512xf32>
    %270 = tpu.matmul %269, %11, %cst_41 {dimension_numbers = #tpu.dot_dimension_numbers<[1], [0], [0], [1], [0, 0, 1, 1], [], []>} : vector<2x128xbf16>, vector<128x512xbf16>, vector<2x512xf32> -> vector<2x512xf32>
    %271 = arith.addf %268, %270 : vector<2x512xf32>
    %272 = vector.extract_strided_slice %271 {offsets = [0, 0], sizes = [2, 128], strides = [1, 1]} : vector<2x512xf32> to vector<2x128xf32>
    %273 = arith.negf %272 : vector<2x128xf32>
    %274 = math.exp %273 : vector<2x128xf32>
    %cst_42 = arith.constant 1.000000e+00 : f32
    %275 = vector.broadcast %cst_42 : f32 to vector<2x128xf32>
    %276 = arith.addf %275, %274 : vector<2x128xf32>
    %277 = arith.divf %275, %276 : vector<2x128xf32>
    %278 = vector.extract_strided_slice %271 {offsets = [0, 128], sizes = [2, 128], strides = [1, 1]} : vector<2x512xf32> to vector<2x128xf32>
    %279 = arith.negf %278 : vector<2x128xf32>
    %280 = math.exp %279 : vector<2x128xf32>
    %cst_43 = arith.constant 1.000000e+00 : f32
    %281 = vector.broadcast %cst_43 : f32 to vector<2x128xf32>
    %282 = arith.addf %281, %280 : vector<2x128xf32>
    %283 = arith.divf %281, %282 : vector<2x128xf32>
    %284 = vector.extract_strided_slice %271 {offsets = [0, 256], sizes = [2, 128], strides = [1, 1]} : vector<2x512xf32> to vector<2x128xf32>
    %285 = math.tanh %284 : vector<2x128xf32>
    %286 = vector.extract_strided_slice %271 {offsets = [0, 384], sizes = [2, 128], strides = [1, 1]} : vector<2x512xf32> to vector<2x128xf32>
    %287 = arith.negf %286 : vector<2x128xf32>
    %288 = math.exp %287 : vector<2x128xf32>
    %cst_44 = arith.constant 1.000000e+00 : f32
    %289 = vector.broadcast %cst_44 : f32 to vector<2x128xf32>
    %290 = arith.addf %289, %288 : vector<2x128xf32>
    %291 = arith.divf %289, %290 : vector<2x128xf32>
    %292 = arith.mulf %283, %261 : vector<2x128xf32>
    %293 = arith.mulf %277, %285 : vector<2x128xf32>
    %294 = arith.addf %292, %293 : vector<2x128xf32>
    %295 = math.tanh %294 : vector<2x128xf32>
    %296 = arith.mulf %291, %295 : vector<2x128xf32>
    %297 = vector.shape_cast %65 : vector<2x128xf32> to vector<1x2x128xf32>
    %298 = vector.shape_cast %98 : vector<2x128xf32> to vector<1x2x128xf32>
    %299 = vector.shape_cast %131 : vector<2x128xf32> to vector<1x2x128xf32>
    %300 = vector.shape_cast %164 : vector<2x128xf32> to vector<1x2x128xf32>
    %301 = vector.shape_cast %197 : vector<2x128xf32> to vector<1x2x128xf32>
    %302 = vector.shape_cast %230 : vector<2x128xf32> to vector<1x2x128xf32>
    %303 = vector.shape_cast %263 : vector<2x128xf32> to vector<1x2x128xf32>
    %304 = vector.shape_cast %296 : vector<2x128xf32> to vector<1x2x128xf32>
    %305 = tpu.concatenate %297, %298, %299, %300, %301, %302, %303, %304 in 0 : vector<1x2x128xf32>, vector<1x2x128xf32>, vector<1x2x128xf32>, vector<1x2x128xf32>, vector<1x2x128xf32>, vector<1x2x128xf32>, vector<1x2x128xf32>, vector<1x2x128xf32> -> vector<8x2x128xf32>
    %306 = vector.shape_cast %296 : vector<2x128xf32> to vector<1x2x128xf32>
    %307 = vector.shape_cast %263 : vector<2x128xf32> to vector<1x2x128xf32>
    %308 = vector.shape_cast %230 : vector<2x128xf32> to vector<1x2x128xf32>
    %309 = vector.shape_cast %197 : vector<2x128xf32> to vector<1x2x128xf32>
    %310 = vector.shape_cast %164 : vector<2x128xf32> to vector<1x2x128xf32>
    %311 = vector.shape_cast %131 : vector<2x128xf32> to vector<1x2x128xf32>
    %312 = vector.shape_cast %98 : vector<2x128xf32> to vector<1x2x128xf32>
    %313 = vector.shape_cast %65 : vector<2x128xf32> to vector<1x2x128xf32>
    %314 = tpu.concatenate %306, %307, %308, %309, %310, %311, %312, %313 in 0 : vector<1x2x128xf32>, vector<1x2x128xf32>, vector<1x2x128xf32>, vector<1x2x128xf32>, vector<1x2x128xf32>, vector<1x2x128xf32>, vector<1x2x128xf32>, vector<1x2x128xf32> -> vector<8x2x128xf32>
    %315 = vector.extract_strided_slice %305 {offsets = [0, 0, 0], sizes = [8, 2, 32], strides = [1, 1, 1]} : vector<8x2x128xf32> to vector<8x2x32xf32>
    %316 = vector.extract_strided_slice %314 {offsets = [0, 0, 64], sizes = [8, 2, 32], strides = [1, 1, 1]} : vector<8x2x128xf32> to vector<8x2x32xf32>
    %317 = tpu.concatenate %315, %316 in 2 : vector<8x2x32xf32>, vector<8x2x32xf32> -> vector<8x2x64xf32>
    %cst_45 = arith.constant dense<0.000000e+00> : vector<8x2xf32>
    %318 = vector.multi_reduction <add>, %317, %cst_45 [2] : vector<8x2x64xf32> to vector<8x2xf32>
    %319 = vector.shape_cast %318 : vector<8x2xf32> to vector<8x2x1xf32>
    %cst_46 = arith.constant 6.400000e+01 : f32
    %320 = vector.broadcast %cst_46 : f32 to vector<8x2x1xf32>
    %321 = arith.divf %319, %320 : vector<8x2x1xf32>
    %322 = vector.broadcast %321 : vector<8x2x1xf32> to vector<8x2x64xf32>
    %323 = arith.subf %317, %322 : vector<8x2x64xf32>
    %324 = arith.mulf %323, %323 : vector<8x2x64xf32>
    %cst_47 = arith.constant dense<0.000000e+00> : vector<8x2xf32>
    %325 = vector.multi_reduction <add>, %324, %cst_47 [2] : vector<8x2x64xf32> to vector<8x2xf32>
    %326 = vector.shape_cast %325 : vector<8x2xf32> to vector<8x2x1xf32>
    %cst_48 = arith.constant 6.400000e+01 : f32
    %327 = vector.broadcast %cst_48 : f32 to vector<8x2x1xf32>
    %328 = arith.divf %326, %327 : vector<8x2x1xf32>
    %329 = vector.broadcast %321 : vector<8x2x1xf32> to vector<8x2x64xf32>
    %330 = arith.subf %317, %329 : vector<8x2x64xf32>
    %cst_49 = arith.constant 9.99999974E-6 : f32
    %331 = vector.broadcast %cst_49 : f32 to vector<8x2x1xf32>
    %332 = arith.addf %328, %331 : vector<8x2x1xf32>
    %333 = math.rsqrt %332 : vector<8x2x1xf32>
    %334 = vector.broadcast %333 : vector<8x2x1xf32> to vector<8x2x64xf32>
    %335 = arith.mulf %330, %334 : vector<8x2x64xf32>
    %c0_50 = arith.constant 0 : index
    %c0_51 = arith.constant 0 : index
    %c0_52 = arith.constant 0 : index
    %336 = vector.load %arg4[%c0_50, %c0_51, %c0_52] : memref<1x1x64xf32, #tpu.memory_space<vmem>>, vector<1x1x64xf32>
    %337 = vector.broadcast %336 : vector<1x1x64xf32> to vector<8x2x64xf32>
    %338 = arith.mulf %335, %337 : vector<8x2x64xf32>
    %c0_53 = arith.constant 0 : index
    %c0_54 = arith.constant 0 : index
    %c0_55 = arith.constant 0 : index
    %339 = vector.load %arg5[%c0_53, %c0_54, %c0_55] : memref<1x1x64xf32, #tpu.memory_space<vmem>>, vector<1x1x64xf32>
    %340 = vector.broadcast %339 : vector<1x1x64xf32> to vector<8x2x64xf32>
    %341 = arith.addf %338, %340 : vector<8x2x64xf32>
    %342 = vector.shape_cast %341 : vector<8x2x64xf32> to vector<16x64xf32>
    %343 = arith.truncf %342 : vector<16x64xf32> to vector<16x64xbf16>
    %c0_56 = arith.constant 0 : index
    %c0_57 = arith.constant 0 : index
    %344 = vector.load %arg6[%c0_56, %c0_57] : memref<64x512xf32, #tpu.memory_space<vmem>>, vector<64x512xf32>
    %345 = arith.truncf %344 : vector<64x512xf32> to vector<64x512xbf16>
    %cst_58 = arith.constant dense<0.000000e+00> : vector<16x512xf32>
    %346 = tpu.matmul %343, %345, %cst_58 {dimension_numbers = #tpu.dot_dimension_numbers<[1], [0], [0], [1], [0, 0, 1, 1], [], []>} : vector<16x64xbf16>, vector<64x512xbf16>, vector<16x512xf32> -> vector<16x512xf32>
    %c0_59 = arith.constant 0 : index
    %c0_60 = arith.constant 0 : index
    %347 = vector.load %arg8[%c0_59, %c0_60] : memref<1x512xf32, #tpu.memory_space<vmem>>, vector<1x512xf32>
    %348 = vector.broadcast %347 : vector<1x512xf32> to vector<16x512xf32>
    %349 = arith.addf %346, %348 : vector<16x512xf32>
    %350 = vector.shape_cast %349 : vector<16x512xf32> to vector<8x2x512xf32>
    %c0_61 = arith.constant 0 : index
    %c0_62 = arith.constant 0 : index
    %351 = vector.load %arg7[%c0_61, %c0_62] : memref<128x512xf32, #tpu.memory_space<vmem>>, vector<128x512xf32>
    %352 = arith.truncf %351 : vector<128x512xf32> to vector<128x512xbf16>
    %353 = tpu.iota {dimensions = array<i32: 1>} : vector<2x512xi32>
    %c128_i32_63 = arith.constant 128 : i32
    %c0_i32_64 = arith.constant 0 : i32
    %354 = arith.cmpi eq, %c128_i32_63, %c0_i32_64 : i32
    %c1_i32_65 = arith.constant 1 : i32
    %355 = arith.select %354, %c1_i32_65, %c128_i32_63 : i32
    %356 = vector.broadcast %355 : i32 to vector<2x512xi32>
    %357 = arith.remsi %353, %356 : vector<2x512xi32>
    %c0_i32_66 = arith.constant 0 : i32
    %358 = vector.broadcast %c0_i32_66 : i32 to vector<2x512xi32>
    %359 = arith.cmpi ne, %357, %358 : vector<2x512xi32>
    %c0_i32_67 = arith.constant 0 : i32
    %360 = vector.broadcast %c0_i32_67 : i32 to vector<2x512xi32>
    %361 = arith.cmpi slt, %357, %360 : vector<2x512xi32>
    %c0_i32_68 = arith.constant 0 : i32
    %362 = arith.cmpi slt, %355, %c0_i32_68 : i32
    %363 = vector.broadcast %362 : i1 to vector<2x512xi1>
    %364 = vector.broadcast %363 : vector<2x512xi1> to vector<2x512xi1>
    %365 = arith.xori %361, %364 : vector<2x512xi1>
    %366 = arith.andi %365, %359 : vector<2x512xi1>
    %367 = vector.broadcast %355 : i32 to vector<2x512xi32>
    %368 = arith.addi %357, %367 : vector<2x512xi32>
    %369 = arith.select %366, %368, %357 : vector<2x512xi1>, vector<2x512xi32>
    %c64_i32_69 = arith.constant 64 : i32
    %370 = vector.broadcast %c64_i32_69 : i32 to vector<2x512xi32>
    %371 = arith.cmpi slt, %369, %370 : vector<2x512xi32>
    %cst_70 = arith.constant 0.000000e+00 : f32
    %372 = vector.broadcast %cst_70 : f32 to vector<2x128xf32>
    %cst_71 = arith.constant 0.000000e+00 : f32
    %373 = vector.broadcast %cst_71 : f32 to vector<2x128xf32>
    %374 = vector.extract_strided_slice %350 {offsets = [0, 0, 0], sizes = [1, 2, 512], strides = [1, 1, 1]} : vector<8x2x512xf32> to vector<1x2x512xf32>
    %375 = vector.shape_cast %374 : vector<1x2x512xf32> to vector<2x512xf32>
    %376 = vector.extract_strided_slice %350 {offsets = [7, 0, 0], sizes = [1, 2, 512], strides = [1, 1, 1]} : vector<8x2x512xf32> to vector<1x2x512xf32>
    %377 = vector.shape_cast %376 : vector<1x2x512xf32> to vector<2x512xf32>
    %378 = arith.select %371, %375, %377 : vector<2x512xi1>, vector<2x512xf32>
    %379 = arith.truncf %372 : vector<2x128xf32> to vector<2x128xbf16>
    %cst_72 = arith.constant dense<0.000000e+00> : vector<2x512xf32>
    %380 = tpu.matmul %379, %352, %cst_72 {dimension_numbers = #tpu.dot_dimension_numbers<[1], [0], [0], [1], [0, 0, 1, 1], [], []>} : vector<2x128xbf16>, vector<128x512xbf16>, vector<2x512xf32> -> vector<2x512xf32>
    %381 = arith.addf %378, %380 : vector<2x512xf32>
    %382 = vector.extract_strided_slice %381 {offsets = [0, 0], sizes = [2, 128], strides = [1, 1]} : vector<2x512xf32> to vector<2x128xf32>
    %383 = arith.negf %382 : vector<2x128xf32>
    %384 = math.exp %383 : vector<2x128xf32>
    %cst_73 = arith.constant 1.000000e+00 : f32
    %385 = vector.broadcast %cst_73 : f32 to vector<2x128xf32>
    %386 = arith.addf %385, %384 : vector<2x128xf32>
    %387 = arith.divf %385, %386 : vector<2x128xf32>
    %388 = vector.extract_strided_slice %381 {offsets = [0, 128], sizes = [2, 128], strides = [1, 1]} : vector<2x512xf32> to vector<2x128xf32>
    %389 = arith.negf %388 : vector<2x128xf32>
    %390 = math.exp %389 : vector<2x128xf32>
    %cst_74 = arith.constant 1.000000e+00 : f32
    %391 = vector.broadcast %cst_74 : f32 to vector<2x128xf32>
    %392 = arith.addf %391, %390 : vector<2x128xf32>
    %393 = arith.divf %391, %392 : vector<2x128xf32>
    %394 = vector.extract_strided_slice %381 {offsets = [0, 256], sizes = [2, 128], strides = [1, 1]} : vector<2x512xf32> to vector<2x128xf32>
    %395 = math.tanh %394 : vector<2x128xf32>
    %396 = vector.extract_strided_slice %381 {offsets = [0, 384], sizes = [2, 128], strides = [1, 1]} : vector<2x512xf32> to vector<2x128xf32>
    %397 = arith.negf %396 : vector<2x128xf32>
    %398 = math.exp %397 : vector<2x128xf32>
    %cst_75 = arith.constant 1.000000e+00 : f32
    %399 = vector.broadcast %cst_75 : f32 to vector<2x128xf32>
    %400 = arith.addf %399, %398 : vector<2x128xf32>
    %401 = arith.divf %399, %400 : vector<2x128xf32>
    %402 = arith.mulf %393, %373 : vector<2x128xf32>
    %403 = arith.mulf %387, %395 : vector<2x128xf32>
    %404 = arith.addf %402, %403 : vector<2x128xf32>
    %405 = math.tanh %404 : vector<2x128xf32>
    %406 = arith.mulf %401, %405 : vector<2x128xf32>
    %407 = vector.extract_strided_slice %350 {offsets = [1, 0, 0], sizes = [1, 2, 512], strides = [1, 1, 1]} : vector<8x2x512xf32> to vector<1x2x512xf32>
    %408 = vector.shape_cast %407 : vector<1x2x512xf32> to vector<2x512xf32>
    %409 = vector.extract_strided_slice %350 {offsets = [6, 0, 0], sizes = [1, 2, 512], strides = [1, 1, 1]} : vector<8x2x512xf32> to vector<1x2x512xf32>
    %410 = vector.shape_cast %409 : vector<1x2x512xf32> to vector<2x512xf32>
    %411 = arith.select %371, %408, %410 : vector<2x512xi1>, vector<2x512xf32>
    %412 = arith.truncf %406 : vector<2x128xf32> to vector<2x128xbf16>
    %cst_76 = arith.constant dense<0.000000e+00> : vector<2x512xf32>
    %413 = tpu.matmul %412, %352, %cst_76 {dimension_numbers = #tpu.dot_dimension_numbers<[1], [0], [0], [1], [0, 0, 1, 1], [], []>} : vector<2x128xbf16>, vector<128x512xbf16>, vector<2x512xf32> -> vector<2x512xf32>
    %414 = arith.addf %411, %413 : vector<2x512xf32>
    %415 = vector.extract_strided_slice %414 {offsets = [0, 0], sizes = [2, 128], strides = [1, 1]} : vector<2x512xf32> to vector<2x128xf32>
    %416 = arith.negf %415 : vector<2x128xf32>
    %417 = math.exp %416 : vector<2x128xf32>
    %cst_77 = arith.constant 1.000000e+00 : f32
    %418 = vector.broadcast %cst_77 : f32 to vector<2x128xf32>
    %419 = arith.addf %418, %417 : vector<2x128xf32>
    %420 = arith.divf %418, %419 : vector<2x128xf32>
    %421 = vector.extract_strided_slice %414 {offsets = [0, 128], sizes = [2, 128], strides = [1, 1]} : vector<2x512xf32> to vector<2x128xf32>
    %422 = arith.negf %421 : vector<2x128xf32>
    %423 = math.exp %422 : vector<2x128xf32>
    %cst_78 = arith.constant 1.000000e+00 : f32
    %424 = vector.broadcast %cst_78 : f32 to vector<2x128xf32>
    %425 = arith.addf %424, %423 : vector<2x128xf32>
    %426 = arith.divf %424, %425 : vector<2x128xf32>
    %427 = vector.extract_strided_slice %414 {offsets = [0, 256], sizes = [2, 128], strides = [1, 1]} : vector<2x512xf32> to vector<2x128xf32>
    %428 = math.tanh %427 : vector<2x128xf32>
    %429 = vector.extract_strided_slice %414 {offsets = [0, 384], sizes = [2, 128], strides = [1, 1]} : vector<2x512xf32> to vector<2x128xf32>
    %430 = arith.negf %429 : vector<2x128xf32>
    %431 = math.exp %430 : vector<2x128xf32>
    %cst_79 = arith.constant 1.000000e+00 : f32
    %432 = vector.broadcast %cst_79 : f32 to vector<2x128xf32>
    %433 = arith.addf %432, %431 : vector<2x128xf32>
    %434 = arith.divf %432, %433 : vector<2x128xf32>
    %435 = arith.mulf %426, %404 : vector<2x128xf32>
    %436 = arith.mulf %420, %428 : vector<2x128xf32>
    %437 = arith.addf %435, %436 : vector<2x128xf32>
    %438 = math.tanh %437 : vector<2x128xf32>
    %439 = arith.mulf %434, %438 : vector<2x128xf32>
    %440 = vector.extract_strided_slice %350 {offsets = [2, 0, 0], sizes = [1, 2, 512], strides = [1, 1, 1]} : vector<8x2x512xf32> to vector<1x2x512xf32>
    %441 = vector.shape_cast %440 : vector<1x2x512xf32> to vector<2x512xf32>
    %442 = vector.extract_strided_slice %350 {offsets = [5, 0, 0], sizes = [1, 2, 512], strides = [1, 1, 1]} : vector<8x2x512xf32> to vector<1x2x512xf32>
    %443 = vector.shape_cast %442 : vector<1x2x512xf32> to vector<2x512xf32>
    %444 = arith.select %371, %441, %443 : vector<2x512xi1>, vector<2x512xf32>
    %445 = arith.truncf %439 : vector<2x128xf32> to vector<2x128xbf16>
    %cst_80 = arith.constant dense<0.000000e+00> : vector<2x512xf32>
    %446 = tpu.matmul %445, %352, %cst_80 {dimension_numbers = #tpu.dot_dimension_numbers<[1], [0], [0], [1], [0, 0, 1, 1], [], []>} : vector<2x128xbf16>, vector<128x512xbf16>, vector<2x512xf32> -> vector<2x512xf32>
    %447 = arith.addf %444, %446 : vector<2x512xf32>
    %448 = vector.extract_strided_slice %447 {offsets = [0, 0], sizes = [2, 128], strides = [1, 1]} : vector<2x512xf32> to vector<2x128xf32>
    %449 = arith.negf %448 : vector<2x128xf32>
    %450 = math.exp %449 : vector<2x128xf32>
    %cst_81 = arith.constant 1.000000e+00 : f32
    %451 = vector.broadcast %cst_81 : f32 to vector<2x128xf32>
    %452 = arith.addf %451, %450 : vector<2x128xf32>
    %453 = arith.divf %451, %452 : vector<2x128xf32>
    %454 = vector.extract_strided_slice %447 {offsets = [0, 128], sizes = [2, 128], strides = [1, 1]} : vector<2x512xf32> to vector<2x128xf32>
    %455 = arith.negf %454 : vector<2x128xf32>
    %456 = math.exp %455 : vector<2x128xf32>
    %cst_82 = arith.constant 1.000000e+00 : f32
    %457 = vector.broadcast %cst_82 : f32 to vector<2x128xf32>
    %458 = arith.addf %457, %456 : vector<2x128xf32>
    %459 = arith.divf %457, %458 : vector<2x128xf32>
    %460 = vector.extract_strided_slice %447 {offsets = [0, 256], sizes = [2, 128], strides = [1, 1]} : vector<2x512xf32> to vector<2x128xf32>
    %461 = math.tanh %460 : vector<2x128xf32>
    %462 = vector.extract_strided_slice %447 {offsets = [0, 384], sizes = [2, 128], strides = [1, 1]} : vector<2x512xf32> to vector<2x128xf32>
    %463 = arith.negf %462 : vector<2x128xf32>
    %464 = math.exp %463 : vector<2x128xf32>
    %cst_83 = arith.constant 1.000000e+00 : f32
    %465 = vector.broadcast %cst_83 : f32 to vector<2x128xf32>
    %466 = arith.addf %465, %464 : vector<2x128xf32>
    %467 = arith.divf %465, %466 : vector<2x128xf32>
    %468 = arith.mulf %459, %437 : vector<2x128xf32>
    %469 = arith.mulf %453, %461 : vector<2x128xf32>
    %470 = arith.addf %468, %469 : vector<2x128xf32>
    %471 = math.tanh %470 : vector<2x128xf32>
    %472 = arith.mulf %467, %471 : vector<2x128xf32>
    %473 = vector.extract_strided_slice %350 {offsets = [3, 0, 0], sizes = [1, 2, 512], strides = [1, 1, 1]} : vector<8x2x512xf32> to vector<1x2x512xf32>
    %474 = vector.shape_cast %473 : vector<1x2x512xf32> to vector<2x512xf32>
    %475 = vector.extract_strided_slice %350 {offsets = [4, 0, 0], sizes = [1, 2, 512], strides = [1, 1, 1]} : vector<8x2x512xf32> to vector<1x2x512xf32>
    %476 = vector.shape_cast %475 : vector<1x2x512xf32> to vector<2x512xf32>
    %477 = arith.select %371, %474, %476 : vector<2x512xi1>, vector<2x512xf32>
    %478 = arith.truncf %472 : vector<2x128xf32> to vector<2x128xbf16>
    %cst_84 = arith.constant dense<0.000000e+00> : vector<2x512xf32>
    %479 = tpu.matmul %478, %352, %cst_84 {dimension_numbers = #tpu.dot_dimension_numbers<[1], [0], [0], [1], [0, 0, 1, 1], [], []>} : vector<2x128xbf16>, vector<128x512xbf16>, vector<2x512xf32> -> vector<2x512xf32>
    %480 = arith.addf %477, %479 : vector<2x512xf32>
    %481 = vector.extract_strided_slice %480 {offsets = [0, 0], sizes = [2, 128], strides = [1, 1]} : vector<2x512xf32> to vector<2x128xf32>
    %482 = arith.negf %481 : vector<2x128xf32>
    %483 = math.exp %482 : vector<2x128xf32>
    %cst_85 = arith.constant 1.000000e+00 : f32
    %484 = vector.broadcast %cst_85 : f32 to vector<2x128xf32>
    %485 = arith.addf %484, %483 : vector<2x128xf32>
    %486 = arith.divf %484, %485 : vector<2x128xf32>
    %487 = vector.extract_strided_slice %480 {offsets = [0, 128], sizes = [2, 128], strides = [1, 1]} : vector<2x512xf32> to vector<2x128xf32>
    %488 = arith.negf %487 : vector<2x128xf32>
    %489 = math.exp %488 : vector<2x128xf32>
    %cst_86 = arith.constant 1.000000e+00 : f32
    %490 = vector.broadcast %cst_86 : f32 to vector<2x128xf32>
    %491 = arith.addf %490, %489 : vector<2x128xf32>
    %492 = arith.divf %490, %491 : vector<2x128xf32>
    %493 = vector.extract_strided_slice %480 {offsets = [0, 256], sizes = [2, 128], strides = [1, 1]} : vector<2x512xf32> to vector<2x128xf32>
    %494 = math.tanh %493 : vector<2x128xf32>
    %495 = vector.extract_strided_slice %480 {offsets = [0, 384], sizes = [2, 128], strides = [1, 1]} : vector<2x512xf32> to vector<2x128xf32>
    %496 = arith.negf %495 : vector<2x128xf32>
    %497 = math.exp %496 : vector<2x128xf32>
    %cst_87 = arith.constant 1.000000e+00 : f32
    %498 = vector.broadcast %cst_87 : f32 to vector<2x128xf32>
    %499 = arith.addf %498, %497 : vector<2x128xf32>
    %500 = arith.divf %498, %499 : vector<2x128xf32>
    %501 = arith.mulf %492, %470 : vector<2x128xf32>
    %502 = arith.mulf %486, %494 : vector<2x128xf32>
    %503 = arith.addf %501, %502 : vector<2x128xf32>
    %504 = math.tanh %503 : vector<2x128xf32>
    %505 = arith.mulf %500, %504 : vector<2x128xf32>
    %506 = vector.extract_strided_slice %350 {offsets = [4, 0, 0], sizes = [1, 2, 512], strides = [1, 1, 1]} : vector<8x2x512xf32> to vector<1x2x512xf32>
    %507 = vector.shape_cast %506 : vector<1x2x512xf32> to vector<2x512xf32>
    %508 = vector.extract_strided_slice %350 {offsets = [3, 0, 0], sizes = [1, 2, 512], strides = [1, 1, 1]} : vector<8x2x512xf32> to vector<1x2x512xf32>
    %509 = vector.shape_cast %508 : vector<1x2x512xf32> to vector<2x512xf32>
    %510 = arith.select %371, %507, %509 : vector<2x512xi1>, vector<2x512xf32>
    %511 = arith.truncf %505 : vector<2x128xf32> to vector<2x128xbf16>
    %cst_88 = arith.constant dense<0.000000e+00> : vector<2x512xf32>
    %512 = tpu.matmul %511, %352, %cst_88 {dimension_numbers = #tpu.dot_dimension_numbers<[1], [0], [0], [1], [0, 0, 1, 1], [], []>} : vector<2x128xbf16>, vector<128x512xbf16>, vector<2x512xf32> -> vector<2x512xf32>
    %513 = arith.addf %510, %512 : vector<2x512xf32>
    %514 = vector.extract_strided_slice %513 {offsets = [0, 0], sizes = [2, 128], strides = [1, 1]} : vector<2x512xf32> to vector<2x128xf32>
    %515 = arith.negf %514 : vector<2x128xf32>
    %516 = math.exp %515 : vector<2x128xf32>
    %cst_89 = arith.constant 1.000000e+00 : f32
    %517 = vector.broadcast %cst_89 : f32 to vector<2x128xf32>
    %518 = arith.addf %517, %516 : vector<2x128xf32>
    %519 = arith.divf %517, %518 : vector<2x128xf32>
    %520 = vector.extract_strided_slice %513 {offsets = [0, 128], sizes = [2, 128], strides = [1, 1]} : vector<2x512xf32> to vector<2x128xf32>
    %521 = arith.negf %520 : vector<2x128xf32>
    %522 = math.exp %521 : vector<2x128xf32>
    %cst_90 = arith.constant 1.000000e+00 : f32
    %523 = vector.broadcast %cst_90 : f32 to vector<2x128xf32>
    %524 = arith.addf %523, %522 : vector<2x128xf32>
    %525 = arith.divf %523, %524 : vector<2x128xf32>
    %526 = vector.extract_strided_slice %513 {offsets = [0, 256], sizes = [2, 128], strides = [1, 1]} : vector<2x512xf32> to vector<2x128xf32>
    %527 = math.tanh %526 : vector<2x128xf32>
    %528 = vector.extract_strided_slice %513 {offsets = [0, 384], sizes = [2, 128], strides = [1, 1]} : vector<2x512xf32> to vector<2x128xf32>
    %529 = arith.negf %528 : vector<2x128xf32>
    %530 = math.exp %529 : vector<2x128xf32>
    %cst_91 = arith.constant 1.000000e+00 : f32
    %531 = vector.broadcast %cst_91 : f32 to vector<2x128xf32>
    %532 = arith.addf %531, %530 : vector<2x128xf32>
    %533 = arith.divf %531, %532 : vector<2x128xf32>
    %534 = arith.mulf %525, %503 : vector<2x128xf32>
    %535 = arith.mulf %519, %527 : vector<2x128xf32>
    %536 = arith.addf %534, %535 : vector<2x128xf32>
    %537 = math.tanh %536 : vector<2x128xf32>
    %538 = arith.mulf %533, %537 : vector<2x128xf32>
    %539 = vector.extract_strided_slice %350 {offsets = [5, 0, 0], sizes = [1, 2, 512], strides = [1, 1, 1]} : vector<8x2x512xf32> to vector<1x2x512xf32>
    %540 = vector.shape_cast %539 : vector<1x2x512xf32> to vector<2x512xf32>
    %541 = vector.extract_strided_slice %350 {offsets = [2, 0, 0], sizes = [1, 2, 512], strides = [1, 1, 1]} : vector<8x2x512xf32> to vector<1x2x512xf32>
    %542 = vector.shape_cast %541 : vector<1x2x512xf32> to vector<2x512xf32>
    %543 = arith.select %371, %540, %542 : vector<2x512xi1>, vector<2x512xf32>
    %544 = arith.truncf %538 : vector<2x128xf32> to vector<2x128xbf16>
    %cst_92 = arith.constant dense<0.000000e+00> : vector<2x512xf32>
    %545 = tpu.matmul %544, %352, %cst_92 {dimension_numbers = #tpu.dot_dimension_numbers<[1], [0], [0], [1], [0, 0, 1, 1], [], []>} : vector<2x128xbf16>, vector<128x512xbf16>, vector<2x512xf32> -> vector<2x512xf32>
    %546 = arith.addf %543, %545 : vector<2x512xf32>
    %547 = vector.extract_strided_slice %546 {offsets = [0, 0], sizes = [2, 128], strides = [1, 1]} : vector<2x512xf32> to vector<2x128xf32>
    %548 = arith.negf %547 : vector<2x128xf32>
    %549 = math.exp %548 : vector<2x128xf32>
    %cst_93 = arith.constant 1.000000e+00 : f32
    %550 = vector.broadcast %cst_93 : f32 to vector<2x128xf32>
    %551 = arith.addf %550, %549 : vector<2x128xf32>
    %552 = arith.divf %550, %551 : vector<2x128xf32>
    %553 = vector.extract_strided_slice %546 {offsets = [0, 128], sizes = [2, 128], strides = [1, 1]} : vector<2x512xf32> to vector<2x128xf32>
    %554 = arith.negf %553 : vector<2x128xf32>
    %555 = math.exp %554 : vector<2x128xf32>
    %cst_94 = arith.constant 1.000000e+00 : f32
    %556 = vector.broadcast %cst_94 : f32 to vector<2x128xf32>
    %557 = arith.addf %556, %555 : vector<2x128xf32>
    %558 = arith.divf %556, %557 : vector<2x128xf32>
    %559 = vector.extract_strided_slice %546 {offsets = [0, 256], sizes = [2, 128], strides = [1, 1]} : vector<2x512xf32> to vector<2x128xf32>
    %560 = math.tanh %559 : vector<2x128xf32>
    %561 = vector.extract_strided_slice %546 {offsets = [0, 384], sizes = [2, 128], strides = [1, 1]} : vector<2x512xf32> to vector<2x128xf32>
    %562 = arith.negf %561 : vector<2x128xf32>
    %563 = math.exp %562 : vector<2x128xf32>
    %cst_95 = arith.constant 1.000000e+00 : f32
    %564 = vector.broadcast %cst_95 : f32 to vector<2x128xf32>
    %565 = arith.addf %564, %563 : vector<2x128xf32>
    %566 = arith.divf %564, %565 : vector<2x128xf32>
    %567 = arith.mulf %558, %536 : vector<2x128xf32>
    %568 = arith.mulf %552, %560 : vector<2x128xf32>
    %569 = arith.addf %567, %568 : vector<2x128xf32>
    %570 = math.tanh %569 : vector<2x128xf32>
    %571 = arith.mulf %566, %570 : vector<2x128xf32>
    %572 = vector.extract_strided_slice %350 {offsets = [6, 0, 0], sizes = [1, 2, 512], strides = [1, 1, 1]} : vector<8x2x512xf32> to vector<1x2x512xf32>
    %573 = vector.shape_cast %572 : vector<1x2x512xf32> to vector<2x512xf32>
    %574 = vector.extract_strided_slice %350 {offsets = [1, 0, 0], sizes = [1, 2, 512], strides = [1, 1, 1]} : vector<8x2x512xf32> to vector<1x2x512xf32>
    %575 = vector.shape_cast %574 : vector<1x2x512xf32> to vector<2x512xf32>
    %576 = arith.select %371, %573, %575 : vector<2x512xi1>, vector<2x512xf32>
    %577 = arith.truncf %571 : vector<2x128xf32> to vector<2x128xbf16>
    %cst_96 = arith.constant dense<0.000000e+00> : vector<2x512xf32>
    %578 = tpu.matmul %577, %352, %cst_96 {dimension_numbers = #tpu.dot_dimension_numbers<[1], [0], [0], [1], [0, 0, 1, 1], [], []>} : vector<2x128xbf16>, vector<128x512xbf16>, vector<2x512xf32> -> vector<2x512xf32>
    %579 = arith.addf %576, %578 : vector<2x512xf32>
    %580 = vector.extract_strided_slice %579 {offsets = [0, 0], sizes = [2, 128], strides = [1, 1]} : vector<2x512xf32> to vector<2x128xf32>
    %581 = arith.negf %580 : vector<2x128xf32>
    %582 = math.exp %581 : vector<2x128xf32>
    %cst_97 = arith.constant 1.000000e+00 : f32
    %583 = vector.broadcast %cst_97 : f32 to vector<2x128xf32>
    %584 = arith.addf %583, %582 : vector<2x128xf32>
    %585 = arith.divf %583, %584 : vector<2x128xf32>
    %586 = vector.extract_strided_slice %579 {offsets = [0, 128], sizes = [2, 128], strides = [1, 1]} : vector<2x512xf32> to vector<2x128xf32>
    %587 = arith.negf %586 : vector<2x128xf32>
    %588 = math.exp %587 : vector<2x128xf32>
    %cst_98 = arith.constant 1.000000e+00 : f32
    %589 = vector.broadcast %cst_98 : f32 to vector<2x128xf32>
    %590 = arith.addf %589, %588 : vector<2x128xf32>
    %591 = arith.divf %589, %590 : vector<2x128xf32>
    %592 = vector.extract_strided_slice %579 {offsets = [0, 256], sizes = [2, 128], strides = [1, 1]} : vector<2x512xf32> to vector<2x128xf32>
    %593 = math.tanh %592 : vector<2x128xf32>
    %594 = vector.extract_strided_slice %579 {offsets = [0, 384], sizes = [2, 128], strides = [1, 1]} : vector<2x512xf32> to vector<2x128xf32>
    %595 = arith.negf %594 : vector<2x128xf32>
    %596 = math.exp %595 : vector<2x128xf32>
    %cst_99 = arith.constant 1.000000e+00 : f32
    %597 = vector.broadcast %cst_99 : f32 to vector<2x128xf32>
    %598 = arith.addf %597, %596 : vector<2x128xf32>
    %599 = arith.divf %597, %598 : vector<2x128xf32>
    %600 = arith.mulf %591, %569 : vector<2x128xf32>
    %601 = arith.mulf %585, %593 : vector<2x128xf32>
    %602 = arith.addf %600, %601 : vector<2x128xf32>
    %603 = math.tanh %602 : vector<2x128xf32>
    %604 = arith.mulf %599, %603 : vector<2x128xf32>
    %605 = vector.extract_strided_slice %350 {offsets = [7, 0, 0], sizes = [1, 2, 512], strides = [1, 1, 1]} : vector<8x2x512xf32> to vector<1x2x512xf32>
    %606 = vector.shape_cast %605 : vector<1x2x512xf32> to vector<2x512xf32>
    %607 = vector.extract_strided_slice %350 {offsets = [0, 0, 0], sizes = [1, 2, 512], strides = [1, 1, 1]} : vector<8x2x512xf32> to vector<1x2x512xf32>
    %608 = vector.shape_cast %607 : vector<1x2x512xf32> to vector<2x512xf32>
    %609 = arith.select %371, %606, %608 : vector<2x512xi1>, vector<2x512xf32>
    %610 = arith.truncf %604 : vector<2x128xf32> to vector<2x128xbf16>
    %cst_100 = arith.constant dense<0.000000e+00> : vector<2x512xf32>
    %611 = tpu.matmul %610, %352, %cst_100 {dimension_numbers = #tpu.dot_dimension_numbers<[1], [0], [0], [1], [0, 0, 1, 1], [], []>} : vector<2x128xbf16>, vector<128x512xbf16>, vector<2x512xf32> -> vector<2x512xf32>
    %612 = arith.addf %609, %611 : vector<2x512xf32>
    %613 = vector.extract_strided_slice %612 {offsets = [0, 0], sizes = [2, 128], strides = [1, 1]} : vector<2x512xf32> to vector<2x128xf32>
    %614 = arith.negf %613 : vector<2x128xf32>
    %615 = math.exp %614 : vector<2x128xf32>
    %cst_101 = arith.constant 1.000000e+00 : f32
    %616 = vector.broadcast %cst_101 : f32 to vector<2x128xf32>
    %617 = arith.addf %616, %615 : vector<2x128xf32>
    %618 = arith.divf %616, %617 : vector<2x128xf32>
    %619 = vector.extract_strided_slice %612 {offsets = [0, 128], sizes = [2, 128], strides = [1, 1]} : vector<2x512xf32> to vector<2x128xf32>
    %620 = arith.negf %619 : vector<2x128xf32>
    %621 = math.exp %620 : vector<2x128xf32>
    %cst_102 = arith.constant 1.000000e+00 : f32
    %622 = vector.broadcast %cst_102 : f32 to vector<2x128xf32>
    %623 = arith.addf %622, %621 : vector<2x128xf32>
    %624 = arith.divf %622, %623 : vector<2x128xf32>
    %625 = vector.extract_strided_slice %612 {offsets = [0, 256], sizes = [2, 128], strides = [1, 1]} : vector<2x512xf32> to vector<2x128xf32>
    %626 = math.tanh %625 : vector<2x128xf32>
    %627 = vector.extract_strided_slice %612 {offsets = [0, 384], sizes = [2, 128], strides = [1, 1]} : vector<2x512xf32> to vector<2x128xf32>
    %628 = arith.negf %627 : vector<2x128xf32>
    %629 = math.exp %628 : vector<2x128xf32>
    %cst_103 = arith.constant 1.000000e+00 : f32
    %630 = vector.broadcast %cst_103 : f32 to vector<2x128xf32>
    %631 = arith.addf %630, %629 : vector<2x128xf32>
    %632 = arith.divf %630, %631 : vector<2x128xf32>
    %633 = arith.mulf %624, %602 : vector<2x128xf32>
    %634 = arith.mulf %618, %626 : vector<2x128xf32>
    %635 = arith.addf %633, %634 : vector<2x128xf32>
    %636 = math.tanh %635 : vector<2x128xf32>
    %637 = arith.mulf %632, %636 : vector<2x128xf32>
    %638 = vector.shape_cast %406 : vector<2x128xf32> to vector<1x2x128xf32>
    %639 = vector.shape_cast %439 : vector<2x128xf32> to vector<1x2x128xf32>
    %640 = vector.shape_cast %472 : vector<2x128xf32> to vector<1x2x128xf32>
    %641 = vector.shape_cast %505 : vector<2x128xf32> to vector<1x2x128xf32>
    %642 = vector.shape_cast %538 : vector<2x128xf32> to vector<1x2x128xf32>
    %643 = vector.shape_cast %571 : vector<2x128xf32> to vector<1x2x128xf32>
    %644 = vector.shape_cast %604 : vector<2x128xf32> to vector<1x2x128xf32>
    %645 = vector.shape_cast %637 : vector<2x128xf32> to vector<1x2x128xf32>
    %646 = tpu.concatenate %638, %639, %640, %641, %642, %643, %644, %645 in 0 : vector<1x2x128xf32>, vector<1x2x128xf32>, vector<1x2x128xf32>, vector<1x2x128xf32>, vector<1x2x128xf32>, vector<1x2x128xf32>, vector<1x2x128xf32>, vector<1x2x128xf32> -> vector<8x2x128xf32>
    %647 = vector.shape_cast %637 : vector<2x128xf32> to vector<1x2x128xf32>
    %648 = vector.shape_cast %604 : vector<2x128xf32> to vector<1x2x128xf32>
    %649 = vector.shape_cast %571 : vector<2x128xf32> to vector<1x2x128xf32>
    %650 = vector.shape_cast %538 : vector<2x128xf32> to vector<1x2x128xf32>
    %651 = vector.shape_cast %505 : vector<2x128xf32> to vector<1x2x128xf32>
    %652 = vector.shape_cast %472 : vector<2x128xf32> to vector<1x2x128xf32>
    %653 = vector.shape_cast %439 : vector<2x128xf32> to vector<1x2x128xf32>
    %654 = vector.shape_cast %406 : vector<2x128xf32> to vector<1x2x128xf32>
    %655 = tpu.concatenate %647, %648, %649, %650, %651, %652, %653, %654 in 0 : vector<1x2x128xf32>, vector<1x2x128xf32>, vector<1x2x128xf32>, vector<1x2x128xf32>, vector<1x2x128xf32>, vector<1x2x128xf32>, vector<1x2x128xf32>, vector<1x2x128xf32> -> vector<8x2x128xf32>
    %656 = vector.extract_strided_slice %646 {offsets = [0, 0, 0], sizes = [8, 2, 32], strides = [1, 1, 1]} : vector<8x2x128xf32> to vector<8x2x32xf32>
    %657 = vector.extract_strided_slice %655 {offsets = [0, 0, 64], sizes = [8, 2, 32], strides = [1, 1, 1]} : vector<8x2x128xf32> to vector<8x2x32xf32>
    %658 = tpu.concatenate %656, %657 in 2 : vector<8x2x32xf32>, vector<8x2x32xf32> -> vector<8x2x64xf32>
    %cst_104 = arith.constant dense<0.000000e+00> : vector<8x2xf32>
    %659 = vector.multi_reduction <add>, %658, %cst_104 [2] : vector<8x2x64xf32> to vector<8x2xf32>
    %660 = vector.shape_cast %659 : vector<8x2xf32> to vector<8x2x1xf32>
    %cst_105 = arith.constant 6.400000e+01 : f32
    %661 = vector.broadcast %cst_105 : f32 to vector<8x2x1xf32>
    %662 = arith.divf %660, %661 : vector<8x2x1xf32>
    %663 = vector.broadcast %662 : vector<8x2x1xf32> to vector<8x2x64xf32>
    %664 = arith.subf %658, %663 : vector<8x2x64xf32>
    %665 = arith.mulf %664, %664 : vector<8x2x64xf32>
    %cst_106 = arith.constant dense<0.000000e+00> : vector<8x2xf32>
    %666 = vector.multi_reduction <add>, %665, %cst_106 [2] : vector<8x2x64xf32> to vector<8x2xf32>
    %667 = vector.shape_cast %666 : vector<8x2xf32> to vector<8x2x1xf32>
    %cst_107 = arith.constant 6.400000e+01 : f32
    %668 = vector.broadcast %cst_107 : f32 to vector<8x2x1xf32>
    %669 = arith.divf %667, %668 : vector<8x2x1xf32>
    %670 = vector.broadcast %662 : vector<8x2x1xf32> to vector<8x2x64xf32>
    %671 = arith.subf %658, %670 : vector<8x2x64xf32>
    %cst_108 = arith.constant 9.99999974E-6 : f32
    %672 = vector.broadcast %cst_108 : f32 to vector<8x2x1xf32>
    %673 = arith.addf %669, %672 : vector<8x2x1xf32>
    %674 = math.rsqrt %673 : vector<8x2x1xf32>
    %675 = vector.broadcast %674 : vector<8x2x1xf32> to vector<8x2x64xf32>
    %676 = arith.mulf %671, %675 : vector<8x2x64xf32>
    %c0_109 = arith.constant 0 : index
    %c0_110 = arith.constant 0 : index
    %c0_111 = arith.constant 0 : index
    %677 = vector.load %arg9[%c0_109, %c0_110, %c0_111] : memref<1x1x64xf32, #tpu.memory_space<vmem>>, vector<1x1x64xf32>
    %678 = vector.broadcast %677 : vector<1x1x64xf32> to vector<8x2x64xf32>
    %679 = arith.mulf %676, %678 : vector<8x2x64xf32>
    %c0_112 = arith.constant 0 : index
    %c0_113 = arith.constant 0 : index
    %c0_114 = arith.constant 0 : index
    %680 = vector.load %arg10[%c0_112, %c0_113, %c0_114] : memref<1x1x64xf32, #tpu.memory_space<vmem>>, vector<1x1x64xf32>
    %681 = vector.broadcast %680 : vector<1x1x64xf32> to vector<8x2x64xf32>
    %682 = arith.addf %679, %681 : vector<8x2x64xf32>
    %683 = vector.shape_cast %682 : vector<8x2x64xf32> to vector<16x64xf32>
    %684 = arith.truncf %683 : vector<16x64xf32> to vector<16x64xbf16>
    %c0_115 = arith.constant 0 : index
    %c0_116 = arith.constant 0 : index
    %685 = vector.load %arg11[%c0_115, %c0_116] : memref<64x192xf32, #tpu.memory_space<vmem>>, vector<64x192xf32>
    %686 = arith.truncf %685 : vector<64x192xf32> to vector<64x192xbf16>
    %cst_117 = arith.constant dense<0.000000e+00> : vector<16x192xf32>
    %687 = tpu.matmul %684, %686, %cst_117 {dimension_numbers = #tpu.dot_dimension_numbers<[1], [0], [0], [1], [0, 0, 1, 1], [], []>} : vector<16x64xbf16>, vector<64x192xbf16>, vector<16x192xf32> -> vector<16x192xf32>
    %c0_118 = arith.constant 0 : index
    %c0_119 = arith.constant 0 : index
    %688 = vector.load %arg12[%c0_118, %c0_119] : memref<1x192xf32, #tpu.memory_space<vmem>>, vector<1x192xf32>
    %689 = vector.broadcast %688 : vector<1x192xf32> to vector<16x192xf32>
    %690 = arith.addf %687, %689 : vector<16x192xf32>
    %691 = vector.shape_cast %690 : vector<16x192xf32> to vector<8x2x192xf32>
    %692 = vector.extract_strided_slice %691 {offsets = [0, 0, 0], sizes = [8, 2, 64], strides = [1, 1, 1]} : vector<8x2x192xf32> to vector<8x2x64xf32>
    %693 = vector.shape_cast %692 : vector<8x2x64xf32> to vector<8x2x8x8xf32>
    %694 = tpu.transpose %693, [1, 2, 0, 3] : vector<8x2x8x8xf32> -> vector<2x8x8x8xf32>
    %695 = vector.shape_cast %694 : vector<2x8x8x8xf32> to vector<16x8x8xf32>
    %696 = vector.extract_strided_slice %691 {offsets = [0, 0, 64], sizes = [8, 2, 64], strides = [1, 1, 1]} : vector<8x2x192xf32> to vector<8x2x64xf32>
    %697 = vector.shape_cast %696 : vector<8x2x64xf32> to vector<8x2x8x8xf32>
    %698 = tpu.transpose %697, [1, 2, 0, 3] : vector<8x2x8x8xf32> -> vector<2x8x8x8xf32>
    %699 = vector.shape_cast %698 : vector<2x8x8x8xf32> to vector<16x8x8xf32>
    %700 = vector.extract_strided_slice %691 {offsets = [0, 0, 128], sizes = [8, 2, 64], strides = [1, 1, 1]} : vector<8x2x192xf32> to vector<8x2x64xf32>
    %701 = vector.shape_cast %700 : vector<8x2x64xf32> to vector<8x2x8x8xf32>
    %702 = tpu.transpose %701, [1, 2, 0, 3] : vector<8x2x8x8xf32> -> vector<2x8x8x8xf32>
    %703 = vector.shape_cast %702 : vector<2x8x8x8xf32> to vector<16x8x8xf32>
    %cst_120 = arith.constant 8.000000e+00 : f32
    %704 = math.sqrt %cst_120 : f32
    %cst_121 = arith.constant 1.000000e+00 : f32
    %705 = arith.divf %cst_121, %704 : f32
    %706 = arith.truncf %695 : vector<16x8x8xf32> to vector<16x8x8xbf16>
    %707 = arith.truncf %699 : vector<16x8x8xf32> to vector<16x8x8xbf16>
    "tpu.trace_start"() <{level = 10 : i32, message = "bqd,bkd->bqk"}> : () -> ()
    %cst_122 = arith.constant dense<0.000000e+00> : vector<16x8x8xf32>
    %708 = tpu.matmul %706, %707, %cst_122 {dimension_numbers = #tpu.dot_dimension_numbers<[2], [2], [1], [1], [0, 0, 0, 1, 1, 1], [0], [0]>} : vector<16x8x8xbf16>, vector<16x8x8xbf16>, vector<16x8x8xf32> -> vector<16x8x8xf32>
    "tpu.trace_stop"() : () -> ()
    %709 = vector.broadcast %705 : f32 to vector<16x8x8xf32>
    %710 = arith.mulf %708, %709 : vector<16x8x8xf32>
    %cst_123 = arith.constant dense<0xFF800000> : vector<16x8xf32>
    %711 = vector.multi_reduction <maximumf>, %710, %cst_123 [2] : vector<16x8x8xf32> to vector<16x8xf32>
    %cst_124 = arith.constant 0xFF800000 : f32
    %712 = vector.broadcast %cst_124 : f32 to vector<16x8xf32>
    %713 = arith.maximumf %712, %711 : vector<16x8xf32>
    %714 = vector.shape_cast %713 : vector<16x8xf32> to vector<16x8x1xf32>
    %715 = vector.broadcast %714 : vector<16x8x1xf32> to vector<16x8x8xf32>
    %716 = arith.subf %710, %715 : vector<16x8x8xf32>
    %717 = math.exp %716 : vector<16x8x8xf32>
    %cst_125 = arith.constant dense<0.000000e+00> : vector<16x8xf32>
    %718 = vector.multi_reduction <add>, %717, %cst_125 [2] : vector<16x8x8xf32> to vector<16x8xf32>
    %719 = vector.shape_cast %718 : vector<16x8xf32> to vector<16x8x1xf32>
    %720 = vector.broadcast %719 : vector<16x8x1xf32> to vector<16x8x8xf32>
    %721 = arith.divf %717, %720 : vector<16x8x8xf32>
    %722 = arith.truncf %721 : vector<16x8x8xf32> to vector<16x8x8xbf16>
    %723 = arith.truncf %703 : vector<16x8x8xf32> to vector<16x8x8xbf16>
    "tpu.trace_start"() <{level = 10 : i32, message = "bqk,bkd->bqd"}> : () -> ()
    %cst_126 = arith.constant dense<0.000000e+00> : vector<16x8x8xf32>
    %724 = tpu.matmul %722, %723, %cst_126 {dimension_numbers = #tpu.dot_dimension_numbers<[2], [1], [1], [2], [0, 0, 0, 1, 1, 2], [0], [0]>} : vector<16x8x8xbf16>, vector<16x8x8xbf16>, vector<16x8x8xf32> -> vector<16x8x8xf32>
    "tpu.trace_stop"() : () -> ()
    %725 = vector.shape_cast %724 : vector<16x8x8xf32> to vector<2x8x8x8xf32>
    %726 = tpu.transpose %725, [2, 0, 1, 3] : vector<2x8x8x8xf32> -> vector<8x2x8x8xf32>
    %727 = vector.shape_cast %726 : vector<8x2x8x8xf32> to vector<16x64xf32>
    %728 = arith.truncf %727 : vector<16x64xf32> to vector<16x64xbf16>
    %c0_127 = arith.constant 0 : index
    %c0_128 = arith.constant 0 : index
    %729 = vector.load %arg13[%c0_127, %c0_128] : memref<64x64xf32, #tpu.memory_space<vmem>>, vector<64x64xf32>
    %730 = arith.truncf %729 : vector<64x64xf32> to vector<64x64xbf16>
    %cst_129 = arith.constant dense<0.000000e+00> : vector<16x64xf32>
    %731 = tpu.matmul %728, %730, %cst_129 {dimension_numbers = #tpu.dot_dimension_numbers<[1], [0], [0], [1], [0, 0, 1, 1], [], []>} : vector<16x64xbf16>, vector<64x64xbf16>, vector<16x64xf32> -> vector<16x64xf32>
    %c0_130 = arith.constant 0 : index
    %c0_131 = arith.constant 0 : index
    %732 = vector.load %arg14[%c0_130, %c0_131] : memref<1x64xf32, #tpu.memory_space<vmem>>, vector<1x64xf32>
    %733 = vector.broadcast %732 : vector<1x64xf32> to vector<16x64xf32>
    %734 = arith.addf %731, %733 : vector<16x64xf32>
    %735 = vector.shape_cast %734 : vector<16x64xf32> to vector<8x2x64xf32>
    %cst_132 = arith.constant dense<0.000000e+00> : vector<2x64xf32>
    %736 = vector.multi_reduction <add>, %735, %cst_132 [0] : vector<8x2x64xf32> to vector<2x64xf32>
    %cst_133 = arith.constant 8.000000e+00 : f32
    %737 = vector.broadcast %cst_133 : f32 to vector<2x64xf32>
    %738 = arith.divf %736, %737 : vector<2x64xf32>
    %cst_134 = arith.constant dense<0xFF800000> : vector<2x64xf32>
    %739 = vector.multi_reduction <maximumf>, %735, %cst_134 [0] : vector<8x2x64xf32> to vector<2x64xf32>
    %740 = tpu.concatenate %738, %739 in 1 : vector<2x64xf32>, vector<2x64xf32> -> vector<2x128xf32>
    %741 = arith.truncf %740 : vector<2x128xf32> to vector<2x128xbf16>
    %c0_135 = arith.constant 0 : index
    %c0_136 = arith.constant 0 : index
    %742 = vector.load %arg15[%c0_135, %c0_136] : memref<128x32xf32, #tpu.memory_space<vmem>>, vector<128x32xf32>
    %743 = arith.truncf %742 : vector<128x32xf32> to vector<128x32xbf16>
    %cst_137 = arith.constant dense<0.000000e+00> : vector<2x32xf32>
    %744 = tpu.matmul %741, %743, %cst_137 {dimension_numbers = #tpu.dot_dimension_numbers<[1], [0], [0], [1], [0, 0, 1, 1], [], []>} : vector<2x128xbf16>, vector<128x32xbf16>, vector<2x32xf32> -> vector<2x32xf32>
    %c0_138 = arith.constant 0 : index
    %c0_139 = arith.constant 0 : index
    %745 = vector.load %arg16[%c0_138, %c0_139] : memref<1x32xf32, #tpu.memory_space<vmem>>, vector<1x32xf32>
    %746 = vector.broadcast %745 : vector<1x32xf32> to vector<2x32xf32>
    %747 = arith.addf %744, %746 : vector<2x32xf32>
    %cst_140 = arith.constant 0.000000e+00 : f32
    %748 = vector.broadcast %cst_140 : f32 to vector<2x32xf32>
    %749 = arith.maximumf %747, %748 : vector<2x32xf32>
    %750 = arith.truncf %749 : vector<2x32xf32> to vector<2x32xbf16>
    %c0_141 = arith.constant 0 : index
    %c0_142 = arith.constant 0 : index
    %751 = vector.load %arg17[%c0_141, %c0_142] : memref<32x16xf32, #tpu.memory_space<vmem>>, vector<32x16xf32>
    %752 = arith.truncf %751 : vector<32x16xf32> to vector<32x16xbf16>
    %cst_143 = arith.constant dense<0.000000e+00> : vector<2x16xf32>
    %753 = tpu.matmul %750, %752, %cst_143 {dimension_numbers = #tpu.dot_dimension_numbers<[1], [0], [0], [1], [0, 0, 1, 1], [], []>} : vector<2x32xbf16>, vector<32x16xbf16>, vector<2x16xf32> -> vector<2x16xf32>
    %c0_144 = arith.constant 0 : index
    %c0_145 = arith.constant 0 : index
    %754 = vector.load %arg18[%c0_144, %c0_145] : memref<1x16xf32, #tpu.memory_space<vmem>>, vector<1x16xf32>
    %755 = vector.broadcast %754 : vector<1x16xf32> to vector<2x16xf32>
    %756 = arith.addf %753, %755 : vector<2x16xf32>
    %cst_146 = arith.constant 0.000000e+00 : f32
    %757 = vector.broadcast %cst_146 : f32 to vector<2x16xf32>
    %758 = arith.maximumf %756, %757 : vector<2x16xf32>
    %759 = arith.truncf %758 : vector<2x16xf32> to vector<2x16xbf16>
    %c0_147 = arith.constant 0 : index
    %c0_148 = arith.constant 0 : index
    %760 = vector.load %arg19[%c0_147, %c0_148] : memref<16x2xf32, #tpu.memory_space<vmem>>, vector<16x2xf32>
    %761 = arith.truncf %760 : vector<16x2xf32> to vector<16x2xbf16>
    %cst_149 = arith.constant dense<0.000000e+00> : vector<2x2xf32>
    %762 = tpu.matmul %759, %761, %cst_149 {dimension_numbers = #tpu.dot_dimension_numbers<[1], [0], [0], [1], [0, 0, 1, 1], [], []>} : vector<2x16xbf16>, vector<16x2xbf16>, vector<2x2xf32> -> vector<2x2xf32>
    %c0_150 = arith.constant 0 : index
    %c0_151 = arith.constant 0 : index
    %763 = vector.load %arg20[%c0_150, %c0_151] : memref<1x2xf32, #tpu.memory_space<vmem>>, vector<1x2xf32>
    %764 = vector.broadcast %763 : vector<1x2xf32> to vector<2x2xf32>
    %765 = arith.addf %762, %764 : vector<2x2xf32>
    %c0_152 = arith.constant 0 : index
    %c0_153 = arith.constant 0 : index
    %766 = vector.load %arg21[%c0_152, %c0_153] : memref<2x2xf32, #tpu.memory_space<vmem>>, vector<2x2xf32>
    tpu.vector_store %arg21[%c0_152, %c0_153], %765 {strides = array<i32>} : memref<2x2xf32, #tpu.memory_space<vmem>>, vector<2x2xf32>,
    return
  }
}

</mosaic_0001>

<bundles_post_ra>
// kernel: enhanced_lstm_forward.1
= control target key start
LH: loop header
LB: loop body
LE: loop exit
PB: predicated region body
PF: predicated region fallthrough
CT: control target
= control target key end

     0   :  { %s12984_s0 = inlined_call_operand.vmem [shape: f32[8,2,64], index: 0, kind: input, shape index: {}]   ;;  %s12985_s1 = inlined_call_operand.hbm [shape: f32[64,512], index: 1, kind: input, shape index: {}]   ;;  %s12986_s2 = inlined_call_operand.hbm [shape: f32[128,512], index: 2, kind: input, shape index: {}]   ;;  %s12987_s3 = inlined_call_operand.vmem [shape: f32[1,512], index: 3, kind: input, shape index: {}]   ;;  %s12988_s4 = inlined_call_operand.vmem [shape: f32[1,1,64], index: 4, kind: input, shape index: {}]   ;;  %s12989_s5 = inlined_call_operand.vmem [shape: f32[1,1,64], index: 5, kind: input, shape index: {}]   ;;  %s12990_s6 = inlined_call_operand.hbm [shape: f32[64,512], index: 6, kind: input, shape index: {}]   ;;  %s12991_s7 = inlined_call_operand.hbm [shape: f32[128,512], index: 7, kind: input, shape index: {}]   ;;  %s12992_s8 = inlined_call_operand.vmem [shape: f32[1,512], index: 8, kind: input, shape index: {}]   ;;  %s12993_s9 = inlined_call_operand.vmem [shape: f32[1,1,64], index: 9, kind: input, shape index: {}]   ;;  %s12994_s10 = inlined_call_operand.vmem [shape: f32[1,1,64], index: 10, kind: input, shape index: {}]   ;;  %s12995_s11 = inlined_call_operand.vmem [shape: f32[64,192], index: 11, kind: input, shape index: {}]   ;;  %s12996_s12 = inlined_call_operand.vmem [shape: f32[1,192], index: 12, kind: input, shape index: {}]   ;;  %s12997_s13 = inlined_call_operand.vmem [shape: f32[64,64], index: 13, kind: input, shape index: {}]   ;;  %s12998_s14 = inlined_call_operand.vmem [shape: f32[1,64], index: 14, kind: input, shape index: {}]   ;;  %s12999_s15 = inlined_call_operand.vmem [shape: f32[128,32], index: 15, kind: input, shape index: {}]   ;;  %s13000_s16 = inlined_call_operand.vmem [shape: f32[1,32], index: 16, kind: input, shape index: {}]   ;;  %s13001_s17 = inlined_call_operand.vmem [shape: f32[32,16], index: 17, kind: input, shape index: {}]   ;;  %s13002_s18 = inlined_call_operand.vmem [shape: f32[1,16], index: 18, kind: input, shape index: {}]   ;;  %s13003_s19 = inlined_call_operand.vmem [shape: f32[16,2], index: 19, kind: input, shape index: {}]   ;;  %s13004_s20 = inlined_call_operand.vmem [shape: f32[1,2], index: 20, kind: input, shape index: {}]   ;;  %s13005_s21 = inlined_call_operand.hbm [shape: f32[2,2], index: 21, kind: output, shape index: {}]  }
   0x1   :  { %13082 = sst [smem:[#allocation70_spill]] %s12984_s0 }
   0x2   :  { %13083 = sst [smem:[#allocation71_spill]] %s12985_s1 }
   0x3   :  { %13084 = sst [smem:[#allocation72_spill]] %s12986_s2 }
   0x4   :  { %13085 = sst [smem:[#allocation73_spill]] %s12987_s3 }
   0x5   :  { %13086 = sst [smem:[#allocation74_spill]] %s12988_s4 }
   0x6   :  { %13087 = sst [smem:[#allocation75_spill]] %s12989_s5 }
   0x7   :  { %13088 = sst [smem:[#allocation76_spill]] %s13005_s21 }
   0x8   :  { %26 = vsyncpa [#allocation3], 0 }
   0x9   :  { %27 = vsyncpa [#allocation6], 0 }
   0xa   :  { %28 = vsyncpa [#allocation9], 0 }
   0xb   :  { %29 = vsyncpa [#allocation4], 0  ;;  %s13089_s26 = sld [smem:[#allocation72_spill]]  ;;  %s8612_s3 = smov [#allocation5]  }
   0xc   :  { %s51_s28 = sshll.u32 %s8612_s3, 4  ;;  %s13090_s4 = sld [smem:[#allocation71_spill]]  ;;  %s52_s28 = int_to_ptr.vmem [resolvable:$true] %s51_s28 }
   0xd   :  { %s8613_s5 = smov 512   ;;  %s8614_s22 = smov 32  }
   0xe   :  { %s8615_s23 = smov [#allocation2]   ;;  %s68_s2 = sshll.u32 %s12990_s6, 4  ;;  %s69_s2 = int_to_ptr.hbm [resolvable:$true] %s68_s2 }
   0xf   :  { %s38_s1 = sshll.u32 %s8615_s23, 4  ;;  %s81_s3 = sshll.u32 %s12991_s7, 4  ;;  %s39_s1 = int_to_ptr.vmem [resolvable:$true] %s38_s1  ;;  %s82_s3 = int_to_ptr.hbm [resolvable:$true] %s81_s3 }
  0x10   :  { %s8616_s29 = smov [#allocation7]  }
  0x11   :  { %s49_s27 = sshll.u32 %s13089_s26, 4  ;;  %s70_s0 = sshll.u32 %s8616_s29, 4  ;;  %s50_s27 = int_to_ptr.hbm [resolvable:$true] %s49_s27  ;;  %s71_s0 = int_to_ptr.vmem [resolvable:$true] %s70_s0 }
  0x12   :  { %s36_s30 = sshll.u32 %s13090_s4, 4  ;;  %s37_s30 = int_to_ptr.hbm [resolvable:$true] %s36_s30 }
  0x13   :  { %57 = dma.hbm_to_vmem [thread:$0]  %s50_s27, 8192, %s52_s28, [#allocation6], %s8613_s5, %s8613_s5, %s8614_s22  }
  0x14   :  { %44 = dma.hbm_to_vmem [thread:$0]  %s37_s30, 4096, %s39_s1, [#allocation3], %s8613_s5, %s8613_s5, %s8614_s22  }
  0x15   :  { %76 = dma.hbm_to_vmem [thread:$0]  %s69_s2, 4096, %s71_s0, [#allocation6], %s8613_s5, %s8613_s5, %s8614_s22  }
  0x16   :  { %s8617_s27 = smov [#allocation8]  }
  0x17   :  { %s83_s28 = sshll.u32 %s8617_s27, 4  ;;  %s84_s28 = int_to_ptr.vmem [resolvable:$true] %s83_s28 }
  0x18   :  { %89 = dma.hbm_to_vmem [thread:$0]  %s82_s3, 8192, %s84_s28, [#allocation9], %s8613_s5, %s8613_s5, %s8614_s22  }
  0x19   :  { %8604 = dma.done.wait [#allocation3], 4096  }
  0x1a   :  { %8605 = vsyncadd [#allocation3], 4294963200 }
  0x1b   :  { %8606 = dma.done.wait [#allocation6], 12288  }
  0x1c   :  { %8607 = vsyncadd [#allocation6], 4294955008 }
  0x1d   :  { %8608 = dma.done.wait [#allocation9], 8192  }
  0x1e   :  { %8609 = vsyncadd [#allocation9], 4294959104  ;;  %v193_v0 = vld [vmem:[#allocation2 + $0xc0] sm:$0xff]  ;;  %v194_v2 = vld [vmem:[#allocation2 + $0xc8] sm:$0xff]  ;;  %s13091_s21 = sld [smem:[#allocation70_spill]]  ;;  %vm13028_vm0 = vcmask 523264  }
  0x1f   :  { %v197_v1 = vld [vmem:[#allocation2 + $0xe0] sm:$0xff]  ;;  %v198_v4 = vld [vmem:[#allocation2 + $0xe8] sm:$0xff]  ;;  %v195_v5 = vld [vmem:[#allocation2 + $0xd0] sm:$0xff]  ;;  %vm301_vm1 = vcmask 1041408   ;;  %vm303_vm2 = vcmask 1045508   ;;  %vm13034_vm3 = vcmask 1043456  }
  0x20   :  { %v213_v3 = vpack.c.bf16 %v197_v1, %v193_v0  ;;  %v199_v6 = vld [vmem:[#allocation2 + $0xf0] sm:$0xff]  ;;  %v214_v7 = vpack.c.bf16 %v198_v4, %v194_v2  ;;  %v196_v9 = vld [vmem:[#allocation2 + $0xd8] sm:$0xff]  ;;  %v185_v11 = vld [vmem:[#allocation2 + $0x80] sm:$0xff]  ;;  %vm13027_vm4 = vcmask 1043458   ;;  %vm13026_vm5 = vcmask 1045504   ;;  %s8619_s4 = smov 96  }
  0x21   :  { %v215_v8 = vpack.c.bf16 %v199_v6, %v195_v5  ;;  %v200_v10 = vld [vmem:[#allocation2 + $0xf8] sm:$0xff]  ;;  %v189_v13 = vld [vmem:[#allocation2 + $0xa0] sm:$0xff]  ;;  %v186_v14 = vld [vmem:[#allocation2 + $0x88] sm:$0xff]  ;;  %vm13033_vm6 = vcmask 1045506   ;;  %s13226_s23 = sld [smem:[#allocation74_spill]]  ;;  %s8621_s26 = smov 112  }
  0x22   :  { %235 = vmatpush.bf16.msra.mxu0 %v213_v3  ;;  %v216_v12 = vpack.c.bf16 %v200_v10, %v196_v9  ;;  %v190_v15 = vld [vmem:[#allocation2 + $0xa8] sm:$0xff]  ;;  %249 = vmatpush.bf16.msra.mxu1 %v214_v7  ;;  %v209_v16 = vpack.c.bf16 %v189_v13, %v185_v11  ;;  %v187_v18 = vld [vmem:[#allocation2 + $0x90] sm:$0xff]  ;;  %v188_v20 = vld [vmem:[#allocation2 + $0x98] sm:$0xff]  ;;  %s13227_s2 = sld [smem:[#allocation75_spill]]  ;;  %s8624_s3 = smov 88  }
  0x23   :  { %263 = vmatpush.bf16.msra.mxu2 %v215_v8  ;;  %v210_v17 = vpack.c.bf16 %v190_v15, %v186_v14  ;;  %v191_v19 = vld [vmem:[#allocation2 + $0xb0] sm:$0xff]  ;;  %v192_v22 = vld [vmem:[#allocation2 + $0xb8] sm:$0xff]  ;;  %v177_v23 = vld [vmem:[#allocation2 + $0x40] sm:$0xff]  ;;  %s8625_s29 = smov 104   ;;  %s8626_s0 = smov 64  }
  0x24   :  { %277 = vmatpush.bf16.msra.mxu3 %v216_v12  ;;  %v211_v21 = vpack.c.bf16 %v191_v19, %v187_v18  ;;  %v181_v24 = vld [vmem:[#allocation2 + $0x60] sm:$0xff]  ;;  %v212_v25 = vpack.c.bf16 %v192_v22, %v188_v20  ;;  %v178_v26 = vld [vmem:[#allocation2 + $0x48] sm:$0xff]  ;;  %v179_v28 = vld [vmem:[#allocation2 + $0x50] sm:$0xff]  ;;  %s8632_s27 = smov 8   ;;  %s8633_s28 = smov 56  }
  0x25   :  { %v182_v27 = vld [vmem:[#allocation2 + $0x68] sm:$0xff]  ;;  %v205_v29 = vpack.c.bf16 %v181_v24, %v177_v23  ;;  %v183_v30 = vld [vmem:[#allocation2 + $0x70] sm:$0xff]  ;;  %v180_v31 = vld [vmem:[#allocation2 + $0x58] sm:$0xff]  ;;  %s8634_s6 = smov 40   ;;  %s8635_s7 = smov 48  }
  0x26   :  { %236 = vmatpush.bf16.msra.mxu0 %v209_v16  ;;  %v184_v32 = vld [vmem:[#allocation2 + $0x78] sm:$0xff]  ;;  %250 = vmatpush.bf16.msra.mxu1 %v210_v17  ;;  %v206_v33 = vpack.c.bf16 %v182_v27, %v178_v26  ;;  %v207_v34 = vpack.c.bf16 %v183_v30, %v179_v28  ;;  %v169_v35 = vld [vmem:[#allocation2] sm:$0xff]  ;;  %v170_v37 = vld [vmem:[#allocation2 + $0x8] sm:$0xff] }
  0x27   :  { %264 = vmatpush.bf16.msra.mxu2 %v211_v21  ;;  %v173_v36 = vld [vmem:[#allocation2 + $0x20] sm:$0xff]  ;;  %v208_v38 = vpack.c.bf16 %v184_v32, %v180_v31  ;;  %v174_v39 = vld [vmem:[#allocation2 + $0x28] sm:$0xff]  ;;  %v171_v40 = vld [vmem:[#allocation2 + $0x10] sm:$0xff] }
  0x28   :  { %278 = vmatpush.bf16.msra.mxu3 %v212_v25  ;;  %v175_v41 = vld [vmem:[#allocation2 + $0x30] sm:$0xff]  ;;  %v172_v42 = vld [vmem:[#allocation2 + $0x18] sm:$0xff]  ;;  %v393_v44 = vld [vmem:[#allocation5 + $0x1c0] sm:$0xff]  ;;  %v201_v45 = vpack.c.bf16 %v173_v36, %v169_v35  ;;  %v202_v49 = vpack.c.bf16 %v174_v39, %v170_v37 }
  0x29   :  { %v176_v43 = vld [vmem:[#allocation2 + $0x38] sm:$0xff]  ;;  %v397_v46 = vld [vmem:[#allocation5 + $0x1e0] sm:$0xff]  ;;  %v394_v47 = vld [vmem:[#allocation5 + $0x1c8] sm:$0xff]  ;;  %v203_v50 = vpack.c.bf16 %v175_v41, %v171_v40 }
  0x2a   :  { %237 = vmatpush.bf16.msra.mxu0 %v205_v29  ;;  %v398_v48 = vld [vmem:[#allocation5 + $0x1e8] sm:$0xff]  ;;  %251 = vmatpush.bf16.msra.mxu1 %v206_v33  ;;  %v395_v51 = vld [vmem:[#allocation5 + $0x1d0] sm:$0xff]  ;;  %v396_v53 = vld [vmem:[#allocation5 + $0x1d8] sm:$0xff]  ;;  %v204_v54 = vpack.c.bf16 %v176_v43, %v172_v42  ;;  %v8764_v55 = vpack.c.bf16 %v397_v46, %v393_v44 }
  0x2b   :  { %265 = vmatpush.bf16.msra.mxu2 %v207_v34  ;;  %v399_v52 = vld [vmem:[#allocation5 + $0x1f0] sm:$0xff]  ;;  %v400_v56 = vld [vmem:[#allocation5 + $0x1f8] sm:$0xff]  ;;  %v8769_v58 = vpack.c.bf16 %v398_v48, %v394_v47  ;;  %v137_v0 = vld [vmem:[%s13091_s21 + $0x8] sm:$0x3] }
  0x2c   :  { %279 = vmatpush.bf16.msra.mxu3 %v208_v38  ;;  %v133_v57 = vld [vmem:[%s13091_s21] sm:$0x3]  ;;  %v8771_v59 = vpack.c.bf16 %v399_v52, %v395_v51  ;;  %v134_v60 = vld [vmem:[%s13091_s21 + $0x2] sm:$0x3]  ;;  %v8776_v61 = vpack.c.bf16 %v400_v56, %v396_v53  ;;  %v135_v62 = vld [vmem:[%s13091_s21 + $0x4] sm:$0x3] }
  0x2d   :  { %v136_v63 = vld [vmem:[%s13091_s21 + $0x6] sm:$0x3]  ;;  %v138_v1 = vld [vmem:[%s13091_s21 + $0xa] sm:$0x3]  ;;  %149 = vst [vmem:[#allocation1] ss:$4 sm:$0xff] %v133_v57 }
  0x2e   :  { %238 = vmatpush.bf16.msra.mxu0 %v201_v45  ;;  %252 = vmatpush.bf16.msra.mxu1 %v202_v49  ;;  %v385_v2 = vld [vmem:[#allocation5 + $0x180] sm:$0xff]  ;;  %v386_v4 = vld [vmem:[#allocation5 + $0x188] sm:$0xff]  ;;  %151 = vst [vmem:[#allocation1 + $0x1] ss:$4 sm:$0xff] %v134_v60  ;;  %v387_v8 = vld [vmem:[#allocation5 + $0x190] sm:$0xff] }
  0x2f   :  { %266 = vmatpush.bf16.msra.mxu2 %v203_v50  ;;  %v389_v3 = vld [vmem:[#allocation5 + $0x1a0] sm:$0xff]  ;;  %v390_v7 = vld [vmem:[#allocation5 + $0x1a8] sm:$0xff]  ;;  %v391_v9 = vld [vmem:[#allocation5 + $0x1b0] sm:$0xff]  ;;  %153 = vst [vmem:[#allocation1 + $0x2] ss:$4 sm:$0xff] %v135_v62 }
  0x30   :  { %280 = vmatpush.bf16.msra.mxu3 %v204_v54  ;;  %v139_v5 = vld [vmem:[%s13091_s21 + $0xc] sm:$0x3]  ;;  %v8794_v6 = vpack.c.bf16 %v389_v3, %v385_v2  ;;  %v140_v10 = vld [vmem:[%s13091_s21 + $0xe] sm:$0x3]  ;;  %v8801_v11 = vpack.c.bf16 %v390_v7, %v386_v4  ;;  %v8803_v12 = vpack.c.bf16 %v391_v9, %v387_v8  ;;  %v388_v13 = vld [vmem:[#allocation5 + $0x198] sm:$0xff]  ;;  %s13092_s21 = sld [smem:[#allocation73_spill]] }
  0x31   :  { %v392_v14 = vld [vmem:[#allocation5 + $0x1b8] sm:$0xff]  ;;  %v377_v15 = vld [vmem:[#allocation5 + $0x140] sm:$0xff]  ;;  %155 = vst [vmem:[#allocation1 + $0x3] ss:$4 sm:$0xff] %v136_v63  ;;  %v378_v18 = vld [vmem:[#allocation5 + $0x148] sm:$0xff] }
  0x32   :  { %512 = vmatpush.bf16.msrb.mxu0 %v8764_v55  ;;  %525 = vmatpush.bf16.msrb.mxu1 %v8769_v58  ;;  %v8806_v16 = vpack.c.bf16 %v392_v14, %v388_v13  ;;  %v381_v17 = vld [vmem:[#allocation5 + $0x160] sm:$0xff]  ;;  %v382_v19 = vld [vmem:[#allocation5 + $0x168] sm:$0xff]  ;;  %157 = vst [vmem:[#allocation1 + $0x20] ss:$4 sm:$0xff] %v137_v0  ;;  %v379_v20 = vld [vmem:[#allocation5 + $0x150] sm:$0xff] }
  0x33   :  { %538 = vmatpush.bf16.msrb.mxu2 %v8771_v59  ;;  %v383_v21 = vld [vmem:[#allocation5 + $0x170] sm:$0xff]  ;;  %v380_v22 = vld [vmem:[#allocation5 + $0x158] sm:$0xff]  ;;  %159 = vst [vmem:[#allocation1 + $0x21] ss:$4 sm:$0xff] %v138_v1  ;;  %v8809_v23 = vpack.c.bf16 %v381_v17, %v377_v15  ;;  %v8813_v25 = vpack.c.bf16 %v382_v19, %v378_v18  ;;  %v369_v27 = vld [vmem:[#allocation5 + $0x100] sm:$0xff] }
  0x34   :  { %551 = vmatpush.bf16.msrb.mxu3 %v8776_v61  ;;  %v384_v24 = vld [vmem:[#allocation5 + $0x178] sm:$0xff]  ;;  %161 = vst [vmem:[#allocation1 + $0x22] ss:$4 sm:$0xff] %v139_v5  ;;  %v8815_v26 = vpack.c.bf16 %v383_v21, %v379_v20  ;;  %v373_v28 = vld [vmem:[#allocation5 + $0x120] sm:$0xff]  ;;  %v370_v29 = vld [vmem:[#allocation5 + $0x108] sm:$0xff] }
  0x35   :  { %163 = vst [vmem:[#allocation1 + $0x23] ss:$4 sm:$0xff] %v140_v10  ;;  %v8818_v30 = vpack.c.bf16 %v384_v24, %v380_v22  ;;  %v374_v31 = vld [vmem:[#allocation5 + $0x128] sm:$0xff]  ;;  %v371_v32 = vld [vmem:[#allocation5 + $0x110] sm:$0xff]  ;;  %v372_v34 = vld [vmem:[#allocation5 + $0x118] sm:$0xff]  ;;  %v8821_v36 = vpack.c.bf16 %v373_v28, %v369_v27 }
  0x36   :  { %513 = vmatpush.bf16.msrb.mxu0 %v8794_v6  ;;  %526 = vmatpush.bf16.msrb.mxu1 %v8801_v11  ;;  %v375_v33 = vld [vmem:[#allocation5 + $0x130] sm:$0xff]  ;;  %v376_v35 = vld [vmem:[#allocation5 + $0x138] sm:$0xff]  ;;  %v8825_v37 = vpack.c.bf16 %v374_v31, %v370_v29  ;;  %v361_v40 = vld [vmem:[#allocation5 + $0xc0] sm:$0xff] }
  0x37   :  { %539 = vmatpush.bf16.msrb.mxu2 %v8803_v12  ;;  %v8827_v38 = vpack.c.bf16 %v375_v33, %v371_v32  ;;  %v8830_v39 = vpack.c.bf16 %v376_v35, %v372_v34  ;;  %v365_v41 = vld [vmem:[#allocation5 + $0xe0] sm:$0xff]  ;;  %v362_v42 = vld [vmem:[#allocation5 + $0xc8] sm:$0xff]  ;;  %v363_v45 = vld [vmem:[#allocation5 + $0xd0] sm:$0xff] }
  0x38   :  { %552 = vmatpush.bf16.msrb.mxu3 %v8806_v16  ;;  %v164_v43 = vld.sshfl [vmem:[#allocation1] sm:$0xff pattern:$0x73625140]  ;;  %v366_v44 = vld [vmem:[#allocation5 + $0xe8] sm:$0xff]  ;;  %v367_v46 = vld [vmem:[#allocation5 + $0xf0] sm:$0xff]  ;;  %v8836_v51 = vpack.c.bf16 %v365_v41, %v361_v40 }
  0x39   :  { %v364_v47 = vld [vmem:[#allocation5 + $0xd8] sm:$0xff]  ;;  %v8838_v52 = vpack.c.bf16 %v366_v44, %v362_v42  ;;  %v353_v53 = vld [vmem:[#allocation5 + $0x80] sm:$0xff]  ;;  %v8840_v56 = vpack.c.bf16 %v367_v46, %v363_v45  ;;  %v354_v60 = vld [vmem:[#allocation5 + $0x88] sm:$0xff] }
  0x3a   :  { %514 = vmatpush.bf16.msrb.mxu0 %v8809_v23  ;;  %527 = vmatpush.bf16.msrb.mxu1 %v8813_v25  ;;  %v368_v48 = vld [vmem:[#allocation5 + $0xf8] sm:$0xff]  ;;  %v357_v54 = vld [vmem:[#allocation5 + $0xa0] sm:$0xff]  ;;  %v358_v62 = vld [vmem:[#allocation5 + $0xa8] sm:$0xff] }
  0x3b   :  { %540 = vmatpush.bf16.msrb.mxu2 %v8815_v26  ;;  %v8842_v57 = vpack.c.bf16 %v368_v48, %v364_v47  ;;  %v355_v63 = vld [vmem:[#allocation5 + $0x90] sm:$0xff]  ;;  %v356_v1 = vld [vmem:[#allocation5 + $0x98] sm:$0xff]  ;;  %v345_v3 = vld [vmem:[#allocation5 + $0x40] sm:$0xff]  ;;  %v8850_v8 = vpack.c.bf16 %v357_v54, %v353_v53  ;;  %v8852_v9 = vpack.c.bf16 %v358_v62, %v354_v60 }
  0x3c   :  { %553 = vmatpush.bf16.msrb.mxu3 %v8818_v30  ;;  %v165_v49 = vld.sshfl [vmem:[#allocation1 + $0x20] sm:$0xff pattern:$0x73625140]  ;;  %v359_v0 = vld [vmem:[#allocation5 + $0xb0] sm:$0xff]  ;;  %v349_v4 = vld [vmem:[#allocation5 + $0x60] sm:$0xff] }
  0x3d   :  { %v168_v50 = vpack.c.bf16 %v165_v49, %v164_v43  ;;  %v360_v2 = vld [vmem:[#allocation5 + $0xb8] sm:$0xff]  ;;  %v346_v5 = vld [vmem:[#allocation5 + $0x48] sm:$0xff]  ;;  %v347_v10 = vld [vmem:[#allocation5 + $0x50] sm:$0xff]  ;;  %v8856_v15 = vpack.c.bf16 %v359_v0, %v355_v63  ;;  %v8862_v19 = vpack.c.bf16 %v349_v4, %v345_v3  ;;  %v13007_v43 = vmov 0  }
  0x3e   :  { %515 = vmatpush.bf16.msrb.mxu0 %v8821_v36  ;;  %528 = vmatpush.bf16.msrb.mxu1 %v8825_v37  ;;  %v350_v7 = vld [vmem:[#allocation5 + $0x68] sm:$0xff]  ;;  %v351_v13 = vld [vmem:[#allocation5 + $0x70] sm:$0xff]  ;;  %v348_v14 = vld [vmem:[#allocation5 + $0x58] sm:$0xff]  ;;  %v8858_v17 = vpack.c.bf16 %v360_v2, %v356_v1 }
  0x3f   :  { %541 = vmatpush.bf16.msrb.mxu2 %v8827_v38  ;;  %7934 = vmatmul.msk.bf16.vlgmr.msra.gmra.mxu0 %vm13028_vm0, %v168_v50  ;;  %v352_v18 = vld [vmem:[#allocation5 + $0x78] sm:$0xff]  ;;  %v8864_v20 = vpack.c.bf16 %v350_v7, %v346_v5  ;;  %v337_v21 = vld [vmem:[#allocation5] sm:$0xff]  ;;  %v8868_v24 = vpack.c.bf16 %v351_v13, %v347_v10  ;;  %v338_v28 = vld [vmem:[#allocation5 + $0x8] sm:$0xff] }
  0x40   :  { %554 = vmatpush.bf16.msrb.mxu3 %v8830_v39  ;;  %7935 = vmatmul.msk.bf16.vlgmr.msra.gmra.mxu1 %vm13028_vm0, %v168_v50  ;;  %v341_v22 = vld [vmem:[#allocation5 + $0x20] sm:$0xff]  ;;  %v8870_v27 = vpack.c.bf16 %v352_v18, %v348_v14  ;;  %v342_v29 = vld [vmem:[#allocation5 + $0x28] sm:$0xff]  ;;  %v339_v31 = vld [vmem:[#allocation5 + $0x10] sm:$0xff]  ;;  %v433_v18 = vlaneseq }
  0x41   :  { %7936 = vmatmul.msk.bf16.vlgmr.msra.gmra.mxu2 %vm13028_vm0, %v168_v50  ;;  %7937 = vmatmul.msk.bf16.vlgmr.msra.gmra.mxu3 %vm13028_vm0, %v168_v50  ;;  %v343_v32 = vld [vmem:[#allocation5 + $0x30] sm:$0xff]  ;;  %v340_v33 = vld [vmem:[#allocation5 + $0x18] sm:$0xff]  ;;  %v8874_v35 = vpack.c.bf16 %v341_v22, %v337_v21  ;;  %v8876_v40 = vpack.c.bf16 %v342_v29, %v338_v28 }
  0x42   :  { %516 = vmatpush.bf16.msrb.mxu0 %v8836_v51  ;;  %529 = vmatpush.bf16.msrb.mxu1 %v8838_v52  ;;  %v344_v34 = vld [vmem:[#allocation5 + $0x38] sm:$0xff]  ;;  %v8880_v41 = vpack.c.bf16 %v343_v32, %v339_v31 }
  0x43   :  { %542 = vmatpush.bf16.msrb.mxu2 %v8840_v56  ;;  %v8882_v42 = vpack.c.bf16 %v344_v34, %v340_v33  ;;  %v217_v44 = vld [vmem:[%s13092_s21] sm:$0xf] }
  0x44   :  { %555 = vmatpush.bf16.msrb.mxu3 %v8842_v57  ;;  %v220_v45 = vperm.slane %v217_v44, 1  ;;  %v219_v48 = vperm.slane %v217_v44, 0  ;;  %v221_v50 = vperm.slane %v217_v44, 2  ;;  %v222_v53 = vperm.slane %v217_v44, 3 }
  0x46   :  { %517 = vmatpush.bf16.msrb.mxu0 %v8850_v8  ;;  %530 = vmatpush.bf16.msrb.mxu1 %v8852_v9 }
  0x47   :  { %543 = vmatpush.bf16.msrb.mxu2 %v8856_v15 }
  0x48   :  { %556 = vmatpush.bf16.msrb.mxu3 %v8858_v17 }
  0x4a   :  { %518 = vmatpush.bf16.msrb.mxu0 %v8862_v19  ;;  %531 = vmatpush.bf16.msrb.mxu1 %v8864_v20 }
  0x4b   :  { %544 = vmatpush.bf16.msrb.mxu2 %v8868_v24 }
  0x4c   :  { %557 = vmatpush.bf16.msrb.mxu3 %v8870_v27 }
  0x4e   :  { %519 = vmatpush.bf16.msrb.mxu0 %v8874_v35  ;;  %532 = vmatpush.bf16.msrb.mxu1 %v8876_v40 }
  0x4f   :  { %545 = vmatpush.bf16.msrb.mxu2 %v8880_v41 }
  0x50   :  { %558 = vmatpush.bf16.msrb.mxu3 %v8882_v42 }
  0x51   :  { %520 = vmatmul.bf16.vlgmr.msrb.gmra.mxu0 %v13007_v43  ;;  %533 = vmatmul.bf16.vlgmr.msrb.gmra.mxu1 %v13007_v43 }
  0x52   :  { %654 = vmatpush.bf16.msra.mxu0 %v8764_v55  ;;  %667 = vmatpush.bf16.msra.mxu1 %v8769_v58 }
  0x53   :  { %546 = vmatmul.bf16.vlgmr.msrb.gmra.mxu2 %v13007_v43  ;;  %559 = vmatmul.bf16.vlgmr.msrb.gmra.mxu3 %v13007_v43  ;;  %v13100_v43 = vmov 0 }
  0x54   :  { %680 = vmatpush.bf16.msra.mxu2 %v8771_v59  ;;  %693 = vmatpush.bf16.msra.mxu3 %v8776_v61 }
  0x56   :  { %655 = vmatpush.bf16.msra.mxu0 %v8794_v6  ;;  %668 = vmatpush.bf16.msra.mxu1 %v8801_v11 }
  0x58   :  { %681 = vmatpush.bf16.msra.mxu2 %v8803_v12  ;;  %694 = vmatpush.bf16.msra.mxu3 %v8806_v16 }
  0x5a   :  { %656 = vmatpush.bf16.msra.mxu0 %v8809_v23  ;;  %669 = vmatpush.bf16.msra.mxu1 %v8813_v25 }
  0x5c   :  { %682 = vmatpush.bf16.msra.mxu2 %v8815_v26  ;;  %695 = vmatpush.bf16.msra.mxu3 %v8818_v30 }
  0x5e   :  { %657 = vmatpush.bf16.msra.mxu0 %v8821_v36  ;;  %670 = vmatpush.bf16.msra.mxu1 %v8825_v37 }
  0x60   :  { %683 = vmatpush.bf16.msra.mxu2 %v8827_v38  ;;  %696 = vmatpush.bf16.msra.mxu3 %v8830_v39 }
  0x62   :  { %658 = vmatpush.bf16.msra.mxu0 %v8836_v51  ;;  %671 = vmatpush.bf16.msra.mxu1 %v8838_v52 }
  0x64   :  { %684 = vmatpush.bf16.msra.mxu2 %v8840_v56  ;;  %697 = vmatpush.bf16.msra.mxu3 %v8842_v57 }
  0x66   :  { %659 = vmatpush.bf16.msra.mxu0 %v8850_v8  ;;  %672 = vmatpush.bf16.msra.mxu1 %v8852_v9 }
  0x68   :  { %685 = vmatpush.bf16.msra.mxu2 %v8856_v15  ;;  %698 = vmatpush.bf16.msra.mxu3 %v8858_v17 }
  0x6a   :  { %660 = vmatpush.bf16.msra.mxu0 %v8862_v19  ;;  %673 = vmatpush.bf16.msra.mxu1 %v8864_v20 }
  0x6c   :  { %686 = vmatpush.bf16.msra.mxu2 %v8868_v24  ;;  %699 = vmatpush.bf16.msra.mxu3 %v8870_v27 }
  0x6e   :  { %661 = vmatpush.bf16.msra.mxu0 %v8874_v35  ;;  %674 = vmatpush.bf16.msra.mxu1 %v8876_v40 }
  0x70   :  { %687 = vmatpush.bf16.msra.mxu2 %v8880_v41  ;;  %700 = vmatpush.bf16.msra.mxu3 %v8882_v42 }
  0x72   :  { %796 = vmatpush.bf16.msrb.mxu0 %v8764_v55  ;;  %809 = vmatpush.bf16.msrb.mxu1 %v8769_v58 }
  0x74   :  { %822 = vmatpush.bf16.msrb.mxu2 %v8771_v59  ;;  %835 = vmatpush.bf16.msrb.mxu3 %v8776_v61 }
  0x76   :  { %797 = vmatpush.bf16.msrb.mxu0 %v8794_v6  ;;  %810 = vmatpush.bf16.msrb.mxu1 %v8801_v11 }
  0x78   :  { %823 = vmatpush.bf16.msrb.mxu2 %v8803_v12  ;;  %836 = vmatpush.bf16.msrb.mxu3 %v8806_v16 }
  0x7a   :  { %798 = vmatpush.bf16.msrb.mxu0 %v8809_v23  ;;  %811 = vmatpush.bf16.msrb.mxu1 %v8813_v25 }
  0x7c   :  { %824 = vmatpush.bf16.msrb.mxu2 %v8815_v26  ;;  %837 = vmatpush.bf16.msrb.mxu3 %v8818_v30 }
  0x7e   :  { %799 = vmatpush.bf16.msrb.mxu0 %v8821_v36  ;;  %812 = vmatpush.bf16.msrb.mxu1 %v8825_v37 }
  0x80   :  { %825 = vmatpush.bf16.msrb.mxu2 %v8827_v38  ;;  %838 = vmatpush.bf16.msrb.mxu3 %v8830_v39 }
  0x82   :  { %800 = vmatpush.bf16.msrb.mxu0 %v8836_v51  ;;  %813 = vmatpush.bf16.msrb.mxu1 %v8838_v52 }
  0x84   :  { %826 = vmatpush.bf16.msrb.mxu2 %v8840_v56  ;;  %839 = vmatpush.bf16.msrb.mxu3 %v8842_v57 }
  0x86   :  { %801 = vmatpush.bf16.msrb.mxu0 %v8850_v8  ;;  %814 = vmatpush.bf16.msrb.mxu1 %v8852_v9 }
  0x88   :  { %827 = vmatpush.bf16.msrb.mxu2 %v8856_v15  ;;  %840 = vmatpush.bf16.msrb.mxu3 %v8858_v17 }
  0x8a   :  { %802 = vmatpush.bf16.msrb.mxu0 %v8862_v19  ;;  %815 = vmatpush.bf16.msrb.mxu1 %v8864_v20 }
  0x8c   :  { %828 = vmatpush.bf16.msrb.mxu2 %v8868_v24  ;;  %841 = vmatpush.bf16.msrb.mxu3 %v8870_v27 }
  0x8e   :  { %803 = vmatpush.bf16.msrb.mxu0 %v8874_v35  ;;  %816 = vmatpush.bf16.msrb.mxu1 %v8876_v40 }
  0x90   :  { %829 = vmatpush.bf16.msrb.mxu2 %v8880_v41  ;;  %842 = vmatpush.bf16.msrb.mxu3 %v8882_v42 }
  0xbc   :  { %v240_v46 = vpop.f32.mrf.mxu0 }
  0xbd   :  { %v254_v47 = vpop.f32.mrf.mxu1  ;;  %v8959_v54 = vadd.f32 %v240_v46, %v219_v48 }
  0xbe   :  { %v255_v49 = vadd.f32 %v254_v47, %v220_v45 }
  0xc0   :  { %v8961_v60 = vrot.slane %v255_v49, 6 }
  0xc2   :  { %v302_v4 = vsel %vm301_vm1, %v8959_v54, %v8961_v60 }
  0xc4   :  { %v268_v62 = vpop.f32.mrf.mxu2  ;;  %v282_v63 = vpop.f32.mrf.mxu3 }
  0xc5   :  { %v269_v0 = vadd.f32 %v268_v62, %v221_v50  ;;  %v283_v1 = vadd.f32 %v282_v63, %v222_v53  ;;  %v242_v2 = vpop.f32.mrf.mxu0  ;;  %v256_v3 = vpop.f32.mrf.mxu1 }
  0xc6   :  { %v257_v13 = vadd.f32 %v256_v3, %v220_v45  ;;  %v8979_v34 = vadd.f32 %v242_v2, %v219_v48  ;;  %v8985_v45 = vand.u32 127, %v433_v18 }
  0xc7   :  { %v8966_v5 = vrot.slane %v269_v0, 4  ;;  %v8968_v7 = vrot.slane %v283_v1, 2 }
  0xc8   :  { %v8977_v28 = vrot.slane %v257_v13, 6  ;;  %13094 = vst [vmem:[#allocation16_spill] sm:$0xff] %v8985_v45  ;;  %v437_v0 = vadd.s32 384, %v8985_v45  ;;  %vm486_vm7 = vcmp.lt.s32.totalorder %v8985_v45, 64 }
  0xc9   :  { %v304_v10 = vsel %vm303_vm2, %v8966_v5, %v8968_v7  ;;  %v310_v13 = vsel %vm13026_vm5, %v8968_v7, %v8966_v5 }
  0xca   :  { %v8974_v14 = vsel %vm13034_vm3, %v302_v4, %v304_v10  ;;  %v333_v47 = vsel %vm13026_vm5, %v8977_v28, %v8979_v34  ;;  %v308_v10 = vsel %vm13027_vm4, %v8959_v54, %v8961_v60 }
  0xcb   :  { %13093 = vst [vmem:[#allocation15_spill] sm:$0xff] %v8974_v14 }
  0xcc   :  { %490 = vst [vmem:[#allocation1] ss:$4 sm:$0xff] %v8974_v14  ;;  %v270_v21 = vpop.f32.mrf.mxu2  ;;  %v284_v22 = vpop.f32.mrf.mxu3 }
  0xcd   :  { %v271_v29 = vadd.f32 %v270_v21, %v221_v50  ;;  %v285_v31 = vadd.f32 %v284_v22, %v222_v53  ;;  %v435_v53 = vadd.s32 128, %v8985_v45 }
  0xce   :  { %v521_v32 = vpop.f32.mrf.mxu0  ;;  %v534_v33 = vpop.f32.mrf.mxu1 }
  0xcf   :  { %v8981_v44 = vrot.slane %v271_v29, 4  ;;  %v8983_v46 = vrot.slane %v285_v31, 2  ;;  %v449_v22 = vand.u32 127, %v435_v53  ;;  %v463_v29 = vand.u32 127, %v437_v0 }
  0xd0   :  { %v9012_v31 = vsel %vm13033_vm6, %v308_v10, %v310_v13 }
  0xd1   :  { %v334_v49 = vsel %vm13027_vm4, %v8981_v44, %v8983_v46  ;;  %13096 = vst [vmem:[#allocation18_spill] sm:$0xff] %v9012_v31  ;;  %vm9015_vm8 = vcmp.lt.s32.totalorder %v449_v22, 64  ;;  %vm9020_vm9 = vcmp.lt.s32.totalorder %v463_v29, 64  ;;  %v330_v22 = vsel %vm301_vm1, %v8981_v44, %v8983_v46 }
  0xd2   :  { %v8994_v48 = vsel %vm13033_vm6, %v334_v49, %v333_v47  ;;  %v13097_v47 = vmov 0  ;;  %v13014_v49 = vrot.slane %v9012_v31, 2  ;;  %v13101_v43 = vsel %vm9020_vm9, 4294967295, %v13100_v43 }
  0xd3   :  { %13095 = vst [vmem:[#allocation17_spill] sm:$0xff] %v8994_v48  ;;  %v491_v50 = vld.sshfl [vmem:[#allocation1] sm:$0xff pattern:$0x73625140]  ;;  %v13009_v63 = vrot.slane %v8994_v48, 6  ;;  %v13098_v47 = vsel %vm9015_vm8, 4294967295, %v13097_v47 }
  0xd4   :  { %v492_v62 = vld.sshfl [vmem:[#allocation1 + $0x8] sm:$0xff pattern:$0x73625140]  ;;  %v8999_v1 = vld.sshfl [vmem:[#allocation1 + $0x10] sm:$0xff pattern:$0x73625140] }
  0xd5   :  { %v494_v2 = vld.sshfl [vmem:[#allocation1 + $0x18] sm:$0xff pattern:$0x73625140]  ;;  %13099 = vst [vmem:[#allocation19_spill] sm:$0xff] %v13098_v47 }
  0xd6   :  { %v9001_v3 = vpop.f32.mrf.mxu2  ;;  %v560_v4 = vpop.f32.mrf.mxu3  ;;  %499 = vst [vmem:[#allocation1] ss:$4 sm:$0xff] %v13009_v63 }
  0xd7   :  { %v523_v18 = vpop.f32.mrf.mxu0  ;;  %v536_v21 = vpop.f32.mrf.mxu1  ;;  %13102 = vst [vmem:[#allocation20_spill] sm:$0xff] %v13101_v43 }
  0xdd   :  { %v500_v63 = vld.sshfl [vmem:[#allocation1] sm:$0xff pattern:$0x73625140]  ;;  %v501_v18 = vld.sshfl [vmem:[#allocation1 + $0x8] sm:$0xff pattern:$0x73625140] }
  0xde   :  { %v562_v21 = vpop.f32.mrf.mxu3  ;;  %v549_v53 = vpop.f32.mrf.mxu2  ;;  %v502_v0 = vld.sshfl [vmem:[#allocation1 + $0x10] sm:$0xff pattern:$0x73625140]  ;;  %v503_v14 = vld.sshfl [vmem:[#allocation1 + $0x18] sm:$0xff pattern:$0x73625140]  ;;  %v508_v10 = vsel %vm486_vm7, %v491_v50, %v500_v63  ;;  %v509_v13 = vsel %vm9015_vm8, %v492_v62, %v501_v18  ;;  %v329_v50 = vsel %vm303_vm2, %v8979_v34, %v8977_v28 }
  0xdf   :  { %631 = vst [vmem:[#allocation1] ss:$4 sm:$0xff] %v13014_v49  ;;  %v564_v29 = vadd.f32 %v521_v32, %v508_v10  ;;  %v565_v48 = vadd.f32 %v534_v33, %v509_v13  ;;  %v511_v21 = vsel %vm9020_vm9, %v494_v2, %v503_v14  ;;  %v9039_v62 = vsel %vm13034_vm3, %v330_v22, %v329_v50 }
  0xe0   :  { %v567_v53 = vadd.f32 %v560_v4, %v511_v21  ;;  %13103 = vst [vmem:[#allocation21_spill] sm:$0xff] %v9039_v62  ;;  %v13015_v49 = vrot.slane %v9039_v62, 4  ;;  %v436_v32 = vadd.s32 256, %v8985_v45 }
  0xe1   :  { %v7938_v63 = vmul.f32 -1.442695, %v564_v29  ;;  %v7939_v47 = vmul.f32 -1.442695, %v565_v48  ;;  %v314_v48 = vsel %vm303_vm2, %v8959_v54, %v8961_v60 }
  0xe2   :  { %v7940_v18 = vmul.f32 -1.442695, %v567_v53  ;;  %v456_v13 = vand.u32 127, %v436_v32  ;;  %v326_v32 = vsel %vm13026_vm5, %v8983_v46, %v8981_v44 }
  0xe3   :  { %8128 = vpow2.f32 %v7938_v63  ;;  %v13109_v63 = vmov 0 }
  0xe4   :  { %8130 = vpow2.f32 %v7939_v47  ;;  %v315_v47 = vsel %vm301_vm1, %v8966_v5, %v8968_v7  ;;  %vm9062_vm10 = vcmp.lt.s32.totalorder %v456_v13, 64 }
  0xe5   :  { %8132 = vpow2.f32 %v7940_v18  ;;  %v9060_v53 = vsel %vm13034_vm3, %v315_v47, %v314_v48  ;;  %v13110_v63 = vsel %vm9062_vm10, 4294967295, %v13109_v63  ;;  %v510_v13 = vsel %vm9062_vm10, %v8999_v1, %v502_v0 }
  0xe6   :  { %v9043_v33 = vld.sshfl [vmem:[#allocation1] sm:$0xff pattern:$0x73625140]  ;;  %v9045_v14 = vld.sshfl [vmem:[#allocation1 + $0x8] sm:$0xff pattern:$0x73625140] }
  0xe7   :  { %13104 = vst [vmem:[#allocation22_spill] sm:$0xff] %v9043_v33  ;;  %v9047_v2 = vld.sshfl [vmem:[#allocation1 + $0x10] sm:$0xff pattern:$0x73625140]  ;;  %v13023_v18 = vrot.slane %v9060_v53, 4 }
  0xe8   :  { %13105 = vst [vmem:[#allocation23_spill] sm:$0xff] %v9045_v14  ;;  %v9049_v4 = vld.sshfl [vmem:[#allocation1 + $0x18] sm:$0xff pattern:$0x73625140] }
  0xe9   :  { %13106 = vst [vmem:[#allocation24_spill] sm:$0xff] %v9047_v2  ;;  %v8129_v10 = vpop.eup %8128 }
  0xea   :  { %13107 = vst [vmem:[#allocation25_spill] sm:$0xff] %v9049_v4  ;;  %v8131_v22 = vpop.eup %8130  ;;  %v571_v29 = vadd.f32 1.0, %v8129_v10 }
  0xeb   :  { %640 = vst [vmem:[#allocation1] ss:$4 sm:$0xff] %v13015_v49  ;;  %v8133_v21 = vpop.eup %8132  ;;  %v590_v50 = vadd.f32 1.0, %v8131_v22  ;;  %v325_v22 = vsel %vm13027_vm4, %v8979_v34, %v8977_v28 }
  0xec   :  { %13108 = vst [vmem:[#allocation26_spill] sm:$0xff] %v9060_v53  ;;  %8134 = vrcp.f32 %v571_v29  ;;  %v9067_v2 = vadd.f32 1.0, %v8133_v21  ;;  %v566_v21 = vadd.f32 %v9001_v3, %v510_v13  ;;  %v581_v33 = vand.u32 2147483647, %v571_v29 }
  0xed   :  { %8136 = vrcp.f32 %v590_v50  ;;  %13111 = vst [vmem:[#allocation27_spill] sm:$0xff] %v13110_v63  ;;  %v602_v45 = vand.u32 2147483648, %v590_v50  ;;  %vm577_vm13 = vweird.f32 %v571_v29  ;;  %vm596_vm14 = vweird.f32 %v590_v50 }
  0xee   :  { %8138 = vrcp.f32 %v9067_v2 }
  0xef   :  { %8140 = vtanh.f32 %v566_v21 }
  0xf2   :  { %v9072_v10 = vld.sshfl [vmem:[#allocation1] sm:$0xff pattern:$0x73625140]  ;;  %v9074_v49 = vld.sshfl [vmem:[#allocation1 + $0x8] sm:$0xff pattern:$0x73625140]  ;;  %v8135_v43 = vpop.eup %8134 }
  0xf3   :  { %13112 = vst [vmem:[#allocation28_spill] sm:$0xff] %v9072_v10  ;;  %v9076_v48 = vld.sshfl [vmem:[#allocation1 + $0x10] sm:$0xff pattern:$0x73625140]  ;;  %v8137_v4 = vpop.eup %8136  ;;  %v583_v10 = vand.u32 2147483648, %v571_v29  ;;  %vm578_vm11 = vweird.f32 %v8135_v43 }
  0xf4   :  { %13113 = vst [vmem:[#allocation29_spill] sm:$0xff] %v9074_v49  ;;  %v9078_v47 = vld.sshfl [vmem:[#allocation1 + $0x18] sm:$0xff pattern:$0x73625140]  ;;  %v592_v14 = vmul.f32 %v8137_v4, %v590_v50  ;;  %v8139_v63 = vpop.eup %8138  ;;  %vm597_vm12 = vweird.f32 %v8137_v4  ;;  %vm579_vm15 = vmor %vm577_vm13, %vm578_vm11 }
  0xf5   :  { %13114 = vst [vmem:[#allocation30_spill] sm:$0xff] %v9076_v48  ;;  %v9091_v48 = vsel %vm13033_vm6, %v325_v22, %v326_v32  ;;  %v612_v3 = vmul.f32 %v8139_v63, %v9067_v2 }
  0xf6   :  { %13115 = vst [vmem:[#allocation31_spill] sm:$0xff] %v9078_v47  ;;  %v573_v47 = vmul.f32 %v8135_v43, %v571_v29  ;;  %v593_v49 = vsub.f32 1.0, %v592_v14  ;;  %v319_v14 = vsel %vm13027_vm4, %v8966_v5, %v8968_v7  ;;  %vm598_vm4 = vmor %vm596_vm14, %vm597_vm12 }
  0xf7   :  { %773 = vst [vmem:[#allocation1] ss:$4 sm:$0xff] %v13023_v18  ;;  %v600_v18 = vand.u32 2147483647, %v590_v50  ;;  %v613_v62 = vsub.f32 1.0, %v612_v3 }
  0xf8   :  { %v574_v0 = vsub.f32 1.0, %v573_v47  ;;  %v594_v22 = vmul.f32 %v8137_v4, %v593_v49  ;;  %v318_v47 = vsel %vm13026_vm5, %v8961_v60, %v8959_v54  ;;  %v584_v49 = vor.u32 1.1754944e-38, %v583_v10  ;;  %v8141_v54 = vpop.eup %8140 }
  0xf9   :  { %v603_v60 = vor.u32 1.1754944e-38, %v602_v45  ;;  %vm582_vm5 = vcmp.eq.f32.partialorder %v581_v33, 8.507059e+37  ;;  %vm601_vm0 = vcmp.eq.f32.partialorder %v600_v18, 8.507059e+37  ;;  %v614_v50 = vmul.f32 %v8139_v63, %v613_v62 }
  0xfa   :  { %v575_v31 = vmul.f32 %v8135_v43, %v574_v0  ;;  %v622_v45 = vand.u32 2147483648, %v9067_v2  ;;  %v620_v62 = vand.u32 2147483647, %v9067_v2 }
  0xfc   :  { %v576_v1 = vadd.f32 %v8135_v43, %v575_v31  ;;  %v9114_v31 = vsel %vm13033_vm6, %v319_v14, %v318_v47  ;;  %v623_v3 = vor.u32 1.1754944e-38, %v622_v45  ;;  %vm621_vm11 = vcmp.eq.f32.partialorder %v620_v62, 8.507059e+37 }
  0xfd   :  { %v321_v10 = vrot.slane %v9114_v31, 6  ;;  %v323_v47 = vsel %vm303_vm2, %v8981_v44, %v8983_v46 }
  0xfe   :  { %v9095_v13 = vld.sshfl [vmem:[#allocation1] sm:$0xff pattern:$0x73625140]  ;;  %v9097_v32 = vld.sshfl [vmem:[#allocation1 + $0x8] sm:$0xff pattern:$0x73625140]  ;;  %v580_v53 = vsel %vm579_vm15, %v8135_v43, %v576_v1 }
  0xff   :  { %13116 = vst [vmem:[#allocation32_spill] sm:$0xff] %v9095_v13  ;;  %v9105_v21 = vld.sshfl [vmem:[#allocation1 + $0x10] sm:$0xff pattern:$0x73625140]  ;;  %v13119_v13 = vrot.slane %v9091_v48, 2  ;;  %v585_v5 = vsel %vm582_vm5, %v584_v49, %v580_v53  ;;  %vm617_vm5 = vweird.f32 %v8139_v63  ;;  %v322_v49 = vsel %vm301_vm1, %v8979_v34, %v8977_v28 }
 0x100   :  { %13117 = vst [vmem:[#allocation33_spill] sm:$0xff] %v9097_v32  ;;  %v9107_v0 = vld.sshfl [vmem:[#allocation1 + $0x18] sm:$0xff pattern:$0x73625140]  ;;  %v595_v32 = vadd.f32 %v8137_v4, %v594_v22 }
 0x101   :  { %13118 = vst [vmem:[#allocation34_spill] sm:$0xff] %v9105_v21 }
 0x102   :  { %782 = vst [vmem:[#allocation1] ss:$4 sm:$0xff] %v13119_v13  ;;  %v599_v7 = vsel %vm598_vm4, %v8137_v4, %v595_v32  ;;  %v627_v13 = vmul.f32 %v8141_v54, %v585_v5  ;;  %v615_v4 = vadd.f32 %v8139_v63, %v614_v50 }
 0x103   :  { %v604_v29 = vsel %vm601_vm0, %v603_v60, %v599_v7  ;;  %vm616_vm0 = vweird.f32 %v9067_v2  ;;  %v324_v2 = vsel %vm13034_vm3, %v322_v49, %v323_v47 }
 0x104   :  { %v626_v21 = vmul.f32 0.0, %v604_v29  ;;  %vm618_vm4 = vmor %vm616_vm0, %vm617_vm5 }
 0x105   :  { %v619_v1 = vsel %vm618_vm4, %v8139_v63, %v615_v4 }
 0x106   :  { %v9117_v22 = vadd.f32 %v627_v13, %v626_v21  ;;  %v624_v14 = vsel %vm621_vm11, %v623_v3, %v619_v1  ;;  %v13138_v1 = vrot.slane %v9091_v48, 2 }
 0x108   :  { %8142 = vtanh.f32 %v9117_v22 }
 0x109   :  { %v9120_v43 = vld.sshfl [vmem:[#allocation1] sm:$0xff pattern:$0x73625140]  ;;  %v9122_v33 = vld.sshfl [vmem:[#allocation1 + $0x8] sm:$0xff pattern:$0x73625140] }
 0x10a   :  { %v9124_v53 = vld.sshfl [vmem:[#allocation1 + $0x10] sm:$0xff pattern:$0x73625140]  ;;  %v9126_v18 = vld.sshfl [vmem:[#allocation1 + $0x18] sm:$0xff pattern:$0x73625140] }
 0x10b   :  { %13120 = vst [vmem:[#allocation35_spill] sm:$0xff] %v9124_v53 }
 0x10c   :  { %915 = vst [vmem:[#allocation1] ss:$4 sm:$0xff] %v321_v10 }
 0x10e   :  { %v8143_v32 = vpop.eup %8142 }
 0x10f   :  { %v9134_v21 = vmul.f32 %v8143_v32, %v624_v14  ;;  %v13143_v14 = vld [vmem:[#allocation26_spill] sm:$0xff] }
 0x110   :  { %v13144_v49 = vrot.slane %v13143_v14, 4  ;;  %v13155_v14 = vld [vmem:[#allocation18_spill] sm:$0xff] }
 0x111   :  { %13121 = vst [vmem:[#allocation36_spill] sm:$0xff] %v9134_v21  ;;  %v653_v44 = vpack.c.bf16 %v9134_v21, %v9134_v21 }
 0x113   :  { %v9139_v54 = vld.sshfl [vmem:[#allocation1] sm:$0xff pattern:$0x73625140]  ;;  %v9141_v60 = vld.sshfl [vmem:[#allocation1 + $0x8] sm:$0xff pattern:$0x73625140]  ;;  %662 = vmatmul.bf16.vlgmr.msra.gmra.mxu0 %v653_v44  ;;  %675 = vmatmul.bf16.vlgmr.msra.gmra.mxu1 %v653_v44 }
 0x114   :  { %13122 = vst [vmem:[#allocation37_spill] sm:$0xff] %v9139_v54  ;;  %v9144_v63 = vld.sshfl [vmem:[#allocation1 + $0x10] sm:$0xff pattern:$0x73625140]  ;;  %688 = vmatmul.bf16.vlgmr.msra.gmra.mxu2 %v653_v44  ;;  %701 = vmatmul.bf16.vlgmr.msra.gmra.mxu3 %v653_v44 }
 0x115   :  { %13123 = vst [vmem:[#allocation38_spill] sm:$0xff] %v9141_v60  ;;  %v9146_v5 = vld.sshfl [vmem:[#allocation1 + $0x18] sm:$0xff pattern:$0x73625140]  ;;  %938 = vmatpush.bf16.msra.mxu0 %v8764_v55  ;;  %951 = vmatpush.bf16.msra.mxu1 %v8769_v58 }
 0x116   :  { %13124 = vst [vmem:[#allocation39_spill] sm:$0xff] %v9144_v63  ;;  %964 = vmatpush.bf16.msra.mxu2 %v8771_v59  ;;  %977 = vmatpush.bf16.msra.mxu3 %v8776_v61 }
 0x117   :  { %13125 = vst [vmem:[#allocation40_spill] sm:$0xff] %v9146_v5 }
 0x118   :  { %924 = vst [vmem:[#allocation1] ss:$4 sm:$0xff] %v324_v2 }
 0x119   :  { %939 = vmatpush.bf16.msra.mxu0 %v8794_v6  ;;  %952 = vmatpush.bf16.msra.mxu1 %v8801_v11 }
 0x11a   :  { %965 = vmatpush.bf16.msra.mxu2 %v8803_v12  ;;  %978 = vmatpush.bf16.msra.mxu3 %v8806_v16 }
 0x11d   :  { %940 = vmatpush.bf16.msra.mxu0 %v8809_v23  ;;  %953 = vmatpush.bf16.msra.mxu1 %v8813_v25 }
 0x11e   :  { %966 = vmatpush.bf16.msra.mxu2 %v8815_v26  ;;  %979 = vmatpush.bf16.msra.mxu3 %v8818_v30 }
 0x11f   :  { %v9154_v28 = vld.sshfl [vmem:[#allocation1] sm:$0xff pattern:$0x73625140]  ;;  %v9156_v34 = vld.sshfl [vmem:[#allocation1 + $0x8] sm:$0xff pattern:$0x73625140] }
 0x120   :  { %13126 = vst [vmem:[#allocation41_spill] sm:$0xff] %v9154_v28  ;;  %v9160_v46 = vld.sshfl [vmem:[#allocation1 + $0x10] sm:$0xff pattern:$0x73625140] }
 0x121   :  { %13127 = vst [vmem:[#allocation42_spill] sm:$0xff] %v9156_v34  ;;  %v9162_v7 = vld.sshfl [vmem:[#allocation1 + $0x18] sm:$0xff pattern:$0x73625140]  ;;  %941 = vmatpush.bf16.msra.mxu0 %v8821_v36  ;;  %954 = vmatpush.bf16.msra.mxu1 %v8825_v37 }
 0x122   :  { %13128 = vst [vmem:[#allocation43_spill] sm:$0xff] %v9160_v46  ;;  %967 = vmatpush.bf16.msra.mxu2 %v8827_v38  ;;  %980 = vmatpush.bf16.msra.mxu3 %v8830_v39 }
 0x123   :  { %13129 = vst [vmem:[#allocation44_spill] sm:$0xff] %v9162_v7 }
 0x124   :  { %1057 = vst [vmem:[#allocation1] ss:$4 sm:$0xff] %v324_v2 }
 0x125   :  { %942 = vmatpush.bf16.msra.mxu0 %v8836_v51  ;;  %955 = vmatpush.bf16.msra.mxu1 %v8838_v52 }
 0x126   :  { %968 = vmatpush.bf16.msra.mxu2 %v8840_v56  ;;  %981 = vmatpush.bf16.msra.mxu3 %v8842_v57 }
 0x129   :  { %943 = vmatpush.bf16.msra.mxu0 %v8850_v8  ;;  %956 = vmatpush.bf16.msra.mxu1 %v8852_v9 }
 0x12a   :  { %969 = vmatpush.bf16.msra.mxu2 %v8856_v15  ;;  %982 = vmatpush.bf16.msra.mxu3 %v8858_v17 }
 0x12b   :  { %v9172_v31 = vld.sshfl [vmem:[#allocation1] sm:$0xff pattern:$0x73625140]  ;;  %v9174_v29 = vld.sshfl [vmem:[#allocation1 + $0x8] sm:$0xff pattern:$0x73625140] }
 0x12c   :  { %13130 = vst [vmem:[#allocation45_spill] sm:$0xff] %v9172_v31  ;;  %v9178_v13 = vld.sshfl [vmem:[#allocation1 + $0x10] sm:$0xff pattern:$0x73625140]  ;;  %v13175_v31 = vld [vmem:[#allocation25_spill] sm:$0xff] }
 0x12d   :  { %13131 = vst [vmem:[#allocation46_spill] sm:$0xff] %v9174_v29  ;;  %v9180_v50 = vld.sshfl [vmem:[#allocation1 + $0x18] sm:$0xff pattern:$0x73625140]  ;;  %944 = vmatpush.bf16.msra.mxu0 %v8862_v19  ;;  %957 = vmatpush.bf16.msra.mxu1 %v8864_v20 }
 0x12e   :  { %13132 = vst [vmem:[#allocation47_spill] sm:$0xff] %v9178_v13  ;;  %970 = vmatpush.bf16.msra.mxu2 %v8868_v24  ;;  %983 = vmatpush.bf16.msra.mxu3 %v8870_v27  ;;  %v13149_v13 = vld [vmem:[#allocation21_spill] sm:$0xff] }
 0x12f   :  { %13133 = vst [vmem:[#allocation48_spill] sm:$0xff] %v9180_v50 }
 0x130   :  { %1066 = vst [vmem:[#allocation1] ss:$4 sm:$0xff] %v321_v10 }
 0x131   :  { %945 = vmatpush.bf16.msra.mxu0 %v8874_v35  ;;  %958 = vmatpush.bf16.msra.mxu1 %v8876_v40 }
 0x132   :  { %971 = vmatpush.bf16.msra.mxu2 %v8880_v41  ;;  %984 = vmatpush.bf16.msra.mxu3 %v8882_v42 }
 0x137   :  { %v9190_v45 = vld.sshfl [vmem:[#allocation1] sm:$0xff pattern:$0x73625140]  ;;  %v9192_v4 = vld.sshfl [vmem:[#allocation1 + $0x8] sm:$0xff pattern:$0x73625140] }
 0x138   :  { %13134 = vst [vmem:[#allocation49_spill] sm:$0xff] %v9190_v45  ;;  %v9194_v10 = vld.sshfl [vmem:[#allocation1 + $0x10] sm:$0xff pattern:$0x73625140] }
 0x139   :  { %13135 = vst [vmem:[#allocation50_spill] sm:$0xff] %v9192_v4  ;;  %v9196_v62 = vld.sshfl [vmem:[#allocation1 + $0x18] sm:$0xff pattern:$0x73625140] }
 0x13a   :  { %13136 = vst [vmem:[#allocation51_spill] sm:$0xff] %v9194_v10  ;;  %v13150_v10 = vrot.slane %v13149_v13, 4  ;;  %v13161_v13 = vld [vmem:[#allocation17_spill] sm:$0xff] }
 0x13b   :  { %13137 = vst [vmem:[#allocation52_spill] sm:$0xff] %v9196_v62  ;;  %v13172_v62 = vld [vmem:[#allocation23_spill] sm:$0xff] }
 0x13c   :  { %1199 = vst [vmem:[#allocation1] ss:$4 sm:$0xff] %v13138_v1 }
 0x143   :  { %v9208_v3 = vld.sshfl [vmem:[#allocation1] sm:$0xff pattern:$0x73625140]  ;;  %v9210_v48 = vld.sshfl [vmem:[#allocation1 + $0x8] sm:$0xff pattern:$0x73625140] }
 0x144   :  { %13139 = vst [vmem:[#allocation53_spill] sm:$0xff] %v9208_v3  ;;  %v9212_v32 = vld.sshfl [vmem:[#allocation1 + $0x10] sm:$0xff pattern:$0x73625140] }
 0x145   :  { %13140 = vst [vmem:[#allocation54_spill] sm:$0xff] %v9210_v48  ;;  %v9214_v47 = vld.sshfl [vmem:[#allocation1 + $0x18] sm:$0xff pattern:$0x73625140] }
 0x146   :  { %13141 = vst [vmem:[#allocation55_spill] sm:$0xff] %v9212_v32 }
 0x147   :  { %13142 = vst [vmem:[#allocation56_spill] sm:$0xff] %v9214_v47 }
 0x148   :  { %1208 = vst [vmem:[#allocation1] ss:$4 sm:$0xff] %v13144_v49  ;;  %v13156_v49 = vrot.slane %v13155_v14, 2  ;;  %v13167_v14 = vld [vmem:[#allocation15_spill] sm:$0xff] }
 0x14f   :  { %v9218_v2 = vld.sshfl [vmem:[#allocation1] sm:$0xff pattern:$0x73625140]  ;;  %v9220_v44 = vld.sshfl [vmem:[#allocation1 + $0x8] sm:$0xff pattern:$0x73625140] }
 0x150   :  { %13145 = vst [vmem:[#allocation26_spill] sm:$0xff] %v9218_v2  ;;  %v9222_v1 = vld.sshfl [vmem:[#allocation1 + $0x10] sm:$0xff pattern:$0x73625140] }
 0x151   :  { %13146 = vst [vmem:[#allocation57_spill] sm:$0xff] %v9220_v44  ;;  %v9224_v21 = vld.sshfl [vmem:[#allocation1 + $0x18] sm:$0xff pattern:$0x73625140] }
 0x152   :  { %13147 = vst [vmem:[#allocation58_spill] sm:$0xff] %v9222_v1 }
 0x153   :  { %13148 = vst [vmem:[#allocation59_spill] sm:$0xff] %v9224_v21 }
 0x154   :  { %1341 = vst [vmem:[#allocation1] ss:$4 sm:$0xff] %v13150_v10  ;;  %v13162_v10 = vrot.slane %v13161_v13, 6 }
 0x15b   :  { %v9228_v3 = vld.sshfl [vmem:[#allocation1] sm:$0xff pattern:$0x73625140]  ;;  %v9230_v48 = vld.sshfl [vmem:[#allocation1 + $0x8] sm:$0xff pattern:$0x73625140] }
 0x15c   :  { %13151 = vst [vmem:[#allocation21_spill] sm:$0xff] %v9228_v3  ;;  %v9232_v32 = vld.sshfl [vmem:[#allocation1 + $0x10] sm:$0xff pattern:$0x73625140] }
 0x15d   :  { %13152 = vst [vmem:[#allocation60_spill] sm:$0xff] %v9230_v48  ;;  %v9234_v47 = vld.sshfl [vmem:[#allocation1 + $0x18] sm:$0xff pattern:$0x73625140] }
 0x15e   :  { %13153 = vst [vmem:[#allocation61_spill] sm:$0xff] %v9232_v32 }
 0x15f   :  { %13154 = vst [vmem:[#allocation62_spill] sm:$0xff] %v9234_v47 }
 0x160   :  { %1350 = vst [vmem:[#allocation1] ss:$4 sm:$0xff] %v13156_v49  ;;  %v13168_v49 = vld [vmem:[#allocation28_spill] sm:$0xff] }
 0x167   :  { %v9238_v2 = vld.sshfl [vmem:[#allocation1] sm:$0xff pattern:$0x73625140]  ;;  %v9240_v44 = vld.sshfl [vmem:[#allocation1 + $0x8] sm:$0xff pattern:$0x73625140] }
 0x168   :  { %13157 = vst [vmem:[#allocation18_spill] sm:$0xff] %v9238_v2  ;;  %v9242_v1 = vld.sshfl [vmem:[#allocation1 + $0x10] sm:$0xff pattern:$0x73625140]  ;;  %v13169_v2 = vld [vmem:[#allocation22_spill] sm:$0xff] }
 0x169   :  { %13158 = vst [vmem:[#allocation63_spill] sm:$0xff] %v9240_v44  ;;  %v9244_v21 = vld.sshfl [vmem:[#allocation1 + $0x18] sm:$0xff pattern:$0x73625140] }
 0x16a   :  { %13159 = vst [vmem:[#allocation64_spill] sm:$0xff] %v9242_v1  ;;  %v649_v1 = vsel %vm486_vm7, %v13169_v2, %v13168_v49 }
 0x16b   :  { %13160 = vst [vmem:[#allocation65_spill] sm:$0xff] %v9244_v21  ;;  %v13171_v21 = vld [vmem:[#allocation29_spill] sm:$0xff] }
 0x16c   :  { %1483 = vst [vmem:[#allocation1] ss:$4 sm:$0xff] %v13162_v10  ;;  %v650_v10 = vsel %vm9015_vm8, %v13172_v62, %v13171_v21 }
 0x173   :  { %v9248_v3 = vld.sshfl [vmem:[#allocation1] sm:$0xff pattern:$0x73625140]  ;;  %v9250_v48 = vld.sshfl [vmem:[#allocation1 + $0x8] sm:$0xff pattern:$0x73625140] }
 0x174   :  { %13163 = vst [vmem:[#allocation17_spill] sm:$0xff] %v9248_v3  ;;  %v9252_v32 = vld.sshfl [vmem:[#allocation1 + $0x10] sm:$0xff pattern:$0x73625140] }
 0x175   :  { %13164 = vst [vmem:[#allocation66_spill] sm:$0xff] %v9250_v48  ;;  %v9254_v47 = vld.sshfl [vmem:[#allocation1 + $0x18] sm:$0xff pattern:$0x73625140] }
 0x176   :  { %13165 = vst [vmem:[#allocation67_spill] sm:$0xff] %v9252_v32 }
 0x177   :  { %13166 = vst [vmem:[#allocation68_spill] sm:$0xff] %v9254_v47 }
 0x178   :  { %1492 = vst [vmem:[#allocation1] ss:$4 sm:$0xff] %v13167_v14  ;;  %v13174_v14 = vld [vmem:[#allocation31_spill] sm:$0xff] }
 0x179   :  { %v652_v63 = vsel %vm9020_vm9, %v13175_v31, %v13174_v14 }
 0x190   :  { %v663_v50 = vpop.f32.mrf.mxu0  ;;  %v676_v3 = vpop.f32.mrf.mxu1 }
 0x191   :  { %v706_v29 = vadd.f32 %v663_v50, %v649_v1  ;;  %v707_v48 = vadd.f32 %v676_v3, %v650_v10 }
 0x193   :  { %v7941_v4 = vmul.f32 -1.442695, %v706_v29  ;;  %v7942_v32 = vmul.f32 -1.442695, %v707_v48  ;;  %v13177_v48 = vld [vmem:[#allocation30_spill] sm:$0xff] }
 0x195   :  { %8144 = vpow2.f32 %v7941_v4 }
 0x196   :  { %8146 = vpow2.f32 %v7942_v32  ;;  %v13178_v32 = vld [vmem:[#allocation24_spill] sm:$0xff] }
 0x197   :  { %v689_v47 = vpop.f32.mrf.mxu2  ;;  %v702_v2 = vpop.f32.mrf.mxu3  ;;  %v651_v31 = vsel %vm9062_vm10, %v13178_v32, %v13177_v48 }
 0x198   :  { %v709_v49 = vadd.f32 %v702_v2, %v652_v63  ;;  %v665_v46 = vpop.f32.mrf.mxu0  ;;  %v678_v5 = vpop.f32.mrf.mxu1 }
 0x199   :  { %v708_v46 = vadd.f32 %v689_v47, %v651_v31 }
 0x19a   :  { %v7943_v7 = vmul.f32 -1.442695, %v709_v49 }
 0x19b   :  { %v8145_v60 = vpop.eup %8144 }
 0x19c   :  { %v8147_v21 = vpop.eup %8146  ;;  %v713_v62 = vadd.f32 1.0, %v8145_v60  ;;  %8148 = vpow2.f32 %v7943_v7 }
 0x19d   :  { %v732_v50 = vadd.f32 1.0, %v8147_v21 }
 0x19e   :  { %8150 = vrcp.f32 %v713_v62  ;;  %v725_v49 = vand.u32 2147483648, %v713_v62  ;;  %vm719_vm14 = vweird.f32 %v713_v62 }
 0x19f   :  { %8152 = vrcp.f32 %v732_v50  ;;  %v691_v29 = vpop.f32.mrf.mxu2  ;;  %v704_v4 = vpop.f32.mrf.mxu3  ;;  %v744_v21 = vand.u32 2147483648, %v732_v50  ;;  %v742_v54 = vand.u32 2147483647, %v732_v50  ;;  %vm738_vm15 = vweird.f32 %v732_v50 }
 0x1a0   :  { %v723_v4 = vand.u32 2147483647, %v713_v62  ;;  %v726_v47 = vor.u32 1.1754944e-38, %v725_v49 }
 0x1a1   :  { %v745_v31 = vor.u32 1.1754944e-38, %v744_v21  ;;  %vm743_vm11 = vcmp.eq.f32.partialorder %v742_v54, 8.507059e+37 }
 0x1a2   :  { %v8149_v3 = vpop.eup %8148  ;;  %vm724_vm4 = vcmp.eq.f32.partialorder %v723_v4, 8.507059e+37 }
 0x1a3   :  { %v752_v10 = vadd.f32 1.0, %v8149_v3 }
 0x1a4   :  { %v8151_v63 = vpop.eup %8150 }
 0x1a5   :  { %v8153_v5 = vpop.eup %8152  ;;  %v715_v14 = vmul.f32 %v8151_v63, %v713_v62  ;;  %8154 = vrcp.f32 %v752_v10  ;;  %vm720_vm12 = vweird.f32 %v8151_v63 }
 0x1a6   :  { %v734_v2 = vmul.f32 %v8153_v5, %v732_v50  ;;  %8156 = vtanh.f32 %v708_v46  ;;  %vm739_vm13 = vweird.f32 %v8153_v5  ;;  %vm721_vm5 = vmor %vm719_vm14, %vm720_vm12 }
 0x1a7   :  { %v716_v60 = vsub.f32 1.0, %v715_v14  ;;  %vm740_vm0 = vmor %vm738_vm15, %vm739_vm13  ;;  %vm758_vm13 = vweird.f32 %v752_v10 }
 0x1a8   :  { %v735_v7 = vsub.f32 1.0, %v734_v2 }
 0x1a9   :  { %v717_v29 = vmul.f32 %v8151_v63, %v716_v60 }
 0x1aa   :  { %v736_v34 = vmul.f32 %v8153_v5, %v735_v7 }
 0x1ab   :  { %v8155_v28 = vpop.eup %8154  ;;  %v718_v48 = vadd.f32 %v8151_v63, %v717_v29 }
 0x1ac   :  { %v737_v3 = vadd.f32 %v8153_v5, %v736_v34  ;;  %v754_v32 = vmul.f32 %v8155_v28, %v752_v10  ;;  %v8157_v46 = vpop.eup %8156  ;;  %vm759_vm12 = vweird.f32 %v8155_v28  ;;  %v764_v34 = vand.u32 2147483648, %v752_v10 }
 0x1ad   :  { %v722_v14 = vsel %vm721_vm5, %v8151_v63, %v718_v48  ;;  %v762_v63 = vand.u32 2147483647, %v752_v10  ;;  %vm760_vm14 = vmor %vm758_vm13, %vm759_vm12 }
 0x1ae   :  { %v727_v2 = vsel %vm724_vm4, %v726_v47, %v722_v14  ;;  %v741_v60 = vsel %vm740_vm0, %v8153_v5, %v737_v3  ;;  %v755_v1 = vsub.f32 1.0, %v754_v32  ;;  %v765_v21 = vor.u32 1.1754944e-38, %v764_v34 }
 0x1af   :  { %v746_v7 = vsel %vm743_vm11, %v745_v31, %v741_v60  ;;  %v769_v53 = vmul.f32 %v8157_v46, %v727_v2  ;;  %vm763_vm15 = vcmp.eq.f32.partialorder %v762_v63, 8.507059e+37  ;;  %v794_v2 = vsel %vm9020_vm9, %v9107_v0, %v9126_v18 }
 0x1b0   :  { %v768_v45 = vmul.f32 %v746_v7, %v9117_v22  ;;  %v756_v29 = vmul.f32 %v8155_v28, %v755_v1  ;;  %v13182_v1 = vld [vmem:[#allocation33_spill] sm:$0xff] }
 0x1b1   :  { %v792_v10 = vsel %vm9015_vm8, %v13182_v1, %v9122_v33 }
 0x1b2   :  { %v9274_v62 = vadd.f32 %v769_v53, %v768_v45  ;;  %v757_v50 = vadd.f32 %v8155_v28, %v756_v29  ;;  %v13181_v53 = vld [vmem:[#allocation32_spill] sm:$0xff] }
 0x1b4   :  { %8158 = vtanh.f32 %v9274_v62  ;;  %v761_v49 = vsel %vm760_vm14, %v8155_v28, %v757_v50  ;;  %v791_v28 = vsel %vm486_vm7, %v13181_v53, %v9120_v43  ;;  %v13185_v53 = vld [vmem:[#allocation34_spill] sm:$0xff] }
 0x1b5   :  { %v766_v5 = vsel %vm763_vm15, %v765_v21, %v761_v49 }
 0x1ba   :  { %v8159_v54 = vpop.eup %8158 }
 0x1bb   :  { %v9277_v4 = vmul.f32 %v8159_v54, %v766_v5 }
 0x1bd   :  { %13180 = vst [vmem:[#allocation15_spill] sm:$0xff] %v9277_v4  ;;  %v795_v22 = vpack.c.bf16 %v9277_v4, %v9277_v4 }
 0x1bf   :  { %804 = vmatmul.bf16.vlgmr.msrb.gmra.mxu0 %v795_v22  ;;  %817 = vmatmul.bf16.vlgmr.msrb.gmra.mxu1 %v795_v22 }
 0x1c0   :  { %830 = vmatmul.bf16.vlgmr.msrb.gmra.mxu2 %v795_v22  ;;  %843 = vmatmul.bf16.vlgmr.msrb.gmra.mxu3 %v795_v22  ;;  %v13184_v22 = vld [vmem:[#allocation35_spill] sm:$0xff] }
 0x1c1   :  { %1080 = vmatpush.bf16.msrb.mxu0 %v8764_v55  ;;  %1093 = vmatpush.bf16.msrb.mxu1 %v8769_v58  ;;  %v793_v0 = vsel %vm9062_vm10, %v13185_v53, %v13184_v22 }
 0x1c2   :  { %1106 = vmatpush.bf16.msrb.mxu2 %v8771_v59  ;;  %1119 = vmatpush.bf16.msrb.mxu3 %v8776_v61 }
 0x1c5   :  { %1081 = vmatpush.bf16.msrb.mxu0 %v8794_v6  ;;  %1094 = vmatpush.bf16.msrb.mxu1 %v8801_v11 }
 0x1c6   :  { %1107 = vmatpush.bf16.msrb.mxu2 %v8803_v12  ;;  %1120 = vmatpush.bf16.msrb.mxu3 %v8806_v16 }
 0x1c9   :  { %1082 = vmatpush.bf16.msrb.mxu0 %v8809_v23  ;;  %1095 = vmatpush.bf16.msrb.mxu1 %v8813_v25 }
 0x1ca   :  { %1108 = vmatpush.bf16.msrb.mxu2 %v8815_v26  ;;  %1121 = vmatpush.bf16.msrb.mxu3 %v8818_v30 }
 0x1cd   :  { %1083 = vmatpush.bf16.msrb.mxu0 %v8821_v36  ;;  %1096 = vmatpush.bf16.msrb.mxu1 %v8825_v37 }
 0x1ce   :  { %1109 = vmatpush.bf16.msrb.mxu2 %v8827_v38  ;;  %1122 = vmatpush.bf16.msrb.mxu3 %v8830_v39 }
 0x1d1   :  { %1084 = vmatpush.bf16.msrb.mxu0 %v8836_v51  ;;  %1097 = vmatpush.bf16.msrb.mxu1 %v8838_v52 }
 0x1d2   :  { %1110 = vmatpush.bf16.msrb.mxu2 %v8840_v56  ;;  %1123 = vmatpush.bf16.msrb.mxu3 %v8842_v57 }
 0x1d5   :  { %1085 = vmatpush.bf16.msrb.mxu0 %v8850_v8  ;;  %1098 = vmatpush.bf16.msrb.mxu1 %v8852_v9 }
 0x1d6   :  { %1111 = vmatpush.bf16.msrb.mxu2 %v8856_v15  ;;  %1124 = vmatpush.bf16.msrb.mxu3 %v8858_v17 }
 0x1d9   :  { %1086 = vmatpush.bf16.msrb.mxu0 %v8862_v19  ;;  %1099 = vmatpush.bf16.msrb.mxu1 %v8864_v20 }
 0x1da   :  { %1112 = vmatpush.bf16.msrb.mxu2 %v8868_v24  ;;  %1125 = vmatpush.bf16.msrb.mxu3 %v8870_v27 }
 0x1dd   :  { %1087 = vmatpush.bf16.msrb.mxu0 %v8874_v35  ;;  %1100 = vmatpush.bf16.msrb.mxu1 %v8876_v40 }
 0x1de   :  { %1113 = vmatpush.bf16.msrb.mxu2 %v8880_v41  ;;  %1126 = vmatpush.bf16.msrb.mxu3 %v8882_v42 }
 0x23c   :  { %v805_v45 = vpop.f32.mrf.mxu0  ;;  %v818_v48 = vpop.f32.mrf.mxu1 }
 0x23d   :  { %v848_v47 = vadd.f32 %v805_v45, %v791_v28  ;;  %v849_v3 = vadd.f32 %v818_v48, %v792_v10 }
 0x23f   :  { %v7944_v32 = vmul.f32 -1.442695, %v848_v47  ;;  %v7945_v31 = vmul.f32 -1.442695, %v849_v3 }
 0x241   :  { %8160 = vpow2.f32 %v7944_v32 }
 0x242   :  { %8162 = vpow2.f32 %v7945_v31 }
 0x243   :  { %v831_v14 = vpop.f32.mrf.mxu2  ;;  %v844_v43 = vpop.f32.mrf.mxu3 }
 0x244   :  { %v851_v60 = vadd.f32 %v844_v43, %v794_v2  ;;  %v807_v7 = vpop.f32.mrf.mxu0  ;;  %v820_v29 = vpop.f32.mrf.mxu1  ;;  %v850_v1 = vadd.f32 %v831_v14, %v793_v0 }
 0x246   :  { %v7946_v50 = vmul.f32 -1.442695, %v851_v60 }
 0x247   :  { %v8161_v34 = vpop.eup %8160 }
 0x248   :  { %v8163_v33 = vpop.eup %8162  ;;  %v855_v63 = vadd.f32 1.0, %v8161_v34  ;;  %8164 = vpow2.f32 %v7946_v50 }
 0x249   :  { %v874_v49 = vadd.f32 1.0, %v8163_v33 }
 0x24a   :  { %8166 = vrcp.f32 %v855_v63  ;;  %v867_v31 = vand.u32 2147483648, %v855_v63  ;;  %v865_v60 = vand.u32 2147483647, %v855_v63  ;;  %vm861_vm4 = vweird.f32 %v855_v63 }
 0x24b   :  { %8168 = vrcp.f32 %v874_v49  ;;  %v833_v21 = vpop.f32.mrf.mxu2  ;;  %v846_v54 = vpop.f32.mrf.mxu3  ;;  %v886_v2 = vand.u32 2147483648, %v874_v49  ;;  %v884_v29 = vand.u32 2147483647, %v874_v49  ;;  %vm880_vm11 = vweird.f32 %v874_v49 }
 0x24c   :  { %v868_v14 = vor.u32 1.1754944e-38, %v867_v31  ;;  %vm866_vm14 = vcmp.eq.f32.partialorder %v865_v60, 8.507059e+37 }
 0x24d   :  { %v887_v54 = vor.u32 1.1754944e-38, %v886_v2  ;;  %vm885_vm15 = vcmp.eq.f32.partialorder %v884_v29, 8.507059e+37  ;;  %v13188_v29 = vld [vmem:[#allocation37_spill] sm:$0xff] }
 0x24e   :  { %v8165_v5 = vpop.eup %8164 }
 0x24f   :  { %v894_v18 = vadd.f32 1.0, %v8165_v5 }
 0x250   :  { %v8167_v45 = vpop.eup %8166 }
 0x251   :  { %v8169_v10 = vpop.eup %8168  ;;  %v857_v48 = vmul.f32 %v8167_v45, %v855_v63  ;;  %8170 = vrcp.f32 %v894_v18  ;;  %vm862_vm5 = vweird.f32 %v8167_v45  ;;  %v906_v31 = vand.u32 2147483648, %v894_v18 }
 0x252   :  { %v876_v47 = vmul.f32 %v8169_v10, %v874_v49  ;;  %8172 = vtanh.f32 %v850_v1  ;;  %vm881_vm0 = vweird.f32 %v8169_v10  ;;  %vm863_vm12 = vmor %vm861_vm4, %vm862_vm5 }
 0x253   :  { %v858_v3 = vsub.f32 1.0, %v857_v48  ;;  %vm882_vm13 = vmor %vm880_vm11, %vm881_vm0  ;;  %vm900_vm0 = vweird.f32 %v894_v18 }
 0x254   :  { %v877_v32 = vsub.f32 1.0, %v876_v47 }
 0x255   :  { %v859_v43 = vmul.f32 %v8167_v45, %v858_v3 }
 0x256   :  { %v878_v7 = vmul.f32 %v8169_v10, %v877_v32 }
 0x257   :  { %v8171_v50 = vpop.eup %8170  ;;  %v860_v34 = vadd.f32 %v8167_v45, %v859_v43  ;;  %v907_v43 = vor.u32 1.1754944e-38, %v906_v31 }
 0x258   :  { %v879_v33 = vadd.f32 %v8169_v10, %v878_v7  ;;  %v896_v21 = vmul.f32 %v8171_v50, %v894_v18  ;;  %v8173_v22 = vpop.eup %8172  ;;  %vm901_vm5 = vweird.f32 %v8171_v50 }
 0x259   :  { %v864_v5 = vsel %vm863_vm12, %v8167_v45, %v860_v34  ;;  %v904_v45 = vand.u32 2147483647, %v894_v18  ;;  %vm902_vm4 = vmor %vm900_vm0, %vm901_vm5  ;;  %v13187_v18 = vld [vmem:[#allocation41_spill] sm:$0xff] }
 0x25a   :  { %v869_v53 = vsel %vm866_vm14, %v868_v14, %v864_v5  ;;  %v883_v0 = vsel %vm882_vm13, %v8169_v10, %v879_v33  ;;  %v897_v1 = vsub.f32 1.0, %v896_v21  ;;  %v13189_v14 = vld [vmem:[#allocation42_spill] sm:$0xff] }
 0x25b   :  { %v888_v48 = vsel %vm885_vm15, %v887_v54, %v883_v0  ;;  %v911_v47 = vmul.f32 %v8173_v22, %v869_v53  ;;  %vm905_vm11 = vcmp.eq.f32.partialorder %v904_v45, 8.507059e+37  ;;  %v13190_v33 = vld [vmem:[#allocation38_spill] sm:$0xff] }
 0x25c   :  { %v910_v3 = vmul.f32 %v888_v48, %v9274_v62  ;;  %v898_v32 = vmul.f32 %v8171_v50, %v897_v1  ;;  %v934_v21 = vsel %vm9015_vm8, %v13190_v33, %v13189_v14  ;;  %v13191_v48 = vld [vmem:[#allocation44_spill] sm:$0xff]  ;;  %v13194_v14 = vld [vmem:[#allocation39_spill] sm:$0xff] }
 0x25e   :  { %v9330_v63 = vadd.f32 %v911_v47, %v910_v3  ;;  %v899_v49 = vadd.f32 %v8171_v50, %v898_v32  ;;  %v13192_v47 = vld [vmem:[#allocation40_spill] sm:$0xff] }
 0x25f   :  { %v936_v3 = vsel %vm9020_vm9, %v13192_v47, %v13191_v48 }
 0x260   :  { %8174 = vtanh.f32 %v9330_v63  ;;  %v903_v2 = vsel %vm902_vm4, %v8171_v50, %v899_v49  ;;  %v933_v50 = vsel %vm486_vm7, %v13188_v29, %v13187_v18 }
 0x261   :  { %v908_v60 = vsel %vm905_vm11, %v907_v43, %v903_v2 }
 0x266   :  { %v8175_v10 = vpop.eup %8174 }
 0x267   :  { %v9333_v7 = vmul.f32 %v8175_v10, %v908_v60 }
 0x269   :  { %1643 = vrot.lane.b32.xlu2 %v9333_v7, %s8619_s4  ;;  %v937_v62 = vpack.c.bf16 %v9333_v7, %v9333_v7 }
 0x26b   :  { %946 = vmatmul.bf16.vlgmr.msra.gmra.mxu0 %v937_v62  ;;  %959 = vmatmul.bf16.vlgmr.msra.gmra.mxu1 %v937_v62 }
 0x26c   :  { %972 = vmatmul.bf16.vlgmr.msra.gmra.mxu2 %v937_v62  ;;  %985 = vmatmul.bf16.vlgmr.msra.gmra.mxu3 %v937_v62 }
 0x26d   :  { %1222 = vmatpush.bf16.msra.mxu0 %v8764_v55  ;;  %1235 = vmatpush.bf16.msra.mxu1 %v8769_v58 }
 0x26e   :  { %1248 = vmatpush.bf16.msra.mxu2 %v8771_v59  ;;  %1261 = vmatpush.bf16.msra.mxu3 %v8776_v61 }
 0x271   :  { %1223 = vmatpush.bf16.msra.mxu0 %v8794_v6  ;;  %1236 = vmatpush.bf16.msra.mxu1 %v8801_v11 }
 0x272   :  { %1249 = vmatpush.bf16.msra.mxu2 %v8803_v12  ;;  %1262 = vmatpush.bf16.msra.mxu3 %v8806_v16 }
 0x275   :  { %1224 = vmatpush.bf16.msra.mxu0 %v8809_v23  ;;  %1237 = vmatpush.bf16.msra.mxu1 %v8813_v25 }
 0x276   :  { %1250 = vmatpush.bf16.msra.mxu2 %v8815_v26  ;;  %1263 = vmatpush.bf16.msra.mxu3 %v8818_v30 }
 0x279   :  { %1225 = vmatpush.bf16.msra.mxu0 %v8821_v36  ;;  %1238 = vmatpush.bf16.msra.mxu1 %v8825_v37 }
 0x27a   :  { %1251 = vmatpush.bf16.msra.mxu2 %v8827_v38  ;;  %1264 = vmatpush.bf16.msra.mxu3 %v8830_v39 }
 0x27d   :  { %1226 = vmatpush.bf16.msra.mxu0 %v8836_v51  ;;  %1239 = vmatpush.bf16.msra.mxu1 %v8838_v52 }
 0x27e   :  { %1252 = vmatpush.bf16.msra.mxu2 %v8840_v56  ;;  %1265 = vmatpush.bf16.msra.mxu3 %v8842_v57 }
 0x281   :  { %1227 = vmatpush.bf16.msra.mxu0 %v8850_v8  ;;  %1240 = vmatpush.bf16.msra.mxu1 %v8852_v9 }
 0x282   :  { %1253 = vmatpush.bf16.msra.mxu2 %v8856_v15  ;;  %1266 = vmatpush.bf16.msra.mxu3 %v8858_v17 }
 0x285   :  { %1228 = vmatpush.bf16.msra.mxu0 %v8862_v19  ;;  %1241 = vmatpush.bf16.msra.mxu1 %v8864_v20 }
 0x286   :  { %1254 = vmatpush.bf16.msra.mxu2 %v8868_v24  ;;  %1267 = vmatpush.bf16.msra.mxu3 %v8870_v27 }
 0x289   :  { %1229 = vmatpush.bf16.msra.mxu0 %v8874_v35  ;;  %1242 = vmatpush.bf16.msra.mxu1 %v8876_v40 }
 0x28a   :  { %1255 = vmatpush.bf16.msra.mxu2 %v8880_v41  ;;  %1268 = vmatpush.bf16.msra.mxu3 %v8882_v42 }
 0x2e8   :  { %v947_v34 = vpop.f32.mrf.mxu0  ;;  %v960_v54 = vpop.f32.mrf.mxu1 }
 0x2e9   :  { %v990_v5 = vadd.f32 %v947_v34, %v933_v50  ;;  %v991_v22 = vadd.f32 %v960_v54, %v934_v21  ;;  %v13193_v34 = vld [vmem:[#allocation43_spill] sm:$0xff] }
 0x2ea   :  { %v935_v33 = vsel %vm9062_vm10, %v13194_v14, %v13193_v34 }
 0x2eb   :  { %v7947_v53 = vmul.f32 -1.442695, %v990_v5  ;;  %v7948_v0 = vmul.f32 -1.442695, %v991_v22 }
 0x2ed   :  { %8176 = vpow2.f32 %v7947_v53 }
 0x2ee   :  { %8178 = vpow2.f32 %v7948_v0 }
 0x2ef   :  { %v973_v1 = vpop.f32.mrf.mxu2  ;;  %v986_v32 = vpop.f32.mrf.mxu3 }
 0x2f0   :  { %v993_v49 = vadd.f32 %v986_v32, %v936_v3  ;;  %v949_v31 = vpop.f32.mrf.mxu0  ;;  %v962_v45 = vpop.f32.mrf.mxu1  ;;  %v992_v5 = vadd.f32 %v973_v1, %v935_v33 }
 0x2f2   :  { %v7949_v2 = vmul.f32 -1.442695, %v993_v49 }
 0x2f3   :  { %v8177_v43 = vpop.eup %8176 }
 0x2f4   :  { %v8179_v10 = vpop.eup %8178  ;;  %v997_v60 = vadd.f32 1.0, %v8177_v43  ;;  %8180 = vpow2.f32 %v7949_v2 }
 0x2f5   :  { %v1016_v62 = vadd.f32 1.0, %v8179_v10 }
 0x2f6   :  { %8182 = vrcp.f32 %v997_v60  ;;  %v1009_v3 = vand.u32 2147483648, %v997_v60  ;;  %v1007_v31 = vand.u32 2147483647, %v997_v60  ;;  %vm1003_vm14 = vweird.f32 %v997_v60 }
 0x2f7   :  { %8184 = vrcp.f32 %v1016_v62  ;;  %v975_v18 = vpop.f32.mrf.mxu2  ;;  %v988_v29 = vpop.f32.mrf.mxu3  ;;  %v1028_v32 = vand.u32 2147483648, %v1016_v62  ;;  %v1026_v2 = vand.u32 2147483647, %v1016_v62  ;;  %vm1022_vm15 = vweird.f32 %v1016_v62 }
 0x2f8   :  { %v1010_v1 = vor.u32 1.1754944e-38, %v1009_v3  ;;  %vm1008_vm4 = vcmp.eq.f32.partialorder %v1007_v31, 8.507059e+37 }
 0x2f9   :  { %vm1027_vm11 = vcmp.eq.f32.partialorder %v1026_v2, 8.507059e+37 }
 0x2fa   :  { %v8181_v50 = vpop.eup %8180 }
 0x2fb   :  { %v1036_v21 = vadd.f32 1.0, %v8181_v50  ;;  %v1029_v50 = vor.u32 1.1754944e-38, %v1028_v32 }
 0x2fc   :  { %v8183_v54 = vpop.eup %8182 }
 0x2fd   :  { %v8185_v22 = vpop.eup %8184  ;;  %v999_v53 = vmul.f32 %v8183_v54, %v997_v60  ;;  %8186 = vrcp.f32 %v1036_v21  ;;  %vm1004_vm12 = vweird.f32 %v8183_v54  ;;  %v1048_v3 = vand.u32 2147483648, %v1036_v21 }
 0x2fe   :  { %v1018_v0 = vmul.f32 %v8185_v22, %v1016_v62  ;;  %8188 = vtanh.f32 %v992_v5  ;;  %vm1023_vm13 = vweird.f32 %v8185_v22  ;;  %vm1005_vm5 = vmor %vm1003_vm14, %vm1004_vm12 }
 0x2ff   :  { %v1000_v48 = vsub.f32 1.0, %v999_v53  ;;  %vm1024_vm0 = vmor %vm1022_vm15, %vm1023_vm13  ;;  %vm1042_vm13 = vweird.f32 %v1036_v21  ;;  %v1049_v31 = vor.u32 1.1754944e-38, %v1048_v3 }
 0x300   :  { %v1019_v47 = vsub.f32 1.0, %v1018_v0 }
 0x301   :  { %v1001_v49 = vmul.f32 %v8183_v54, %v1000_v48 }
 0x302   :  { %v1020_v45 = vmul.f32 %v8185_v22, %v1019_v47 }
 0x303   :  { %v8187_v43 = vpop.eup %8186  ;;  %v1002_v10 = vadd.f32 %v8183_v54, %v1001_v49 }
 0x304   :  { %v1021_v18 = vadd.f32 %v8185_v22, %v1020_v45  ;;  %v1038_v29 = vmul.f32 %v8187_v43, %v1036_v21  ;;  %v8189_v14 = vpop.eup %8188  ;;  %vm1043_vm12 = vweird.f32 %v8187_v43 }
 0x305   :  { %v1006_v34 = vsel %vm1005_vm5, %v8183_v54, %v1002_v10  ;;  %v1046_v54 = vand.u32 2147483647, %v1036_v21  ;;  %vm1044_vm14 = vmor %vm1042_vm13, %vm1043_vm12  ;;  %v13195_v21 = vld [vmem:[#allocation49_spill] sm:$0xff] }
 0x306   :  { %v1011_v33 = vsel %vm1008_vm4, %v1010_v1, %v1006_v34  ;;  %v1025_v5 = vsel %vm1024_vm0, %v8185_v22, %v1021_v18  ;;  %v1039_v53 = vsub.f32 1.0, %v1038_v29  ;;  %v13197_v18 = vld [vmem:[#allocation50_spill] sm:$0xff] }
 0x307   :  { %v1030_v0 = vsel %vm1027_vm11, %v1029_v50, %v1025_v5  ;;  %v1053_v48 = vmul.f32 %v8189_v14, %v1011_v33  ;;  %vm1047_vm15 = vcmp.eq.f32.partialorder %v1046_v54, 8.507059e+37  ;;  %v13198_v29 = vld [vmem:[#allocation46_spill] sm:$0xff] }
 0x308   :  { %v1052_v47 = vmul.f32 %v1030_v0, %v9330_v63  ;;  %v1040_v49 = vmul.f32 %v8187_v43, %v1039_v53  ;;  %v1076_v50 = vsel %vm9015_vm8, %v13198_v29, %v13197_v18  ;;  %v13201_v18 = vld [vmem:[#allocation51_spill] sm:$0xff] }
 0x309   :  { %v13202_v29 = vld [vmem:[#allocation47_spill] sm:$0xff] }
 0x30a   :  { %v9388_v60 = vadd.f32 %v1053_v48, %v1052_v47  ;;  %v1041_v62 = vadd.f32 %v8187_v43, %v1040_v49  ;;  %v13199_v48 = vld [vmem:[#allocation52_spill] sm:$0xff] }
 0x30b   :  { %v13200_v47 = vld [vmem:[#allocation48_spill] sm:$0xff] }
 0x30c   :  { %8190 = vtanh.f32 %v9388_v60  ;;  %v1045_v32 = vsel %vm1044_vm14, %v8187_v43, %v1041_v62  ;;  %v13196_v43 = vld [vmem:[#allocation45_spill] sm:$0xff]  ;;  %v1078_v49 = vsel %vm9020_vm9, %v13200_v47, %v13199_v48 }
 0x30d   :  { %v1050_v45 = vsel %vm1047_vm15, %v1049_v31, %v1045_v32  ;;  %v1075_v10 = vsel %vm486_vm7, %v13196_v43, %v13195_v21 }
 0x312   :  { %v8191_v22 = vpop.eup %8190 }
 0x313   :  { %v9391_v2 = vmul.f32 %v8191_v22, %v1050_v45 }
 0x315   :  { %1641 = vrot.lane.b32.xlu2 %v9391_v2, %s8619_s4  ;;  %v1079_v63 = vpack.c.bf16 %v9391_v2, %v9391_v2 }
 0x317   :  { %1088 = vmatmul.bf16.vlgmr.msrb.gmra.mxu0 %v1079_v63  ;;  %1101 = vmatmul.bf16.vlgmr.msrb.gmra.mxu1 %v1079_v63 }
 0x318   :  { %1114 = vmatmul.bf16.vlgmr.msrb.gmra.mxu2 %v1079_v63  ;;  %1127 = vmatmul.bf16.vlgmr.msrb.gmra.mxu3 %v1079_v63 }
 0x319   :  { %1364 = vmatpush.bf16.msrb.mxu0 %v8764_v55  ;;  %1377 = vmatpush.bf16.msrb.mxu1 %v8769_v58 }
 0x31a   :  { %1390 = vmatpush.bf16.msrb.mxu2 %v8771_v59  ;;  %1403 = vmatpush.bf16.msrb.mxu3 %v8776_v61 }
 0x31d   :  { %1365 = vmatpush.bf16.msrb.mxu0 %v8794_v6  ;;  %1378 = vmatpush.bf16.msrb.mxu1 %v8801_v11 }
 0x31e   :  { %1391 = vmatpush.bf16.msrb.mxu2 %v8803_v12  ;;  %1404 = vmatpush.bf16.msrb.mxu3 %v8806_v16 }
 0x321   :  { %1366 = vmatpush.bf16.msrb.mxu0 %v8809_v23  ;;  %1379 = vmatpush.bf16.msrb.mxu1 %v8813_v25 }
 0x322   :  { %1392 = vmatpush.bf16.msrb.mxu2 %v8815_v26  ;;  %1405 = vmatpush.bf16.msrb.mxu3 %v8818_v30 }
 0x325   :  { %1367 = vmatpush.bf16.msrb.mxu0 %v8821_v36  ;;  %1380 = vmatpush.bf16.msrb.mxu1 %v8825_v37 }
 0x326   :  { %1393 = vmatpush.bf16.msrb.mxu2 %v8827_v38  ;;  %1406 = vmatpush.bf16.msrb.mxu3 %v8830_v39 }
 0x329   :  { %1368 = vmatpush.bf16.msrb.mxu0 %v8836_v51  ;;  %1381 = vmatpush.bf16.msrb.mxu1 %v8838_v52 }
 0x32a   :  { %1394 = vmatpush.bf16.msrb.mxu2 %v8840_v56  ;;  %1407 = vmatpush.bf16.msrb.mxu3 %v8842_v57 }
 0x32d   :  { %1369 = vmatpush.bf16.msrb.mxu0 %v8850_v8  ;;  %1382 = vmatpush.bf16.msrb.mxu1 %v8852_v9 }
 0x32e   :  { %1395 = vmatpush.bf16.msrb.mxu2 %v8856_v15  ;;  %1408 = vmatpush.bf16.msrb.mxu3 %v8858_v17 }
 0x331   :  { %1370 = vmatpush.bf16.msrb.mxu0 %v8862_v19  ;;  %1383 = vmatpush.bf16.msrb.mxu1 %v8864_v20 }
 0x332   :  { %1396 = vmatpush.bf16.msrb.mxu2 %v8868_v24  ;;  %1409 = vmatpush.bf16.msrb.mxu3 %v8870_v27 }
 0x335   :  { %1371 = vmatpush.bf16.msrb.mxu0 %v8874_v35  ;;  %1384 = vmatpush.bf16.msrb.mxu1 %v8876_v40 }
 0x336   :  { %1397 = vmatpush.bf16.msrb.mxu2 %v8880_v41  ;;  %1410 = vmatpush.bf16.msrb.mxu3 %v8882_v42 }
 0x394   :  { %v1089_v1 = vpop.f32.mrf.mxu0  ;;  %v1102_v34 = vpop.f32.mrf.mxu1 }
 0x395   :  { %v1132_v14 = vadd.f32 %v1089_v1, %v1075_v10  ;;  %v1133_v33 = vadd.f32 %v1102_v34, %v1076_v50  ;;  %v1077_v50 = vsel %vm9062_vm10, %v13202_v29, %v13201_v18 }
 0x397   :  { %v7950_v5 = vmul.f32 -1.442695, %v1132_v14  ;;  %v7951_v53 = vmul.f32 -1.442695, %v1133_v33 }
 0x399   :  { %8192 = vpow2.f32 %v7950_v5 }
 0x39a   :  { %8194 = vpow2.f32 %v7951_v53 }
 0x39b   :  { %v1115_v0 = vpop.f32.mrf.mxu2  ;;  %v1128_v62 = vpop.f32.mrf.mxu3 }
 0x39c   :  { %v1135_v3 = vadd.f32 %v1128_v62, %v1078_v49  ;;  %v1091_v54 = vpop.f32.mrf.mxu0  ;;  %v1104_v32 = vpop.f32.mrf.mxu1  ;;  %v1134_v33 = vadd.f32 %v1115_v0, %v1077_v50 }
 0x39e   :  { %v7952_v31 = vmul.f32 -1.442695, %v1135_v3 }
 0x39f   :  { %v8193_v22 = vpop.eup %8192 }
 0x3a0   :  { %v8195_v45 = vpop.eup %8194  ;;  %v1139_v63 = vadd.f32 1.0, %v8193_v22  ;;  %8196 = vpow2.f32 %v7952_v31 }
 0x3a1   :  { %v1158_v21 = vadd.f32 1.0, %v8195_v45 }
 0x3a2   :  { %8198 = vrcp.f32 %v1139_v63  ;;  %v1151_v62 = vand.u32 2147483648, %v1139_v63  ;;  %v1149_v32 = vand.u32 2147483647, %v1139_v63  ;;  %vm1145_vm4 = vweird.f32 %v1139_v63 }
 0x3a3   :  { %8200 = vrcp.f32 %v1158_v21  ;;  %v1117_v43 = vpop.f32.mrf.mxu2  ;;  %v1130_v10 = vpop.f32.mrf.mxu3  ;;  %v1170_v3 = vand.u32 2147483648, %v1158_v21  ;;  %v1168_v22 = vand.u32 2147483647, %v1158_v21  ;;  %vm1164_vm11 = vweird.f32 %v1158_v21 }
 0x3a4   :  { %v1152_v0 = vor.u32 1.1754944e-38, %v1151_v62  ;;  %vm1150_vm14 = vcmp.eq.f32.partialorder %v1149_v32, 8.507059e+37 }
 0x3a5   :  { %v1171_v18 = vor.u32 1.1754944e-38, %v1170_v3  ;;  %vm1169_vm15 = vcmp.eq.f32.partialorder %v1168_v22, 8.507059e+37 }
 0x3a6   :  { %v8197_v1 = vpop.eup %8196 }
 0x3a7   :  { %v1178_v34 = vadd.f32 1.0, %v8197_v1 }
 0x3a8   :  { %v8199_v14 = vpop.eup %8198 }
 0x3a9   :  { %v8201_v5 = vpop.eup %8200  ;;  %v1141_v53 = vmul.f32 %v8199_v14, %v1139_v63  ;;  %8202 = vrcp.f32 %v1178_v34  ;;  %vm1146_vm5 = vweird.f32 %v8199_v14  ;;  %v1190_v62 = vand.u32 2147483648, %v1178_v34 }
 0x3aa   :  { %v1160_v48 = vmul.f32 %v8201_v5, %v1158_v21  ;;  %8204 = vtanh.f32 %v1134_v33  ;;  %vm1165_vm0 = vweird.f32 %v8201_v5  ;;  %vm1147_vm12 = vmor %vm1145_vm4, %vm1146_vm5 }
 0x3ab   :  { %v1142_v47 = vsub.f32 1.0, %v1141_v53  ;;  %vm1166_vm13 = vmor %vm1164_vm11, %vm1165_vm0  ;;  %vm1184_vm0 = vweird.f32 %v1178_v34  ;;  %v1191_v32 = vor.u32 1.1754944e-38, %v1190_v62 }
 0x3ac   :  { %v1161_v49 = vsub.f32 1.0, %v1160_v48 }
 0x3ad   :  { %v1143_v54 = vmul.f32 %v8199_v14, %v1142_v47 }
 0x3ae   :  { %v1162_v31 = vmul.f32 %v8201_v5, %v1161_v49 }
 0x3af   :  { %v8203_v45 = vpop.eup %8202  ;;  %v1144_v43 = vadd.f32 %v8199_v14, %v1143_v54 }
 0x3b0   :  { %v1163_v10 = vadd.f32 %v8201_v5, %v1162_v31  ;;  %v1180_v1 = vmul.f32 %v8203_v45, %v1178_v34  ;;  %v8205_v50 = vpop.eup %8204  ;;  %vm1185_vm5 = vweird.f32 %v8203_v45 }
 0x3b1   :  { %v1148_v29 = vsel %vm1147_vm12, %v8199_v14, %v1144_v43  ;;  %v1188_v14 = vand.u32 2147483647, %v1178_v34  ;;  %vm1186_vm4 = vmor %vm1184_vm0, %vm1185_vm5  ;;  %vm13053_vm12 = vcmask 261120   ;;  %v13210_v43 = vld [vmem:[#allocation55_spill] sm:$0xff] }
 0x3b2   :  { %v1153_v33 = vsel %vm1150_vm14, %v1152_v0, %v1148_v29  ;;  %v1167_v53 = vsel %vm1166_vm13, %v8201_v5, %v1163_v10  ;;  %v1181_v48 = vsub.f32 1.0, %v1180_v1  ;;  %vm13052_vm13 = vcmask 517120  }
 0x3b3   :  { %v1172_v47 = vsel %vm1169_vm15, %v1171_v18, %v1167_v53  ;;  %v1195_v49 = vmul.f32 %v8205_v50, %v1153_v33  ;;  %vm1189_vm11 = vcmp.eq.f32.partialorder %v1188_v14, 8.507059e+37 }
 0x3b4   :  { %v1194_v4 = vmul.f32 %v1172_v47, %v9388_v60  ;;  %v1182_v54 = vmul.f32 %v8203_v45, %v1181_v48 }
 0x3b6   :  { %v9446_v63 = vadd.f32 %v1195_v49, %v1194_v4  ;;  %v1183_v21 = vadd.f32 %v8203_v45, %v1182_v54 }
 0x3b8   :  { %8206 = vtanh.f32 %v9446_v63  ;;  %v1187_v3 = vsel %vm1186_vm4, %v8203_v45, %v1183_v21  ;;  %v13209_v45 = vld [vmem:[#allocation58_spill] sm:$0xff] }
 0x3b9   :  { %v1192_v31 = vsel %vm1189_vm11, %v1191_v32, %v1187_v3  ;;  %v1219_v0 = vsel %vm9062_vm10, %v13210_v43, %v13209_v45 }
 0x3be   :  { %v8207_v5 = vpop.eup %8206 }
 0x3bf   :  { %v1198_v22 = vmul.f32 %v8207_v5, %v1192_v31 }
 0x3c1   :  { %1639 = vrot.lane.b32.xlu1 %v1198_v22, %s8619_s4  ;;  %v1221_v60 = vpack.c.bf16 %v1198_v22, %v1198_v22 }
 0x3c3   :  { %1230 = vmatmul.bf16.vlgmr.msra.gmra.mxu0 %v1221_v60  ;;  %1243 = vmatmul.bf16.vlgmr.msra.gmra.mxu1 %v1221_v60 }
 0x3c4   :  { %1256 = vmatmul.bf16.vlgmr.msra.gmra.mxu2 %v1221_v60  ;;  %1269 = vmatmul.bf16.vlgmr.msra.gmra.mxu3 %v1221_v60 }
 0x3c5   :  { %1506 = vmatpush.bf16.msra.mxu0 %v8764_v55  ;;  %1519 = vmatpush.bf16.msra.mxu1 %v8769_v58  ;;  %v9482_v55 = vpop.permute.xlu2 %1643 }
 0x3c6   :  { %1532 = vmatpush.bf16.msra.mxu2 %v8771_v59  ;;  %1545 = vmatpush.bf16.msra.mxu3 %v8776_v61 }
 0x3c9   :  { %1507 = vmatpush.bf16.msra.mxu0 %v8794_v6  ;;  %1520 = vmatpush.bf16.msra.mxu1 %v8801_v11 }
 0x3ca   :  { %1533 = vmatpush.bf16.msra.mxu2 %v8803_v12  ;;  %1546 = vmatpush.bf16.msra.mxu3 %v8806_v16  ;;  %v13203_v16 = vld [vmem:[#allocation26_spill] sm:$0xff] }
 0x3cd   :  { %1508 = vmatpush.bf16.msra.mxu0 %v8809_v23  ;;  %1521 = vmatpush.bf16.msra.mxu1 %v8813_v25  ;;  %v1642_v6 = vpop.permute.xlu2 %1641  ;;  %v13204_v23 = vld [vmem:[#allocation53_spill] sm:$0xff] }
 0x3ce   :  { %1534 = vmatpush.bf16.msra.mxu2 %v8815_v26  ;;  %1547 = vmatpush.bf16.msra.mxu3 %v8818_v30  ;;  %v9491_v11 = vsel %vm13053_vm12, %v1198_v22, %v1642_v6  ;;  %v1217_v25 = vsel %vm486_vm7, %v13204_v23, %v13203_v16  ;;  %v13205_v30 = vld [vmem:[#allocation57_spill] sm:$0xff] }
 0x3cf   :  { %v1679_v12 = vsel %vm13052_vm13, %v9491_v11, 0.0 }
 0x3d1   :  { %1509 = vmatpush.bf16.msra.mxu0 %v8821_v36  ;;  %1522 = vmatpush.bf16.msra.mxu1 %v8825_v37  ;;  %v13206_v36 = vld [vmem:[#allocation54_spill] sm:$0xff] }
 0x3d2   :  { %1535 = vmatpush.bf16.msra.mxu2 %v8827_v38  ;;  %1548 = vmatpush.bf16.msra.mxu3 %v8830_v39  ;;  %v1218_v37 = vsel %vm9015_vm8, %v13206_v36, %v13205_v30 }
 0x3d5   :  { %1510 = vmatpush.bf16.msra.mxu0 %v8836_v51  ;;  %1523 = vmatpush.bf16.msra.mxu1 %v8838_v52 }
 0x3d6   :  { %1536 = vmatpush.bf16.msra.mxu2 %v8840_v56  ;;  %1549 = vmatpush.bf16.msra.mxu3 %v8842_v57 }
 0x3d9   :  { %1511 = vmatpush.bf16.msra.mxu0 %v8850_v8  ;;  %1524 = vmatpush.bf16.msra.mxu1 %v8852_v9  ;;  %v13207_v8 = vld [vmem:[#allocation59_spill] sm:$0xff]  ;;  %v13208_v9 = vld [vmem:[#allocation56_spill] sm:$0xff] }
 0x3da   :  { %1537 = vmatpush.bf16.msra.mxu2 %v8856_v15  ;;  %1550 = vmatpush.bf16.msra.mxu3 %v8858_v17  ;;  %v1220_v15 = vsel %vm9020_vm9, %v13208_v9, %v13207_v8  ;;  %v13211_v9 = vld [vmem:[#allocation36_spill] sm:$0xff] }
 0x3dd   :  { %1512 = vmatpush.bf16.msra.mxu0 %v8862_v19  ;;  %1525 = vmatpush.bf16.msra.mxu1 %v8864_v20 }
 0x3de   :  { %1538 = vmatpush.bf16.msra.mxu2 %v8868_v24  ;;  %1551 = vmatpush.bf16.msra.mxu3 %v8870_v27 }
 0x3e1   :  { %1513 = vmatpush.bf16.msra.mxu0 %v8874_v35  ;;  %1526 = vmatpush.bf16.msra.mxu1 %v8876_v40 }
 0x3e2   :  { %1539 = vmatpush.bf16.msra.mxu2 %v8880_v41  ;;  %1552 = vmatpush.bf16.msra.mxu3 %v8882_v42 }
 0x433   :  { %v1640_v58 = vpop.permute.xlu1 %1639 }
 0x434   :  { %v9486_v59 = vsel %vm13053_vm12, %v9391_v2, %v1640_v58 }
 0x435   :  { %v1676_v61 = vsel %vm13052_vm13, %v9486_v59, 0.0 }
 0x436   :  { %1677 = vadd.xlane.f32.xlu2 %v1676_v61 }
 0x43e   :  { %1680 = vadd.xlane.f32.xlu2 %v1679_v12 }
 0x440   :  { %v1231_v26 = vpop.f32.mrf.mxu0  ;;  %v1244_v38 = vpop.f32.mrf.mxu1 }
 0x441   :  { %v1274_v39 = vadd.f32 %v1231_v26, %v1217_v25  ;;  %v1275_v51 = vadd.f32 %v1244_v38, %v1218_v37 }
 0x443   :  { %v7953_v52 = vmul.f32 -1.442695, %v1274_v39  ;;  %v7954_v56 = vmul.f32 -1.442695, %v1275_v51 }
 0x445   :  { %8208 = vpow2.f32 %v7953_v52 }
 0x446   :  { %8210 = vpow2.f32 %v7954_v56 }
 0x447   :  { %v1257_v57 = vpop.f32.mrf.mxu2  ;;  %v1270_v17 = vpop.f32.mrf.mxu3 }
 0x448   :  { %v1277_v19 = vadd.f32 %v1270_v17, %v1220_v15  ;;  %v1233_v20 = vpop.f32.mrf.mxu0  ;;  %v1246_v24 = vpop.f32.mrf.mxu1  ;;  %v1276_v18 = vadd.f32 %v1257_v57, %v1219_v0  ;;  %v13216_v0 = vld [vmem:[#allocation65_spill] sm:$0xff] }
 0x449   :  { %v13212_v20 = vld [vmem:[#allocation18_spill] sm:$0xff]  ;;  %v13213_v24 = vld [vmem:[#allocation21_spill] sm:$0xff] }
 0x44a   :  { %v7955_v27 = vmul.f32 -1.442695, %v1277_v19 }
 0x44b   :  { %v8209_v35 = vpop.eup %8208 }
 0x44c   :  { %v8211_v40 = vpop.eup %8210  ;;  %v1281_v41 = vadd.f32 1.0, %v8209_v35  ;;  %8212 = vpow2.f32 %v7955_v27  ;;  %v1359_v27 = vsel %vm486_vm7, %v13213_v24, %v13212_v20 }
 0x44d   :  { %v1300_v42 = vadd.f32 1.0, %v8211_v40  ;;  %v13214_v40 = vld [vmem:[#allocation63_spill] sm:$0xff] }
 0x44e   :  { %8214 = vrcp.f32 %v1281_v41  ;;  %v1293_v47 = vand.u32 2147483648, %v1281_v41  ;;  %v1291_v21 = vand.u32 2147483647, %v1281_v41  ;;  %vm1287_vm5 = vweird.f32 %v1281_v41 }
 0x44f   :  { %8216 = vrcp.f32 %v1300_v42  ;;  %v1259_v4 = vpop.f32.mrf.mxu2  ;;  %v1272_v2 = vpop.f32.mrf.mxu3  ;;  %v1312_v49 = vand.u32 2147483648, %v1300_v42  ;;  %v1310_v14 = vand.u32 2147483647, %v1300_v42  ;;  %vm1306_vm0 = vweird.f32 %v1300_v42 }
 0x450   :  { %v1294_v5 = vor.u32 1.1754944e-38, %v1293_v47  ;;  %vm1292_vm6 = vcmp.eq.f32.partialorder %v1291_v21, 8.507059e+37 }
 0x451   :  { %v1313_v60 = vor.u32 1.1754944e-38, %v1312_v49  ;;  %vm1311_vm3 = vcmp.eq.f32.partialorder %v1310_v14, 8.507059e+37 }
 0x452   :  { %v8213_v34 = vpop.eup %8212 }
 0x453   :  { %v1320_v10 = vadd.f32 1.0, %v8213_v34 }
 0x454   :  { %v8215_v1 = vpop.eup %8214 }
 0x455   :  { %v8217_v29 = vpop.eup %8216  ;;  %v1283_v50 = vmul.f32 %v8215_v1, %v1281_v41  ;;  %8218 = vrcp.f32 %v1320_v10  ;;  %vm1288_vm14 = vweird.f32 %v8215_v1  ;;  %v1332_v38 = vand.u32 2147483648, %v1320_v10  ;;  %v13215_v41 = vld [vmem:[#allocation60_spill] sm:$0xff] }
 0x456   :  { %v1302_v33 = vmul.f32 %v8217_v29, %v1300_v42  ;;  %8220 = vtanh.f32 %v1276_v18  ;;  %vm1307_vm15 = vweird.f32 %v8217_v29  ;;  %vm1289_vm4 = vmor %vm1287_vm5, %vm1288_vm14  ;;  %v1330_v39 = vand.u32 2147483647, %v1320_v10 }
 0x457   :  { %v1284_v53 = vsub.f32 1.0, %v1283_v50  ;;  %vm1308_vm11 = vmor %vm1306_vm0, %vm1307_vm15  ;;  %vm1326_vm15 = vweird.f32 %v1320_v10  ;;  %v1333_v52 = vor.u32 1.1754944e-38, %v1332_v38  ;;  %v1360_v42 = vsel %vm9015_vm8, %v13215_v41, %v13214_v40 }
 0x458   :  { %v1303_v48 = vsub.f32 1.0, %v1302_v33 }
 0x459   :  { %v1285_v54 = vmul.f32 %v8215_v1, %v1284_v53 }
 0x45a   :  { %v1304_v62 = vmul.f32 %v8217_v29, %v1303_v48 }
 0x45b   :  { %v8219_v3 = vpop.eup %8218  ;;  %v1286_v32 = vadd.f32 %v8215_v1, %v1285_v54 }
 0x45c   :  { %v1305_v31 = vadd.f32 %v8217_v29, %v1304_v62  ;;  %v1322_v22 = vmul.f32 %v8219_v3, %v1320_v10  ;;  %v8221_v61 = vpop.eup %8220  ;;  %vm1327_vm14 = vweird.f32 %v8219_v3  ;;  %v13217_v10 = vld [vmem:[#allocation62_spill] sm:$0xff] }
 0x45d   :  { %v1290_v58 = vsel %vm1289_vm4, %v8215_v1, %v1286_v32  ;;  %vm1328_vm5 = vmor %vm1326_vm15, %vm1327_vm14  ;;  %v1362_v1 = vsel %vm9020_vm9, %v13217_v10, %v13216_v0  ;;  %v13219_v32 = vld [vmem:[#allocation61_spill] sm:$0xff] }
 0x45e   :  { %v1295_v6 = vsel %vm1292_vm6, %v1294_v5, %v1290_v58  ;;  %v1309_v12 = vsel %vm1308_vm11, %v8217_v29, %v1305_v31  ;;  %v1323_v16 = vsub.f32 1.0, %v1322_v22  ;;  %vm1331_vm6 = vcmp.eq.f32.partialorder %v1330_v39, 8.507059e+37 }
 0x45f   :  { %v1314_v23 = vsel %vm1311_vm3, %v1313_v60, %v1309_v12  ;;  %v1337_v25 = vmul.f32 %v8221_v61, %v1295_v6 }
 0x460   :  { %v1336_v26 = vmul.f32 %v1314_v23, %v9446_v63  ;;  %v1324_v30 = vmul.f32 %v8219_v3, %v1323_v16 }
 0x462   :  { %v9512_v36 = vadd.f32 %v1337_v25, %v1336_v26  ;;  %v1325_v37 = vadd.f32 %v8219_v3, %v1324_v30 }
 0x464   :  { %8222 = vtanh.f32 %v9512_v36  ;;  %v1329_v51 = vsel %vm1328_vm5, %v8219_v3, %v1325_v37  ;;  %v13218_v3 = vld [vmem:[#allocation64_spill] sm:$0xff] }
 0x465   :  { %v1334_v57 = vsel %vm1331_vm6, %v1333_v52, %v1329_v51  ;;  %v1361_v5 = vsel %vm9062_vm10, %v13219_v32, %v13218_v3  ;;  %v1496_v3 = vld.sshfl [vmem:[#allocation1 + $0x18] sm:$0xff pattern:$0x73625140] }
 0x46a   :  { %v8223_v56 = vpop.eup %8222 }
 0x46b   :  { %v9515_v8 = vmul.f32 %v8223_v56, %v1334_v57 }
 0x46d   :  { %1637 = vrot.lane.b32.xlu1 %v9515_v8, %s8619_s4  ;;  %v1363_v63 = vpack.c.bf16 %v9515_v8, %v9515_v8 }
 0x46f   :  { %1372 = vmatmul.bf16.vlgmr.msrb.gmra.mxu0 %v1363_v63  ;;  %1385 = vmatmul.bf16.vlgmr.msrb.gmra.mxu1 %v1363_v63 }
 0x470   :  { %1398 = vmatmul.bf16.vlgmr.msrb.gmra.mxu2 %v1363_v63  ;;  %1411 = vmatmul.bf16.vlgmr.msrb.gmra.mxu3 %v1363_v63 }
 0x475   :  { %1647 = vrot.lane.b32.xlu1 %v13211_v9, %s8619_s4 }
 0x4df   :  { %v1638_v15 = vpop.permute.xlu1 %1637 }
 0x4e0   :  { %v9525_v17 = vsel %vm13053_vm12, %v9333_v7, %v1638_v15 }
 0x4e1   :  { %v1673_v19 = vsel %vm13052_vm13, %v9525_v17, 0.0 }
 0x4e2   :  { %1674 = vadd.xlane.f32.xlu1 %v1673_v19 }
 0x4ec   :  { %v1373_v35 = vpop.f32.mrf.mxu0  ;;  %v1386_v4 = vpop.f32.mrf.mxu1 }
 0x4ed   :  { %v1416_v2 = vadd.f32 %v1373_v35, %v1359_v27  ;;  %v1417_v34 = vadd.f32 %v1386_v4, %v1360_v42 }
 0x4ef   :  { %v7956_v7 = vmul.f32 -1.442695, %v1416_v2  ;;  %v7957_v45 = vmul.f32 -1.442695, %v1417_v34 }
 0x4f1   :  { %8224 = vpow2.f32 %v7956_v7 }
 0x4f2   :  { %8226 = vpow2.f32 %v7957_v45 }
 0x4f3   :  { %v1399_v43 = vpop.f32.mrf.mxu2  ;;  %v1412_v18 = vpop.f32.mrf.mxu3 }
 0x4f4   :  { %v1419_v29 = vadd.f32 %v1412_v18, %v1362_v1  ;;  %v1375_v50 = vpop.f32.mrf.mxu0  ;;  %v1388_v33 = vpop.f32.mrf.mxu1  ;;  %v1418_v60 = vadd.f32 %v1399_v43, %v1361_v5  ;;  %v1493_v18 = vld.sshfl [vmem:[#allocation1] sm:$0xff pattern:$0x73625140]  ;;  %v13222_v5 = vld [vmem:[#allocation68_spill] sm:$0xff] }
 0x4f5   :  { %v13220_v50 = vld [vmem:[#allocation17_spill] sm:$0xff] }
 0x4f6   :  { %v7958_v53 = vmul.f32 -1.442695, %v1419_v29  ;;  %v1494_v29 = vld.sshfl [vmem:[#allocation1 + $0x8] sm:$0xff pattern:$0x73625140]  ;;  %v1501_v33 = vsel %vm486_vm7, %v13220_v50, %v1493_v18 }
 0x4f7   :  { %v8225_v48 = vpop.eup %8224 }
 0x4f8   :  { %v8227_v47 = vpop.eup %8226  ;;  %v1423_v49 = vadd.f32 1.0, %v8225_v48  ;;  %8228 = vpow2.f32 %v7958_v53  ;;  %v13221_v48 = vld [vmem:[#allocation66_spill] sm:$0xff] }
 0x4f9   :  { %v1442_v54 = vadd.f32 1.0, %v8227_v47  ;;  %v1502_v47 = vsel %vm9015_vm8, %v13221_v48, %v1494_v29 }
 0x4fa   :  { %8230 = vrcp.f32 %v1423_v49  ;;  %v1435_v23 = vand.u32 2147483648, %v1423_v49  ;;  %v1433_v30 = vand.u32 2147483647, %v1423_v49  ;;  %vm1429_vm4 = vweird.f32 %v1423_v49 }
 0x4fb   :  { %8232 = vrcp.f32 %v1442_v54  ;;  %v1401_v21 = vpop.f32.mrf.mxu2  ;;  %v1414_v62 = vpop.f32.mrf.mxu3  ;;  %v1454_v25 = vand.u32 2147483648, %v1442_v54  ;;  %v1452_v38 = vand.u32 2147483647, %v1442_v54  ;;  %vm1448_vm11 = vweird.f32 %v1442_v54 }
 0x4fc   :  { %v1436_v52 = vor.u32 1.1754944e-38, %v1435_v23  ;;  %vm1434_vm5 = vcmp.eq.f32.partialorder %v1433_v30, 8.507059e+37 }
 0x4fd   :  { %v1455_v63 = vor.u32 1.1754944e-38, %v1454_v25  ;;  %vm1453_vm6 = vcmp.eq.f32.partialorder %v1452_v38, 8.507059e+37 }
 0x4fe   :  { %v8229_v14 = vpop.eup %8228 }
 0x4ff   :  { %v1462_v31 = vadd.f32 1.0, %v8229_v14 }
 0x500   :  { %v8231_v22 = vpop.eup %8230 }
 0x501   :  { %v8233_v58 = vpop.eup %8232  ;;  %v1425_v61 = vmul.f32 %v8231_v22, %v1423_v49  ;;  %8234 = vrcp.f32 %v1462_v31  ;;  %vm1430_vm3 = vweird.f32 %v8231_v22  ;;  %v1474_v34 = vand.u32 2147483648, %v1462_v31 }
 0x502   :  { %v1444_v6 = vmul.f32 %v8233_v58, %v1442_v54  ;;  %8236 = vtanh.f32 %v1418_v60  ;;  %vm1449_vm0 = vweird.f32 %v8233_v58  ;;  %vm1431_vm14 = vmor %vm1429_vm4, %vm1430_vm3  ;;  %v1472_v7 = vand.u32 2147483647, %v1462_v31 }
 0x503   :  { %v1426_v12 = vsub.f32 1.0, %v1425_v61  ;;  %vm1450_vm15 = vmor %vm1448_vm11, %vm1449_vm0  ;;  %vm1468_vm0 = vweird.f32 %v1462_v31  ;;  %v1475_v43 = vor.u32 1.1754944e-38, %v1474_v34 }
 0x504   :  { %v1445_v16 = vsub.f32 1.0, %v1444_v6  ;;  %vm1473_vm11 = vcmp.eq.f32.partialorder %v1472_v7, 8.507059e+37 }
 0x505   :  { %v1427_v26 = vmul.f32 %v8231_v22, %v1426_v12 }
 0x506   :  { %v1446_v37 = vmul.f32 %v8233_v58, %v1445_v16 }
 0x507   :  { %v8235_v39 = vpop.eup %8234  ;;  %v1428_v51 = vadd.f32 %v8231_v22, %v1427_v26 }
 0x508   :  { %v1447_v56 = vadd.f32 %v8233_v58, %v1446_v37  ;;  %v1464_v57 = vmul.f32 %v8235_v39, %v1462_v31  ;;  %v8237_v19 = vpop.eup %8236  ;;  %vm1469_vm3 = vweird.f32 %v8235_v39  ;;  %v1504_v31 = vsel %vm9020_vm9, %v13222_v5, %v1496_v3  ;;  %v1495_v37 = vld.sshfl [vmem:[#allocation1 + $0x10] sm:$0xff pattern:$0x73625140] }
 0x509   :  { %v1432_v15 = vsel %vm1431_vm14, %v8231_v22, %v1428_v51  ;;  %vm1470_vm4 = vmor %vm1468_vm0, %vm1469_vm3 }
 0x50a   :  { %v1437_v20 = vsel %vm1434_vm5, %v1436_v52, %v1432_v15  ;;  %v1451_v24 = vsel %vm1450_vm15, %v8233_v58, %v1447_v56  ;;  %v1465_v27 = vsub.f32 1.0, %v1464_v57 }
 0x50b   :  { %v1456_v35 = vsel %vm1453_vm6, %v1455_v63, %v1451_v24  ;;  %v1479_v40 = vmul.f32 %v8237_v19, %v1437_v20 }
 0x50c   :  { %v1478_v41 = vmul.f32 %v1456_v35, %v9512_v36  ;;  %v1466_v42 = vmul.f32 %v8235_v39, %v1465_v27 }
 0x50e   :  { %v9546_v4 = vadd.f32 %v1479_v40, %v1478_v41  ;;  %v1467_v2 = vadd.f32 %v8235_v39, %v1466_v42 }
 0x510   :  { %8238 = vtanh.f32 %v9546_v4  ;;  %v1471_v45 = vsel %vm1470_vm4, %v8235_v39, %v1467_v2  ;;  %v13223_v39 = vld [vmem:[#allocation67_spill] sm:$0xff] }
 0x511   :  { %v1476_v10 = vsel %vm1473_vm11, %v1475_v43, %v1471_v45  ;;  %v1503_v51 = vsel %vm9062_vm10, %v13223_v39, %v1495_v37  ;;  %v1678_v37 = vpop.xlane.xlu2 %1677  ;;  %v1663_v39 = vsel %vm13053_vm12, %v9515_v8, %v9482_v55 }
 0x516   :  { %v8239_v0 = vpop.eup %8238 }
 0x517   :  { %v9549_v1 = vmul.f32 %v8239_v0, %v1476_v10 }
 0x519   :  { %1635 = vrot.lane.b32.xlu0 %v9549_v1, %s8619_s4  ;;  %v1505_v36 = vpack.c.bf16 %v9549_v1, %v9549_v1 }
 0x51b   :  { %1514 = vmatmul.bf16.vlgmr.msra.gmra.mxu0 %v1505_v36  ;;  %1527 = vmatmul.bf16.vlgmr.msra.gmra.mxu1 %v1505_v36 }
 0x51c   :  { %1540 = vmatmul.bf16.vlgmr.msra.gmra.mxu2 %v1505_v36  ;;  %1553 = vmatmul.bf16.vlgmr.msra.gmra.mxu3 %v1505_v36 }
 0x598   :  { %v1515_v53 = vpop.f32.mrf.mxu0  ;;  %v1528_v49 = vpop.f32.mrf.mxu1 }
 0x599   :  { %v1558_v54 = vadd.f32 %v1515_v53, %v1501_v33  ;;  %v1559_v21 = vadd.f32 %v1528_v49, %v1502_v47 }
 0x59b   :  { %v7959_v62 = vmul.f32 -1.442695, %v1558_v54  ;;  %v7960_v14 = vmul.f32 -1.442695, %v1559_v21 }
 0x59d   :  { %8240 = vpow2.f32 %v7959_v62 }
 0x59e   :  { %8242 = vpow2.f32 %v7960_v14 }
 0x59f   :  { %v1541_v32 = vpop.f32.mrf.mxu2  ;;  %v1554_v22 = vpop.f32.mrf.mxu3 }
 0x5a0   :  { %v1561_v60 = vadd.f32 %v1554_v22, %v1504_v31  ;;  %v1517_v58 = vpop.f32.mrf.mxu0  ;;  %v1530_v61 = vpop.f32.mrf.mxu1  ;;  %v1560_v57 = vadd.f32 %v1541_v32, %v1503_v51 }
 0x5a2   :  { %v7961_v6 = vmul.f32 -1.442695, %v1561_v60  ;;  %v13224_v60 = vld [vmem:[#allocation15_spill] sm:$0xff] }
 0x5a3   :  { %v8241_v12 = vpop.eup %8240 }
 0x5a4   :  { %v8243_v16 = vpop.eup %8242  ;;  %v1565_v23 = vadd.f32 1.0, %v8241_v12  ;;  %8244 = vpow2.f32 %v7961_v6 }
 0x5a5   :  { %v1584_v25 = vadd.f32 1.0, %v8243_v16  ;;  %v1636_v16 = vpop.permute.xlu0 %1635 }
 0x5a6   :  { %8246 = vrcp.f32 %v1565_v23  ;;  %v1577_v27 = vand.u32 2147483648, %v1565_v23  ;;  %v1575_v41 = vand.u32 2147483647, %v1565_v23  ;;  %vm1571_vm5 = vweird.f32 %v1565_v23 }
 0x5a7   :  { %8248 = vrcp.f32 %v1584_v25  ;;  %v1543_v26 = vpop.f32.mrf.mxu2  ;;  %v1556_v30 = vpop.f32.mrf.mxu3  ;;  %v1596_v35 = vand.u32 2147483648, %v1584_v25  ;;  %v1594_v2 = vand.u32 2147483647, %v1584_v25  ;;  %vm1590_vm6 = vweird.f32 %v1584_v25 }
 0x5a8   :  { %v1578_v45 = vor.u32 1.1754944e-38, %v1577_v27  ;;  %vm1576_vm4 = vcmp.eq.f32.partialorder %v1575_v41, 8.507059e+37 }
 0x5a9   :  { %v1597_v10 = vor.u32 1.1754944e-38, %v1596_v35  ;;  %vm1595_vm11 = vcmp.eq.f32.partialorder %v1594_v2, 8.507059e+37  ;;  %v1681_v2 = vpop.xlane.xlu2 %1680 }
 0x5aa   :  { %v8245_v38 = vpop.eup %8244 }
 0x5ab   :  { %v1604_v52 = vadd.f32 1.0, %v8245_v38 }
 0x5ac   :  { %v8247_v56 = vpop.eup %8246 }
 0x5ad   :  { %v8249_v63 = vpop.eup %8248  ;;  %v1567_v15 = vmul.f32 %v8247_v56, %v1565_v23  ;;  %8250 = vrcp.f32 %v1604_v52  ;;  %vm1572_vm14 = vweird.f32 %v8247_v56  ;;  %v1616_v62 = vand.u32 2147483648, %v1604_v52 }
 0x5ae   :  { %v1586_v19 = vmul.f32 %v8249_v63, %v1584_v25  ;;  %8252 = vtanh.f32 %v1560_v57  ;;  %vm1591_vm15 = vweird.f32 %v8249_v63  ;;  %vm1573_vm3 = vmor %vm1571_vm5, %vm1572_vm14  ;;  %vm1610_vm5 = vweird.f32 %v1604_v52 }
 0x5af   :  { %v1568_v20 = vsub.f32 1.0, %v1567_v15  ;;  %vm1592_vm0 = vmor %vm1590_vm6, %vm1591_vm15  ;;  %v1614_v14 = vand.u32 2147483647, %v1604_v52  ;;  %v1617_v32 = vor.u32 1.1754944e-38, %v1616_v62  ;;  %v1659_v25 = vsel %vm13053_vm12, %v13224_v60, %v1636_v16 }
 0x5b0   :  { %v1587_v24 = vsub.f32 1.0, %v1586_v19  ;;  %v1670_v26 = vsel %vm13052_vm13, %v1659_v25, 0.0 }
 0x5b1   :  { %v1569_v40 = vmul.f32 %v8247_v56, %v1568_v20  ;;  %vm1615_vm6 = vcmp.eq.f32.partialorder %v1614_v14, 8.507059e+37 }
 0x5b2   :  { %v1588_v42 = vmul.f32 %v8249_v63, %v1587_v24 }
 0x5b3   :  { %v8251_v34 = vpop.eup %8250  ;;  %v1570_v7 = vadd.f32 %v8247_v56, %v1569_v40 }
 0x5b4   :  { %v1589_v43 = vadd.f32 %v8249_v63, %v1588_v42  ;;  %v1606_v0 = vmul.f32 %v8251_v34, %v1604_v52  ;;  %v8253_v18 = vpop.eup %8252  ;;  %vm1611_vm14 = vweird.f32 %v8251_v34  ;;  %v1682_v52 = vsel %vm13052_vm13, %v1663_v39, 0.0 }
 0x5b5   :  { %v1574_v36 = vsel %vm1573_vm3, %v8247_v56, %v1570_v7  ;;  %vm1612_vm15 = vmor %vm1610_vm5, %vm1611_vm14 }
 0x5b6   :  { %v1579_v29 = vsel %vm1576_vm4, %v1578_v45, %v1574_v36  ;;  %v1593_v50 = vsel %vm1592_vm0, %v8249_v63, %v1589_v43  ;;  %v1607_v33 = vsub.f32 1.0, %v1606_v0  ;;  %v1648_v63 = vpop.permute.xlu1 %1647 }
 0x5b7   :  { %v1598_v53 = vsel %vm1595_vm11, %v1597_v10, %v1593_v50  ;;  %v1621_v48 = vmul.f32 %v8253_v18, %v1579_v29 }
 0x5b8   :  { %v1620_v47 = vmul.f32 %v1598_v53, %v9546_v4  ;;  %v1608_v49 = vmul.f32 %v8251_v34, %v1607_v33  ;;  %v8620_v4 = vmov 64.0  }
 0x5ba   :  { %v1622_v54 = vadd.f32 %v1621_v48, %v1620_v47  ;;  %v1609_v21 = vadd.f32 %v8251_v34, %v1608_v49 }
 0x5bc   :  { %8254 = vtanh.f32 %v1622_v54  ;;  %v1613_v3 = vsel %vm1612_vm15, %v8251_v34, %v1609_v21 }
 0x5bd   :  { %v1618_v31 = vsel %vm1615_vm6, %v1617_v32, %v1613_v3  ;;  %8256 = vrcp.f32 %v8620_v4  ;;  %v9621_v32 = vld [vmem:[%s13226_s23] ss:$0 sm:$0xff] }
 0x5be   :  { %v1675_v24 = vpop.xlane.xlu1 %1674 }
 0x5c2   :  { %v8255_v5 = vpop.eup %8254 }
 0x5c3   :  { %v1624_v22 = vmul.f32 %v8255_v5, %v1618_v31  ;;  %v8257_v58 = vpop.eup %8256  ;;  %v9626_v31 = vld [vmem:[%s13227_s2] ss:$0 sm:$0xff] }
 0x5c4   :  { %v1692_v61 = vmul.f32 64.0, %v8257_v58  ;;  %vm1696_vm3 = vweird.f32 %v8257_v58 }
 0x5c5   :  { %1633 = vrot.lane.b32.xlu0 %v1624_v22, %s8619_s4 }
 0x5c6   :  { %v1693_v6 = vsub.f32 1.0, %v1692_v61 }
 0x5c8   :  { %v1694_v12 = vmul.f32 %v8257_v58, %v1693_v6 }
 0x5ca   :  { %v1695_v23 = vadd.f32 %v8257_v58, %v1694_v12 }
 0x5cc   :  { %v9574_v30 = vsel %vm1696_vm3, %v8257_v58, %v1695_v23 }
 0x5cd   :  { %1645 = vrot.lane.b32.xlu0 %v13224_v60, %s8619_s4  ;;  %13225 = vst [vmem:[#allocation28_spill] sm:$0xff] %v9574_v30  ;;  %v1701_v38 = vmul.f32 %v9574_v30, %v1678_v37  ;;  %v1700_v55 = vmul.f32 %v9574_v30, %v1675_v24 }
 0x5cf   :  { %v1709_v51 = vsub.f32 %v9486_v59, %v1701_v38  ;;  %v1665_v59 = vsel %vm13053_vm12, %v1624_v22, %v1648_v63  ;;  %v9591_v35 = vsub.f32 %v9525_v17, %v1700_v55 }
 0x5d0   :  { %v1688_v41 = vsel %vm13052_vm13, %v1665_v59, 0.0 }
 0x5d1   :  { %v1717_v56 = vmul.f32 %v1709_v51, %v1709_v51 }
 0x5d3   :  { %v1731_v57 = vsel %vm13052_vm13, %v1717_v56, 0.0 }
 0x5f7   :  { %1671 = vadd.xlane.f32.xlu0 %v1670_v26 }
 0x5ff   :  { %1683 = vadd.xlane.f32.xlu0 %v1682_v52 }
 0x607   :  { %1732 = vadd.xlane.f32.xlu0 %v1731_v57 }
 0x637   :  { %v1634_v15 = vpop.permute.xlu0 %1633 }
 0x638   :  { %v1658_v19 = vsel %vm13053_vm12, %v13211_v9, %v1634_v15  ;;  %v1716_v9 = vmul.f32 %v9591_v35, %v9591_v35 }
 0x639   :  { %v1667_v20 = vsel %vm13052_vm13, %v1658_v19, 0.0 }
 0x63a   :  { %1668 = vadd.xlane.f32.xlu2 %v1667_v20  ;;  %v1728_v42 = vsel %vm13052_vm13, %v1716_v9, 0.0 }
 0x63f   :  { %v1646_v8 = vpop.permute.xlu0 %1645 }
 0x640   :  { %v1664_v27 = vsel %vm13053_vm12, %v9549_v1, %v1646_v8  ;;  %v1702_v1 = vmul.f32 %v9574_v30, %v1681_v2  ;;  %vm13263_vm12 = vcmask 1045506  }
 0x641   :  { %v1685_v40 = vsel %vm13052_vm13, %v1664_v27, 0.0 }
 0x642   :  { %1686 = vadd.xlane.f32.xlu1 %v1685_v40  ;;  %1689 = vadd.xlane.f32.xlu2 %v1688_v41  ;;  %v9605_v43 = vsub.f32 %v9491_v11, %v1702_v1 }
 0x644   :  { %v1718_v29 = vmul.f32 %v9605_v43, %v9605_v43 }
 0x646   :  { %v1734_v33 = vsel %vm13052_vm13, %v1718_v29, 0.0 }
 0x64a   :  { %1729 = vadd.xlane.f32.xlu2 %v1728_v42 }
 0x66a   :  { %v1672_v34 = vpop.xlane.xlu0 %1671 }
 0x66b   :  { %v1699_v7 = vmul.f32 %v9574_v30, %v1672_v34 }
 0x66d   :  { %v9600_v17 = vsub.f32 %v1659_v25, %v1699_v7 }
 0x66f   :  { %v1715_v45 = vmul.f32 %v9600_v17, %v9600_v17 }
 0x671   :  { %v1725_v0 = vsel %vm13052_vm13, %v1715_v45, 0.0 }
 0x672   :  { %1726 = vadd.xlane.f32.xlu1 %v1725_v0  ;;  %v1684_v10 = vpop.xlane.xlu0 %1683 }
 0x673   :  { %v1703_v36 = vmul.f32 %v9574_v30, %v1684_v10 }
 0x675   :  { %v9609_v18 = vsub.f32 %v1663_v39, %v1703_v36 }
 0x677   :  { %v1719_v50 = vmul.f32 %v9609_v18, %v9609_v18 }
 0x679   :  { %v1737_v53 = vsel %vm13052_vm13, %v1719_v50, 0.0 }
 0x67a   :  { %1735 = vadd.xlane.f32.xlu1 %v1734_v33  ;;  %v1733_v11 = vpop.xlane.xlu0 %1732  ;;  %1738 = vadd.xlane.f32.xlu2 %v1737_v53 }
 0x67b   :  { %v1749_v48 = vmul.f32 %v1733_v11, %v9574_v30 }
 0x67d   :  { %v1757_v47 = vadd.f32 1e-05, %v1749_v48 }
 0x67f   :  { %8258 = vrsqrt.f32 %v1757_v47  ;;  %vm1798_vm4 = vweird.f32 %v1757_v47 }
 0x685   :  { %v8259_v49 = vpop.eup %8258 }
 0x686   :  { %v1793_v54 = vmul.f32 %v8259_v49, %v1757_v47  ;;  %vm1799_vm0 = vweird.f32 %v8259_v49 }
 0x687   :  { %vm1800_vm11 = vmor %vm1798_vm4, %vm1799_vm0 }
 0x688   :  { %v1794_v21 = vmul.f32 %v8259_v49, %v1793_v54 }
 0x68a   :  { %v1795_v62 = vmul.f32 0.5, %v1794_v21 }
 0x68c   :  { %v1796_v14 = vsub.f32 1.5, %v1795_v62 }
 0x68e   :  { %v1797_v3 = vmul.f32 %v8259_v49, %v1796_v14 }
 0x690   :  { %v1801_v5 = vsel %vm1800_vm11, %v8259_v49, %v1797_v3 }
 0x691   :  { %v1845_v22 = vmul.f32 %v1801_v5, %v1709_v51 }
 0x693   :  { %v1857_v60 = vmul.f32 %v9621_v32, %v1845_v22 }
 0x695   :  { %v1869_v4 = vadd.f32 %v9626_v31, %v1857_v60 }
 0x697   :  { %1888 = vst [vmem:[#allocation1 + $0x3] ss:$4 sm:$0xff] %v1869_v4 }
 0x6ad   :  { %v1669_v58 = vpop.xlane.xlu2 %1668 }
 0x6ae   :  { %v1698_v61 = vmul.f32 %v9574_v30, %v1669_v58 }
 0x6b0   :  { %v9631_v6 = vsub.f32 %v1658_v19, %v1698_v61 }
 0x6b2   :  { %v1714_v12 = vmul.f32 %v9631_v6, %v9631_v6 }
 0x6b4   :  { %v1722_v16 = vsel %vm13052_vm13, %v1714_v12, 0.0 }
 0x6b5   :  { %1723 = vadd.xlane.f32.xlu0 %v1722_v16  ;;  %v1687_v23 = vpop.xlane.xlu1 %1686  ;;  %v1690_v25 = vpop.xlane.xlu2 %1689 }
 0x6b6   :  { %v1704_v26 = vmul.f32 %v9574_v30, %v1687_v23  ;;  %v1705_v37 = vmul.f32 %v9574_v30, %v1690_v25 }
 0x6b8   :  { %v9638_v38 = vsub.f32 %v1664_v27, %v1704_v26  ;;  %v9640_v39 = vsub.f32 %v1665_v59, %v1705_v37 }
 0x6ba   :  { %v1720_v51 = vmul.f32 %v9638_v38, %v9638_v38  ;;  %v1721_v52 = vmul.f32 %v9640_v39, %v9640_v39 }
 0x6bc   :  { %v1740_v56 = vsel %vm13052_vm13, %v1720_v51, 0.0  ;;  %v1743_v57 = vsel %vm13052_vm13, %v1721_v52, 0.0 }
 0x6bd   :  { %1741 = vadd.xlane.f32.xlu0 %v1740_v56  ;;  %1744 = vadd.xlane.f32.xlu1 %v1743_v57  ;;  %v1730_v63 = vpop.xlane.xlu2 %1729 }
 0x6be   :  { %v1748_v15 = vmul.f32 %v1730_v63, %v9574_v30  ;;  %v1926_v63 = vld [vmem:[#allocation7 + $0xc0] sm:$0xff] }
 0x6c0   :  { %v1756_v19 = vadd.f32 1e-05, %v1748_v15  ;;  %v1930_v15 = vld [vmem:[#allocation7 + $0xe0] sm:$0xff] }
 0x6c2   :  { %8260 = vrsqrt.f32 %v1756_v19  ;;  %vm1788_vm5 = vweird.f32 %v1756_v19 }
 0x6c8   :  { %v8261_v20 = vpop.eup %8260 }
 0x6c9   :  { %v1783_v24 = vmul.f32 %v8261_v20, %v1756_v19  ;;  %vm1789_vm14 = vweird.f32 %v8261_v20  ;;  %v1927_v19 = vld [vmem:[#allocation7 + $0xc8] sm:$0xff] }
 0x6ca   :  { %vm1790_vm15 = vmor %vm1788_vm5, %vm1789_vm14 }
 0x6cb   :  { %v1784_v55 = vmul.f32 %v8261_v20, %v1783_v24  ;;  %v1931_v24 = vld [vmem:[#allocation7 + $0xe8] sm:$0xff] }
 0x6cd   :  { %v1785_v59 = vmul.f32 0.5, %v1784_v55 }
 0x6cf   :  { %v1786_v8 = vsub.f32 1.5, %v1785_v59  ;;  %v1928_v59 = vld [vmem:[#allocation7 + $0xd0] sm:$0xff] }
 0x6d1   :  { %v1787_v27 = vmul.f32 %v8261_v20, %v1786_v8  ;;  %v1932_v8 = vld [vmem:[#allocation7 + $0xf0] sm:$0xff] }
 0x6d3   :  { %v1791_v40 = vsel %vm1790_vm15, %v8261_v20, %v1787_v27  ;;  %v1946_v20 = vpack.c.bf16 %v1930_v15, %v1926_v63  ;;  %v2123_v63 = vld [vmem:[#allocation8 + $0x1e0] sm:$0xff]  ;;  %v2120_v15 = vld [vmem:[#allocation8 + $0x1c8] sm:$0xff] }
 0x6d4   :  { %v1844_v41 = vmul.f32 %v1791_v40, %v9591_v35  ;;  %v1948_v40 = vpack.c.bf16 %v1932_v8, %v1928_v59 }
 0x6d5   :  { %1967 = vmatpush.bf16.msrb.mxu0 %v1946_v20 }
 0x6d6   :  { %v1856_v9 = vmul.f32 %v9621_v32, %v1844_v41  ;;  %v1933_v41 = vld [vmem:[#allocation7 + $0xf8] sm:$0xff]  ;;  %1995 = vmatpush.bf16.msrb.mxu2 %v1948_v40  ;;  %v2121_v40 = vld [vmem:[#allocation8 + $0x1d0] sm:$0xff] }
 0x6d8   :  { %v1868_v42 = vadd.f32 %v9626_v31, %v1856_v9 }
 0x6da   :  { %1886 = vst [vmem:[#allocation1 + $0x2] ss:$4 sm:$0xff] %v1868_v42  ;;  %v1918_v42 = vld [vmem:[#allocation7 + $0x80] sm:$0xff] }
 0x6e5   :  { %v1727_v2 = vpop.xlane.xlu1 %1726 }
 0x6e6   :  { %v1747_v34 = vmul.f32 %v1727_v2, %v9574_v30  ;;  %v1922_v2 = vld [vmem:[#allocation7 + $0xa0] sm:$0xff] }
 0x6e8   :  { %v1755_v7 = vadd.f32 1e-05, %v1747_v34  ;;  %v1919_v34 = vld [vmem:[#allocation7 + $0x88] sm:$0xff] }
 0x6ea   :  { %8262 = vrsqrt.f32 %v1755_v7  ;;  %vm1778_vm3 = vweird.f32 %v1755_v7 }
 0x6ed   :  { %v1736_v1 = vpop.xlane.xlu1 %1735  ;;  %v1739_v45 = vpop.xlane.xlu2 %1738 }
 0x6ee   :  { %v1750_v0 = vmul.f32 %v1736_v1, %v9574_v30  ;;  %v1751_v10 = vmul.f32 %v1739_v45, %v9574_v30  ;;  %v1942_v1 = vpack.c.bf16 %v1922_v2, %v1918_v42  ;;  %v1923_v45 = vld [vmem:[#allocation7 + $0xa8] sm:$0xff]  ;;  %v2122_v42 = vld [vmem:[#allocation8 + $0x1d8] sm:$0xff] }
 0x6ef   :  { %v2126_v2 = vld [vmem:[#allocation8 + $0x1f8] sm:$0xff] }
 0x6f0   :  { %v8263_v36 = vpop.eup %8262  ;;  %v1758_v29 = vadd.f32 1e-05, %v1750_v0  ;;  %v1759_v50 = vadd.f32 1e-05, %v1751_v10  ;;  %v1943_v0 = vpack.c.bf16 %v1923_v45, %v1919_v34  ;;  %v1920_v10 = vld [vmem:[#allocation7 + $0x90] sm:$0xff]  ;;  %1968 = vmatpush.bf16.msrb.mxu0 %v1942_v1  ;;  %v9689_v45 = vpack.c.bf16 %v2126_v2, %v2122_v42  ;;  %v2087_v42 = vld [vmem:[#allocation8 + $0xc0] sm:$0xff] }
 0x6f1   :  { %v1773_v35 = vmul.f32 %v8263_v36, %v1755_v7  ;;  %vm1779_vm6 = vweird.f32 %v8263_v36 }
 0x6f2   :  { %8264 = vrsqrt.f32 %v1758_v29  ;;  %vm1780_vm0 = vmor %vm1778_vm3, %vm1779_vm6  ;;  %vm1808_vm14 = vweird.f32 %v1758_v29  ;;  %vm1818_vm15 = vweird.f32 %v1759_v50 }
 0x6f3   :  { %v1774_v33 = vmul.f32 %v8263_v36, %v1773_v35  ;;  %8266 = vrsqrt.f32 %v1759_v50  ;;  %v1925_v35 = vld [vmem:[#allocation7 + $0xb8] sm:$0xff] }
 0x6f5   :  { %v1775_v53 = vmul.f32 0.5, %v1774_v33 }
 0x6f7   :  { %v1776_v11 = vsub.f32 1.5, %v1775_v53  ;;  %v1910_v53 = vld [vmem:[#allocation7 + $0x40] sm:$0xff] }
 0x6f8   :  { %v8265_v48 = vpop.eup %8264 }
 0x6f9   :  { %v8267_v47 = vpop.eup %8266  ;;  %v1777_v49 = vmul.f32 %v8263_v36, %v1776_v11  ;;  %v1803_v54 = vmul.f32 %v8265_v48, %v1758_v29  ;;  %vm1809_vm4 = vweird.f32 %v8265_v48  ;;  %v1921_v29 = vld [vmem:[#allocation7 + $0x98] sm:$0xff]  ;;  %v1914_v11 = vld [vmem:[#allocation7 + $0x60] sm:$0xff] }
 0x6fa   :  { %v1813_v21 = vmul.f32 %v8267_v47, %v1759_v50  ;;  %vm1819_vm11 = vweird.f32 %v8267_v47  ;;  %vm1810_vm5 = vmor %vm1808_vm14, %vm1809_vm4  ;;  %v1945_v33 = vpack.c.bf16 %v1925_v35, %v1921_v29  ;;  %v2113_v35 = vld [vmem:[#allocation8 + $0x190] sm:$0xff] }
 0x6fb   :  { %v1781_v62 = vsel %vm1780_vm0, %v8263_v36, %v1777_v49  ;;  %v1804_v14 = vmul.f32 %v8265_v48, %v1803_v54  ;;  %vm1820_vm6 = vmor %vm1818_vm15, %vm1819_vm11  ;;  %v1924_v36 = vld [vmem:[#allocation7 + $0xb0] sm:$0xff]  ;;  %v1915_v49 = vld [vmem:[#allocation7 + $0x68] sm:$0xff] }
 0x6fc   :  { %v1843_v3 = vmul.f32 %v1781_v62, %v9600_v17  ;;  %v1814_v5 = vmul.f32 %v8267_v47, %v1813_v21  ;;  %v1944_v50 = vpack.c.bf16 %v1924_v36, %v1920_v10  ;;  %v2115_v10 = vld [vmem:[#allocation8 + $0x1a0] sm:$0xff]  ;;  %v2112_v36 = vld [vmem:[#allocation8 + $0x188] sm:$0xff] }
 0x6fd   :  { %v1805_v22 = vmul.f32 0.5, %v1804_v14  ;;  %v1912_v14 = vld [vmem:[#allocation7 + $0x50] sm:$0xff] }
 0x6fe   :  { %v1855_v60 = vmul.f32 %v9621_v32, %v1843_v3  ;;  %v1815_v4 = vmul.f32 0.5, %v1814_v5  ;;  %1996 = vmatpush.bf16.msrb.mxu2 %v1944_v50  ;;  %v1916_v3 = vld [vmem:[#allocation7 + $0x70] sm:$0xff]  ;;  %v1913_v5 = vld [vmem:[#allocation7 + $0x58] sm:$0xff]  ;;  %v2116_v50 = vld [vmem:[#allocation8 + $0x1a8] sm:$0xff] }
 0x6ff   :  { %v1806_v58 = vsub.f32 1.5, %v1805_v22 }
 0x700   :  { %v1867_v61 = vadd.f32 %v9626_v31, %v1855_v60  ;;  %v1816_v12 = vsub.f32 1.5, %v1815_v4  ;;  %v1940_v4 = vpack.c.bf16 %v1916_v3, %v1912_v14  ;;  %v2107_v14 = vld [vmem:[#allocation8 + $0x160] sm:$0xff]  ;;  %v2104_v3 = vld [vmem:[#allocation8 + $0x148] sm:$0xff] }
 0x701   :  { %v1807_v16 = vmul.f32 %v8265_v48, %v1806_v58  ;;  %v1917_v58 = vld [vmem:[#allocation7 + $0x78] sm:$0xff] }
 0x702   :  { %1884 = vst [vmem:[#allocation1 + $0x1] ss:$4 sm:$0xff] %v1867_v61  ;;  %v1817_v23 = vmul.f32 %v8267_v47, %v1816_v12  ;;  %v1941_v61 = vpack.c.bf16 %v1917_v58, %v1913_v5  ;;  %v1902_v12 = vld [vmem:[#allocation7] sm:$0xff]  ;;  %1997 = vmatpush.bf16.msrb.mxu2 %v1940_v4  ;;  %v2108_v5 = vld [vmem:[#allocation8 + $0x168] sm:$0xff] }
 0x703   :  { %v1811_v25 = vsel %vm1810_vm5, %v8265_v48, %v1807_v16  ;;  %v1911_v48 = vld [vmem:[#allocation7 + $0x48] sm:$0xff]  ;;  %v1906_v16 = vld [vmem:[#allocation7 + $0x20] sm:$0xff] }
 0x704   :  { %v1846_v17 = vmul.f32 %v1811_v25, %v9605_v43  ;;  %v1821_v26 = vsel %vm1820_vm6, %v8267_v47, %v1817_v23  ;;  %v1947_v43 = vpack.c.bf16 %v1931_v24, %v1927_v19  ;;  %v1938_v47 = vpack.c.bf16 %v1914_v11, %v1910_v53  ;;  %v1903_v23 = vld [vmem:[#allocation7 + $0x8] sm:$0xff]  ;;  %v1904_v24 = vld [vmem:[#allocation7 + $0x10] sm:$0xff] }
 0x705   :  { %v1847_v37 = vmul.f32 %v1821_v26, %v9609_v18  ;;  %v1929_v18 = vld [vmem:[#allocation7 + $0xd8] sm:$0xff]  ;;  %v1939_v62 = vpack.c.bf16 %v1915_v49, %v1911_v48  ;;  %v2124_v19 = vld [vmem:[#allocation8 + $0x1e8] sm:$0xff]  ;;  %v9696_v11 = vpack.c.bf16 %v2116_v50, %v2112_v36 }
 0x706   :  { %v1858_v51 = vmul.f32 %v9621_v32, %v1846_v17  ;;  %1981 = vmatpush.bf16.msrb.mxu1 %v1947_v43  ;;  %v1949_v9 = vpack.c.bf16 %v1933_v41, %v1929_v18  ;;  %1969 = vmatpush.bf16.msrb.mxu0 %v1938_v47  ;;  %v9683_v59 = vpack.c.bf16 %v2124_v19, %v2120_v15  ;;  %v1905_v18 = vld [vmem:[#allocation7 + $0x18] sm:$0xff]  ;;  %v2099_v15 = vld [vmem:[#allocation8 + $0x120] sm:$0xff]  ;;  %v2096_v19 = vld [vmem:[#allocation8 + $0x108] sm:$0xff] }
 0x707   :  { %v1859_v52 = vmul.f32 %v9621_v32, %v1847_v37  ;;  %v1934_v37 = vpack.c.bf16 %v1906_v16, %v1902_v12  ;;  %v2114_v47 = vld [vmem:[#allocation8 + $0x198] sm:$0xff]  ;;  %v2109_v12 = vld [vmem:[#allocation8 + $0x170] sm:$0xff] }
 0x708   :  { %v1870_v56 = vadd.f32 %v9626_v31, %v1858_v51  ;;  %2009 = vmatpush.bf16.msrb.mxu3 %v1949_v9  ;;  %v1907_v51 = vld [vmem:[#allocation7 + $0x28] sm:$0xff]  ;;  %v2125_v9 = vld [vmem:[#allocation8 + $0x1f0] sm:$0xff]  ;;  %v2118_v49 = vld [vmem:[#allocation8 + $0x1b8] sm:$0xff] }
 0x709   :  { %v1871_v57 = vadd.f32 %v9626_v31, %v1859_v52  ;;  %v2119_v52 = vld [vmem:[#allocation8 + $0x1c0] sm:$0xff]  ;;  %v9687_v1 = vpack.c.bf16 %v2125_v9, %v2121_v40  ;;  %v2106_v16 = vld [vmem:[#allocation8 + $0x158] sm:$0xff] }
 0x70a   :  { %1890 = vst [vmem:[#allocation1 + $0x20] ss:$4 sm:$0xff] %v1870_v56  ;;  %1982 = vmatpush.bf16.msrb.mxu1 %v1943_v0  ;;  %1970 = vmatpush.bf16.msrb.mxu0 %v1934_v37  ;;  %v9679_v20 = vpack.c.bf16 %v2123_v63, %v2119_v52  ;;  %v2111_v0 = vld [vmem:[#allocation8 + $0x180] sm:$0xff]  ;;  %v9718_v37 = vpack.c.bf16 %v2108_v5, %v2104_v3  ;;  %v2102_v9 = vld [vmem:[#allocation8 + $0x138] sm:$0xff] }
 0x70b   :  { %1892 = vst [vmem:[#allocation1 + $0x21] ss:$4 sm:$0xff] %v1871_v57  ;;  %v1935_v57 = vpack.c.bf16 %v1907_v51, %v1903_v23  ;;  %v9691_v29 = vpack.c.bf16 %v2115_v10, %v2111_v0  ;;  %v2095_v52 = vld [vmem:[#allocation8 + $0x100] sm:$0xff]  ;;  %v2088_v0 = vld [vmem:[#allocation8 + $0xc8] sm:$0xff]  ;;  %v2094_v3 = vld [vmem:[#allocation8 + $0xf8] sm:$0xff] }
 0x70c   :  { %2010 = vmatpush.bf16.msrb.mxu3 %v1945_v33  ;;  %v2117_v33 = vld [vmem:[#allocation8 + $0x1b0] sm:$0xff]  ;;  %v2092_v10 = vld [vmem:[#allocation8 + $0xe8] sm:$0xff] }
 0x70d   :  { %v9698_v48 = vpack.c.bf16 %v2117_v33, %v2113_v35  ;;  %v2089_v33 = vld [vmem:[#allocation8 + $0xd0] sm:$0xff] }
 0x70e   :  { %1983 = vmatpush.bf16.msrb.mxu1 %v1939_v62  ;;  %2181 = vmatpush.bf16.msra.mxu0 %v9679_v20  ;;  %v9703_v62 = vpack.c.bf16 %v2118_v49, %v2114_v47 }
 0x710   :  { %2011 = vmatpush.bf16.msrb.mxu3 %v1941_v61  ;;  %v2105_v61 = vld [vmem:[#allocation8 + $0x150] sm:$0xff] }
 0x711   :  { %v9720_v51 = vpack.c.bf16 %v2109_v12, %v2105_v61  ;;  %v2083_v61 = vld [vmem:[#allocation8 + $0xa0] sm:$0xff] }
 0x712   :  { %1984 = vmatpush.bf16.msrb.mxu1 %v1935_v57  ;;  %2182 = vmatpush.bf16.msra.mxu0 %v9691_v29 }
 0x716   :  { %2194 = vmatpush.bf16.msra.mxu1 %v9683_v59 }
 0x71a   :  { %2195 = vmatpush.bf16.msra.mxu1 %v9696_v11 }
 0x71e   :  { %2196 = vmatpush.bf16.msra.mxu1 %v9718_v37 }
 0x728   :  { %v1724_v55 = vpop.xlane.xlu0 %1723 }
 0x729   :  { %v1746_v27 = vmul.f32 %v1724_v55, %v9574_v30  ;;  %v1908_v55 = vld [vmem:[#allocation7 + $0x30] sm:$0xff] }
 0x72a   :  { %v1936_v8 = vpack.c.bf16 %v1908_v55, %v1904_v24 }
 0x72b   :  { %v9665_v7 = vadd.f32 1e-05, %v1746_v27  ;;  %v1909_v27 = vld [vmem:[#allocation7 + $0x38] sm:$0xff] }
 0x72c   :  { %v1937_v41 = vpack.c.bf16 %v1909_v27, %v1905_v18  ;;  %1998 = vmatpush.bf16.msrb.mxu2 %v1936_v8  ;;  %v2100_v8 = vld [vmem:[#allocation8 + $0x128] sm:$0xff]  ;;  %v2101_v18 = vld [vmem:[#allocation8 + $0x130] sm:$0xff] }
 0x72d   :  { %8268 = vrsqrt.f32 %v9665_v7  ;;  %vm1768_vm0 = vweird.f32 %v9665_v7  ;;  %v9734_v40 = vpack.c.bf16 %v2100_v8, %v2096_v19  ;;  %v2082_v19 = vld [vmem:[#allocation8 + $0x98] sm:$0xff] }
 0x72e   :  { %2012 = vmatpush.bf16.msrb.mxu3 %v1937_v41  ;;  %v2098_v41 = vld [vmem:[#allocation8 + $0x118] sm:$0xff] }
 0x72f   :  { %v9742_v35 = vpack.c.bf16 %v2102_v9, %v2098_v41  ;;  %2197 = vmatpush.bf16.msra.mxu1 %v9734_v40  ;;  %v2076_v41 = vld [vmem:[#allocation8 + $0x68] sm:$0xff] }
 0x730   :  { %v1742_v54 = vpop.xlane.xlu0 %1741  ;;  %v1745_v21 = vpop.xlane.xlu1 %1744  ;;  %2207 = vmatpush.bf16.msra.mxu2 %v9687_v1 }
 0x731   :  { %v1752_v22 = vmul.f32 %v1742_v54, %v9574_v30  ;;  %v1753_v60 = vmul.f32 %v1745_v21, %v9574_v30  ;;  %v2103_v54 = vld [vmem:[#allocation8 + $0x140] sm:$0xff] }
 0x732   :  { %2220 = vmatpush.bf16.msra.mxu3 %v9689_v45  ;;  %v9712_v58 = vpack.c.bf16 %v2107_v14, %v2103_v54  ;;  %v2093_v54 = vld [vmem:[#allocation8 + $0xf0] sm:$0xff]  ;;  %v2090_v14 = vld [vmem:[#allocation8 + $0xd8] sm:$0xff] }
 0x733   :  { %v9670_v25 = vpop.eup %8268  ;;  %v9672_v17 = vadd.f32 1e-05, %v1752_v22  ;;  %v9674_v26 = vadd.f32 1e-05, %v1753_v60 }
 0x734   :  { %v1763_v56 = vmul.f32 %v9670_v25, %v9665_v7  ;;  %vm1769_vm3 = vweird.f32 %v9670_v25  ;;  %v2110_v7 = vld [vmem:[#allocation8 + $0x178] sm:$0xff]  ;;  %2208 = vmatpush.bf16.msra.mxu2 %v9698_v48  ;;  %2183 = vmatpush.bf16.msra.mxu0 %v9712_v58 }
 0x735   :  { %8270 = vrsqrt.f32 %v9672_v17  ;;  %vm1770_vm4 = vmor %vm1768_vm0, %vm1769_vm3  ;;  %v9726_v63 = vpack.c.bf16 %v2110_v7, %v2106_v16  ;;  %vm1828_vm5 = vweird.f32 %v9672_v17  ;;  %vm1838_vm6 = vweird.f32 %v9674_v26  ;;  %v2080_v16 = vld [vmem:[#allocation8 + $0x88] sm:$0xff] }
 0x736   :  { %v1764_v43 = vmul.f32 %v9670_v25, %v1763_v56  ;;  %8272 = vrsqrt.f32 %v9674_v26  ;;  %2221 = vmatpush.bf16.msra.mxu3 %v9703_v62  ;;  %vm13229_vm0 = vcmask 523264  }
 0x738   :  { %v1765_v34 = vmul.f32 0.5, %v1764_v43  ;;  %v9731_v43 = vpack.c.bf16 %v2099_v15, %v2095_v52  ;;  %2209 = vmatpush.bf16.msra.mxu2 %v9720_v51  ;;  %v9765_v52 = vpack.c.bf16 %v2094_v3, %v2090_v14 }
 0x73a   :  { %v1766_v53 = vsub.f32 1.5, %v1765_v34  ;;  %v2091_v34 = vld [vmem:[#allocation8 + $0xe0] sm:$0xff]  ;;  %2222 = vmatpush.bf16.msra.mxu3 %v9726_v63  ;;  %2184 = vmatpush.bf16.msra.mxu0 %v9731_v43 }
 0x73b   :  { %v9700_v21 = vpop.eup %8270  ;;  %v9747_v49 = vpack.c.bf16 %v2091_v34, %v2087_v42  ;;  %v2077_v34 = vld [vmem:[#allocation8 + $0x70] sm:$0xff] }
 0x73c   :  { %v9705_v22 = vpop.eup %8272  ;;  %v1767_v60 = vmul.f32 %v9670_v25, %v1766_v53  ;;  %v1823_v4 = vmul.f32 %v9700_v21, %v9672_v17  ;;  %vm1829_vm11 = vweird.f32 %v9700_v21  ;;  %v9763_v17 = vpack.c.bf16 %v2093_v54, %v2089_v33  ;;  %v2063_v33 = vld [vmem:[#allocation8] sm:$0xff]  ;;  %v2068_v54 = vld [vmem:[#allocation8 + $0x28] sm:$0xff] }
 0x73d   :  { %v1833_v23 = vmul.f32 %v9705_v22, %v9674_v26  ;;  %vm1839_vm14 = vweird.f32 %v9705_v22  ;;  %vm1830_vm15 = vmor %vm1828_vm5, %vm1829_vm11  ;;  %vm13234_vm5 = vcmask 1043456  }
 0x73e   :  { %v1771_v56 = vsel %vm1770_vm4, %v9670_v25, %v1767_v60  ;;  %v1824_v57 = vmul.f32 %v9700_v21, %v1823_v4  ;;  %v2097_v25 = vld [vmem:[#allocation8 + $0x110] sm:$0xff]  ;;  %v9752_v60 = vpack.c.bf16 %v2092_v10, %v2088_v0  ;;  %v2079_v4 = vld [vmem:[#allocation8 + $0x80] sm:$0xff]  ;;  %vm1840_vm3 = vmor %vm1838_vm6, %vm1839_vm14  ;;  %2223 = vmatpush.bf16.msra.mxu3 %v9742_v35  ;;  %2185 = vmatpush.bf16.msra.mxu0 %v9747_v49  ;;  %vm13237_vm6 = vcmask 1043458  }
 0x73f   :  { %v1842_v24 = vmul.f32 %v1771_v56, %v9631_v6  ;;  %v1834_v55 = vmul.f32 %v9705_v22, %v1833_v23  ;;  %v9740_v50 = vpack.c.bf16 %v2101_v18, %v2097_v25  ;;  %v2084_v23 = vld [vmem:[#allocation8 + $0xa8] sm:$0xff]  ;;  %v2081_v56 = vld [vmem:[#allocation8 + $0x90] sm:$0xff]  ;;  %v9770_v15 = vpack.c.bf16 %v2083_v61, %v2079_v4  ;;  %v2071_v25 = vld [vmem:[#allocation8 + $0x40] sm:$0xff] }
 0x740   :  { %v1825_v27 = vmul.f32 0.5, %v1824_v57  ;;  %2198 = vmatpush.bf16.msra.mxu1 %v9752_v60  ;;  %v9774_v8 = vpack.c.bf16 %v2084_v23, %v2080_v16  ;;  %v2075_v18 = vld [vmem:[#allocation8 + $0x60] sm:$0xff]  ;;  %v2074_v0 = vld [vmem:[#allocation8 + $0x58] sm:$0xff]  ;;  %v2069_v4 = vld [vmem:[#allocation8 + $0x30] sm:$0xff] }
 0x741   :  { %v1854_v2 = vmul.f32 %v9621_v32, %v1842_v24  ;;  %v1835_v6 = vmul.f32 0.5, %v1834_v55  ;;  %2210 = vmatpush.bf16.msra.mxu2 %v9740_v50  ;;  %v2086_v24 = vld [vmem:[#allocation8 + $0xb8] sm:$0xff]  ;;  %vm13230_vm4 = vmmov %vm13229_vm0 }
 0x742   :  { %v1826_v36 = vsub.f32 1.5, %v1825_v27  ;;  %2224 = vmatpush.bf16.msra.mxu3 %v9765_v52  ;;  %v9782_v42 = vpack.c.bf16 %v2086_v24, %v2082_v19  ;;  %2186 = vmatpush.bf16.msra.mxu0 %v9770_v15  ;;  %v2078_v10 = vld [vmem:[#allocation8 + $0x78] sm:$0xff]  ;;  %vm13231_vm11 = vmmov %vm13229_vm0 }
 0x743   :  { %v1866_v53 = vadd.f32 %v9626_v31, %v1854_v2  ;;  %v1836_v47 = vsub.f32 1.5, %v1835_v6  ;;  %v9786_v6 = vpack.c.bf16 %v2075_v18, %v2071_v25  ;;  %v9796_v3 = vpack.c.bf16 %v2078_v10, %v2074_v0  ;;  %v2066_v61 = vld [vmem:[#allocation8 + $0x18] sm:$0xff]  ;;  %vm13232_vm14 = vmmov %vm13229_vm0 }
 0x744   :  { %v1827_v5 = vmul.f32 %v9700_v21, %v1826_v36  ;;  %2199 = vmatpush.bf16.msra.mxu1 %v9774_v8  ;;  %v1950_v19 = vld [vmem:[%s12992_s8] sm:$0xf]  ;;  %s8622_s8 = smov 120  }
 0x745   :  { %1882 = vst [vmem:[#allocation1] ss:$4 sm:$0xff] %v1866_v53  ;;  %v1837_v12 = vmul.f32 %v9705_v22, %v1836_v47  ;;  %2211 = vmatpush.bf16.msra.mxu2 %v9763_v17  ;;  %v2067_v53 = vld [vmem:[#allocation8 + $0x20] sm:$0xff]  ;;  %v2064_v47 = vld [vmem:[#allocation8 + $0x8] sm:$0xff] }
 0x746   :  { %v1831_v7 = vsel %vm1830_vm15, %v9700_v21, %v1827_v5  ;;  %v2085_v21 = vld [vmem:[#allocation8 + $0xb0] sm:$0xff]  ;;  %2225 = vmatpush.bf16.msra.mxu3 %v9782_v42  ;;  %2187 = vmatpush.bf16.msra.mxu0 %v9786_v6  ;;  %v9802_v16 = vpack.c.bf16 %v2068_v54, %v2064_v47  ;;  %vm13236_vm15 = vcmask 1045504  }
 0x747   :  { %v1848_v57 = vmul.f32 %v1831_v7, %v9638_v38  ;;  %v1841_v26 = vsel %vm1840_vm3, %v9705_v22, %v1837_v12  ;;  %v2072_v38 = vld [vmem:[#allocation8 + $0x48] sm:$0xff]  ;;  %v9780_v9 = vpack.c.bf16 %v2085_v21, %v2081_v56  ;;  %v2065_v5 = vld [vmem:[#allocation8 + $0x10] sm:$0xff]  ;;  %v2070_v12 = vld [vmem:[#allocation8 + $0x38] sm:$0xff]  ;;  %v13233_v21 = vmov 0  }
 0x748   :  { %v1849_v55 = vmul.f32 %v1841_v26, %v9640_v39  ;;  %v2073_v39 = vld [vmem:[#allocation8 + $0x50] sm:$0xff]  ;;  %v9790_v36 = vpack.c.bf16 %v2076_v41, %v2072_v38  ;;  %v9806_v23 = vpack.c.bf16 %v2069_v4, %v2065_v5  ;;  %v9808_v7 = vpack.c.bf16 %v2070_v12, %v2066_v61 }
 0x749   :  { %v1860_v27 = vmul.f32 %v9621_v32, %v1848_v57  ;;  %2212 = vmatpush.bf16.msra.mxu2 %v9780_v9  ;;  %v9794_v14 = vpack.c.bf16 %v2077_v34, %v2073_v39  ;;  %v1955_v38 = vperm.slane %v1950_v19, 3  ;;  %v1952_v41 = vperm.slane %v1950_v19, 0 }
 0x74a   :  { %v1861_v22 = vmul.f32 %v9621_v32, %v1849_v55  ;;  %2200 = vmatpush.bf16.msra.mxu1 %v9790_v36  ;;  %2226 = vmatpush.bf16.msra.mxu3 %v9796_v3  ;;  %13228 = vst [vmem:[#allocation22_spill] sm:$0xff] %v9808_v7  ;;  %v1953_v55 = vperm.slane %v1950_v19, 1  ;;  %vm13238_vm3 = vcmask 1045506  }
 0x74b   :  { %v1872_v2 = vadd.f32 %v9626_v31, %v1860_v27  ;;  %v1954_v27 = vperm.slane %v1950_v19, 2 }
 0x74c   :  { %v1873_v32 = vadd.f32 %v9626_v31, %v1861_v22  ;;  %v9799_v31 = vpack.c.bf16 %v2067_v53, %v2063_v33  ;;  %v1897_v56 = vld.sshfl [vmem:[#allocation1] sm:$0xff pattern:$0x73625140] }
 0x74d   :  { %1894 = vst [vmem:[#allocation1 + $0x22] ss:$4 sm:$0xff] %v1872_v2  ;;  %2213 = vmatpush.bf16.msra.mxu2 %v9794_v14 }
 0x74e   :  { %1896 = vst [vmem:[#allocation1 + $0x23] ss:$4 sm:$0xff] %v1873_v32  ;;  %2188 = vmatpush.bf16.msra.mxu0 %v9799_v31  ;;  %2201 = vmatpush.bf16.msra.mxu1 %v9802_v16 }
 0x74f   :  { %2227 = vmatpush.bf16.msra.mxu3 %v9808_v7 }
 0x751   :  { %2214 = vmatpush.bf16.msra.mxu2 %v9806_v23 }
 0x755   :  { %v1898_v57 = vld.sshfl [vmem:[#allocation1 + $0x20] sm:$0xff pattern:$0x73625140] }
 0x756   :  { %v1901_v26 = vpack.c.bf16 %v1898_v57, %v1897_v56 }
 0x758   :  { %7962 = vmatmul.msk.bf16.vlgmr.msrb.gmra.mxu0 %vm13229_vm0, %v1901_v26  ;;  %7963 = vmatmul.msk.bf16.vlgmr.msrb.gmra.mxu1 %vm13230_vm4, %v1901_v26  ;;  %vm13240_vm0 = vmmov %vm13236_vm15 }
 0x759   :  { %7964 = vmatmul.msk.bf16.vlgmr.msrb.gmra.mxu2 %vm13231_vm11, %v1901_v26  ;;  %7965 = vmatmul.msk.bf16.vlgmr.msrb.gmra.mxu3 %vm13232_vm14, %v1901_v26  ;;  %vm13241_vm4 = vmmov %vm13237_vm6 }
 0x75a   :  { %2323 = vmatpush.bf16.msrb.mxu0 %v9679_v20  ;;  %2336 = vmatpush.bf16.msrb.mxu1 %v9683_v59  ;;  %vm13242_vm11 = vmmov %vm13238_vm3 }
 0x75b   :  { %2349 = vmatpush.bf16.msrb.mxu2 %v9687_v1  ;;  %2362 = vmatpush.bf16.msrb.mxu3 %v9689_v45  ;;  %vm13244_vm14 = vmmov %vm13234_vm5 }
 0x75e   :  { %2324 = vmatpush.bf16.msrb.mxu0 %v9691_v29  ;;  %2337 = vmatpush.bf16.msrb.mxu1 %v9696_v11 }
 0x75f   :  { %2350 = vmatpush.bf16.msrb.mxu2 %v9698_v48  ;;  %2363 = vmatpush.bf16.msrb.mxu3 %v9703_v62 }
 0x762   :  { %2325 = vmatpush.bf16.msrb.mxu0 %v9712_v58  ;;  %2338 = vmatpush.bf16.msrb.mxu1 %v9718_v37 }
 0x763   :  { %2351 = vmatpush.bf16.msrb.mxu2 %v9720_v51  ;;  %2364 = vmatpush.bf16.msrb.mxu3 %v9726_v63 }
 0x766   :  { %2326 = vmatpush.bf16.msrb.mxu0 %v9731_v43  ;;  %2339 = vmatpush.bf16.msrb.mxu1 %v9734_v40 }
 0x767   :  { %2352 = vmatpush.bf16.msrb.mxu2 %v9740_v50  ;;  %2365 = vmatpush.bf16.msrb.mxu3 %v9742_v35 }
 0x768   :  { %2189 = vmatmul.bf16.vlgmr.msra.gmra.mxu0 %v13233_v21  ;;  %2202 = vmatmul.bf16.vlgmr.msra.gmra.mxu1 %v13233_v21 }
 0x769   :  { %2215 = vmatmul.bf16.vlgmr.msra.gmra.mxu2 %v13233_v21  ;;  %2228 = vmatmul.bf16.vlgmr.msra.gmra.mxu3 %v13233_v21 }
 0x76a   :  { %2327 = vmatpush.bf16.msrb.mxu0 %v9747_v49  ;;  %2340 = vmatpush.bf16.msrb.mxu1 %v9752_v60 }
 0x76b   :  { %2353 = vmatpush.bf16.msrb.mxu2 %v9763_v17  ;;  %2366 = vmatpush.bf16.msrb.mxu3 %v9765_v52 }
 0x76e   :  { %2328 = vmatpush.bf16.msrb.mxu0 %v9770_v15  ;;  %2341 = vmatpush.bf16.msrb.mxu1 %v9774_v8 }
 0x76f   :  { %2354 = vmatpush.bf16.msrb.mxu2 %v9780_v9  ;;  %2367 = vmatpush.bf16.msrb.mxu3 %v9782_v42 }
 0x772   :  { %2329 = vmatpush.bf16.msrb.mxu0 %v9786_v6  ;;  %2342 = vmatpush.bf16.msrb.mxu1 %v9790_v36 }
 0x773   :  { %2355 = vmatpush.bf16.msrb.mxu2 %v9794_v14  ;;  %2368 = vmatpush.bf16.msrb.mxu3 %v9796_v3 }
 0x776   :  { %2330 = vmatpush.bf16.msrb.mxu0 %v9799_v31  ;;  %2343 = vmatpush.bf16.msrb.mxu1 %v9802_v16 }
 0x777   :  { %2356 = vmatpush.bf16.msrb.mxu2 %v9806_v23  ;;  %2369 = vmatpush.bf16.msrb.mxu3 %v9808_v7 }
 0x77a   :  { %2465 = vmatpush.bf16.msra.mxu0 %v9679_v20  ;;  %2478 = vmatpush.bf16.msra.mxu1 %v9683_v59 }
 0x77b   :  { %2491 = vmatpush.bf16.msra.mxu2 %v9687_v1  ;;  %2504 = vmatpush.bf16.msra.mxu3 %v9689_v45 }
 0x77e   :  { %2466 = vmatpush.bf16.msra.mxu0 %v9691_v29  ;;  %2479 = vmatpush.bf16.msra.mxu1 %v9696_v11 }
 0x77f   :  { %2492 = vmatpush.bf16.msra.mxu2 %v9698_v48  ;;  %2505 = vmatpush.bf16.msra.mxu3 %v9703_v62 }
 0x782   :  { %2467 = vmatpush.bf16.msra.mxu0 %v9712_v58  ;;  %2480 = vmatpush.bf16.msra.mxu1 %v9718_v37 }
 0x783   :  { %2493 = vmatpush.bf16.msra.mxu2 %v9720_v51  ;;  %2506 = vmatpush.bf16.msra.mxu3 %v9726_v63 }
 0x786   :  { %2468 = vmatpush.bf16.msra.mxu0 %v9731_v43  ;;  %2481 = vmatpush.bf16.msra.mxu1 %v9734_v40 }
 0x787   :  { %2494 = vmatpush.bf16.msra.mxu2 %v9740_v50  ;;  %2507 = vmatpush.bf16.msra.mxu3 %v9742_v35 }
 0x78a   :  { %2469 = vmatpush.bf16.msra.mxu0 %v9747_v49  ;;  %2482 = vmatpush.bf16.msra.mxu1 %v9752_v60 }
 0x78b   :  { %2495 = vmatpush.bf16.msra.mxu2 %v9763_v17  ;;  %2508 = vmatpush.bf16.msra.mxu3 %v9765_v52 }
 0x78e   :  { %2470 = vmatpush.bf16.msra.mxu0 %v9770_v15  ;;  %2483 = vmatpush.bf16.msra.mxu1 %v9774_v8 }
 0x78f   :  { %2496 = vmatpush.bf16.msra.mxu2 %v9780_v9  ;;  %2509 = vmatpush.bf16.msra.mxu3 %v9782_v42 }
 0x792   :  { %2471 = vmatpush.bf16.msra.mxu0 %v9786_v6  ;;  %2484 = vmatpush.bf16.msra.mxu1 %v9790_v36 }
 0x793   :  { %2497 = vmatpush.bf16.msra.mxu2 %v9794_v14  ;;  %2510 = vmatpush.bf16.msra.mxu3 %v9796_v3 }
 0x796   :  { %2472 = vmatpush.bf16.msra.mxu0 %v9799_v31  ;;  %2485 = vmatpush.bf16.msra.mxu1 %v9802_v16 }
 0x797   :  { %2498 = vmatpush.bf16.msra.mxu2 %v9806_v23  ;;  %2511 = vmatpush.bf16.msra.mxu3 %v9808_v7 }
 0x7d5   :  { %v1972_v24 = vpop.f32.mrf.mxu0  ;;  %v1986_v25 = vpop.f32.mrf.mxu1 }
 0x7d6   :  { %v1987_v18 = vadd.f32 %v1986_v25, %v1953_v55  ;;  %v9891_v33 = vadd.f32 %v1972_v24, %v1952_v41 }
 0x7d8   :  { %v9889_v2 = vrot.slane %v1987_v18, 6 }
 0x7da   :  { %v2033_v54 = vsel %vm301_vm1, %v9891_v33, %v9889_v2 }
 0x7dc   :  { %v2000_v22 = vpop.f32.mrf.mxu2  ;;  %v2014_v39 = vpop.f32.mrf.mxu3 }
 0x7dd   :  { %v2001_v34 = vadd.f32 %v2000_v22, %v1954_v27  ;;  %v2015_v0 = vadd.f32 %v2014_v39, %v1955_v38  ;;  %v1974_v10 = vpop.f32.mrf.mxu0  ;;  %v1988_v32 = vpop.f32.mrf.mxu1 }
 0x7de   :  { %v1989_v4 = vadd.f32 %v1988_v32, %v1953_v55  ;;  %v9909_v25 = vadd.f32 %v1974_v10, %v1952_v41 }
 0x7df   :  { %v9893_v53 = vrot.slane %v2001_v34, 4  ;;  %v9895_v47 = vrot.slane %v2015_v0, 2 }
 0x7e0   :  { %v9907_v57 = vrot.slane %v1989_v4, 6 }
 0x7e1   :  { %v2034_v5 = vsel %vm303_vm2, %v9893_v53, %v9895_v47 }
 0x7e2   :  { %v9904_v61 = vsel %vm13234_vm5, %v2033_v54, %v2034_v5  ;;  %v2059_v55 = vsel %vm13236_vm15, %v9907_v57, %v9909_v25  ;;  %vm13251_vm15 = vmmov %vm13240_vm0 }
 0x7e3   :  { %13235 = vst [vmem:[#allocation29_spill] sm:$0xff] %v9904_v61 }
 0x7e4   :  { %2159 = vst [vmem:[#allocation1] ss:$4 sm:$0xff] %v9904_v61  ;;  %v2002_v12 = vpop.f32.mrf.mxu2  ;;  %v2016_v56 = vpop.f32.mrf.mxu3 }
 0x7e5   :  { %v2003_v26 = vadd.f32 %v2002_v12, %v1954_v27  ;;  %v2017_v21 = vadd.f32 %v2016_v56, %v1955_v38  ;;  %v2190_v19 = vpop.f32.mrf.mxu0  ;;  %v2203_v24 = vpop.f32.mrf.mxu1  ;;  %v2037_v12 = vsel %vm13240_vm0, %v9895_v47, %v9893_v53  ;;  %v2036_v56 = vsel %vm13241_vm4, %v9891_v33, %v9889_v2 }
 0x7e7   :  { %v9911_v18 = vrot.slane %v2003_v26, 4  ;;  %v9913_v22 = vrot.slane %v2017_v21, 2  ;;  %v9934_v26 = vsel %vm13242_vm11, %v2036_v56, %v2037_v12 }
 0x7e8   :  { %13243 = vst [vmem:[#allocation31_spill] sm:$0xff] %v9934_v26  ;;  %v13043_v21 = vrot.slane %v9934_v26, 2 }
 0x7e9   :  { %v2060_v39 = vsel %vm13237_vm6, %v9911_v18, %v9913_v22  ;;  %vm13256_vm6 = vmmov %vm13241_vm4 }
 0x7ea   :  { %v9922_v34 = vsel %vm13238_vm3, %v2060_v39, %v2059_v55  ;;  %vm13259_vm11 = vmmov %vm13256_vm6 }
 0x7eb   :  { %13239 = vst [vmem:[#allocation23_spill] sm:$0xff] %v9922_v34  ;;  %v2160_v27 = vld.sshfl [vmem:[#allocation1] sm:$0xff pattern:$0x73625140]  ;;  %v13040_v41 = vrot.slane %v9922_v34, 6  ;;  %v2056_v34 = vsel %vm301_vm1, %v9911_v18, %v9913_v22 }
 0x7ec   :  { %v2161_v38 = vld.sshfl [vmem:[#allocation1 + $0x8] sm:$0xff pattern:$0x73625140]  ;;  %v2216_v0 = vpop.f32.mrf.mxu2  ;;  %v2229_v10 = vpop.f32.mrf.mxu3  ;;  %v2162_v32 = vld.sshfl [vmem:[#allocation1 + $0x10] sm:$0xff pattern:$0x73625140] }
 0x7ed   :  { %v2163_v54 = vld.sshfl [vmem:[#allocation1 + $0x18] sm:$0xff pattern:$0x73625140]  ;;  %v2192_v5 = vpop.f32.mrf.mxu0  ;;  %v2205_v4 = vpop.f32.mrf.mxu1 }
 0x7ee   :  { %2168 = vst [vmem:[#allocation1] ss:$4 sm:$0xff] %v13040_v41 }
 0x7f4   :  { %v2231_v55 = vpop.f32.mrf.mxu3  ;;  %v2218_v39 = vpop.f32.mrf.mxu2 }
 0x7f5   :  { %v2169_v5 = vld.sshfl [vmem:[#allocation1] sm:$0xff pattern:$0x73625140]  ;;  %v2170_v4 = vld.sshfl [vmem:[#allocation1 + $0x8] sm:$0xff pattern:$0x73625140] }
 0x7f6   :  { %v2171_v30 = vld.sshfl [vmem:[#allocation1 + $0x10] sm:$0xff pattern:$0x73625140]  ;;  %v2172_v61 = vld.sshfl [vmem:[#allocation1 + $0x18] sm:$0xff pattern:$0x73625140]  ;;  %v2177_v7 = vsel %vm486_vm7, %v2160_v27, %v2169_v5  ;;  %v2178_v41 = vsel %vm9015_vm8, %v2161_v38, %v2170_v4  ;;  %v2055_v27 = vsel %vm303_vm2, %v9909_v25, %v9907_v57 }
 0x7f7   :  { %2300 = vst [vmem:[#allocation1] ss:$4 sm:$0xff] %v13043_v21  ;;  %v2233_v12 = vadd.f32 %v2190_v19, %v2177_v7  ;;  %v2234_v56 = vadd.f32 %v2203_v24, %v2178_v41  ;;  %v2180_v55 = vsel %vm9020_vm9, %v2163_v54, %v2172_v61  ;;  %v9952_v38 = vsel %vm13244_vm14, %v2056_v34, %v2055_v27 }
 0x7f8   :  { %v2236_v39 = vadd.f32 %v2229_v10, %v2180_v55  ;;  %13245 = vst [vmem:[#allocation25_spill] sm:$0xff] %v9952_v38  ;;  %v13044_v21 = vrot.slane %v9952_v38, 4  ;;  %v2041_v41 = vsel %vm301_vm1, %v9893_v53, %v9895_v47  ;;  %v2040_v10 = vsel %vm303_vm2, %v9891_v33, %v9889_v2 }
 0x7f9   :  { %v7966_v5 = vmul.f32 -1.442695, %v2233_v12  ;;  %v7967_v13 = vmul.f32 -1.442695, %v2234_v56  ;;  %v9972_v56 = vsel %vm13234_vm5, %v2041_v41, %v2040_v10  ;;  %v2179_v27 = vsel %vm9062_vm10, %v2162_v32, %v2171_v30 }
 0x7fa   :  { %v7968_v4 = vmul.f32 -1.442695, %v2236_v39  ;;  %13250 = vst [vmem:[#allocation35_spill] sm:$0xff] %v9972_v56  ;;  %v13048_v39 = vrot.slane %v9972_v56, 4  ;;  %v2051_v30 = vsel %vm13256_vm6, %v9909_v25, %v9907_v57  ;;  %v2235_v32 = vadd.f32 %v2216_v0, %v2179_v27 }
 0x7fb   :  { %8274 = vpow2.f32 %v7966_v5 }
 0x7fc   :  { %8276 = vpow2.f32 %v7967_v13 }
 0x7fd   :  { %8278 = vpow2.f32 %v7968_v4  ;;  %v2052_v4 = vsel %vm13251_vm15, %v9913_v22, %v9911_v18 }
 0x7fe   :  { %v9955_v7 = vld.sshfl [vmem:[#allocation1] sm:$0xff pattern:$0x73625140]  ;;  %v9957_v19 = vld.sshfl [vmem:[#allocation1 + $0x8] sm:$0xff pattern:$0x73625140] }
 0x7ff   :  { %13246 = vst [vmem:[#allocation30_spill] sm:$0xff] %v9955_v7  ;;  %v9959_v61 = vld.sshfl [vmem:[#allocation1 + $0x10] sm:$0xff pattern:$0x73625140] }
 0x800   :  { %13247 = vst [vmem:[#allocation24_spill] sm:$0xff] %v9957_v19  ;;  %v9961_v24 = vld.sshfl [vmem:[#allocation1 + $0x18] sm:$0xff pattern:$0x73625140] }
 0x801   :  { %13248 = vst [vmem:[#allocation32_spill] sm:$0xff] %v9959_v61  ;;  %v8275_v34 = vpop.eup %8274 }
 0x802   :  { %13249 = vst [vmem:[#allocation33_spill] sm:$0xff] %v9961_v24  ;;  %v8277_v13 = vpop.eup %8276  ;;  %v2240_v54 = vadd.f32 1.0, %v8275_v34 }
 0x803   :  { %2309 = vst [vmem:[#allocation1] ss:$4 sm:$0xff] %v13044_v21  ;;  %v8279_v12 = vpop.eup %8278  ;;  %v2259_v55 = vadd.f32 1.0, %v8277_v13 }
 0x804   :  { %8280 = vrcp.f32 %v2240_v54  ;;  %v9977_v5 = vadd.f32 1.0, %v8279_v12  ;;  %v9997_v12 = vsel %vm13238_vm3, %v2051_v30, %v2052_v4  ;;  %v2250_v44 = vand.u32 2147483647, %v2240_v54 }
 0x805   :  { %8282 = vrcp.f32 %v2259_v55  ;;  %v2252_v7 = vand.u32 2147483648, %v2240_v54  ;;  %vm2246_vm14 = vweird.f32 %v2240_v54  ;;  %vm2265_vm5 = vweird.f32 %v2259_v55 }
 0x806   :  { %8284 = vrcp.f32 %v9977_v5  ;;  %vm2251_vm6 = vcmp.eq.f32.partialorder %v2250_v44, 8.507059e+37  ;;  %v2291_v44 = vand.u32 2147483648, %v9977_v5 }
 0x807   :  { %8286 = vtanh.f32 %v2235_v32 }
 0x80a   :  { %v9982_v21 = vld.sshfl [vmem:[#allocation1] sm:$0xff pattern:$0x73625140]  ;;  %v9984_v34 = vld.sshfl [vmem:[#allocation1 + $0x8] sm:$0xff pattern:$0x73625140]  ;;  %v8281_v10 = vpop.eup %8280 }
 0x80b   :  { %13252 = vst [vmem:[#allocation34_spill] sm:$0xff] %v9982_v21  ;;  %v9986_v41 = vld.sshfl [vmem:[#allocation1 + $0x10] sm:$0xff pattern:$0x73625140]  ;;  %v8283_v28 = vpop.eup %8282  ;;  %v2242_v61 = vmul.f32 %v8281_v10, %v2240_v54  ;;  %vm2247_vm0 = vweird.f32 %v8281_v10 }
 0x80c   :  { %13253 = vst [vmem:[#allocation41_spill] sm:$0xff] %v9984_v34  ;;  %v9988_v13 = vld.sshfl [vmem:[#allocation1 + $0x18] sm:$0xff pattern:$0x73625140]  ;;  %v2261_v46 = vmul.f32 %v8283_v28, %v2259_v55  ;;  %v2271_v34 = vand.u32 2147483648, %v2259_v55  ;;  %vm2266_vm4 = vweird.f32 %v8283_v28  ;;  %vm2248_vm15 = vmor %vm2246_vm14, %vm2247_vm0  ;;  %vm13268_vm14 = vcmask 1043456  }
 0x80d   :  { %13254 = vst [vmem:[#allocation37_spill] sm:$0xff] %v9986_v41  ;;  %v2243_v24 = vsub.f32 1.0, %v2242_v61  ;;  %v2045_v61 = vsel %vm13259_vm11, %v9893_v53, %v9895_v47  ;;  %vm2267_vm3 = vmor %vm2265_vm5, %vm2266_vm4  ;;  %vm13262_vm11 = vcmask 1045504  }
 0x80e   :  { %13255 = vst [vmem:[#allocation42_spill] sm:$0xff] %v9988_v13  ;;  %v8285_v13 = vpop.eup %8284  ;;  %v2262_v19 = vsub.f32 1.0, %v2261_v46  ;;  %v2272_v38 = vor.u32 1.1754944e-38, %v2271_v34  ;;  %v2044_v53 = vsel %vm13262_vm11, %v9889_v2, %v9891_v33 }
 0x80f   :  { %2442 = vst [vmem:[#allocation1] ss:$4 sm:$0xff] %v13048_v39  ;;  %v2244_v21 = vmul.f32 %v8281_v10, %v2243_v24  ;;  %v2269_v39 = vand.u32 2147483647, %v2259_v55  ;;  %v2281_v0 = vmul.f32 %v8285_v13, %v9977_v5  ;;  %v13261_v24 = vrot.slane %v9997_v12, 2 }
 0x810   :  { %v2263_v30 = vmul.f32 %v8283_v28, %v2262_v19  ;;  %v8287_v19 = vpop.eup %8286  ;;  %v10019_v54 = vsel %vm13263_vm12, %v2045_v61, %v2044_v53  ;;  %vm2286_vm0 = vweird.f32 %v8285_v13  ;;  %vm2285_vm12 = vweird.f32 %v9977_v5 }
 0x811   :  { %v2245_v41 = vadd.f32 %v8281_v10, %v2244_v21  ;;  %vm2270_vm13 = vcmp.eq.f32.partialorder %v2269_v39, 8.507059e+37  ;;  %v2047_v34 = vrot.slane %v10019_v54, 6 }
 0x812   :  { %v2264_v26 = vadd.f32 %v8283_v28, %v2263_v30 }
 0x813   :  { %v2249_v56 = vsel %vm2248_vm15, %v8281_v10, %v2245_v41 }
 0x814   :  { %v2268_v21 = vsel %vm2267_vm3, %v8283_v28, %v2264_v26  ;;  %v2289_v26 = vand.u32 2147483647, %v9977_v5 }
 0x815   :  { %v2273_v55 = vsel %vm2270_vm13, %v2272_v38, %v2268_v21  ;;  %vm2287_vm13 = vmor %vm2285_vm12, %vm2286_vm0 }
 0x816   :  { %v10001_v27 = vld.sshfl [vmem:[#allocation1] sm:$0xff pattern:$0x73625140]  ;;  %v10003_v4 = vld.sshfl [vmem:[#allocation1 + $0x8] sm:$0xff pattern:$0x73625140] }
 0x817   :  { %13257 = vst [vmem:[#allocation38_spill] sm:$0xff] %v10001_v27  ;;  %v10008_v32 = vld.sshfl [vmem:[#allocation1 + $0x10] sm:$0xff pattern:$0x73625140]  ;;  %v2253_v27 = vor.u32 1.1754944e-38, %v2252_v7  ;;  %vm2290_vm4 = vcmp.eq.f32.partialorder %v2289_v26, 8.507059e+37 }
 0x818   :  { %13258 = vst [vmem:[#allocation44_spill] sm:$0xff] %v10003_v4  ;;  %v10010_v46 = vld.sshfl [vmem:[#allocation1 + $0x18] sm:$0xff pattern:$0x73625140]  ;;  %v2282_v4 = vsub.f32 1.0, %v2281_v0  ;;  %v2295_v0 = vmul.f32 0.0, %v2273_v55 }
 0x819   :  { %13260 = vst [vmem:[#allocation40_spill] sm:$0xff] %v10008_v32  ;;  %v2254_v47 = vsel %vm2251_vm6, %v2253_v27, %v2249_v56  ;;  %v2292_v56 = vor.u32 1.1754944e-38, %v2291_v44  ;;  %v2049_v27 = vsel %vm303_vm2, %v9911_v18, %v9913_v22 }
 0x81a   :  { %2451 = vst [vmem:[#allocation1] ss:$4 sm:$0xff] %v13261_v24  ;;  %v2296_v7 = vmul.f32 %v8287_v19, %v2254_v47  ;;  %v2283_v30 = vmul.f32 %v8285_v13, %v2282_v4  ;;  %v2048_v19 = vsel %vm301_vm1, %v9909_v25, %v9907_v57 }
 0x81b   :  { %v2050_v5 = vsel %vm13268_vm14, %v2048_v19, %v2049_v27  ;;  %v13289_v19 = vld [vmem:[#allocation35_spill] sm:$0xff] }
 0x81c   :  { %v10022_v41 = vadd.f32 %v2296_v7, %v2295_v0  ;;  %v2284_v2 = vadd.f32 %v8285_v13, %v2283_v30 }
 0x81e   :  { %8288 = vtanh.f32 %v10022_v41  ;;  %v2288_v38 = vsel %vm2287_vm13, %v8285_v13, %v2284_v2 }
 0x81f   :  { %v2293_v4 = vsel %vm2290_vm4, %v2292_v56, %v2288_v38  ;;  %v13283_v38 = vrot.slane %v9997_v12, 2  ;;  %v13284_v56 = vld [vmem:[#allocation22_spill] sm:$0xff] }
 0x821   :  { %v10025_v10 = vld.sshfl [vmem:[#allocation1] sm:$0xff pattern:$0x73625140]  ;;  %v10027_v24 = vld.sshfl [vmem:[#allocation1 + $0x8] sm:$0xff pattern:$0x73625140] }
 0x822   :  { %v10029_v28 = vld.sshfl [vmem:[#allocation1 + $0x10] sm:$0xff pattern:$0x73625140]  ;;  %v10031_v33 = vld.sshfl [vmem:[#allocation1 + $0x18] sm:$0xff pattern:$0x73625140] }
 0x823   :  { %13264 = vst [vmem:[#allocation43_spill] sm:$0xff] %v10029_v28 }
 0x824   :  { %2584 = vst [vmem:[#allocation1] ss:$4 sm:$0xff] %v2047_v34  ;;  %v8289_v39 = vpop.eup %8288 }
 0x825   :  { %v10039_v61 = vmul.f32 %v8289_v39, %v2293_v4 }
 0x827   :  { %13265 = vst [vmem:[#allocation39_spill] sm:$0xff] %v10039_v61  ;;  %3316 = vrot.lane.b32.xlu2 %v10039_v61, %s8619_s4  ;;  %v2322_v18 = vpack.c.bf16 %v10039_v61, %v10039_v61 }
 0x829   :  { %2331 = vmatmul.bf16.vlgmr.msrb.gmra.mxu0 %v2322_v18  ;;  %2344 = vmatmul.bf16.vlgmr.msrb.gmra.mxu1 %v2322_v18 }
 0x82a   :  { %2357 = vmatmul.bf16.vlgmr.msrb.gmra.mxu2 %v2322_v18  ;;  %2370 = vmatmul.bf16.vlgmr.msrb.gmra.mxu3 %v2322_v18 }
 0x82b   :  { %v10044_v53 = vld.sshfl [vmem:[#allocation1] sm:$0xff pattern:$0x73625140]  ;;  %v10046_v47 = vld.sshfl [vmem:[#allocation1 + $0x8] sm:$0xff pattern:$0x73625140]  ;;  %2607 = vmatpush.bf16.msrb.mxu0 %v9679_v20  ;;  %2620 = vmatpush.bf16.msrb.mxu1 %v9683_v59 }
 0x82c   :  { %13266 = vst [vmem:[#allocation49_spill] sm:$0xff] %v10044_v53  ;;  %v10049_v13 = vld.sshfl [vmem:[#allocation1 + $0x10] sm:$0xff pattern:$0x73625140]  ;;  %2633 = vmatpush.bf16.msrb.mxu2 %v9687_v1  ;;  %2646 = vmatpush.bf16.msrb.mxu3 %v9689_v45 }
 0x82d   :  { %13267 = vst [vmem:[#allocation45_spill] sm:$0xff] %v10046_v47  ;;  %v10051_v21 = vld.sshfl [vmem:[#allocation1 + $0x18] sm:$0xff pattern:$0x73625140] }
 0x82e   :  { %13269 = vst [vmem:[#allocation50_spill] sm:$0xff] %v10049_v13 }
 0x82f   :  { %13270 = vst [vmem:[#allocation46_spill] sm:$0xff] %v10051_v21  ;;  %2608 = vmatpush.bf16.msrb.mxu0 %v9691_v29  ;;  %2621 = vmatpush.bf16.msrb.mxu1 %v9696_v11 }
 0x830   :  { %2593 = vst [vmem:[#allocation1] ss:$4 sm:$0xff] %v2050_v5  ;;  %2634 = vmatpush.bf16.msrb.mxu2 %v9698_v48  ;;  %2647 = vmatpush.bf16.msrb.mxu3 %v9703_v62 }
 0x833   :  { %2609 = vmatpush.bf16.msrb.mxu0 %v9712_v58  ;;  %2622 = vmatpush.bf16.msrb.mxu1 %v9718_v37 }
 0x834   :  { %2635 = vmatpush.bf16.msrb.mxu2 %v9720_v51  ;;  %2648 = vmatpush.bf16.msrb.mxu3 %v9726_v63 }
 0x837   :  { %v10061_v57 = vld.sshfl [vmem:[#allocation1] sm:$0xff pattern:$0x73625140]  ;;  %v10063_v25 = vld.sshfl [vmem:[#allocation1 + $0x8] sm:$0xff pattern:$0x73625140]  ;;  %2610 = vmatpush.bf16.msrb.mxu0 %v9731_v43  ;;  %2623 = vmatpush.bf16.msrb.mxu1 %v9734_v40 }
 0x838   :  { %13271 = vst [vmem:[#allocation52_spill] sm:$0xff] %v10061_v57  ;;  %v10067_v22 = vld.sshfl [vmem:[#allocation1 + $0x10] sm:$0xff pattern:$0x73625140]  ;;  %2636 = vmatpush.bf16.msrb.mxu2 %v9740_v50  ;;  %2649 = vmatpush.bf16.msrb.mxu3 %v9742_v35 }
 0x839   :  { %13272 = vst [vmem:[#allocation48_spill] sm:$0xff] %v10063_v25  ;;  %v10069_v54 = vld.sshfl [vmem:[#allocation1 + $0x18] sm:$0xff pattern:$0x73625140] }
 0x83a   :  { %13273 = vst [vmem:[#allocation51_spill] sm:$0xff] %v10067_v22 }
 0x83b   :  { %13274 = vst [vmem:[#allocation47_spill] sm:$0xff] %v10069_v54  ;;  %2611 = vmatpush.bf16.msrb.mxu0 %v9747_v49  ;;  %2624 = vmatpush.bf16.msrb.mxu1 %v9752_v60 }
 0x83c   :  { %2726 = vst [vmem:[#allocation1] ss:$4 sm:$0xff] %v2050_v5  ;;  %2637 = vmatpush.bf16.msrb.mxu2 %v9763_v17  ;;  %2650 = vmatpush.bf16.msrb.mxu3 %v9765_v52  ;;  %v13290_v5 = vrot.slane %v13289_v19, 4  ;;  %v13301_v19 = vld [vmem:[#allocation31_spill] sm:$0xff] }
 0x83f   :  { %2612 = vmatpush.bf16.msrb.mxu0 %v9770_v15  ;;  %2625 = vmatpush.bf16.msrb.mxu1 %v9774_v8 }
 0x840   :  { %2638 = vmatpush.bf16.msrb.mxu2 %v9780_v9  ;;  %2651 = vmatpush.bf16.msrb.mxu3 %v9782_v42 }
 0x843   :  { %v10079_v55 = vld.sshfl [vmem:[#allocation1] sm:$0xff pattern:$0x73625140]  ;;  %v10081_v7 = vld.sshfl [vmem:[#allocation1 + $0x8] sm:$0xff pattern:$0x73625140]  ;;  %2613 = vmatpush.bf16.msrb.mxu0 %v9786_v6  ;;  %2626 = vmatpush.bf16.msrb.mxu1 %v9790_v36 }
 0x844   :  { %13275 = vst [vmem:[#allocation26_spill] sm:$0xff] %v10079_v55  ;;  %v10085_v30 = vld.sshfl [vmem:[#allocation1 + $0x10] sm:$0xff pattern:$0x73625140]  ;;  %2639 = vmatpush.bf16.msrb.mxu2 %v9794_v14  ;;  %2652 = vmatpush.bf16.msrb.mxu3 %v9796_v3 }
 0x845   :  { %13276 = vst [vmem:[#allocation53_spill] sm:$0xff] %v10081_v7  ;;  %v10087_v0 = vld.sshfl [vmem:[#allocation1 + $0x18] sm:$0xff pattern:$0x73625140] }
 0x846   :  { %13277 = vst [vmem:[#allocation57_spill] sm:$0xff] %v10085_v30  ;;  %v13318_v7 = vld [vmem:[#allocation24_spill] sm:$0xff] }
 0x847   :  { %13278 = vst [vmem:[#allocation54_spill] sm:$0xff] %v10087_v0  ;;  %2614 = vmatpush.bf16.msrb.mxu0 %v9799_v31  ;;  %2627 = vmatpush.bf16.msrb.mxu1 %v9802_v16 }
 0x848   :  { %2735 = vst [vmem:[#allocation1] ss:$4 sm:$0xff] %v2047_v34  ;;  %2640 = vmatpush.bf16.msrb.mxu2 %v9806_v23  ;;  %2653 = vmatpush.bf16.msrb.mxu3 %v13284_v56 }
 0x84f   :  { %v10097_v44 = vld.sshfl [vmem:[#allocation1] sm:$0xff pattern:$0x73625140]  ;;  %v10099_v2 = vld.sshfl [vmem:[#allocation1 + $0x8] sm:$0xff pattern:$0x73625140] }
 0x850   :  { %13279 = vst [vmem:[#allocation59_spill] sm:$0xff] %v10097_v44  ;;  %v10101_v34 = vld.sshfl [vmem:[#allocation1 + $0x10] sm:$0xff pattern:$0x73625140]  ;;  %v13321_v44 = vld [vmem:[#allocation33_spill] sm:$0xff] }
 0x851   :  { %13280 = vst [vmem:[#allocation56_spill] sm:$0xff] %v10099_v2  ;;  %v10103_v26 = vld.sshfl [vmem:[#allocation1 + $0x18] sm:$0xff pattern:$0x73625140] }
 0x852   :  { %13281 = vst [vmem:[#allocation58_spill] sm:$0xff] %v10101_v34  ;;  %v13295_v34 = vld [vmem:[#allocation25_spill] sm:$0xff] }
 0x853   :  { %13282 = vst [vmem:[#allocation55_spill] sm:$0xff] %v10103_v26  ;;  %v13296_v0 = vrot.slane %v13295_v34, 4 }
 0x854   :  { %2868 = vst [vmem:[#allocation1] ss:$4 sm:$0xff] %v13283_v38 }
 0x85b   :  { %v10115_v39 = vld.sshfl [vmem:[#allocation1] sm:$0xff pattern:$0x73625140]  ;;  %v10117_v27 = vld.sshfl [vmem:[#allocation1 + $0x8] sm:$0xff pattern:$0x73625140] }
 0x85c   :  { %13285 = vst [vmem:[#allocation36_spill] sm:$0xff] %v10115_v39  ;;  %v10119_v4 = vld.sshfl [vmem:[#allocation1 + $0x10] sm:$0xff pattern:$0x73625140] }
 0x85d   :  { %13286 = vst [vmem:[#allocation18_spill] sm:$0xff] %v10117_v27  ;;  %v10121_v12 = vld.sshfl [vmem:[#allocation1 + $0x18] sm:$0xff pattern:$0x73625140] }
 0x85e   :  { %13287 = vst [vmem:[#allocation21_spill] sm:$0xff] %v10119_v4 }
 0x85f   :  { %13288 = vst [vmem:[#allocation63_spill] sm:$0xff] %v10121_v12 }
 0x860   :  { %2877 = vst [vmem:[#allocation1] ss:$4 sm:$0xff] %v13290_v5  ;;  %v13302_v5 = vrot.slane %v13301_v19, 2  ;;  %v13313_v19 = vld [vmem:[#allocation29_spill] sm:$0xff] }
 0x867   :  { %v10125_v18 = vld.sshfl [vmem:[#allocation1] sm:$0xff pattern:$0x73625140]  ;;  %v10127_v38 = vld.sshfl [vmem:[#allocation1 + $0x8] sm:$0xff pattern:$0x73625140] }
 0x868   :  { %13291 = vst [vmem:[#allocation60_spill] sm:$0xff] %v10125_v18  ;;  %v10129_v61 = vld.sshfl [vmem:[#allocation1 + $0x10] sm:$0xff pattern:$0x73625140] }
 0x869   :  { %13292 = vst [vmem:[#allocation65_spill] sm:$0xff] %v10127_v38  ;;  %v10131_v30 = vld.sshfl [vmem:[#allocation1 + $0x18] sm:$0xff pattern:$0x73625140] }
 0x86a   :  { %13293 = vst [vmem:[#allocation62_spill] sm:$0xff] %v10129_v61 }
 0x86b   :  { %13294 = vst [vmem:[#allocation64_spill] sm:$0xff] %v10131_v30 }
 0x86c   :  { %3010 = vst [vmem:[#allocation1] ss:$4 sm:$0xff] %v13296_v0  ;;  %v13307_v0 = vld [vmem:[#allocation23_spill] sm:$0xff] }
 0x86d   :  { %v13308_v34 = vrot.slane %v13307_v0, 6 }
 0x873   :  { %v10135_v39 = vld.sshfl [vmem:[#allocation1] sm:$0xff pattern:$0x73625140]  ;;  %v10137_v27 = vld.sshfl [vmem:[#allocation1 + $0x8] sm:$0xff pattern:$0x73625140] }
 0x874   :  { %13297 = vst [vmem:[#allocation61_spill] sm:$0xff] %v10135_v39  ;;  %v10139_v4 = vld.sshfl [vmem:[#allocation1 + $0x10] sm:$0xff pattern:$0x73625140] }
 0x875   :  { %13298 = vst [vmem:[#allocation17_spill] sm:$0xff] %v10137_v27  ;;  %v10141_v12 = vld.sshfl [vmem:[#allocation1 + $0x18] sm:$0xff pattern:$0x73625140] }
 0x876   :  { %13299 = vst [vmem:[#allocation66_spill] sm:$0xff] %v10139_v4 }
 0x877   :  { %13300 = vst [vmem:[#allocation68_spill] sm:$0xff] %v10141_v12 }
 0x878   :  { %3019 = vst [vmem:[#allocation1] ss:$4 sm:$0xff] %v13302_v5  ;;  %v13314_v5 = vld [vmem:[#allocation34_spill] sm:$0xff] }
 0x87f   :  { %v10145_v18 = vld.sshfl [vmem:[#allocation1] sm:$0xff pattern:$0x73625140]  ;;  %v10147_v38 = vld.sshfl [vmem:[#allocation1 + $0x8] sm:$0xff pattern:$0x73625140] }
 0x880   :  { %13303 = vst [vmem:[#allocation67_spill] sm:$0xff] %v10145_v18  ;;  %v10149_v61 = vld.sshfl [vmem:[#allocation1 + $0x10] sm:$0xff pattern:$0x73625140]  ;;  %v13315_v18 = vld [vmem:[#allocation30_spill] sm:$0xff] }
 0x881   :  { %13304 = vst [vmem:[#allocation15_spill] sm:$0xff] %v10147_v38  ;;  %v10151_v30 = vld.sshfl [vmem:[#allocation1 + $0x18] sm:$0xff pattern:$0x73625140] }
 0x882   :  { %13305 = vst [vmem:[#allocation22_spill] sm:$0xff] %v10149_v61  ;;  %v2318_v61 = vsel %vm486_vm7, %v13315_v18, %v13314_v5 }
 0x883   :  { %13306 = vst [vmem:[#allocation35_spill] sm:$0xff] %v10151_v30  ;;  %v13317_v30 = vld [vmem:[#allocation41_spill] sm:$0xff] }
 0x884   :  { %3152 = vst [vmem:[#allocation1] ss:$4 sm:$0xff] %v13308_v34  ;;  %v2319_v34 = vsel %vm9015_vm8, %v13318_v7, %v13317_v30 }
 0x88b   :  { %v10155_v39 = vld.sshfl [vmem:[#allocation1] sm:$0xff pattern:$0x73625140]  ;;  %v10157_v27 = vld.sshfl [vmem:[#allocation1 + $0x8] sm:$0xff pattern:$0x73625140] }
 0x88c   :  { %13309 = vst [vmem:[#allocation25_spill] sm:$0xff] %v10155_v39  ;;  %v10159_v4 = vld.sshfl [vmem:[#allocation1 + $0x10] sm:$0xff pattern:$0x73625140] }
 0x88d   :  { %13310 = vst [vmem:[#allocation31_spill] sm:$0xff] %v10157_v27  ;;  %v10161_v12 = vld.sshfl [vmem:[#allocation1 + $0x18] sm:$0xff pattern:$0x73625140] }
 0x88e   :  { %13311 = vst [vmem:[#allocation23_spill] sm:$0xff] %v10159_v4 }
 0x88f   :  { %13312 = vst [vmem:[#allocation69_spill] sm:$0xff] %v10161_v12 }
 0x890   :  { %3161 = vst [vmem:[#allocation1] ss:$4 sm:$0xff] %v13313_v19  ;;  %v13320_v19 = vld [vmem:[#allocation42_spill] sm:$0xff] }
 0x891   :  { %v2321_v22 = vsel %vm9020_vm9, %v13321_v44, %v13320_v19 }
 0x8a6   :  { %v2332_v26 = vpop.f32.mrf.mxu0  ;;  %v2345_v39 = vpop.f32.mrf.mxu1 }
 0x8a7   :  { %v2375_v2 = vadd.f32 %v2332_v26, %v2318_v61  ;;  %v2376_v27 = vadd.f32 %v2345_v39, %v2319_v34  ;;  %v13323_v39 = vld [vmem:[#allocation37_spill] sm:$0xff] }
 0x8a9   :  { %v7969_v55 = vmul.f32 -1.442695, %v2375_v2  ;;  %v7970_v4 = vmul.f32 -1.442695, %v2376_v27  ;;  %v13324_v27 = vld [vmem:[#allocation32_spill] sm:$0xff] }
 0x8aa   :  { %v2320_v44 = vsel %vm9062_vm10, %v13324_v27, %v13323_v39 }
 0x8ab   :  { %8290 = vpow2.f32 %v7969_v55 }
 0x8ac   :  { %8292 = vpow2.f32 %v7970_v4 }
 0x8ad   :  { %v2358_v12 = vpop.f32.mrf.mxu2  ;;  %v2371_v18 = vpop.f32.mrf.mxu3 }
 0x8ae   :  { %v2378_v5 = vadd.f32 %v2371_v18, %v2321_v22  ;;  %v2334_v21 = vpop.f32.mrf.mxu0  ;;  %v2347_v54 = vpop.f32.mrf.mxu1 }
 0x8af   :  { %v2377_v21 = vadd.f32 %v2358_v12, %v2320_v44 }
 0x8b0   :  { %v7971_v47 = vmul.f32 -1.442695, %v2378_v5 }
 0x8b1   :  { %v8291_v25 = vpop.eup %8290 }
 0x8b2   :  { %v8293_v7 = vpop.eup %8292  ;;  %v2382_v30 = vadd.f32 1.0, %v8291_v25  ;;  %8294 = vpow2.f32 %v7971_v47 }
 0x8b3   :  { %v2401_v61 = vadd.f32 1.0, %v8293_v7 }
 0x8b4   :  { %8296 = vrcp.f32 %v2382_v30  ;;  %v2394_v5 = vand.u32 2147483648, %v2382_v30  ;;  %vm2388_vm6 = vweird.f32 %v2382_v30 }
 0x8b5   :  { %8298 = vrcp.f32 %v2401_v61  ;;  %v2360_v55 = vpop.f32.mrf.mxu2  ;;  %v2373_v2 = vpop.f32.mrf.mxu3  ;;  %v2413_v7 = vand.u32 2147483648, %v2401_v61  ;;  %v2411_v57 = vand.u32 2147483647, %v2401_v61  ;;  %vm2407_vm3 = vweird.f32 %v2401_v61 }
 0x8b6   :  { %v2392_v2 = vand.u32 2147483647, %v2382_v30  ;;  %v2395_v12 = vor.u32 1.1754944e-38, %v2394_v5 }
 0x8b7   :  { %v2414_v44 = vor.u32 1.1754944e-38, %v2413_v7  ;;  %vm2412_vm13 = vcmp.eq.f32.partialorder %v2411_v57, 8.507059e+37 }
 0x8b8   :  { %v8295_v26 = vpop.eup %8294  ;;  %vm2393_vm12 = vcmp.eq.f32.partialorder %v2392_v2, 8.507059e+37 }
 0x8b9   :  { %v2421_v34 = vadd.f32 1.0, %v8295_v26 }
 0x8ba   :  { %v8297_v22 = vpop.eup %8296 }
 0x8bb   :  { %v8299_v54 = vpop.eup %8298  ;;  %v2384_v19 = vmul.f32 %v8297_v22, %v2382_v30  ;;  %8300 = vrcp.f32 %v2421_v34  ;;  %vm2389_vm5 = vweird.f32 %v8297_v22  ;;  %vm2427_vm14 = vweird.f32 %v2421_v34 }
 0x8bc   :  { %v2403_v18 = vmul.f32 %v8299_v54, %v2401_v61  ;;  %8302 = vtanh.f32 %v2377_v21  ;;  %vm2408_vm15 = vweird.f32 %v8299_v54  ;;  %vm2390_vm11 = vmor %vm2388_vm6, %vm2389_vm5 }
 0x8bd   :  { %v2385_v25 = vsub.f32 1.0, %v2384_v19  ;;  %vm2409_vm0 = vmor %vm2407_vm3, %vm2408_vm15 }
 0x8be   :  { %v2404_v47 = vsub.f32 1.0, %v2403_v18 }
 0x8bf   :  { %v2386_v55 = vmul.f32 %v8297_v22, %v2385_v25 }
 0x8c0   :  { %v2405_v53 = vmul.f32 %v8299_v54, %v2404_v47 }
 0x8c1   :  { %v8301_v4 = vpop.eup %8300  ;;  %v2387_v39 = vadd.f32 %v8297_v22, %v2386_v55 }
 0x8c2   :  { %v2406_v26 = vadd.f32 %v8299_v54, %v2405_v53  ;;  %v2423_v27 = vmul.f32 %v8301_v4, %v2421_v34  ;;  %v8303_v21 = vpop.eup %8302  ;;  %vm2428_vm4 = vweird.f32 %v8301_v4  ;;  %v2433_v53 = vand.u32 2147483648, %v2421_v34 }
 0x8c3   :  { %v2391_v19 = vsel %vm2390_vm11, %v8297_v22, %v2387_v39  ;;  %v2431_v22 = vand.u32 2147483647, %v2421_v34  ;;  %vm2429_vm5 = vmor %vm2427_vm14, %vm2428_vm4 }
 0x8c4   :  { %v2396_v18 = vsel %vm2393_vm12, %v2395_v12, %v2391_v19  ;;  %v2410_v25 = vsel %vm2409_vm0, %v8299_v54, %v2406_v26  ;;  %v2424_v32 = vsub.f32 1.0, %v2423_v27  ;;  %v2434_v7 = vor.u32 1.1754944e-38, %v2433_v53 }
 0x8c5   :  { %v2415_v47 = vsel %vm2412_vm13, %v2414_v44, %v2410_v25  ;;  %v2438_v28 = vmul.f32 %v8303_v21, %v2396_v18  ;;  %vm2432_vm15 = vcmp.eq.f32.partialorder %v2431_v22, 8.507059e+37  ;;  %v2463_v18 = vsel %vm9020_vm9, %v10010_v46, %v10031_v33 }
 0x8c6   :  { %v2437_v13 = vmul.f32 %v2415_v47, %v10022_v41  ;;  %v2425_v55 = vmul.f32 %v8301_v4, %v2424_v32  ;;  %v13327_v41 = vld [vmem:[#allocation38_spill] sm:$0xff] }
 0x8c8   :  { %v10181_v30 = vadd.f32 %v2438_v28, %v2437_v13  ;;  %v2426_v61 = vadd.f32 %v8301_v4, %v2425_v55  ;;  %v2460_v28 = vsel %vm486_vm7, %v13327_v41, %v10025_v10  ;;  %v13331_v41 = vld [vmem:[#allocation40_spill] sm:$0xff] }
 0x8ca   :  { %8304 = vtanh.f32 %v10181_v30  ;;  %v2430_v5 = vsel %vm2429_vm5, %v8301_v4, %v2426_v61  ;;  %v13328_v4 = vld [vmem:[#allocation44_spill] sm:$0xff] }
 0x8cb   :  { %v2435_v54 = vsel %vm2432_vm15, %v2434_v7, %v2430_v5  ;;  %v2461_v34 = vsel %vm9015_vm8, %v13328_v4, %v10027_v24 }
 0x8d0   :  { %v8305_v57 = vpop.eup %8304 }
 0x8d1   :  { %v10184_v2 = vmul.f32 %v8305_v57, %v2435_v54 }
 0x8d3   :  { %13326 = vst [vmem:[#allocation29_spill] sm:$0xff] %v10184_v2  ;;  %3314 = vrot.lane.b32.xlu0 %v10184_v2, %s8619_s4  ;;  %v2464_v32 = vpack.c.bf16 %v10184_v2, %v10184_v2 }
 0x8d5   :  { %2473 = vmatmul.bf16.vlgmr.msra.gmra.mxu0 %v2464_v32  ;;  %2486 = vmatmul.bf16.vlgmr.msra.gmra.mxu1 %v2464_v32 }
 0x8d6   :  { %2499 = vmatmul.bf16.vlgmr.msra.gmra.mxu2 %v2464_v32  ;;  %2512 = vmatmul.bf16.vlgmr.msra.gmra.mxu3 %v2464_v32  ;;  %v13330_v32 = vld [vmem:[#allocation43_spill] sm:$0xff] }
 0x8d7   :  { %2749 = vmatpush.bf16.msra.mxu0 %v9679_v20  ;;  %2762 = vmatpush.bf16.msra.mxu1 %v9683_v59  ;;  %v2462_v46 = vsel %vm9062_vm10, %v13331_v41, %v13330_v32 }
 0x8d8   :  { %2775 = vmatpush.bf16.msra.mxu2 %v9687_v1  ;;  %2788 = vmatpush.bf16.msra.mxu3 %v9689_v45 }
 0x8db   :  { %2750 = vmatpush.bf16.msra.mxu0 %v9691_v29  ;;  %2763 = vmatpush.bf16.msra.mxu1 %v9696_v11 }
 0x8dc   :  { %2776 = vmatpush.bf16.msra.mxu2 %v9698_v48  ;;  %2789 = vmatpush.bf16.msra.mxu3 %v9703_v62 }
 0x8df   :  { %2751 = vmatpush.bf16.msra.mxu0 %v9712_v58  ;;  %2764 = vmatpush.bf16.msra.mxu1 %v9718_v37 }
 0x8e0   :  { %2777 = vmatpush.bf16.msra.mxu2 %v9720_v51  ;;  %2790 = vmatpush.bf16.msra.mxu3 %v9726_v63 }
 0x8e3   :  { %2752 = vmatpush.bf16.msra.mxu0 %v9731_v43  ;;  %2765 = vmatpush.bf16.msra.mxu1 %v9734_v40 }
 0x8e4   :  { %2778 = vmatpush.bf16.msra.mxu2 %v9740_v50  ;;  %2791 = vmatpush.bf16.msra.mxu3 %v9742_v35 }
 0x8e7   :  { %2753 = vmatpush.bf16.msra.mxu0 %v9747_v49  ;;  %2766 = vmatpush.bf16.msra.mxu1 %v9752_v60 }
 0x8e8   :  { %2779 = vmatpush.bf16.msra.mxu2 %v9763_v17  ;;  %2792 = vmatpush.bf16.msra.mxu3 %v9765_v52 }
 0x8eb   :  { %2754 = vmatpush.bf16.msra.mxu0 %v9770_v15  ;;  %2767 = vmatpush.bf16.msra.mxu1 %v9774_v8 }
 0x8ec   :  { %2780 = vmatpush.bf16.msra.mxu2 %v9780_v9  ;;  %2793 = vmatpush.bf16.msra.mxu3 %v9782_v42 }
 0x8ef   :  { %2755 = vmatpush.bf16.msra.mxu0 %v9786_v6  ;;  %2768 = vmatpush.bf16.msra.mxu1 %v9790_v36 }
 0x8f0   :  { %2781 = vmatpush.bf16.msra.mxu2 %v9794_v14  ;;  %2794 = vmatpush.bf16.msra.mxu3 %v9796_v3 }
 0x8f3   :  { %2756 = vmatpush.bf16.msra.mxu0 %v9799_v31  ;;  %2769 = vmatpush.bf16.msra.mxu1 %v9802_v16 }
 0x8f4   :  { %2782 = vmatpush.bf16.msra.mxu2 %v9806_v23  ;;  %2795 = vmatpush.bf16.msra.mxu3 %v13284_v56 }
 0x952   :  { %v2474_v13 = vpop.f32.mrf.mxu0  ;;  %v2487_v39 = vpop.f32.mrf.mxu1 }
 0x953   :  { %v2517_v12 = vadd.f32 %v2474_v13, %v2460_v28  ;;  %v2518_v26 = vadd.f32 %v2487_v39, %v2461_v34 }
 0x955   :  { %v7972_v27 = vmul.f32 -1.442695, %v2517_v12  ;;  %v7973_v44 = vmul.f32 -1.442695, %v2518_v26 }
 0x957   :  { %8306 = vpow2.f32 %v7972_v27 }
 0x958   :  { %8308 = vpow2.f32 %v7973_v44 }
 0x959   :  { %v2500_v19 = vpop.f32.mrf.mxu2  ;;  %v2513_v10 = vpop.f32.mrf.mxu3 }
 0x95a   :  { %v2520_v25 = vadd.f32 %v2513_v10, %v2463_v18  ;;  %v2476_v47 = vpop.f32.mrf.mxu0  ;;  %v2489_v55 = vpop.f32.mrf.mxu1  ;;  %v2519_v4 = vadd.f32 %v2500_v19, %v2462_v46 }
 0x95c   :  { %v7974_v61 = vmul.f32 -1.442695, %v2520_v25 }
 0x95d   :  { %v8307_v53 = vpop.eup %8306 }
 0x95e   :  { %v8309_v24 = vpop.eup %8308  ;;  %v2524_v22 = vadd.f32 1.0, %v8307_v53  ;;  %8310 = vpow2.f32 %v7974_v61 }
 0x95f   :  { %v2543_v5 = vadd.f32 1.0, %v8309_v24 }
 0x960   :  { %8312 = vrcp.f32 %v2524_v22  ;;  %v2536_v44 = vand.u32 2147483648, %v2524_v22  ;;  %v2534_v25 = vand.u32 2147483647, %v2524_v22  ;;  %vm2530_vm11 = vweird.f32 %v2524_v22 }
 0x961   :  { %8314 = vrcp.f32 %v2543_v5  ;;  %v2502_v7 = vpop.f32.mrf.mxu2  ;;  %v2515_v57 = vpop.f32.mrf.mxu3  ;;  %v2555_v18 = vand.u32 2147483648, %v2543_v5  ;;  %v2553_v55 = vand.u32 2147483647, %v2543_v5  ;;  %vm2549_vm0 = vweird.f32 %v2543_v5 }
 0x962   :  { %v2537_v19 = vor.u32 1.1754944e-38, %v2536_v44  ;;  %vm2535_vm4 = vcmp.eq.f32.partialorder %v2534_v25, 8.507059e+37 }
 0x963   :  { %v2556_v57 = vor.u32 1.1754944e-38, %v2555_v18  ;;  %vm2554_vm14 = vcmp.eq.f32.partialorder %v2553_v55, 8.507059e+37  ;;  %v13334_v55 = vld [vmem:[#allocation49_spill] sm:$0xff] }
 0x964   :  { %v8311_v54 = vpop.eup %8310 }
 0x965   :  { %v2563_v33 = vadd.f32 1.0, %v8311_v54 }
 0x966   :  { %v8313_v13 = vpop.eup %8312 }
 0x967   :  { %v8315_v34 = vpop.eup %8314  ;;  %v2526_v39 = vmul.f32 %v8313_v13, %v2524_v22  ;;  %8316 = vrcp.f32 %v2563_v33  ;;  %vm2531_vm6 = vweird.f32 %v8313_v13  ;;  %v2575_v44 = vand.u32 2147483648, %v2563_v33 }
 0x968   :  { %v2545_v12 = vmul.f32 %v8315_v34, %v2543_v5  ;;  %8318 = vtanh.f32 %v2519_v4  ;;  %vm2550_vm3 = vweird.f32 %v8315_v34  ;;  %vm2532_vm12 = vmor %vm2530_vm11, %vm2531_vm6  ;;  %vm2569_vm15 = vweird.f32 %v2563_v33 }
 0x969   :  { %v2527_v26 = vsub.f32 1.0, %v2526_v39  ;;  %vm2551_vm13 = vmor %vm2549_vm0, %vm2550_vm3 }
 0x96a   :  { %v2546_v27 = vsub.f32 1.0, %v2545_v12 }
 0x96b   :  { %v2528_v10 = vmul.f32 %v8313_v13, %v2527_v26 }
 0x96c   :  { %v2547_v47 = vmul.f32 %v8315_v34, %v2546_v27 }
 0x96d   :  { %v8317_v61 = vpop.eup %8316  ;;  %v2529_v53 = vadd.f32 %v8313_v13, %v2528_v10  ;;  %v2576_v10 = vor.u32 1.1754944e-38, %v2575_v44 }
 0x96e   :  { %v2548_v24 = vadd.f32 %v8315_v34, %v2547_v47  ;;  %v2565_v7 = vmul.f32 %v8317_v61, %v2563_v33  ;;  %v8319_v32 = vpop.eup %8318  ;;  %vm2570_vm5 = vweird.f32 %v8317_v61 }
 0x96f   :  { %v2533_v54 = vsel %vm2532_vm12, %v8313_v13, %v2529_v53  ;;  %v2573_v13 = vand.u32 2147483647, %v2563_v33  ;;  %vm2571_vm6 = vmor %vm2569_vm15, %vm2570_vm5  ;;  %v13333_v33 = vld [vmem:[#allocation52_spill] sm:$0xff] }
 0x970   :  { %v2538_v41 = vsel %vm2535_vm4, %v2537_v19, %v2533_v54  ;;  %v2552_v46 = vsel %vm2551_vm13, %v8315_v34, %v2548_v24  ;;  %v2566_v4 = vsub.f32 1.0, %v2565_v7  ;;  %v13335_v19 = vld [vmem:[#allocation48_spill] sm:$0xff]  ;;  %v13336_v24 = vld [vmem:[#allocation45_spill] sm:$0xff] }
 0x971   :  { %v2557_v39 = vsel %vm2554_vm14, %v2556_v57, %v2552_v46  ;;  %v2580_v12 = vmul.f32 %v8319_v32, %v2538_v41  ;;  %vm2574_vm3 = vcmp.eq.f32.partialorder %v2573_v13, 8.507059e+37  ;;  %v2603_v7 = vsel %vm9015_vm8, %v13336_v24, %v13335_v19  ;;  %v13340_v19 = vld [vmem:[#allocation50_spill] sm:$0xff] }
 0x972   :  { %v2579_v26 = vmul.f32 %v2557_v39, %v10181_v30  ;;  %v2567_v27 = vmul.f32 %v8317_v61, %v2566_v4  ;;  %v13337_v39 = vld [vmem:[#allocation47_spill] sm:$0xff] }
 0x974   :  { %v10239_v22 = vadd.f32 %v2580_v12, %v2579_v26  ;;  %v2568_v5 = vadd.f32 %v8317_v61, %v2567_v27  ;;  %v13338_v12 = vld [vmem:[#allocation46_spill] sm:$0xff] }
 0x975   :  { %v2605_v26 = vsel %vm9020_vm9, %v13338_v12, %v13337_v39 }
 0x976   :  { %8320 = vtanh.f32 %v10239_v22  ;;  %v2572_v18 = vsel %vm2571_vm6, %v8317_v61, %v2568_v5  ;;  %v2602_v61 = vsel %vm486_vm7, %v13334_v55, %v13333_v33 }
 0x977   :  { %v2577_v25 = vsel %vm2574_vm3, %v2576_v10, %v2572_v18 }
 0x97c   :  { %v8321_v34 = vpop.eup %8320 }
 0x97d   :  { %v10242_v47 = vmul.f32 %v8321_v34, %v2577_v25 }
 0x97f   :  { %3312 = vrot.lane.b32.xlu1 %v10242_v47, %s8619_s4  ;;  %v2606_v30 = vpack.c.bf16 %v10242_v47, %v10242_v47 }
 0x981   :  { %2615 = vmatmul.bf16.vlgmr.msrb.gmra.mxu0 %v2606_v30  ;;  %2628 = vmatmul.bf16.vlgmr.msrb.gmra.mxu1 %v2606_v30 }
 0x982   :  { %2641 = vmatmul.bf16.vlgmr.msrb.gmra.mxu2 %v2606_v30  ;;  %2654 = vmatmul.bf16.vlgmr.msrb.gmra.mxu3 %v2606_v30 }
 0x983   :  { %2891 = vmatpush.bf16.msrb.mxu0 %v9679_v20  ;;  %2904 = vmatpush.bf16.msrb.mxu1 %v9683_v59 }
 0x984   :  { %2917 = vmatpush.bf16.msrb.mxu2 %v9687_v1  ;;  %2930 = vmatpush.bf16.msrb.mxu3 %v9689_v45 }
 0x987   :  { %2892 = vmatpush.bf16.msrb.mxu0 %v9691_v29  ;;  %2905 = vmatpush.bf16.msrb.mxu1 %v9696_v11 }
 0x988   :  { %2918 = vmatpush.bf16.msrb.mxu2 %v9698_v48  ;;  %2931 = vmatpush.bf16.msrb.mxu3 %v9703_v62 }
 0x98b   :  { %2893 = vmatpush.bf16.msrb.mxu0 %v9712_v58  ;;  %2906 = vmatpush.bf16.msrb.mxu1 %v9718_v37 }
 0x98c   :  { %2919 = vmatpush.bf16.msrb.mxu2 %v9720_v51  ;;  %2932 = vmatpush.bf16.msrb.mxu3 %v9726_v63 }
 0x98f   :  { %2894 = vmatpush.bf16.msrb.mxu0 %v9731_v43  ;;  %2907 = vmatpush.bf16.msrb.mxu1 %v9734_v40 }
 0x990   :  { %2920 = vmatpush.bf16.msrb.mxu2 %v9740_v50  ;;  %2933 = vmatpush.bf16.msrb.mxu3 %v9742_v35 }
 0x993   :  { %2895 = vmatpush.bf16.msrb.mxu0 %v9747_v49  ;;  %2908 = vmatpush.bf16.msrb.mxu1 %v9752_v60 }
 0x994   :  { %2921 = vmatpush.bf16.msrb.mxu2 %v9763_v17  ;;  %2934 = vmatpush.bf16.msrb.mxu3 %v9765_v52 }
 0x997   :  { %2896 = vmatpush.bf16.msrb.mxu0 %v9770_v15  ;;  %2909 = vmatpush.bf16.msrb.mxu1 %v9774_v8 }
 0x998   :  { %2922 = vmatpush.bf16.msrb.mxu2 %v9780_v9  ;;  %2935 = vmatpush.bf16.msrb.mxu3 %v9782_v42 }
 0x99b   :  { %2897 = vmatpush.bf16.msrb.mxu0 %v9786_v6  ;;  %2910 = vmatpush.bf16.msrb.mxu1 %v9790_v36 }
 0x99c   :  { %2923 = vmatpush.bf16.msrb.mxu2 %v9794_v14  ;;  %2936 = vmatpush.bf16.msrb.mxu3 %v9796_v3 }
 0x99f   :  { %2898 = vmatpush.bf16.msrb.mxu0 %v9799_v31  ;;  %2911 = vmatpush.bf16.msrb.mxu1 %v9802_v16 }
 0x9a0   :  { %2924 = vmatpush.bf16.msrb.mxu2 %v9806_v23  ;;  %2937 = vmatpush.bf16.msrb.mxu3 %v13284_v56 }
 0x9fe   :  { %v2616_v53 = vpop.f32.mrf.mxu0  ;;  %v2629_v57 = vpop.f32.mrf.mxu1 }
 0x9ff   :  { %v2659_v54 = vadd.f32 %v2616_v53, %v2602_v61  ;;  %v2660_v32 = vadd.f32 %v2629_v57, %v2603_v7  ;;  %v13339_v53 = vld [vmem:[#allocation51_spill] sm:$0xff] }
 0xa00   :  { %v2604_v24 = vsel %vm9062_vm10, %v13340_v19, %v13339_v53 }
 0xa01   :  { %v7975_v41 = vmul.f32 -1.442695, %v2659_v54  ;;  %v7976_v46 = vmul.f32 -1.442695, %v2660_v32 }
 0xa03   :  { %8322 = vpow2.f32 %v7975_v41 }
 0xa04   :  { %8324 = vpow2.f32 %v7976_v46 }
 0xa05   :  { %v2642_v4 = vpop.f32.mrf.mxu2  ;;  %v2655_v27 = vpop.f32.mrf.mxu3 }
 0xa06   :  { %v2662_v5 = vadd.f32 %v2655_v27, %v2605_v26  ;;  %v2618_v44 = vpop.f32.mrf.mxu0  ;;  %v2631_v13 = vpop.f32.mrf.mxu1  ;;  %v2661_v54 = vadd.f32 %v2642_v4, %v2604_v24 }
 0xa08   :  { %v7977_v18 = vmul.f32 -1.442695, %v2662_v5 }
 0xa09   :  { %v8323_v10 = vpop.eup %8322 }
 0xa0a   :  { %v8325_v34 = vpop.eup %8324  ;;  %v2666_v25 = vadd.f32 1.0, %v8323_v10  ;;  %8326 = vpow2.f32 %v7977_v18 }
 0xa0b   :  { %v2685_v30 = vadd.f32 1.0, %v8325_v34 }
 0xa0c   :  { %8328 = vrcp.f32 %v2666_v25  ;;  %v2678_v26 = vand.u32 2147483648, %v2666_v25  ;;  %v2676_v44 = vand.u32 2147483647, %v2666_v25  ;;  %vm2672_vm12 = vweird.f32 %v2666_v25 }
 0xa0d   :  { %8330 = vrcp.f32 %v2685_v30  ;;  %v2644_v33 = vpop.f32.mrf.mxu2  ;;  %v2657_v55 = vpop.f32.mrf.mxu3  ;;  %v2697_v27 = vand.u32 2147483648, %v2685_v30  ;;  %v2695_v18 = vand.u32 2147483647, %v2685_v30  ;;  %vm2691_vm13 = vweird.f32 %v2685_v30 }
 0xa0e   :  { %v2679_v4 = vor.u32 1.1754944e-38, %v2678_v26  ;;  %vm2677_vm5 = vcmp.eq.f32.partialorder %v2676_v44, 8.507059e+37 }
 0xa0f   :  { %vm2696_vm15 = vcmp.eq.f32.partialorder %v2695_v18, 8.507059e+37 }
 0xa10   :  { %v8327_v61 = vpop.eup %8326 }
 0xa11   :  { %v2705_v7 = vadd.f32 1.0, %v8327_v61  ;;  %v2698_v61 = vor.u32 1.1754944e-38, %v2697_v27 }
 0xa12   :  { %v8329_v57 = vpop.eup %8328 }
 0xa13   :  { %v8331_v32 = vpop.eup %8330  ;;  %v2668_v41 = vmul.f32 %v8329_v57, %v2666_v25  ;;  %8332 = vrcp.f32 %v2705_v7  ;;  %vm2673_vm11 = vweird.f32 %v8329_v57  ;;  %v2717_v26 = vand.u32 2147483648, %v2705_v7 }
 0xa14   :  { %v2687_v46 = vmul.f32 %v8331_v32, %v2685_v30  ;;  %8334 = vtanh.f32 %v2661_v54  ;;  %vm2692_vm0 = vweird.f32 %v8331_v32  ;;  %vm2674_vm4 = vmor %vm2672_vm12, %vm2673_vm11  ;;  %vm2711_vm3 = vweird.f32 %v2705_v7 }
 0xa15   :  { %v2669_v39 = vsub.f32 1.0, %v2668_v41  ;;  %vm2693_vm14 = vmor %vm2691_vm13, %vm2692_vm0  ;;  %v2718_v44 = vor.u32 1.1754944e-38, %v2717_v26 }
 0xa16   :  { %v2688_v12 = vsub.f32 1.0, %v2687_v46 }
 0xa17   :  { %v2670_v5 = vmul.f32 %v8329_v57, %v2669_v39 }
 0xa18   :  { %v2689_v13 = vmul.f32 %v8331_v32, %v2688_v12 }
 0xa19   :  { %v8333_v10 = vpop.eup %8332  ;;  %v2671_v34 = vadd.f32 %v8329_v57, %v2670_v5 }
 0xa1a   :  { %v2690_v33 = vadd.f32 %v8331_v32, %v2689_v13  ;;  %v2707_v55 = vmul.f32 %v8333_v10, %v2705_v7  ;;  %v8335_v19 = vpop.eup %8334  ;;  %vm2712_vm6 = vweird.f32 %v8333_v10 }
 0xa1b   :  { %v2675_v53 = vsel %vm2674_vm4, %v8329_v57, %v2671_v34  ;;  %v2715_v57 = vand.u32 2147483647, %v2705_v7  ;;  %vm2713_vm11 = vmor %vm2711_vm3, %vm2712_vm6  ;;  %v13341_v7 = vld [vmem:[#allocation59_spill] sm:$0xff] }
 0xa1c   :  { %v2680_v24 = vsel %vm2677_vm5, %v2679_v4, %v2675_v53  ;;  %v2694_v54 = vsel %vm2693_vm14, %v8331_v32, %v2690_v33  ;;  %v2708_v41 = vsub.f32 1.0, %v2707_v55  ;;  %v13343_v33 = vld [vmem:[#allocation56_spill] sm:$0xff]  ;;  %v13344_v55 = vld [vmem:[#allocation53_spill] sm:$0xff] }
 0xa1d   :  { %v2699_v46 = vsel %vm2696_vm15, %v2698_v61, %v2694_v54  ;;  %v2722_v39 = vmul.f32 %v8335_v19, %v2680_v24  ;;  %vm2716_vm0 = vcmp.eq.f32.partialorder %v2715_v57, 8.507059e+37  ;;  %v2745_v61 = vsel %vm9015_vm8, %v13344_v55, %v13343_v33  ;;  %v13347_v33 = vld [vmem:[#allocation58_spill] sm:$0xff]  ;;  %v13348_v55 = vld [vmem:[#allocation57_spill] sm:$0xff] }
 0xa1e   :  { %v2721_v12 = vmul.f32 %v2699_v46, %v10239_v22  ;;  %v2709_v5 = vmul.f32 %v8333_v10, %v2708_v41 }
 0xa20   :  { %v10297_v25 = vadd.f32 %v2722_v39, %v2721_v12  ;;  %v2710_v30 = vadd.f32 %v8333_v10, %v2709_v5  ;;  %v13345_v39 = vld [vmem:[#allocation55_spill] sm:$0xff]  ;;  %v13346_v12 = vld [vmem:[#allocation54_spill] sm:$0xff] }
 0xa21   :  { %v2747_v5 = vsel %vm9020_vm9, %v13346_v12, %v13345_v39 }
 0xa22   :  { %8336 = vtanh.f32 %v10297_v25  ;;  %v2714_v27 = vsel %vm2713_vm11, %v8333_v10, %v2710_v30  ;;  %v13342_v10 = vld [vmem:[#allocation26_spill] sm:$0xff] }
 0xa23   :  { %v2719_v13 = vsel %vm2716_vm0, %v2718_v44, %v2714_v27  ;;  %v2744_v34 = vsel %vm486_vm7, %v13342_v10, %v13341_v7 }
 0xa28   :  { %v8337_v32 = vpop.eup %8336 }
 0xa29   :  { %v10300_v18 = vmul.f32 %v8337_v32, %v2719_v13 }
 0xa2b   :  { %3310 = vrot.lane.b32.xlu2 %v10300_v18, %s8619_s4  ;;  %v2748_v22 = vpack.c.bf16 %v10300_v18, %v10300_v18 }
 0xa2d   :  { %2757 = vmatmul.bf16.vlgmr.msra.gmra.mxu0 %v2748_v22  ;;  %2770 = vmatmul.bf16.vlgmr.msra.gmra.mxu1 %v2748_v22 }
 0xa2e   :  { %2783 = vmatmul.bf16.vlgmr.msra.gmra.mxu2 %v2748_v22  ;;  %2796 = vmatmul.bf16.vlgmr.msra.gmra.mxu3 %v2748_v22 }
 0xa2f   :  { %3033 = vmatpush.bf16.msra.mxu0 %v9679_v20  ;;  %3046 = vmatpush.bf16.msra.mxu1 %v9683_v59 }
 0xa30   :  { %3059 = vmatpush.bf16.msra.mxu2 %v9687_v1  ;;  %3072 = vmatpush.bf16.msra.mxu3 %v9689_v45 }
 0xa33   :  { %3034 = vmatpush.bf16.msra.mxu0 %v9691_v29  ;;  %3047 = vmatpush.bf16.msra.mxu1 %v9696_v11 }
 0xa34   :  { %3060 = vmatpush.bf16.msra.mxu2 %v9698_v48  ;;  %3073 = vmatpush.bf16.msra.mxu3 %v9703_v62 }
 0xa37   :  { %3035 = vmatpush.bf16.msra.mxu0 %v9712_v58  ;;  %3048 = vmatpush.bf16.msra.mxu1 %v9718_v37 }
 0xa38   :  { %3061 = vmatpush.bf16.msra.mxu2 %v9720_v51  ;;  %3074 = vmatpush.bf16.msra.mxu3 %v9726_v63 }
 0xa3b   :  { %3036 = vmatpush.bf16.msra.mxu0 %v9731_v43  ;;  %3049 = vmatpush.bf16.msra.mxu1 %v9734_v40 }
 0xa3c   :  { %3062 = vmatpush.bf16.msra.mxu2 %v9740_v50  ;;  %3075 = vmatpush.bf16.msra.mxu3 %v9742_v35 }
 0xa3f   :  { %3037 = vmatpush.bf16.msra.mxu0 %v9747_v49  ;;  %3050 = vmatpush.bf16.msra.mxu1 %v9752_v60 }
 0xa40   :  { %3063 = vmatpush.bf16.msra.mxu2 %v9763_v17  ;;  %3076 = vmatpush.bf16.msra.mxu3 %v9765_v52 }
 0xa43   :  { %3038 = vmatpush.bf16.msra.mxu0 %v9770_v15  ;;  %3051 = vmatpush.bf16.msra.mxu1 %v9774_v8 }
 0xa44   :  { %3064 = vmatpush.bf16.msra.mxu2 %v9780_v9  ;;  %3077 = vmatpush.bf16.msra.mxu3 %v9782_v42 }
 0xa47   :  { %3039 = vmatpush.bf16.msra.mxu0 %v9786_v6  ;;  %3052 = vmatpush.bf16.msra.mxu1 %v9790_v36 }
 0xa48   :  { %3065 = vmatpush.bf16.msra.mxu2 %v9794_v14  ;;  %3078 = vmatpush.bf16.msra.mxu3 %v9796_v3 }
 0xa4b   :  { %3040 = vmatpush.bf16.msra.mxu0 %v9799_v31  ;;  %3053 = vmatpush.bf16.msra.mxu1 %v9802_v16 }
 0xa4c   :  { %3066 = vmatpush.bf16.msra.mxu2 %v9806_v23  ;;  %3079 = vmatpush.bf16.msra.mxu3 %v13284_v56 }
 0xaaa   :  { %v2758_v4 = vpop.f32.mrf.mxu0  ;;  %v2771_v53 = vpop.f32.mrf.mxu1 }
 0xaab   :  { %v2801_v19 = vadd.f32 %v2758_v4, %v2744_v34  ;;  %v2802_v24 = vadd.f32 %v2771_v53, %v2745_v61  ;;  %v2746_v61 = vsel %vm9062_vm10, %v13348_v55, %v13347_v33 }
 0xaad   :  { %v7978_v54 = vmul.f32 -1.442695, %v2801_v19  ;;  %v7979_v41 = vmul.f32 -1.442695, %v2802_v24 }
 0xaaf   :  { %8338 = vpow2.f32 %v7978_v54 }
 0xab0   :  { %8340 = vpow2.f32 %v7979_v41 }
 0xab1   :  { %v2784_v46 = vpop.f32.mrf.mxu2  ;;  %v2797_v30 = vpop.f32.mrf.mxu3 }
 0xab2   :  { %v2804_v26 = vadd.f32 %v2797_v30, %v2747_v5  ;;  %v2760_v57 = vpop.f32.mrf.mxu0  ;;  %v2773_v27 = vpop.f32.mrf.mxu1  ;;  %v2803_v24 = vadd.f32 %v2784_v46, %v2746_v61 }
 0xab4   :  { %v7980_v44 = vmul.f32 -1.442695, %v2804_v26 }
 0xab5   :  { %v8339_v32 = vpop.eup %8338 }
 0xab6   :  { %v8341_v13 = vpop.eup %8340  ;;  %v2808_v22 = vadd.f32 1.0, %v8339_v32  ;;  %8342 = vpow2.f32 %v7980_v44 }
 0xab7   :  { %v2827_v7 = vadd.f32 1.0, %v8341_v13 }
 0xab8   :  { %8344 = vrcp.f32 %v2808_v22  ;;  %v2820_v30 = vand.u32 2147483648, %v2808_v22  ;;  %v2818_v27 = vand.u32 2147483647, %v2808_v22  ;;  %vm2814_vm4 = vweird.f32 %v2808_v22 }
 0xab9   :  { %8346 = vrcp.f32 %v2827_v7  ;;  %v2786_v10 = vpop.f32.mrf.mxu2  ;;  %v2799_v34 = vpop.f32.mrf.mxu3  ;;  %v2839_v26 = vand.u32 2147483648, %v2827_v7  ;;  %v2837_v32 = vand.u32 2147483647, %v2827_v7  ;;  %vm2833_vm14 = vweird.f32 %v2827_v7 }
 0xaba   :  { %v2821_v46 = vor.u32 1.1754944e-38, %v2820_v30  ;;  %vm2819_vm6 = vcmp.eq.f32.partialorder %v2818_v27, 8.507059e+37 }
 0xabb   :  { %v2840_v33 = vor.u32 1.1754944e-38, %v2839_v26  ;;  %vm2838_vm3 = vcmp.eq.f32.partialorder %v2837_v32, 8.507059e+37 }
 0xabc   :  { %v8343_v4 = vpop.eup %8342 }
 0xabd   :  { %v2847_v53 = vadd.f32 1.0, %v8343_v4 }
 0xabe   :  { %v8345_v19 = vpop.eup %8344 }
 0xabf   :  { %v8347_v54 = vpop.eup %8346  ;;  %v2810_v41 = vmul.f32 %v8345_v19, %v2808_v22  ;;  %8348 = vrcp.f32 %v2847_v53  ;;  %vm2815_vm12 = vweird.f32 %v8345_v19  ;;  %v2859_v30 = vand.u32 2147483648, %v2847_v53 }
 0xac0   :  { %v2829_v39 = vmul.f32 %v8347_v54, %v2827_v7  ;;  %8350 = vtanh.f32 %v2803_v24  ;;  %vm2834_vm13 = vweird.f32 %v8347_v54  ;;  %vm2816_vm5 = vmor %vm2814_vm4, %vm2815_vm12  ;;  %vm2853_vm0 = vweird.f32 %v2847_v53 }
 0xac1   :  { %v2811_v12 = vsub.f32 1.0, %v2810_v41  ;;  %vm2835_vm15 = vmor %vm2833_vm14, %vm2834_vm13  ;;  %v2860_v27 = vor.u32 1.1754944e-38, %v2859_v30  ;;  %vm13349_vm4 = vcmask 261120   ;;  %vm13350_vm14 = vcmask 517120  }
 0xac2   :  { %v2830_v5 = vsub.f32 1.0, %v2829_v39 }
 0xac3   :  { %v2812_v57 = vmul.f32 %v8345_v19, %v2811_v12 }
 0xac4   :  { %v2831_v44 = vmul.f32 %v8347_v54, %v2830_v5 }
 0xac5   :  { %v8349_v13 = vpop.eup %8348  ;;  %v2813_v10 = vadd.f32 %v8345_v19, %v2812_v57 }
 0xac6   :  { %v2832_v34 = vadd.f32 %v8347_v54, %v2831_v44  ;;  %v2849_v4 = vmul.f32 %v8349_v13, %v2847_v53  ;;  %v8351_v61 = vpop.eup %8350  ;;  %vm2854_vm11 = vweird.f32 %v8349_v13 }
 0xac7   :  { %v2817_v55 = vsel %vm2816_vm5, %v8345_v19, %v2813_v10  ;;  %v2857_v19 = vand.u32 2147483647, %v2847_v53  ;;  %vm2855_vm12 = vmor %vm2853_vm0, %vm2854_vm11  ;;  %v13359_v10 = vld [vmem:[#allocation62_spill] sm:$0xff] }
 0xac8   :  { %v2822_v24 = vsel %vm2819_vm6, %v2821_v46, %v2817_v55  ;;  %v2836_v41 = vsel %vm2835_vm15, %v8347_v54, %v2832_v34  ;;  %v2850_v39 = vsub.f32 1.0, %v2849_v4  ;;  %vm13351_vm5 = vmmov %vm13349_vm4  ;;  %v13360_v46 = vld [vmem:[#allocation21_spill] sm:$0xff] }
 0xac9   :  { %v2841_v12 = vsel %vm2838_vm3, %v2840_v33, %v2836_v41  ;;  %v2864_v5 = vmul.f32 %v8351_v61, %v2822_v24  ;;  %vm2858_vm13 = vcmp.eq.f32.partialorder %v2857_v19, 8.507059e+37  ;;  %vm13352_vm15 = vmmov %vm13350_vm14  ;;  %v2888_v34 = vsel %vm9062_vm10, %v13360_v46, %v13359_v10 }
 0xaca   :  { %v2863_v2 = vmul.f32 %v2841_v12, %v10297_v25  ;;  %v2851_v57 = vmul.f32 %v8349_v13, %v2850_v39 }
 0xacc   :  { %v10355_v22 = vadd.f32 %v2864_v5, %v2863_v2  ;;  %v2852_v7 = vadd.f32 %v8349_v13, %v2851_v57 }
 0xace   :  { %8352 = vtanh.f32 %v10355_v22  ;;  %v2856_v26 = vsel %vm2855_vm12, %v8349_v13, %v2852_v7 }
 0xacf   :  { %v2861_v44 = vsel %vm2858_vm13, %v2860_v27, %v2856_v26 }
 0xad4   :  { %v8353_v54 = vpop.eup %8352 }
 0xad5   :  { %v2867_v32 = vmul.f32 %v8353_v54, %v2861_v44 }
 0xad7   :  { %3308 = vrot.lane.b32.xlu0 %v2867_v32, %s8619_s4  ;;  %v2890_v25 = vpack.c.bf16 %v2867_v32, %v2867_v32 }
 0xad9   :  { %2899 = vmatmul.bf16.vlgmr.msrb.gmra.mxu0 %v2890_v25  ;;  %2912 = vmatmul.bf16.vlgmr.msrb.gmra.mxu1 %v2890_v25 }
 0xada   :  { %2925 = vmatmul.bf16.vlgmr.msrb.gmra.mxu2 %v2890_v25  ;;  %2938 = vmatmul.bf16.vlgmr.msrb.gmra.mxu3 %v2890_v25 }
 0xadb   :  { %3175 = vmatpush.bf16.msrb.mxu0 %v9679_v20  ;;  %3188 = vmatpush.bf16.msrb.mxu1 %v9683_v59  ;;  %v10385_v20 = vpop.permute.xlu2 %3316 }
 0xadc   :  { %3201 = vmatpush.bf16.msrb.mxu2 %v9687_v1  ;;  %3214 = vmatpush.bf16.msrb.mxu3 %v9689_v45 }
 0xadf   :  { %3176 = vmatpush.bf16.msrb.mxu0 %v9691_v29  ;;  %3189 = vmatpush.bf16.msrb.mxu1 %v9696_v11  ;;  %v10398_v29 = vpop.permute.xlu0 %3314 }
 0xae0   :  { %3202 = vmatpush.bf16.msrb.mxu2 %v9698_v48  ;;  %3215 = vmatpush.bf16.msrb.mxu3 %v9703_v62 }
 0xae3   :  { %3177 = vmatpush.bf16.msrb.mxu0 %v9712_v58  ;;  %3190 = vmatpush.bf16.msrb.mxu1 %v9718_v37  ;;  %v3311_v59 = vpop.permute.xlu2 %3310  ;;  %v13353_v58 = vld [vmem:[#allocation60_spill] sm:$0xff] }
 0xae4   :  { %3203 = vmatpush.bf16.msrb.mxu2 %v9720_v51  ;;  %3216 = vmatpush.bf16.msrb.mxu3 %v9726_v63  ;;  %v10394_v1 = vsel %vm13349_vm4, %v2867_v32, %v3311_v59  ;;  %v13354_v37 = vld [vmem:[#allocation36_spill] sm:$0xff] }
 0xae5   :  { %v3346_v45 = vsel %vm13350_vm14, %v10394_v1, 0.0  ;;  %v2886_v51 = vsel %vm486_vm7, %v13354_v37, %v13353_v58 }
 0xae7   :  { %3178 = vmatpush.bf16.msrb.mxu0 %v9731_v43  ;;  %3191 = vmatpush.bf16.msrb.mxu1 %v9734_v40  ;;  %v13355_v43 = vld [vmem:[#allocation65_spill] sm:$0xff]  ;;  %v13356_v40 = vld [vmem:[#allocation18_spill] sm:$0xff] }
 0xae8   :  { %3204 = vmatpush.bf16.msrb.mxu2 %v9740_v50  ;;  %3217 = vmatpush.bf16.msrb.mxu3 %v9742_v35  ;;  %v2887_v50 = vsel %vm9015_vm8, %v13356_v40, %v13355_v43 }
 0xaeb   :  { %3179 = vmatpush.bf16.msrb.mxu0 %v9747_v49  ;;  %3192 = vmatpush.bf16.msrb.mxu1 %v9752_v60 }
 0xaec   :  { %3205 = vmatpush.bf16.msrb.mxu2 %v9763_v17  ;;  %3218 = vmatpush.bf16.msrb.mxu3 %v9765_v52 }
 0xaef   :  { %3180 = vmatpush.bf16.msrb.mxu0 %v9770_v15  ;;  %3193 = vmatpush.bf16.msrb.mxu1 %v9774_v8  ;;  %v13357_v8 = vld [vmem:[#allocation64_spill] sm:$0xff] }
 0xaf0   :  { %3206 = vmatpush.bf16.msrb.mxu2 %v9780_v9  ;;  %3219 = vmatpush.bf16.msrb.mxu3 %v9782_v42  ;;  %v13358_v9 = vld [vmem:[#allocation63_spill] sm:$0xff] }
 0xaf1   :  { %v2889_v42 = vsel %vm9020_vm9, %v13358_v9, %v13357_v8 }
 0xaf3   :  { %3181 = vmatpush.bf16.msrb.mxu0 %v9786_v6  ;;  %3194 = vmatpush.bf16.msrb.mxu1 %v9790_v36 }
 0xaf4   :  { %3207 = vmatpush.bf16.msrb.mxu2 %v9794_v14  ;;  %3220 = vmatpush.bf16.msrb.mxu3 %v9796_v3 }
 0xaf7   :  { %3182 = vmatpush.bf16.msrb.mxu0 %v9799_v31  ;;  %3195 = vmatpush.bf16.msrb.mxu1 %v9802_v16 }
 0xaf8   :  { %3208 = vmatpush.bf16.msrb.mxu2 %v9806_v23  ;;  %3221 = vmatpush.bf16.msrb.mxu3 %v13284_v56 }
 0xb01   :  { %3347 = vadd.xlane.f32.xlu0 %v3346_v45 }
 0xb49   :  { %v3309_v11 = vpop.permute.xlu0 %3308 }
 0xb4a   :  { %v10402_v48 = vsel %vm13351_vm5, %v10300_v18, %v3309_v11 }
 0xb4b   :  { %v3343_v62 = vsel %vm13352_vm15, %v10402_v48, 0.0 }
 0xb4c   :  { %3344 = vadd.xlane.f32.xlu1 %v3343_v62 }
 0xb56   :  { %v2900_v63 = vpop.f32.mrf.mxu0  ;;  %v2913_v35 = vpop.f32.mrf.mxu1 }
 0xb57   :  { %v2943_v49 = vadd.f32 %v2900_v63, %v2886_v51  ;;  %v2944_v60 = vadd.f32 %v2913_v35, %v2887_v50 }
 0xb59   :  { %v7981_v17 = vmul.f32 -1.442695, %v2943_v49  ;;  %v7982_v52 = vmul.f32 -1.442695, %v2944_v60 }
 0xb5b   :  { %8354 = vpow2.f32 %v7981_v17 }
 0xb5c   :  { %8356 = vpow2.f32 %v7982_v52 }
 0xb5d   :  { %v2926_v15 = vpop.f32.mrf.mxu2  ;;  %v2939_v6 = vpop.f32.mrf.mxu3 }
 0xb5e   :  { %v2946_v36 = vadd.f32 %v2939_v6, %v2889_v42  ;;  %v2902_v14 = vpop.f32.mrf.mxu0  ;;  %v2915_v3 = vpop.f32.mrf.mxu1  ;;  %v2945_v55 = vadd.f32 %v2926_v15, %v2888_v34 }
 0xb5f   :  { %v10432_v42 = vpop.permute.xlu1 %3312 }
 0xb60   :  { %v7983_v31 = vmul.f32 -1.442695, %v2946_v36 }
 0xb61   :  { %v8355_v16 = vpop.eup %8354 }
 0xb62   :  { %v8357_v23 = vpop.eup %8356  ;;  %v2950_v56 = vadd.f32 1.0, %v8355_v16  ;;  %8358 = vpow2.f32 %v7983_v31  ;;  %v13363_v31 = vld [vmem:[#allocation67_spill] sm:$0xff]  ;;  %v13364_v16 = vld [vmem:[#allocation61_spill] sm:$0xff] }
 0xb63   :  { %v2969_v2 = vadd.f32 1.0, %v8357_v23  ;;  %v3028_v23 = vsel %vm486_vm7, %v13364_v16, %v13363_v31 }
 0xb64   :  { %8360 = vrcp.f32 %v2950_v56  ;;  %v2962_v5 = vand.u32 2147483648, %v2950_v56  ;;  %v2960_v30 = vand.u32 2147483647, %v2950_v56  ;;  %vm2956_vm11 = vweird.f32 %v2950_v56 }
 0xb65   :  { %8362 = vrcp.f32 %v2969_v2  ;;  %v2928_v18 = vpop.f32.mrf.mxu2  ;;  %v2941_v53 = vpop.f32.mrf.mxu3  ;;  %v2981_v57 = vand.u32 2147483648, %v2969_v2  ;;  %v2979_v26 = vand.u32 2147483647, %v2969_v2  ;;  %vm2975_vm0 = vweird.f32 %v2969_v2 }
 0xb66   :  { %v2963_v44 = vor.u32 1.1754944e-38, %v2962_v5  ;;  %vm2961_vm4 = vcmp.eq.f32.partialorder %v2960_v30, 8.507059e+37  ;;  %v13366_v18 = vld [vmem:[#allocation17_spill] sm:$0xff] }
 0xb67   :  { %v2982_v59 = vor.u32 1.1754944e-38, %v2981_v57  ;;  %vm2980_vm14 = vcmp.eq.f32.partialorder %v2979_v26, 8.507059e+37 }
 0xb68   :  { %v8359_v13 = vpop.eup %8358 }
 0xb69   :  { %v2989_v4 = vadd.f32 1.0, %v8359_v13 }
 0xb6a   :  { %v8361_v33 = vpop.eup %8360 }
 0xb6b   :  { %v8363_v61 = vpop.eup %8362  ;;  %v2952_v24 = vmul.f32 %v8361_v33, %v2950_v56  ;;  %8364 = vrcp.f32 %v2989_v4  ;;  %vm2957_vm6 = vweird.f32 %v8361_v33  ;;  %v3001_v49 = vand.u32 2147483648, %v2989_v4 }
 0xb6c   :  { %v2971_v41 = vmul.f32 %v8363_v61, %v2969_v2  ;;  %8366 = vtanh.f32 %v2945_v55  ;;  %vm2976_vm3 = vweird.f32 %v8363_v61  ;;  %vm2958_vm12 = vmor %vm2956_vm11, %vm2957_vm6  ;;  %vm2995_vm15 = vweird.f32 %v2989_v4  ;;  %v13365_v2 = vld [vmem:[#allocation15_spill] sm:$0xff]  ;;  %v13368_v55 = vld [vmem:[#allocation68_spill] sm:$0xff] }
 0xb6d   :  { %v2953_v39 = vsub.f32 1.0, %v2952_v24  ;;  %vm2977_vm13 = vmor %vm2975_vm0, %vm2976_vm3  ;;  %v2999_v60 = vand.u32 2147483647, %v2989_v4  ;;  %v3002_v52 = vor.u32 1.1754944e-38, %v3001_v49  ;;  %vm13361_vm11 = vcmask 261120  }
 0xb6e   :  { %v2972_v12 = vsub.f32 1.0, %v2971_v41  ;;  %vm13362_vm0 = vcmask 517120   ;;  %v3029_v53 = vsel %vm9015_vm8, %v13366_v18, %v13365_v2 }
 0xb6f   :  { %v2954_v7 = vmul.f32 %v8361_v33, %v2953_v39  ;;  %vm3000_vm3 = vcmp.eq.f32.partialorder %v2999_v60, 8.507059e+37 }
 0xb70   :  { %v2973_v19 = vmul.f32 %v8363_v61, %v2972_v12 }
 0xb71   :  { %v8365_v27 = vpop.eup %8364  ;;  %v2955_v54 = vadd.f32 %v8361_v33, %v2954_v7 }
 0xb72   :  { %v2974_v32 = vadd.f32 %v8363_v61, %v2973_v19  ;;  %v2991_v25 = vmul.f32 %v8365_v27, %v2989_v4  ;;  %v8367_v11 = vpop.eup %8366  ;;  %vm2996_vm5 = vweird.f32 %v8365_v27 }
 0xb73   :  { %v2959_v45 = vsel %vm2958_vm12, %v8361_v33, %v2955_v54  ;;  %vm2997_vm6 = vmor %vm2995_vm15, %vm2996_vm5  ;;  %v13367_v33 = vld [vmem:[#allocation35_spill] sm:$0xff] }
 0xb74   :  { %v2964_v62 = vsel %vm2961_vm4, %v2963_v44, %v2959_v45  ;;  %v2978_v58 = vsel %vm2977_vm13, %v8363_v61, %v2974_v32  ;;  %v2992_v37 = vsub.f32 1.0, %v2991_v25  ;;  %v3031_v61 = vsel %vm9020_vm9, %v13368_v55, %v13367_v33  ;;  %v13369_v44 = vld [vmem:[#allocation22_spill] sm:$0xff] }
 0xb75   :  { %v2983_v51 = vsel %vm2980_vm14, %v2982_v59, %v2978_v58  ;;  %v3006_v63 = vmul.f32 %v8367_v11, %v2964_v62  ;;  %v13370_v32 = vld [vmem:[#allocation66_spill] sm:$0xff] }
 0xb76   :  { %v3005_v43 = vmul.f32 %v2983_v51, %v10355_v22  ;;  %v2993_v40 = vmul.f32 %v8365_v27, %v2992_v37  ;;  %v3030_v25 = vsel %vm9062_vm10, %v13370_v32, %v13369_v44 }
 0xb78   :  { %v10423_v50 = vadd.f32 %v3006_v63, %v3005_v43  ;;  %v2994_v35 = vadd.f32 %v8365_v27, %v2993_v40 }
 0xb7a   :  { %8368 = vtanh.f32 %v10423_v50  ;;  %v2998_v17 = vsel %vm2997_vm6, %v8365_v27, %v2994_v35 }
 0xb7b   :  { %v3003_v8 = vsel %vm3000_vm3, %v3002_v52, %v2998_v17 }
 0xb80   :  { %v8369_v15 = vpop.eup %8368 }
 0xb81   :  { %v10426_v9 = vmul.f32 %v8369_v15, %v3003_v8 }
 0xb83   :  { %3306 = vrot.lane.b32.xlu1 %v10426_v9, %s8619_s4  ;;  %v3032_v22 = vpack.c.bf16 %v10426_v9, %v10426_v9 }
 0xb85   :  { %3041 = vmatmul.bf16.vlgmr.msra.gmra.mxu0 %v3032_v22  ;;  %3054 = vmatmul.bf16.vlgmr.msra.gmra.mxu1 %v3032_v22 }
 0xb86   :  { %3067 = vmatmul.bf16.vlgmr.msra.gmra.mxu2 %v3032_v22  ;;  %3080 = vmatmul.bf16.vlgmr.msra.gmra.mxu3 %v3032_v22 }
 0xbbf   :  { %v10434_v6 = vpop.xlane.xlu1 %3344 }
 0xbf5   :  { %v3307_v36 = vpop.permute.xlu1 %3306 }
 0xbf6   :  { %v10438_v14 = vsel %vm13361_vm11, %v10242_v47, %v3307_v36 }
 0xbf7   :  { %v3340_v3 = vsel %vm13362_vm0, %v10438_v14, 0.0 }
 0xbf8   :  { %3341 = vadd.xlane.f32.xlu2 %v3340_v3 }
 0xc02   :  { %v3042_v56 = vpop.f32.mrf.mxu0  ;;  %v3055_v13 = vpop.f32.mrf.mxu1 }
 0xc03   :  { %v3085_v10 = vadd.f32 %v3042_v56, %v3028_v23  ;;  %v3086_v46 = vadd.f32 %v3055_v13, %v3029_v53 }
 0xc05   :  { %v7984_v47 = vmul.f32 -1.442695, %v3085_v10  ;;  %v7985_v34 = vmul.f32 -1.442695, %v3086_v46 }
 0xc07   :  { %8370 = vpow2.f32 %v7984_v47 }
 0xc08   :  { %8372 = vpow2.f32 %v7985_v34 }
 0xc09   :  { %v3068_v4 = vpop.f32.mrf.mxu2  ;;  %v3081_v24 = vpop.f32.mrf.mxu3 }
 0xc0a   :  { %v3088_v41 = vadd.f32 %v3081_v24, %v3031_v61  ;;  %v3044_v39 = vpop.f32.mrf.mxu0  ;;  %v3057_v12 = vpop.f32.mrf.mxu1  ;;  %v3087_v11 = vadd.f32 %v3068_v4, %v3030_v25  ;;  %v3162_v25 = vld.sshfl [vmem:[#allocation1] sm:$0xff pattern:$0x73625140] }
 0xc0c   :  { %v7986_v5 = vmul.f32 -1.442695, %v3088_v41 }
 0xc0d   :  { %v8371_v57 = vpop.eup %8370 }
 0xc0e   :  { %v8373_v7 = vpop.eup %8372  ;;  %v3092_v30 = vadd.f32 1.0, %v8371_v57  ;;  %8374 = vpow2.f32 %v7986_v5  ;;  %v10469_v5 = vpop.xlane.xlu0 %3347 }
 0xc0f   :  { %v3111_v19 = vadd.f32 1.0, %v8373_v7  ;;  %v13373_v7 = vld [vmem:[#allocation28_spill] sm:$0xff] }
 0xc10   :  { %8376 = vrcp.f32 %v3092_v30  ;;  %v3104_v43 = vand.u32 2147483648, %v3092_v30  ;;  %v3102_v49 = vand.u32 2147483647, %v3092_v30  ;;  %vm3098_vm4 = vweird.f32 %v3092_v30 }
 0xc11   :  { %8378 = vrcp.f32 %v3111_v19  ;;  %v3070_v26 = vpop.f32.mrf.mxu2  ;;  %v3083_v27 = vpop.f32.mrf.mxu3  ;;  %v3123_v40 = vand.u32 2147483648, %v3111_v19  ;;  %v3121_v17 = vand.u32 2147483647, %v3111_v19  ;;  %vm3117_vm14 = vweird.f32 %v3111_v19 }
 0xc12   :  { %v3105_v8 = vor.u32 1.1754944e-38, %v3104_v43  ;;  %vm3103_vm6 = vcmp.eq.f32.partialorder %v3102_v49, 8.507059e+37  ;;  %v13374_v26 = vld [vmem:[#allocation29_spill] sm:$0xff] }
 0xc13   :  { %v3124_v3 = vor.u32 1.1754944e-38, %v3123_v40  ;;  %vm3122_vm3 = vcmp.eq.f32.partialorder %v3121_v17, 8.507059e+37 }
 0xc14   :  { %v8375_v54 = vpop.eup %8374 }
 0xc15   :  { %v3131_v59 = vadd.f32 1.0, %v8375_v54 }
 0xc16   :  { %v8377_v45 = vpop.eup %8376 }
 0xc17   :  { %v8379_v62 = vpop.eup %8378  ;;  %v3094_v58 = vmul.f32 %v8377_v45, %v3092_v30  ;;  %8380 = vrcp.f32 %v3131_v59  ;;  %vm3099_vm12 = vweird.f32 %v8377_v45  ;;  %v3143_v34 = vand.u32 2147483648, %v3131_v59 }
 0xc18   :  { %v3113_v37 = vmul.f32 %v8379_v62, %v3111_v19  ;;  %8382 = vtanh.f32 %v3087_v11  ;;  %vm3118_vm13 = vweird.f32 %v8379_v62  ;;  %vm3100_vm5 = vmor %vm3098_vm4, %vm3099_vm12  ;;  %vm3137_vm0 = vweird.f32 %v3131_v59 }
 0xc19   :  { %v3095_v51 = vsub.f32 1.0, %v3094_v58  ;;  %vm3119_vm15 = vmor %vm3117_vm14, %vm3118_vm13  ;;  %v3141_v4 = vand.u32 2147483647, %v3131_v59  ;;  %v3144_v55 = vor.u32 1.1754944e-38, %v3143_v34  ;;  %vm13371_vm4 = vcmask 261120  }
 0xc1a   :  { %v3114_v63 = vsub.f32 1.0, %v3113_v37  ;;  %vm13372_vm14 = vcmask 517120  }
 0xc1b   :  { %v3096_v35 = vmul.f32 %v8377_v45, %v3095_v51  ;;  %vm3142_vm13 = vcmp.eq.f32.partialorder %v3141_v4, 8.507059e+37 }
 0xc1c   :  { %v3115_v60 = vmul.f32 %v8379_v62, %v3114_v63 }
 0xc1d   :  { %v8381_v52 = vpop.eup %8380  ;;  %v3097_v15 = vadd.f32 %v8377_v45, %v3096_v35  ;;  %v3165_v35 = vld.sshfl [vmem:[#allocation1 + $0x18] sm:$0xff pattern:$0x73625140] }
 0xc1e   :  { %v3116_v22 = vadd.f32 %v8379_v62, %v3115_v60  ;;  %v3133_v36 = vmul.f32 %v8381_v52, %v3131_v59  ;;  %v8383_v16 = vpop.eup %8382  ;;  %vm3138_vm11 = vweird.f32 %v8381_v52  ;;  %v3163_v59 = vld.sshfl [vmem:[#allocation1 + $0x8] sm:$0xff pattern:$0x73625140]  ;;  %v13380_v60 = vld [vmem:[#allocation69_spill] sm:$0xff] }
 0xc1f   :  { %v3101_v31 = vsel %vm3100_vm5, %v8377_v45, %v3097_v15  ;;  %vm3139_vm12 = vmor %vm3137_vm0, %vm3138_vm11  ;;  %v13378_v45 = vld [vmem:[#allocation25_spill] sm:$0xff]  ;;  %v3173_v17 = vsel %vm9020_vm9, %v13380_v60, %v3165_v35 }
 0xc20   :  { %v3106_v23 = vsel %vm3103_vm6, %v3105_v8, %v3101_v31  ;;  %v3120_v56 = vsel %vm3119_vm15, %v8379_v62, %v3116_v22  ;;  %v3134_v2 = vsub.f32 1.0, %v3133_v36  ;;  %vm13375_vm5 = vmmov %vm13371_vm4  ;;  %v3170_v11 = vsel %vm486_vm7, %v13378_v45, %v3162_v25 }
 0xc21   :  { %v3125_v18 = vsel %vm3122_vm3, %v3124_v3, %v3120_v56  ;;  %v3148_v53 = vmul.f32 %v8383_v16, %v3106_v23  ;;  %vm13376_vm15 = vmmov %vm13372_vm14  ;;  %v3164_v23 = vld.sshfl [vmem:[#allocation1 + $0x10] sm:$0xff pattern:$0x73625140] }
 0xc22   :  { %v3147_v13 = vmul.f32 %v3125_v18, %v10423_v50  ;;  %v3135_v10 = vmul.f32 %v8381_v52, %v3134_v2  ;;  %vm13377_vm6 = vmmov %vm13372_vm14  ;;  %v13381_v18 = vld [vmem:[#allocation23_spill] sm:$0xff] }
 0xc23   :  { %v3172_v21 = vsel %vm9062_vm10, %v13381_v18, %v3164_v23 }
 0xc24   :  { %v10459_v46 = vadd.f32 %v3148_v53, %v3147_v13  ;;  %v3136_v47 = vadd.f32 %v8381_v52, %v3135_v10 }
 0xc26   :  { %8384 = vtanh.f32 %v10459_v46  ;;  %v3140_v33 = vsel %vm3139_vm12, %v8381_v52, %v3136_v47 }
 0xc27   :  { %v3145_v24 = vsel %vm3142_vm13, %v3144_v55, %v3140_v33 }
 0xc2c   :  { %v8385_v61 = vpop.eup %8384 }
 0xc2d   :  { %v3151_v41 = vmul.f32 %v8385_v61, %v3145_v24 }
 0xc2f   :  { %3304 = vrot.lane.b32.xlu0 %v3151_v41, %s8619_s4  ;;  %v3174_v50 = vpack.c.bf16 %v3151_v41, %v3151_v41  ;;  %v10465_v39 = vsel %vm13371_vm4, %v3151_v41, %v10398_v29 }
 0xc30   :  { %v3352_v12 = vsel %vm13372_vm14, %v10465_v39, 0.0 }
 0xc31   :  { %3353 = vadd.xlane.f32.xlu1 %v3352_v12  ;;  %3183 = vmatmul.bf16.vlgmr.msrb.gmra.mxu0 %v3174_v50 }
 0xc32   :  { %3196 = vmatmul.bf16.vlgmr.msrb.gmra.mxu1 %v3174_v50  ;;  %3209 = vmatmul.bf16.vlgmr.msrb.gmra.mxu2 %v3174_v50 }
 0xc33   :  { %3222 = vmatmul.bf16.vlgmr.msrb.gmra.mxu3 %v3174_v50 }
 0xc6b   :  { %v3342_v57 = vpop.xlane.xlu2 %3341 }
 0xc6c   :  { %v3360_v30 = vmul.f32 %v3342_v57, %v13373_v7 }
 0xc6e   :  { %v10477_v29 = vsub.f32 %v10438_v14, %v3360_v30  ;;  %v13379_v14 = vld [vmem:[#allocation31_spill] sm:$0xff] }
 0xc6f   :  { %v3171_v37 = vsel %vm9015_vm8, %v13379_v14, %v3163_v59 }
 0xc70   :  { %v3376_v44 = vmul.f32 %v10477_v29, %v10477_v29 }
 0xc72   :  { %v3388_v32 = vsel %vm13377_vm6, %v3376_v44, 0.0 }
 0xca1   :  { %v3305_v19 = vpop.permute.xlu0 %3304 }
 0xca2   :  { %v10474_v27 = vsel %vm13375_vm5, %v13374_v26, %v3305_v19 }
 0xca3   :  { %v3337_v54 = vsel %vm13376_vm15, %v10474_v27, 0.0  ;;  %vm13382_vm15 = vcmask 261120  }
 0xca4   :  { %3338 = vadd.xlane.f32.xlu0 %v3337_v54 }
 0xcac   :  { %3389 = vadd.xlane.f32.xlu0 %v3388_v32 }
 0xcae   :  { %v3184_v62 = vpop.f32.mrf.mxu0 }
 0xcaf   :  { %v3227_v58 = vadd.f32 %v3184_v62, %v3170_v11  ;;  %v3197_v51 = vpop.f32.mrf.mxu1 }
 0xcb0   :  { %v3228_v63 = vadd.f32 %v3197_v51, %v3171_v37 }
 0xcb1   :  { %v7987_v43 = vmul.f32 -1.442695, %v3227_v58 }
 0xcb2   :  { %v7988_v40 = vmul.f32 -1.442695, %v3228_v63 }
 0xcb3   :  { %8386 = vpow2.f32 %v7987_v43 }
 0xcb4   :  { %8388 = vpow2.f32 %v7988_v40 }
 0xcb5   :  { %v3210_v49 = vpop.f32.mrf.mxu2 }
 0xcb6   :  { %v3223_v38 = vpop.f32.mrf.mxu3  ;;  %v3186_v52 = vpop.f32.mrf.mxu0  ;;  %v3229_v13 = vadd.f32 %v3210_v49, %v3172_v21 }
 0xcb7   :  { %v3230_v15 = vadd.f32 %v3223_v38, %v3173_v17  ;;  %v3199_v8 = vpop.f32.mrf.mxu1 }
 0xcb9   :  { %v8387_v22 = vpop.eup %8386  ;;  %v7989_v36 = vmul.f32 -1.442695, %v3230_v15  ;;  %v3361_v15 = vmul.f32 %v10434_v6, %v13373_v7 }
 0xcba   :  { %v8389_v0 = vpop.eup %8388  ;;  %v3234_v3 = vadd.f32 1.0, %v8387_v22 }
 0xcbb   :  { %v3253_v31 = vadd.f32 1.0, %v8389_v0  ;;  %8390 = vpow2.f32 %v7989_v36  ;;  %v10507_v22 = vsub.f32 %v10402_v48, %v3361_v15  ;;  %v3354_v0 = vpop.xlane.xlu1 %3353 }
 0xcbc   :  { %8392 = vrcp.f32 %v3234_v3  ;;  %v3246_v61 = vand.u32 2147483648, %v3234_v3  ;;  %v3244_v50 = vand.u32 2147483647, %v3234_v3  ;;  %vm3240_vm9 = vweird.f32 %v3234_v3 }
 0xcbd   :  { %8394 = vrcp.f32 %v3253_v31  ;;  %v3212_v16 = vpop.f32.mrf.mxu2  ;;  %v3265_v24 = vand.u32 2147483648, %v3253_v31  ;;  %v3263_v57 = vand.u32 2147483647, %v3253_v31  ;;  %vm3259_vm10 = vweird.f32 %v3253_v31 }
 0xcbe   :  { %v3225_v56 = vpop.f32.mrf.mxu3  ;;  %v3247_v19 = vor.u32 1.1754944e-38, %v3246_v61  ;;  %vm3245_vm0 = vcmp.eq.f32.partialorder %v3244_v50, 8.507059e+37  ;;  %v13388_v50 = vld [vmem:[#allocation39_spill] sm:$0xff] }
 0xcbf   :  { %v3266_v54 = vor.u32 1.1754944e-38, %v3265_v24  ;;  %vm3264_vm12 = vcmp.eq.f32.partialorder %v3263_v57, 8.507059e+37  ;;  %v10538_v24 = vld [vmem:[%s12994_s10] ss:$0 sm:$0xff]  ;;  %s8631_s10 = smov 16  }
 0xcc1   :  { %v8391_v2 = vpop.eup %8390 }
 0xcc2   :  { %v8393_v53 = vpop.eup %8392  ;;  %v3273_v10 = vadd.f32 1.0, %v8391_v2 }
 0xcc3   :  { %v8395_v47 = vpop.eup %8394  ;;  %v3236_v34 = vmul.f32 %v8393_v53, %v3234_v3  ;;  %vm3241_vm7 = vweird.f32 %v8393_v53  ;;  %v3364_v3 = vmul.f32 %v3354_v0, %v13373_v7 }
 0xcc4   :  { %v3255_v4 = vmul.f32 %v8395_v47, %v3253_v31  ;;  %8396 = vrcp.f32 %v3273_v10  ;;  %vm3260_vm8 = vweird.f32 %v8395_v47  ;;  %vm3242_vm3 = vmor %vm3240_vm9, %vm3241_vm7  ;;  %v3285_v43 = vand.u32 2147483648, %v3273_v10 }
 0xcc5   :  { %v3237_v33 = vsub.f32 1.0, %v3236_v34  ;;  %8398 = vtanh.f32 %v3229_v13  ;;  %vm3261_vm11 = vmor %vm3259_vm10, %vm3260_vm8  ;;  %vm3279_vm4 = vweird.f32 %v3273_v10  ;;  %v3283_v40 = vand.u32 2147483647, %v3273_v10 }
 0xcc6   :  { %v3256_v55 = vsub.f32 1.0, %v3255_v4  ;;  %v3286_v49 = vor.u32 1.1754944e-38, %v3285_v43  ;;  %vm13383_vm7 = vmmov %vm13382_vm15  ;;  %v10514_v31 = vsub.f32 %v10465_v39, %v3364_v3 }
 0xcc7   :  { %v3238_v41 = vmul.f32 %v8393_v53, %v3237_v33  ;;  %vm3284_vm5 = vcmp.eq.f32.partialorder %v3283_v40, 8.507059e+37  ;;  %v3331_v8 = vsel %vm13383_vm7, %v10426_v9, %v10432_v42  ;;  %vm13384_vm8 = vmmov %vm13377_vm6  ;;  %v10533_v33 = vld [vmem:[%s12993_s9] ss:$0 sm:$0xff]  ;;  %s8627_s9 = smov 80  }
 0xcc8   :  { %v3257_v12 = vmul.f32 %v8395_v47, %v3256_v55  ;;  %v3349_v36 = vsel %vm13384_vm8, %v3331_v8, 0.0  ;;  %vm13385_vm9 = vmmov %vm13377_vm6  ;;  %v3380_v9 = vmul.f32 %v10514_v31, %v10514_v31 }
 0xcc9   :  { %v3239_v28 = vadd.f32 %v8393_v53, %v3238_v41  ;;  %vm13386_vm10 = vmmov %vm13377_vm6 }
 0xcca   :  { %v8397_v30 = vpop.eup %8396  ;;  %v3258_v26 = vadd.f32 %v8395_v47, %v3257_v12  ;;  %v3400_v48 = vsel %vm13386_vm10, %v3380_v9, 0.0 }
 0xccb   :  { %v3243_v44 = vsel %vm3242_vm3, %v8393_v53, %v3239_v28  ;;  %v3275_v32 = vmul.f32 %v8397_v30, %v3273_v10  ;;  %v8399_v25 = vpop.eup %8398  ;;  %vm3280_vm13 = vweird.f32 %v8397_v30  ;;  %vm13387_vm3 = vmmov %vm13377_vm6 }
 0xccc   :  { %v3248_v59 = vsel %vm3245_vm0, %v3247_v19, %v3243_v44  ;;  %v3262_v45 = vsel %vm3261_vm11, %v8395_v47, %v3258_v26  ;;  %vm3281_vm14 = vmor %vm3279_vm4, %vm3280_vm13 }
 0xccd   :  { %v3267_v11 = vsel %vm3264_vm12, %v3266_v54, %v3262_v45  ;;  %v3290_v62 = vmul.f32 %v8399_v25, %v3248_v59  ;;  %v3276_v58 = vsub.f32 1.0, %v3275_v32  ;;  %vm13389_vm13 = vmmov %vm13383_vm7 }
 0xcce   :  { %v3289_v14 = vmul.f32 %v3267_v11, %v10459_v46  ;;  %vm13390_vm4 = vmmov %vm13387_vm3 }
 0xccf   :  { %v3277_v37 = vmul.f32 %v8397_v30, %v3276_v58 }
 0xcd0   :  { %v3291_v51 = vadd.f32 %v3290_v62, %v3289_v14 }
 0xcd1   :  { %v3278_v63 = vadd.f32 %v8397_v30, %v3277_v37 }
 0xcd2   :  { %8400 = vtanh.f32 %v3291_v51 }
 0xcd3   :  { %v3282_v35 = vsel %vm3281_vm14, %v8397_v30, %v3278_v63  ;;  %vm13391_vm14 = vmmov %vm13387_vm3 }
 0xcd4   :  { %v3287_v17 = vsel %vm3284_vm5, %v3286_v49, %v3282_v35  ;;  %vm13392_vm5 = vmmov %vm13387_vm3 }
 0xcd8   :  { %v8401_v60 = vpop.eup %8400 }
 0xcd9   :  { %v3293_v38 = vmul.f32 %v8401_v60, %v3287_v17 }
 0xcdb   :  { %3302 = vrot.lane.b32.xlu2 %v3293_v38, %s8619_s4  ;;  %v3333_v46 = vsel %vm13382_vm15, %v3293_v38, %v10385_v20  ;;  %v3377_v20 = vmul.f32 %v10507_v22, %v10507_v22  ;;  %vm13393_vm15 = vmmov %vm13387_vm3 }
 0xcdc   :  { %v3355_v52 = vsel %vm13377_vm6, %v3333_v46, 0.0 }
 0xcdd   :  { %3356 = vadd.xlane.f32.xlu0 %v3355_v52  ;;  %v3391_v6 = vsel %vm13385_vm9, %v3377_v20, 0.0 }
 0xd04   :  { %3350 = vadd.xlane.f32.xlu2 %v3349_v36 }
 0xd0c   :  { %3392 = vadd.xlane.f32.xlu2 %v3391_v6 }
 0xd14   :  { %3401 = vadd.xlane.f32.xlu2 %v3400_v48 }
 0xd17   :  { %v3339_v42 = vpop.xlane.xlu0 %3338 }
 0xd18   :  { %v3359_v16 = vmul.f32 %v3339_v42, %v13373_v7 }
 0xd1a   :  { %v10522_v23 = vsub.f32 %v10474_v27, %v3359_v16  ;;  %v3362_v27 = vmul.f32 %v10469_v5, %v13373_v7 }
 0xd1c   :  { %v3375_v56 = vmul.f32 %v10522_v23, %v10522_v23  ;;  %v10546_v12 = vsub.f32 %v10394_v1, %v3362_v27 }
 0xd1e   :  { %v3385_v39 = vsel %vm13387_vm3, %v3375_v56, 0.0  ;;  %v3378_v19 = vmul.f32 %v10546_v12, %v10546_v12 }
 0xd1f   :  { %v3390_v2 = vpop.xlane.xlu0 %3389  ;;  %3386 = vadd.xlane.f32.xlu1 %v3385_v39 }
 0xd20   :  { %v3408_v18 = vmul.f32 %v3390_v2, %v13373_v7 }
 0xd22   :  { %v3416_v21 = vadd.f32 1e-05, %v3408_v18 }
 0xd24   :  { %8402 = vrsqrt.f32 %v3416_v21  ;;  %vm3448_vm0 = vweird.f32 %v3416_v21 }
 0xd2a   :  { %v8403_v53 = vpop.eup %8402 }
 0xd2b   :  { %v3443_v13 = vmul.f32 %v8403_v53, %v3416_v21  ;;  %vm3449_vm11 = vweird.f32 %v8403_v53 }
 0xd2c   :  { %vm3450_vm12 = vmor %vm3448_vm0, %vm3449_vm11 }
 0xd2d   :  { %v3444_v10 = vmul.f32 %v8403_v53, %v3443_v13 }
 0xd2f   :  { %v3445_v47 = vmul.f32 0.5, %v3444_v10 }
 0xd31   :  { %v3446_v34 = vsub.f32 1.5, %v3445_v47 }
 0xd33   :  { %v3447_v4 = vmul.f32 %v8403_v53, %v3446_v34 }
 0xd35   :  { %v3451_v55 = vsel %vm3450_vm12, %v8403_v53, %v3447_v4  ;;  %v3303_v61 = vpop.permute.xlu2 %3302 }
 0xd36   :  { %v3504_v41 = vmul.f32 %v3451_v55, %v10477_v29  ;;  %v10543_v5 = vsel %vm13389_vm13, %v13388_v50, %v3303_v61  ;;  %v3394_v29 = vsel %vm13391_vm14, %v3378_v19, 0.0  ;;  %vm13394_vm13 = vmmov %vm13390_vm4 }
 0xd37   :  { %v3334_v57 = vsel %vm13390_vm4, %v10543_v5, 0.0 }
 0xd38   :  { %v3516_v28 = vmul.f32 %v10533_v33, %v3504_v41  ;;  %3335 = vadd.xlane.f32.xlu1 %v3334_v57 }
 0xd3a   :  { %v3528_v30 = vadd.f32 %v10538_v24, %v3516_v28 }
 0xd3c   :  { %3546 = vst [vmem:[#allocation1 + $0x2] ss:$4 sm:$0xff] %v3528_v30 }
 0xd40   :  { %3395 = vadd.xlane.f32.xlu1 %v3394_v29 }
 0xd50   :  { %v3357_v26 = vpop.xlane.xlu0 %3356 }
 0xd51   :  { %v3365_v54 = vmul.f32 %v3357_v26, %v13373_v7 }
 0xd53   :  { %v10556_v1 = vsub.f32 %v3333_v46, %v3365_v54 }
 0xd55   :  { %v3381_v44 = vmul.f32 %v10556_v1, %v10556_v1 }
 0xd57   :  { %v3403_v32 = vsel %vm13392_vm5, %v3381_v44, 0.0 }
 0xd58   :  { %3404 = vadd.xlane.f32.xlu1 %v3403_v32 }
 0xd77   :  { %v3351_v25 = vpop.xlane.xlu2 %3350 }
 0xd78   :  { %v3363_v59 = vmul.f32 %v3351_v25, %v13373_v7 }
 0xd7a   :  { %v10562_v45 = vsub.f32 %v3331_v8, %v3363_v59 }
 0xd7c   :  { %v3379_v11 = vmul.f32 %v10562_v45, %v10562_v45 }
 0xd7e   :  { %v3397_v62 = vsel %vm13393_vm15, %v3379_v11, 0.0 }
 0xd7f   :  { %v3393_v58 = vpop.xlane.xlu2 %3392  ;;  %3398 = vadd.xlane.f32.xlu0 %v3397_v62 }
 0xd80   :  { %v3409_v14 = vmul.f32 %v3393_v58, %v13373_v7 }
 0xd82   :  { %v3417_v37 = vadd.f32 1e-05, %v3409_v14 }
 0xd84   :  { %8404 = vrsqrt.f32 %v3417_v37  ;;  %vm3458_vm7 = vweird.f32 %v3417_v37 }
 0xd87   :  { %v3402_v51 = vpop.xlane.xlu2 %3401 }
 0xd88   :  { %v3412_v63 = vmul.f32 %v3402_v51, %v13373_v7 }
 0xd8a   :  { %v8405_v43 = vpop.eup %8404  ;;  %v3420_v40 = vadd.f32 1e-05, %v3412_v63 }
 0xd8b   :  { %v3453_v35 = vmul.f32 %v8405_v43, %v3417_v37  ;;  %vm3459_vm6 = vweird.f32 %v8405_v43 }
 0xd8c   :  { %8406 = vrsqrt.f32 %v3420_v40  ;;  %vm3460_vm8 = vmor %vm3458_vm7, %vm3459_vm6  ;;  %vm3488_vm10 = vweird.f32 %v3420_v40 }
 0xd8d   :  { %v3454_v49 = vmul.f32 %v8405_v43, %v3453_v35 }
 0xd8f   :  { %v3455_v60 = vmul.f32 0.5, %v3454_v49 }
 0xd91   :  { %v3456_v17 = vsub.f32 1.5, %v3455_v60 }
 0xd92   :  { %v8407_v38 = vpop.eup %8406  ;;  %v3387_v46 = vpop.xlane.xlu1 %3386 }
 0xd93   :  { %v3457_v52 = vmul.f32 %v8405_v43, %v3456_v17  ;;  %v3483_v15 = vmul.f32 %v8407_v38, %v3420_v40  ;;  %v3407_v8 = vmul.f32 %v3387_v46, %v13373_v7  ;;  %vm3489_vm9 = vweird.f32 %v8407_v38 }
 0xd94   :  { %vm3490_vm3 = vmor %vm3488_vm10, %vm3489_vm9 }
 0xd95   :  { %v3461_v36 = vsel %vm3460_vm8, %v8405_v43, %v3457_v52  ;;  %v3484_v0 = vmul.f32 %v8407_v38, %v3483_v15  ;;  %v3415_v3 = vadd.f32 1e-05, %v3407_v8 }
 0xd96   :  { %v3505_v20 = vmul.f32 %v3461_v36, %v10507_v22 }
 0xd97   :  { %v3485_v6 = vmul.f32 0.5, %v3484_v0  ;;  %8408 = vrsqrt.f32 %v3415_v3  ;;  %vm3438_vm0 = vweird.f32 %v3415_v3 }
 0xd98   :  { %v3517_v9 = vmul.f32 %v10533_v33, %v3505_v20 }
 0xd99   :  { %v3486_v48 = vsub.f32 1.5, %v3485_v6 }
 0xd9a   :  { %v3529_v42 = vadd.f32 %v10538_v24, %v3517_v9 }
 0xd9b   :  { %v3487_v16 = vmul.f32 %v8407_v38, %v3486_v48 }
 0xd9c   :  { %3548 = vst [vmem:[#allocation1 + $0x3] ss:$4 sm:$0xff] %v3529_v42  ;;  %v3574_v42 = vld [vmem:[%s12995_s11 + $0x60] sm:$0xff] }
 0xd9d   :  { %v8409_v56 = vpop.eup %8408  ;;  %v3491_v39 = vsel %vm3490_vm3, %v8407_v38, %v3487_v16  ;;  %v3576_v16 = vld [vmem:[%s12995_s11 + $0x70] sm:$0xff] }
 0xd9e   :  { %v3508_v2 = vmul.f32 %v3491_v39, %v10514_v31  ;;  %v3433_v18 = vmul.f32 %v8409_v56, %v3415_v3  ;;  %vm3439_vm11 = vweird.f32 %v8409_v56  ;;  %v3584_v39 = vpack.c.bf16 %v3576_v16, %v3574_v42 }
 0xd9f   :  { %vm3440_vm12 = vmor %vm3438_vm0, %vm3439_vm11 }
 0xda0   :  { %v3520_v21 = vmul.f32 %v10533_v33, %v3508_v2  ;;  %v3434_v22 = vmul.f32 %v8409_v56, %v3433_v18  ;;  %v3570_v2 = vld [vmem:[%s12995_s11 + $0x40] sm:$0xff]  ;;  %v3572_v18 = vld [vmem:[%s12995_s11 + $0x50] sm:$0xff]  ;;  %3599 = vmatpush.bf16.msra.mxu0 %v3584_v39 }
 0xda2   :  { %v3532_v53 = vadd.f32 %v10538_v24, %v3520_v21  ;;  %v3435_v13 = vmul.f32 0.5, %v3434_v22  ;;  %v3571_v22 = vld [vmem:[%s12995_s11 + $0x48] sm:$0xff] }
 0xda4   :  { %3554 = vst [vmem:[#allocation1 + $0x22] ss:$4 sm:$0xff] %v3532_v53  ;;  %v3436_v10 = vsub.f32 1.5, %v3435_v13  ;;  %v3573_v53 = vld [vmem:[%s12995_s11 + $0x58] sm:$0xff]  ;;  %v3582_v13 = vpack.c.bf16 %v3572_v18, %v3570_v2 }
 0xda6   :  { %v3437_v47 = vmul.f32 %v8409_v56, %v3436_v10  ;;  %3600 = vmatpush.bf16.msra.mxu0 %v3582_v13 }
 0xda8   :  { %v3441_v34 = vsel %vm3440_vm12, %v8409_v56, %v3437_v47  ;;  %v3575_v56 = vld [vmem:[%s12995_s11 + $0x68] sm:$0xff]  ;;  %v3583_v47 = vpack.c.bf16 %v3573_v53, %v3571_v22  ;;  %vm13395_vm12 = vcmask 523264  }
 0xda9   :  { %v3503_v27 = vmul.f32 %v3441_v34, %v10522_v23  ;;  %v3566_v34 = vld [vmem:[%s12995_s11 + $0x20] sm:$0xff] }
 0xdab   :  { %v3515_v4 = vmul.f32 %v10533_v33, %v3503_v27  ;;  %v3336_v55 = vpop.xlane.xlu1 %3335  ;;  %v3568_v27 = vld [vmem:[%s12995_s11 + $0x30] sm:$0xff] }
 0xdac   :  { %v3358_v31 = vmul.f32 %v3336_v55, %v13373_v7  ;;  %v3567_v55 = vld [vmem:[%s12995_s11 + $0x28] sm:$0xff] }
 0xdad   :  { %v3527_v61 = vadd.f32 %v10538_v24, %v3515_v4 }
 0xdae   :  { %v10581_v41 = vsub.f32 %v10543_v5, %v3358_v31  ;;  %v3569_v31 = vld [vmem:[%s12995_s11 + $0x38] sm:$0xff] }
 0xdaf   :  { %3544 = vst [vmem:[#allocation1 + $0x1] ss:$4 sm:$0xff] %v3527_v61 }
 0xdb0   :  { %v3374_v50 = vmul.f32 %v10581_v41, %v10581_v41 }
 0xdb2   :  { %v3382_v57 = vsel %vm13394_vm13, %v3374_v50, 0.0  ;;  %v3580_v50 = vpack.c.bf16 %v3568_v27, %v3566_v34  ;;  %vm13396_vm13 = vmmov %vm13395_vm12 }
 0xdb3   :  { %3383 = vadd.xlane.f32.xlu2 %v3382_v57  ;;  %v3396_v28 = vpop.xlane.xlu1 %3395  ;;  %v3581_v57 = vpack.c.bf16 %v3569_v31, %v3567_v55 }
 0xdb4   :  { %v3410_v23 = vmul.f32 %v3396_v28, %v13373_v7  ;;  %v3562_v28 = vld [vmem:[%s12995_s11] sm:$0xff]  ;;  %3601 = vmatpush.bf16.msra.mxu0 %v3580_v50 }
 0xdb6   :  { %v3418_v30 = vadd.f32 1e-05, %v3410_v23  ;;  %v3563_v23 = vld [vmem:[%s12995_s11 + $0x8] sm:$0xff] }
 0xdb8   :  { %8410 = vrsqrt.f32 %v3418_v30  ;;  %vm3468_vm14 = vweird.f32 %v3418_v30 }
 0xdbe   :  { %v8411_v19 = vpop.eup %8410 }
 0xdbf   :  { %v3463_v29 = vmul.f32 %v8411_v19, %v3418_v30  ;;  %vm3469_vm4 = vweird.f32 %v8411_v19  ;;  %v3565_v30 = vld [vmem:[%s12995_s11 + $0x18] sm:$0xff] }
 0xdc0   :  { %vm3470_vm5 = vmor %vm3468_vm14, %vm3469_vm4  ;;  %vm13398_vm4 = vcmask 1043458   ;;  %vm13399_vm14 = vcmask 1045504  }
 0xdc1   :  { %v3464_v26 = vmul.f32 %v8411_v19, %v3463_v29  ;;  %v3579_v29 = vpack.c.bf16 %v3565_v30, %v3563_v23 }
 0xdc3   :  { %v3465_v54 = vmul.f32 0.5, %v3464_v26 }
 0xdc5   :  { %v3466_v44 = vsub.f32 1.5, %v3465_v54 }
 0xdc7   :  { %v3467_v5 = vmul.f32 %v8411_v19, %v3466_v44 }
 0xdc9   :  { %v3471_v32 = vsel %vm3470_vm5, %v8411_v19, %v3467_v5  ;;  %vm13402_vm5 = vmmov %vm13398_vm4 }
 0xdca   :  { %v3506_v25 = vmul.f32 %v3471_v32, %v10546_v12 }
 0xdcb   :  { %v3405_v59 = vpop.xlane.xlu1 %3404 }
 0xdcc   :  { %v3518_v11 = vmul.f32 %v10533_v33, %v3506_v25  ;;  %v3413_v62 = vmul.f32 %v3405_v59, %v13373_v7 }
 0xdce   :  { %v3530_v58 = vadd.f32 %v10538_v24, %v3518_v11  ;;  %v3421_v14 = vadd.f32 1e-05, %v3413_v62 }
 0xdd0   :  { %3550 = vst [vmem:[#allocation1 + $0x20] ss:$4 sm:$0xff] %v3530_v58  ;;  %8412 = vrsqrt.f32 %v3421_v14  ;;  %vm3498_vm6 = vweird.f32 %v3421_v14 }
 0xdd6   :  { %v8413_v37 = vpop.eup %8412 }
 0xdd7   :  { %v3493_v51 = vmul.f32 %v8413_v37, %v3421_v14  ;;  %vm3499_vm15 = vweird.f32 %v8413_v37 }
 0xdd8   :  { %vm3500_vm7 = vmor %vm3498_vm6, %vm3499_vm15  ;;  %vm5994_vm15 = vcmask 64512   ;;  %vm13498_vm6 = vcmask 1043456  }
 0xdd9   :  { %v3494_v63 = vmul.f32 %v8413_v37, %v3493_v51 }
 0xddb   :  { %v3495_v43 = vmul.f32 0.5, %v3494_v63  ;;  %v3586_v63 = vld [vmem:[%s12996_s12] sm:$0x3]  ;;  %s8623_s12 = smov 72  }
 0xddd   :  { %v3496_v40 = vsub.f32 1.5, %v3495_v43  ;;  %v3589_v43 = vperm.slane %v3586_v63, 1 }
 0xddf   :  { %v3497_v35 = vmul.f32 %v8413_v37, %v3496_v40  ;;  %v3588_v40 = vperm.slane %v3586_v63, 0 }
 0xde1   :  { %v3501_v12 = vsel %vm3500_vm7, %v8413_v37, %v3497_v35  ;;  %vm13504_vm7 = vmmov %vm13498_vm6 }
 0xde2   :  { %v3509_v49 = vmul.f32 %v3501_v12, %v10556_v1 }
 0xde4   :  { %v3521_v60 = vmul.f32 %v10533_v33, %v3509_v49 }
 0xde6   :  { %v3533_v17 = vadd.f32 %v10538_v24, %v3521_v60 }
 0xde8   :  { %3556 = vst [vmem:[#allocation1 + $0x23] ss:$4 sm:$0xff] %v3533_v17 }
 0xdf2   :  { %v3399_v38 = vpop.xlane.xlu0 %3398 }
 0xdf3   :  { %v3411_v46 = vmul.f32 %v3399_v38, %v13373_v7 }
 0xdf5   :  { %v3419_v52 = vadd.f32 1e-05, %v3411_v46 }
 0xdf7   :  { %8414 = vrsqrt.f32 %v3419_v52  ;;  %vm3478_vm9 = vweird.f32 %v3419_v52 }
 0xdfd   :  { %v8415_v15 = vpop.eup %8414 }
 0xdfe   :  { %v3473_v8 = vmul.f32 %v8415_v15, %v3419_v52  ;;  %vm3479_vm8 = vweird.f32 %v8415_v15 }
 0xdff   :  { %vm3480_vm10 = vmor %vm3478_vm9, %vm3479_vm8 }
 0xe00   :  { %v3474_v36 = vmul.f32 %v8415_v15, %v3473_v8  ;;  %vm13505_vm8 = vmmov %vm13498_vm6 }
 0xe01   :  { %vm13507_vm9 = vmmov %vm13498_vm6 }
 0xe02   :  { %v3475_v0 = vmul.f32 0.5, %v3474_v36 }
 0xe04   :  { %v3476_v3 = vsub.f32 1.5, %v3475_v0 }
 0xe06   :  { %v3477_v20 = vmul.f32 %v8415_v15, %v3476_v3 }
 0xe08   :  { %v3481_v1 = vsel %vm3480_vm10, %v8415_v15, %v3477_v20  ;;  %vm13508_vm10 = vmmov %vm13498_vm6 }
 0xe09   :  { %v3507_v6 = vmul.f32 %v3481_v1, %v10562_v45  ;;  %v3577_v45 = vld [vmem:[%s12995_s11 + $0x78] sm:$0xff] }
 0xe0a   :  { %v3585_v21 = vpack.c.bf16 %v3577_v45, %v3575_v56 }
 0xe0b   :  { %v3519_v9 = vmul.f32 %v10533_v33, %v3507_v6 }
 0xe0c   :  { %3613 = vmatpush.bf16.msra.mxu1 %v3585_v21 }
 0xe0d   :  { %v3531_v48 = vadd.f32 %v10538_v24, %v3519_v9 }
 0xe0f   :  { %3552 = vst [vmem:[#allocation1 + $0x21] ss:$4 sm:$0xff] %v3531_v48 }
 0xe10   :  { %3614 = vmatpush.bf16.msra.mxu1 %v3583_v47 }
 0xe14   :  { %3615 = vmatpush.bf16.msra.mxu1 %v3581_v57 }
 0xe16   :  { %v3558_v14 = vld.sshfl [vmem:[#allocation1 + $0x20] sm:$0xff pattern:$0x73625140] }
 0xe18   :  { %3616 = vmatpush.bf16.msra.mxu1 %v3579_v29 }
 0xe26   :  { %v3384_v10 = vpop.xlane.xlu2 %3383 }
 0xe27   :  { %v3406_v4 = vmul.f32 %v3384_v10, %v13373_v7  ;;  %v3564_v7 = vld [vmem:[%s12995_s11 + $0x10] sm:$0xff] }
 0xe28   :  { %v3578_v19 = vpack.c.bf16 %v3564_v7, %v3562_v28 }
 0xe29   :  { %v3414_v61 = vadd.f32 1e-05, %v3406_v4  ;;  %v8628_v4 = vmov 1934713408  }
 0xe2a   :  { %3602 = vmatpush.bf16.msra.mxu0 %v3578_v19  ;;  %v3823_v55 = vunpack.c.l.s4 %v8628_v4 }
 0xe2b   :  { %8416 = vrsqrt.f32 %v3414_v61  ;;  %vm3428_vm11 = vweird.f32 %v3414_v61 }
 0xe31   :  { %v8417_v26 = vpop.eup %8416 }
 0xe32   :  { %v3423_v54 = vmul.f32 %v8417_v26, %v3414_v61  ;;  %vm3429_vm3 = vweird.f32 %v8417_v26  ;;  %v10806_v61 = vunpack.c.0.s8 %v3823_v55 }
 0xe33   :  { %vm3430_vm0 = vmor %vm3428_vm11, %vm3429_vm3 }
 0xe34   :  { %v3424_v44 = vmul.f32 %v8417_v26, %v3423_v54  ;;  %vm13511_vm3 = vmmov %vm13498_vm6 }
 0xe35   :  { %vm13512_vm11 = vmmov %vm13511_vm3 }
 0xe36   :  { %v3425_v5 = vmul.f32 0.5, %v3424_v44 }
 0xe38   :  { %v3426_v32 = vsub.f32 1.5, %v3425_v5 }
 0xe3a   :  { %v3427_v25 = vmul.f32 %v8417_v26, %v3426_v32 }
 0xe3c   :  { %v3431_v59 = vsel %vm3430_vm0, %v8417_v26, %v3427_v25  ;;  %vm13514_vm0 = vmmov %vm13511_vm3 }
 0xe3d   :  { %v3502_v11 = vmul.f32 %v3431_v59, %v10581_v41 }
 0xe3f   :  { %v3514_v62 = vmul.f32 %v10533_v33, %v3502_v11 }
 0xe41   :  { %v3526_v58 = vadd.f32 %v10538_v24, %v3514_v62 }
 0xe43   :  { %3542 = vst [vmem:[#allocation1] ss:$4 sm:$0xff] %v3526_v58 }
 0xe4a   :  { %v3557_v37 = vld.sshfl [vmem:[#allocation1] sm:$0xff pattern:$0x73625140] }
 0xe4b   :  { %v3561_v51 = vpack.c.bf16 %v3558_v14, %v3557_v37 }
 0xe4d   :  { %7990 = vmatmul.msk.bf16.vlgmr.msra.gmra.mxu0 %vm13395_vm12, %v3561_v51  ;;  %7991 = vmatmul.msk.bf16.vlgmr.msra.gmra.mxu1 %vm13396_vm13, %v3561_v51 }
 0xeca   :  { %v3604_v35 = vpop.f32.mrf.mxu0  ;;  %v3618_v41 = vpop.f32.mrf.mxu1 }
 0xecb   :  { %v3619_v12 = vadd.f32 %v3618_v41, %v3589_v43  ;;  %v3605_v33 = vadd.f32 %v3604_v35, %v3588_v40 }
 0xecd   :  { %v3627_v49 = vrot.slane %v3619_v12, 6 }
 0xecf   :  { %v10656_v24 = vsel %vm301_vm1, %v3605_v33, %v3627_v49  ;;  %v3630_v1 = vsel %vm13402_vm5, %v3605_v33, %v3627_v49  ;;  %v3632_v9 = vsel %vm303_vm2, %v3605_v33, %v3627_v49 }
 0xed0   :  { %13397 = vst [vmem:[#allocation34_spill] sm:$0xff] %v10656_v24  ;;  %3723 = vrot.lane.b32.xlu1 %v10656_v24, %s8619_s4  ;;  %3675 = vrot.lane.b32.xlu0 %v10656_v24, %s8621_s26  ;;  %v10686_v6 = vrot.slane %v3630_v1, 2  ;;  %v10695_v48 = vrot.slane %v3632_v9, 4 }
 0xed1   :  { %3651 = vrot.lane.b32.xlu2 %v10656_v24, %s8622_s8 }
 0xed2   :  { %v3606_v60 = vpop.f32.mrf.mxu0  ;;  %v3620_v17 = vpop.f32.mrf.mxu1  ;;  %13403 = vst [vmem:[#allocation16_spill] sm:$0xff] %v10686_v6 }
 0xed3   :  { %v3621_v38 = vadd.f32 %v3620_v17, %v3589_v43  ;;  %v3607_v46 = vadd.f32 %v3606_v60, %v3588_v40  ;;  %13404 = vst [vmem:[#allocation41_spill] sm:$0xff] %v10695_v48 }
 0xed5   :  { %v3628_v52 = vrot.slane %v3621_v38, 6 }
 0xed7   :  { %v10665_v15 = vsel %vm301_vm1, %v3607_v46, %v3628_v52  ;;  %v3637_v8 = vsel %vm13398_vm4, %v3607_v46, %v3628_v52  ;;  %v3639_v36 = vsel %vm303_vm2, %v3607_v46, %v3628_v52  ;;  %v3641_v0 = vsel %vm13399_vm14, %v3628_v52, %v3607_v46  ;;  %vm13400_vm1 = vmmov %vm13399_vm14 }
 0xed8   :  { %3795 = vrot.lane.b32.xlu1 %v10656_v24, %s8623_s12  ;;  %3747 = vrot.lane.b32.xlu0 %v10656_v24, %s8624_s3  ;;  %v3634_v3 = vsel %vm13400_vm1, %v3627_v49, %v3605_v33  ;;  %v10755_v56 = vrot.slane %v3637_v8, 2  ;;  %v10757_v39 = vrot.slane %v3641_v0, 6  ;;  %v10767_v2 = vrot.slane %v3639_v36, 4 }
 0xed9   :  { %3699 = vrot.lane.b32.xlu2 %v10656_v24, %s8625_s29  ;;  %v10677_v20 = vrot.slane %v3634_v3, 6  ;;  %vm3820_vm2 = vcmask 1047556  }
 0xedb   :  { %13401 = vst [vmem:[#allocation30_spill] sm:$0xff] %v10677_v20 }
 0xee0   :  { %3705 = vrot.lane.b32.xlu1 %v10677_v20, %s8625_s29  ;;  %4316 = vrot.lane.b32.xlu0 %v10656_v24, %s8626_s0 }
 0xee1   :  { %3771 = vrot.lane.b32.xlu2 %v10656_v24, %s8627_s9 }
 0xee8   :  { %3677 = vrot.lane.b32.xlu1 %v10686_v6, %s8621_s26  ;;  %3653 = vrot.lane.b32.xlu0 %v10686_v6, %s8622_s8 }
 0xee9   :  { %3657 = vrot.lane.b32.xlu2 %v10677_v20, %s8622_s8 }
 0xef0   :  { %3679 = vrot.lane.b32.xlu1 %v10695_v48, %s8621_s26  ;;  %3655 = vrot.lane.b32.xlu0 %v10695_v48, %s8622_s8 }
 0xef1   :  { %3681 = vrot.lane.b32.xlu2 %v10677_v20, %s8621_s26 }
 0xef8   :  { %3749 = vrot.lane.b32.xlu1 %v10686_v6, %s8624_s3  ;;  %3701 = vrot.lane.b32.xlu0 %v10686_v6, %s8625_s29 }
 0xef9   :  { %3753 = vrot.lane.b32.xlu2 %v10677_v20, %s8624_s3 }
 0xf00   :  { %3751 = vrot.lane.b32.xlu1 %v10695_v48, %s8624_s3  ;;  %3703 = vrot.lane.b32.xlu0 %v10695_v48, %s8625_s29 }
 0xf01   :  { %3725 = vrot.lane.b32.xlu2 %v10686_v6, %s8619_s4 }
 0xf08   :  { %3777 = vrot.lane.b32.xlu1 %v10677_v20, %s8627_s9  ;;  %3729 = vrot.lane.b32.xlu0 %v10677_v20, %s8619_s4 }
 0xf09   :  { %3727 = vrot.lane.b32.xlu2 %v10695_v48, %s8619_s4 }
 0xf10   :  { %4364 = vrot.lane.b32.xlu1 %v10677_v20, %s8626_s0  ;;  %3801 = vrot.lane.b32.xlu0 %v10677_v20, %s8623_s12 }
 0xf11   :  { %3797 = vrot.lane.b32.xlu2 %v10686_v6, %s8623_s12 }
 0xf18   :  { %4348 = vrot.lane.b32.xlu1 %v10695_v48, %s8626_s0  ;;  %3773 = vrot.lane.b32.xlu0 %v10686_v6, %s8627_s9 }
 0xf19   :  { %3799 = vrot.lane.b32.xlu2 %v10695_v48, %s8623_s12 }
 0xf20   :  { %3659 = vrot.lane.b32.xlu1 %v10665_v15, %s8622_s8  ;;  %3775 = vrot.lane.b32.xlu0 %v10695_v48, %s8627_s9 }
 0xf21   :  { %4332 = vrot.lane.b32.xlu2 %v10686_v6, %s8626_s0 }
 0xf28   :  { %3707 = vrot.lane.b32.xlu1 %v10665_v15, %s8625_s29  ;;  %3731 = vrot.lane.b32.xlu0 %v10665_v15, %s8619_s4 }
 0xf29   :  { %3683 = vrot.lane.b32.xlu2 %v10665_v15, %s8621_s26 }
 0xf2b   :  { %v10745_v42 = vpop.permute.xlu2 %3651 }
 0xf2c   :  { %13405 = vst [vmem:[#allocation24_spill] sm:$0xff] %v10745_v42  ;;  %v3819_v31 = vrot.slane %v10745_v42, 4 }
 0xf2e   :  { %v3821_v57 = vsel %vm3820_vm2, %v3819_v31, %v10656_v24 }
 0xf2f   :  { %v3825_v19 = vperm.slane %v3821_v57, %v10806_v61 }
 0xf30   :  { %3779 = vrot.lane.b32.xlu1 %v10665_v15, %s8627_s9  ;;  %3803 = vrot.lane.b32.xlu0 %v10665_v15, %s8623_s12 }
 0xf31   :  { %3755 = vrot.lane.b32.xlu2 %v10665_v15, %s8624_s3  ;;  %v3826_v5 = vrot.slane %v3825_v19, 4 }
 0xf33   :  { %v10753_v16 = vpop.permute.xlu2 %3699  ;;  %v3827_v63 = vsel %vm3820_vm2, 0.0, %v3826_v5 }
 0xf34   :  { %13406 = vst [vmem:[#allocation19_spill] sm:$0xff] %v10753_v16 }
 0xf38   :  { %3661 = vrot.lane.b32.xlu1 %v10755_v56, %s8622_s8  ;;  %3665 = vrot.lane.b32.xlu0 %v10757_v39, %s8622_s8 }
 0xf39   :  { %4380 = vrot.lane.b32.xlu2 %v10665_v15, %s8626_s0 }
 0xf3b   :  { %v10765_v45 = vpop.permute.xlu2 %3771 }
 0xf3c   :  { %13407 = vst [vmem:[#allocation42_spill] sm:$0xff] %v10765_v45 }
 0xf40   :  { %3689 = vrot.lane.b32.xlu1 %v10757_v39, %s8621_s26  ;;  %3713 = vrot.lane.b32.xlu0 %v10757_v39, %s8625_s29 }
 0xf41   :  { %3663 = vrot.lane.b32.xlu2 %v10767_v2, %s8622_s8 }
 0xf42   :  { %v10775_v18 = vpop.permute.xlu1 %3723  ;;  %v10777_v21 = vpop.permute.xlu0 %3675 }
 0xf43   :  { %13408 = vst [vmem:[#allocation33_spill] sm:$0xff] %v10775_v18  ;;  %v10779_v22 = vpop.permute.xlu2 %3657 }
 0xf44   :  { %13409 = vst [vmem:[#allocation37_spill] sm:$0xff] %v10777_v21  ;;  %v3916_v50 = vrot.slane %v10779_v22, 4 }
 0xf45   :  { %13410 = vst [vmem:[#allocation32_spill] sm:$0xff] %v10779_v22 }
 0xf46   :  { %v3917_v29 = vsel %vm3820_vm2, %v3916_v50, %v10677_v20 }
 0xf47   :  { %v3921_v44 = vperm.slane %v3917_v29, %v10806_v61 }
 0xf48   :  { %3761 = vrot.lane.b32.xlu1 %v10757_v39, %s8624_s3  ;;  %3685 = vrot.lane.b32.xlu0 %v10755_v56, %s8621_s26 }
 0xf49   :  { %3709 = vrot.lane.b32.xlu2 %v10755_v56, %s8625_s29  ;;  %v3922_v58 = vrot.slane %v3921_v44, 4 }
 0xf4a   :  { %v10787_v53 = vpop.permute.xlu1 %3795  ;;  %v10789_v13 = vpop.permute.xlu0 %3747 }
 0xf4b   :  { %13411 = vst [vmem:[#allocation38_spill] sm:$0xff] %v10787_v53  ;;  %v10791_v10 = vpop.permute.xlu2 %3681  ;;  %v3923_v12 = vsel %vm3820_vm2, 0.0, %v3922_v58 }
 0xf4c   :  { %13412 = vst [vmem:[#allocation44_spill] sm:$0xff] %v10789_v13  ;;  %v4196_v38 = vrot.slane %v3923_v12, 4 }
 0xf4d   :  { %13413 = vst [vmem:[#allocation20_spill] sm:$0xff] %v10791_v10 }
 0xf50   :  { %3733 = vrot.lane.b32.xlu1 %v10755_v56, %s8619_s4  ;;  %3687 = vrot.lane.b32.xlu0 %v10767_v2, %s8621_s26 }
 0xf51   :  { %3711 = vrot.lane.b32.xlu2 %v10767_v2, %s8625_s29 }
 0xf52   :  { %v10799_v47 = vpop.permute.xlu1 %3705  ;;  %v10801_v34 = vpop.permute.xlu0 %4316 }
 0xf53   :  { %13414 = vst [vmem:[#allocation43_spill] sm:$0xff] %v10799_v47  ;;  %v10803_v27 = vpop.permute.xlu2 %3753 }
 0xf54   :  { %13415 = vst [vmem:[#allocation40_spill] sm:$0xff] %v10801_v34  ;;  %v8006_v12 = vrot.slane %v10803_v27, 6 }
 0xf58   :  { %3735 = vrot.lane.b32.xlu1 %v10767_v2, %s8619_s4  ;;  %3757 = vrot.lane.b32.xlu0 %v10755_v56, %s8624_s3 }
 0xf59   :  { %3737 = vrot.lane.b32.xlu2 %v10757_v39, %s8619_s4  ;;  %s8630_s4 = smov 24  }
 0xf5a   :  { %v10817_v28 = vpop.permute.xlu1 %3677  ;;  %v10819_v7 = vpop.permute.xlu0 %3653 }
 0xf5b   :  { %13416 = vst [vmem:[#allocation27_spill] sm:$0xff] %v10817_v28  ;;  %v3852_v23 = vrot.slane %v10819_v7, 4  ;;  %v10822_v30 = vpop.permute.xlu2 %3725 }
 0xf5c   :  { %13417 = vst [vmem:[#allocation52_spill] sm:$0xff] %v10819_v7 }
 0xf5d   :  { %13418 = vst [vmem:[#allocation49_spill] sm:$0xff] %v10822_v30  ;;  %v3853_v26 = vsel %vm3820_vm2, %v3852_v23, %v10686_v6 }
 0xf5e   :  { %v3857_v54 = vperm.slane %v3853_v26, %v10806_v61 }
 0xf60   :  { %v3858_v32 = vrot.slane %v3857_v54, 4  ;;  %3805 = vrot.lane.b32.xlu1 %v10755_v56, %s8623_s12  ;;  %3759 = vrot.lane.b32.xlu0 %v10767_v2, %s8624_s3 }
 0xf61   :  { %3809 = vrot.lane.b32.xlu2 %v10757_v39, %s8623_s12 }
 0xf62   :  { %v3859_v25 = vsel %vm3820_vm2, 0.0, %v3858_v32  ;;  %v4076_v59 = vsel %vm3820_vm2, %v3858_v32, %v3825_v19  ;;  %v10839_v11 = vpop.permute.xlu1 %3679  ;;  %v10841_v62 = vpop.permute.xlu0 %3655  ;;  %v3932_v32 = vrot.slane %v10803_v27, 4 }
 0xf63   :  { %13419 = vst [vmem:[#allocation48_spill] sm:$0xff] %v10841_v62  ;;  %v4080_v14 = vperm.slane %v4076_v59, %v10806_v61  ;;  %v4188_v37 = vrot.slane %v3859_v25, 4  ;;  %v10844_v51 = vpop.permute.xlu2 %3727  ;;  %v3884_v43 = vrot.slane %v10841_v62, 4  ;;  %v5038_v54 = vrot.slane %v10839_v11, 2 }
 0xf65   :  { %v4081_v40 = vrot.slane %v4080_v14, 4  ;;  %v10849_v35 = vsel %vm3820_vm2, %v4188_v37, %v3827_v63  ;;  %5692 = vst [vmem:[#allocation1] ss:$4 sm:$0xff] %v4080_v14  ;;  %v3885_v41 = vsel %vm3820_vm2, %v3884_v43, %v10695_v48  ;;  %v5070_v14 = vrot.slane %v10844_v51, 2 }
 0xf66   :  { %v3889_v49 = vperm.slane %v3885_v41, %v10806_v61 }
 0xf67   :  { %v4082_v33 = vsel %vm3820_vm2, 0.0, %v4081_v40 }
 0xf68   :  { %5701 = vst [vmem:[#allocation1 + $0x20] ss:$4 sm:$0xff] %v4082_v33  ;;  %3807 = vrot.lane.b32.xlu1 %v10767_v2, %s8623_s12  ;;  %3785 = vrot.lane.b32.xlu0 %v10757_v39, %s8627_s9  ;;  %v3890_v60 = vrot.slane %v3889_v49, 4  ;;  %v4083_v17 = vsel %vm3820_vm2, %v3922_v58, %v3889_v49 }
 0xf69   :  { %3781 = vrot.lane.b32.xlu2 %v10755_v56, %s8627_s9  ;;  %v4087_v46 = vperm.slane %v4083_v17, %v10806_v61 }
 0xf6a   :  { %v10864_v52 = vpop.permute.xlu1 %3749  ;;  %v10866_v8 = vpop.permute.xlu0 %3701  ;;  %v3891_v36 = vsel %vm3820_vm2, 0.0, %v3890_v60 }
 0xf6b   :  { %13420 = vst [vmem:[#allocation45_spill] sm:$0xff] %v10864_v52  ;;  %v10869_v0 = vpop.permute.xlu2 %3797  ;;  %v4088_v3 = vrot.slane %v4087_v46, 4  ;;  %v10872_v1 = vsel %vm3820_vm2, %v4196_v38, %v3891_v36 }
 0xf6c   :  { %13421 = vst [vmem:[#allocation47_spill] sm:$0xff] %v10866_v8 }
 0xf6d   :  { %13422 = vst [vmem:[#allocation46_spill] sm:$0xff] %v10869_v0  ;;  %v4089_v9 = vsel %vm3820_vm2, 0.0, %v4088_v3 }
 0xf6e   :  { %5694 = vst [vmem:[#allocation1 + $0x1] ss:$4 sm:$0xff] %v4087_v46 }
 0xf6f   :  { %5703 = vst [vmem:[#allocation1 + $0x21] ss:$4 sm:$0xff] %v4089_v9 }
 0xf70   :  { %4396 = vrot.lane.b32.xlu0 %v10755_v56, %s8626_s0  ;;  %4318 = vrot.lane.b32.xlu1 %v10745_v42, %s8626_s0 }
 0xf71   :  { %3783 = vrot.lane.b32.xlu2 %v10767_v2, %s8627_s9 }
 0xf72   :  { %v10881_v4 = vpop.permute.xlu1 %3751  ;;  %v10883_v55 = vpop.permute.xlu0 %3703 }
 0xf73   :  { %v10885_v31 = vpop.permute.xlu2 %3799  ;;  %v3900_v50 = vrot.slane %v10881_v4, 4  ;;  %v3892_v26 = vrot.slane %v10883_v55, 4  ;;  %v8001_v44 = vrot.slane %v10883_v55, 6  ;;  %v8002_v59 = vrot.slane %v10881_v4, 6 }
 0xf74   :  { %13423 = vst [vmem:[#allocation51_spill] sm:$0xff] %v10885_v31 }
 0xf75   :  { %v3901_v29 = vsel %vm3820_vm2, %v3900_v50, %v10844_v51  ;;  %v10907_v5 = vsel %vm3820_vm2, %v3892_v26, %v10839_v11  ;;  %v10913_v58 = vsel %vm3820_vm2, %v8001_v44, %v5038_v54  ;;  %v5213_v49 = vsel %vm3820_vm2, %v8002_v59, %v5070_v14 }
 0xf76   :  { %v3905_v25 = vperm.slane %v3901_v29, %v10806_v61  ;;  %13425 = vst [vmem:[#allocation59_spill] sm:$0xff] %v10913_v58  ;;  %v5217_v36 = vperm.slane %v5213_v49, %v10806_v61  ;;  %v3828_v58 = vrot.slane %v10753_v16, 4 }
 0xf78   :  { %4412 = vrot.lane.b32.xlu0 %v10767_v2, %s8626_s0  ;;  %4320 = vrot.lane.b32.xlu1 %v10777_v21, %s8626_s0  ;;  %v3906_v33 = vrot.slane %v3905_v25, 4 }
 0xf79   :  { %4428 = vrot.lane.b32.xlu2 %v10757_v39, %s8626_s0 }
 0xf7a   :  { %v10894_v57 = vpop.permute.xlu1 %3777  ;;  %v10896_v23 = vpop.permute.xlu0 %3729  ;;  %v3907_v50 = vsel %vm3820_vm2, 0.0, %v3906_v33 }
 0xf7b   :  { %v10898_v19 = vpop.permute.xlu2 %4332  ;;  %v3933_v37 = vsel %vm3820_vm2, %v3932_v32, %v10896_v23  ;;  %v5071_v60 = vrot.slane %v10896_v23, 2  ;;  %v5103_v26 = vrot.slane %v10894_v57, 2 }
 0xf7c   :  { %13424 = vst [vmem:[#allocation50_spill] sm:$0xff] %v10898_v19  ;;  %v3937_v40 = vperm.slane %v3933_v37, %v10806_v61  ;;  %v5218_v37 = vrot.slane %v5217_v36, 4 }
 0xf7d   :  { %v5245_v46 = vsel %vm3820_vm2, %v8006_v12, %v5071_v60 }
 0xf7e   :  { %v3938_v17 = vrot.slane %v3937_v40, 4  ;;  %v5249_v54 = vperm.slane %v5245_v46, %v10806_v61 }
 0xf80   :  { %4326 = vrot.lane.b32.xlu0 %v10789_v13, %s8626_s0  ;;  %4330 = vrot.lane.b32.xlu1 %v10787_v53, %s8626_s0  ;;  %v3939_v3 = vsel %vm3820_vm2, 0.0, %v3938_v17  ;;  %v10939_v9 = vsel %vm3820_vm2, %v3938_v17, %v3905_v25  ;;  %v5250_v40 = vrot.slane %v5249_v54, 4 }
 0xf81   :  { %4322 = vrot.lane.b32.xlu2 %v10753_v16, %s8626_s0  ;;  %v4260_v29 = vrot.slane %v3939_v3, 4 }
 0xf82   :  { %v10924_v63 = vpop.permute.xlu1 %4364  ;;  %v10926_v43 = vpop.permute.xlu0 %3801  ;;  %v5251_v49 = vsel %vm3820_vm2, 0.0, %v5250_v40  ;;  %v10969_v60 = vsel %vm3820_vm2, %v5250_v40, %v5217_v36 }
 0xf83   :  { %13426 = vst [vmem:[#allocation26_spill] sm:$0xff] %v10924_v63  ;;  %v10929_v41 = vpop.permute.xlu2 %3683  ;;  %v3940_v38 = vrot.slane %v10926_v43, 4  ;;  %v8007_v32 = vrot.slane %v10926_v43, 6  ;;  %v10956_v25 = vsel %vm3820_vm2, %v4260_v29, %v3907_v50  ;;  %v5572_v17 = vrot.slane %v5251_v49, 4 }
 0xf84   :  { %13427 = vst [vmem:[#allocation56_spill] sm:$0xff] %v10956_v25 }
 0xf85   :  { %v10950_v44 = vsel %vm3820_vm2, %v3940_v38, %v10894_v57  ;;  %v10963_v12 = vsel %vm3820_vm2, %v8007_v32, %v5103_v26  ;;  %13431 = vst [vmem:[#allocation58_spill] sm:$0xff] %v10969_v60  ;;  %v5219_v38 = vsel %vm3820_vm2, 0.0, %v5218_v37  ;;  %v3924_v32 = vrot.slane %v10799_v47, 4 }
 0xf86   :  { %13430 = vst [vmem:[#allocation54_spill] sm:$0xff] %v10963_v12  ;;  %v10973_v46 = vsel %vm3820_vm2, %v5572_v17, %v5219_v38  ;;  %v3860_v38 = vrot.slane %v10866_v8, 4 }
 0xf87   :  { %13432 = vst [vmem:[#allocation57_spill] sm:$0xff] %v10973_v46 }
 0xf88   :  { %4328 = vrot.lane.b32.xlu0 %v10765_v45, %s8626_s0  ;;  %4366 = vrot.lane.b32.xlu1 %v10779_v22, %s8626_s0 }
 0xf89   :  { %4324 = vrot.lane.b32.xlu2 %v10775_v18, %s8626_s0 }
 0xf8a   :  { %v10958_v59 = vpop.permute.xlu1 %4348  ;;  %v10960_v14 = vpop.permute.xlu0 %3773 }
 0xf8b   :  { %13428 = vst [vmem:[#allocation53_spill] sm:$0xff] %v10958_v59  ;;  %v10965_v33 = vpop.permute.xlu2 %3755 }
 0xf8c   :  { %13429 = vst [vmem:[#allocation55_spill] sm:$0xff] %v10960_v14  ;;  %v8010_v37 = vrot.slane %v10965_v33, 6 }
 0xf90   :  { %4334 = vrot.lane.b32.xlu0 %v10819_v7, %s8626_s0  ;;  %4338 = vrot.lane.b32.xlu1 %v10866_v8, %s8626_s0  ;;  %v3829_v8 = vsel %vm3820_vm2, %v3828_v58, %v10777_v21  ;;  %v5010_v58 = vrot.slane %v10767_v2, 2 }
 0xf91   :  { %4370 = vrot.lane.b32.xlu2 %v10799_v47, %s8626_s0  ;;  %v3925_v47 = vsel %vm3820_vm2, %v3924_v32, %v10791_v10 }
 0xf92   :  { %v10981_v3 = vpop.permute.xlu1 %3659  ;;  %v10983_v50 = vpop.permute.xlu0 %3775 }
 0xf93   :  { %v10985_v36 = vpop.permute.xlu2 %4380  ;;  %v8008_v46 = vrot.slane %v10981_v3, 6 }
 0xf94   :  { %13433 = vst [vmem:[#allocation60_spill] sm:$0xff] %v10985_v36 }
 0xf98   :  { %4350 = vrot.lane.b32.xlu0 %v10841_v62, %s8626_s0  ;;  %4354 = vrot.lane.b32.xlu1 %v10883_v55, %s8626_s0  ;;  %v3948_v55 = vrot.slane %v10981_v3, 4  ;;  %v3861_v62 = vsel %vm3820_vm2, %v3860_v38, %v10817_v28 }
 0xf99   :  { %4368 = vrot.lane.b32.xlu2 %v10791_v10, %s8626_s0  ;;  %v3865_v32 = vperm.slane %v3861_v62, %v10806_v61  ;;  %v3836_v62 = vrot.slane %v10789_v13, 4 }
 0xf9a   :  { %v10993_v29 = vpop.permute.xlu1 %3707  ;;  %v10995_v26 = vpop.permute.xlu0 %3731  ;;  %v3949_v48 = vsel %vm3820_vm2, %v3948_v55, %v10665_v15 }
 0xf9b   :  { %v10997_v54 = vpop.permute.xlu2 %3663  ;;  %v5072_v40 = vrot.slane %v10995_v26, 2  ;;  %v3953_v16 = vperm.slane %v3949_v48, %v10806_v61  ;;  %v5011_v48 = vrot.slane %v10757_v39, 2 }
 0xf9c   :  { %v8016_v42 = vrot.slane %v10997_v54, 6 }
 0xf9d   :  { %v11016_v12 = vsel %vm3820_vm2, %v8010_v37, %v5072_v40  ;;  %v3929_v40 = vperm.slane %v3925_v47, %v10806_v61  ;;  %v5009_v47 = vrot.slane %v10755_v56, 2 }
 0xf9e   :  { %v5325_v22 = vsel %vm3820_vm2, %v8016_v42, %v5010_v58  ;;  %v11076_v58 = vrot.slane %v3865_v32, 4 }
 0xfa0   :  { %4336 = vrot.lane.b32.xlu0 %v10817_v28, %s8626_s0  ;;  %4340 = vrot.lane.b32.xlu1 %v10822_v30, %s8626_s0 }
 0xfa1   :  { %4352 = vrot.lane.b32.xlu2 %v10839_v11, %s8626_s0  ;;  %v5008_v11 = vrot.slane %v10665_v15, 2  ;;  %v11039_v15 = vperm.slane %v3829_v8, %v10806_v61 }
 0xfa2   :  { %v11009_v49 = vpop.permute.xlu1 %3779  ;;  %v11011_v17 = vpop.permute.xlu0 %3803 }
 0xfa3   :  { %v11018_v60 = vpop.permute.xlu2 %3709  ;;  %v5261_v37 = vsel %vm3820_vm2, %v8008_v46, %v5008_v11  ;;  %v3868_v46 = vrot.slane %v10864_v52, 4 }
 0xfa5   :  { %v3869_v36 = vsel %vm3820_vm2, %v3868_v46, %v10822_v30 }
 0xfa8   :  { %4374 = vrot.lane.b32.xlu0 %v10803_v27, %s8626_s0  ;;  %4378 = vrot.lane.b32.xlu1 %v10926_v43, %s8626_s0  ;;  %v5265_v27 = vperm.slane %v5261_v37, %v10806_v61  ;;  %v4012_v43 = vrot.slane %v10997_v54, 4  ;;  %v3954_v37 = vrot.slane %v3953_v16, 4 }
 0xfa9   :  { %4342 = vrot.lane.b32.xlu2 %v10864_v52, %s8626_s0  ;;  %v11061_v52 = vrot.slane %v3929_v40, 4 }
 0xfaa   :  { %v11050_v55 = vpop.permute.xlu1 %3661  ;;  %v11052_v8 = vpop.permute.xlu0 %3665  ;;  %v4013_v40 = vsel %vm3820_vm2, %v4012_v43, %v10767_v2 }
 0xfab   :  { %v3980_v38 = vrot.slane %v11050_v55, 4  ;;  %v8012_v11 = vrot.slane %v11050_v55, 6  ;;  %v4044_v21 = vrot.slane %v11052_v8, 4  ;;  %v8020_v10 = vrot.slane %v11052_v8, 6  ;;  %v11058_v28 = vpop.permute.xlu2 %3711 }
 0xfad   :  { %v3981_v6 = vsel %vm3820_vm2, %v3980_v38, %v10755_v56  ;;  %v5293_v20 = vsel %vm3820_vm2, %v8012_v11, %v5009_v47  ;;  %v4045_v7 = vsel %vm3820_vm2, %v4044_v21, %v10757_v39  ;;  %v5357_v24 = vsel %vm3820_vm2, %v8020_v10, %v5011_v48 }
 0xfae   :  { %v3985_v13 = vperm.slane %v3981_v6, %v10806_v61  ;;  %v5297_v42 = vperm.slane %v5293_v20, %v10806_v61  ;;  %v5266_v56 = vrot.slane %v5265_v27, 4  ;;  %v4049_v47 = vperm.slane %v4045_v7, %v10806_v61 }
 0xfaf   :  { %v5361_v38 = vperm.slane %v5357_v24, %v10806_v61  ;;  %v11082_v39 = vperm.slane %v10907_v5, %v10806_v61  ;;  %v5329_v21 = vperm.slane %v5325_v22, %v10806_v61  ;;  %v3955_v20 = vsel %vm3820_vm2, 0.0, %v3954_v37 }
 0xfb0   :  { %v3986_v10 = vrot.slane %v3985_v13, 4  ;;  %v5298_v48 = vrot.slane %v5297_v42, 4  ;;  %4372 = vrot.lane.b32.xlu0 %v10896_v23, %s8626_s0  ;;  %4376 = vrot.lane.b32.xlu1 %v10894_v57, %s8626_s0  ;;  %v11091_v6 = vperm.slane %v4013_v40, %v10806_v61  ;;  %v11093_v24 = vrot.slane %v4049_v47, 4 }
 0xfb1   :  { %v5362_v2 = vrot.slane %v5361_v38, 4  ;;  %4358 = vrot.lane.b32.xlu2 %v10881_v4, %s8626_s0  ;;  %v5267_v46 = vsel %vm3820_vm2, 0.0, %v5266_v56  ;;  %v5330_v37 = vrot.slane %v5329_v21, 4  ;;  %v3873_v42 = vperm.slane %v3869_v36, %v10806_v61 }
 0xfb2   :  { %v3987_v22 = vsel %vm3820_vm2, 0.0, %v3986_v10  ;;  %v4090_v13 = vsel %vm3820_vm2, %v3986_v10, %v3953_v16  ;;  %v5299_v7 = vsel %vm3820_vm2, 0.0, %v5298_v48  ;;  %v11101_v23 = vsel %vm3820_vm2, %v5298_v48, %v5265_v27  ;;  %v11103_v57 = vpop.permute.xlu1 %3689  ;;  %v11105_v5 = vpop.permute.xlu0 %3713 }
 0xfb3   :  { %13434 = vst [vmem:[#allocation36_spill] sm:$0xff] %v11101_v23  ;;  %v4094_v32 = vperm.slane %v4090_v13, %v10806_v61  ;;  %v4204_v43 = vrot.slane %v3987_v22, 4  ;;  %v5516_v11 = vrot.slane %v5299_v7, 4  ;;  %v11109_v4 = vpop.permute.xlu2 %3737  ;;  %v4097_v16 = vsel %vm3820_vm2, %v11093_v24, %v11091_v6 }
 0xfb4   :  { %v5363_v27 = vsel %vm3820_vm2, 0.0, %v5362_v2  ;;  %v11116_v40 = vsel %vm3820_vm2, %v5362_v2, %v5329_v21  ;;  %v4104_v10 = vsel %vm3820_vm2, %v11076_v58, %v11039_v15  ;;  %v4101_v48 = vperm.slane %v4097_v16, %v10806_v61 }
 0xfb5   :  { %13435 = vst [vmem:[#allocation65_spill] sm:$0xff] %v11116_v40  ;;  %v4095_v47 = vrot.slane %v4094_v32, 4  ;;  %v11120_v56 = vsel %vm3820_vm2, %v4204_v43, %v3955_v20  ;;  %v11123_v38 = vsel %vm3820_vm2, %v5516_v11, %v5267_v46  ;;  %v4111_v21 = vsel %vm3820_vm2, %v11061_v52, %v11082_v39 }
 0xfb6   :  { %13436 = vst [vmem:[#allocation18_spill] sm:$0xff] %v11123_v38  ;;  %v5524_v2 = vrot.slane %v5363_v27, 4  ;;  %v3837_v20 = vsel %vm3820_vm2, %v3836_v62, %v10775_v18  ;;  %v8009_v22 = vrot.slane %v10993_v29, 6  ;;  %v5331_v13 = vsel %vm3820_vm2, 0.0, %v5330_v37 }
 0xfb7   :  { %5696 = vst [vmem:[#allocation1 + $0x2] ss:$4 sm:$0xff] %v4094_v32  ;;  %v4096_v36 = vsel %vm3820_vm2, 0.0, %v4095_v47  ;;  %v4102_v7 = vrot.slane %v4101_v48, 4  ;;  %v11141_v46 = vrot.slane %v3873_v42, 4  ;;  %v4108_v32 = vperm.slane %v4104_v10, %v10806_v61 }
 0xfb8   :  { %5705 = vst [vmem:[#allocation1 + $0x22] ss:$4 sm:$0xff] %v4096_v36  ;;  %4356 = vrot.lane.b32.xlu0 %v10844_v51, %s8626_s0  ;;  %4390 = vrot.lane.b32.xlu1 %v10965_v33, %s8626_s0  ;;  %v11145_v43 = vsel %vm3820_vm2, %v5524_v2, %v5331_v13  ;;  %v5043_v62 = vrot.slane %v11103_v57, 2  ;;  %v4115_v11 = vperm.slane %v4111_v21, %v10806_v61  ;;  %v5040_v51 = vrot.slane %v10929_v41, 2 }
 0xfb9   :  { %13437 = vst [vmem:[#allocation64_spill] sm:$0xff] %v11145_v43  ;;  %4344 = vrot.lane.b32.xlu2 %v10960_v14, %s8626_s0  ;;  %v3956_v37 = vrot.slane %v10993_v29, 4  ;;  %v4103_v16 = vsel %vm3820_vm2, 0.0, %v4102_v7  ;;  %v3988_v47 = vrot.slane %v11018_v60, 4  ;;  %v8021_v10 = vrot.slane %v11105_v5, 6 }
 0xfba   :  { %5698 = vst [vmem:[#allocation1 + $0x3] ss:$4 sm:$0xff] %v4101_v48  ;;  %v11154_v27 = vpop.permute.xlu1 %3761  ;;  %v11156_v42 = vpop.permute.xlu0 %3685  ;;  %v11163_v36 = vperm.slane %v3837_v20, %v10806_v61  ;;  %v5269_v21 = vsel %vm3820_vm2, %v8009_v22, %v5040_v51  ;;  %v4052_v13 = vrot.slane %v11105_v5, 4  ;;  %v5075_v43 = vrot.slane %v11109_v4, 2 }
 0xfbb   :  { %5707 = vst [vmem:[#allocation1 + $0x23] ss:$4 sm:$0xff] %v4103_v16  ;;  %v11160_v48 = vpop.permute.xlu2 %3809  ;;  %v8022_v2 = vrot.slane %v11154_v27, 6  ;;  %v5365_v7 = vsel %vm3820_vm2, %v8021_v10, %v5043_v62  ;;  %v3989_v16 = vsel %vm3820_vm2, %v3988_v47, %v11156_v42  ;;  %v4109_v18 = vrot.slane %v4108_v32, 4 }
 0xfbc   :  { %v4132_v38 = vsel %vm3820_vm2, %v11141_v46, %v11163_v36  ;;  %v4116_v20 = vrot.slane %v4115_v11, 4  ;;  %v3957_v22 = vsel %vm3820_vm2, %v3956_v37, %v10929_v41  ;;  %v8013_v51 = vrot.slane %v11018_v60, 6 }
 0xfbd   :  { %v11179_v30 = vsel %vm3820_vm2, %v8022_v2, %v5075_v43  ;;  %v3993_v62 = vperm.slane %v3989_v16, %v10806_v61  ;;  %v5041_v10 = vrot.slane %v11156_v42, 2  ;;  %v5273_v47 = vperm.slane %v5269_v21, %v10806_v61 }
 0xfbe   :  { %v4053_v37 = vsel %vm3820_vm2, %v4052_v13, %v11103_v57  ;;  %v5369_v43 = vperm.slane %v5365_v7, %v10806_v61  ;;  %v11199_v21 = vperm.slane %v4132_v38, %v10806_v61  ;;  %v4110_v40 = vsel %vm3820_vm2, 0.0, %v4109_v18 }
 0xfbf   :  { %v11193_v2 = vrot.slane %v3993_v62, 4  ;;  %v5301_v16 = vsel %vm3820_vm2, %v8013_v51, %v5041_v10  ;;  %v4117_v51 = vsel %vm3820_vm2, 0.0, %v4116_v20  ;;  %v4020_v38 = vrot.slane %v11058_v28, 4 }
 0xfc0   :  { %4346 = vrot.lane.b32.xlu0 %v10869_v0, %s8626_s0  ;;  %4388 = vrot.lane.b32.xlu1 %v10995_v26, %s8626_s0  ;;  %v5305_v13 = vperm.slane %v5301_v16, %v10806_v61  ;;  %v4057_v18 = vperm.slane %v4053_v37, %v10806_v61  ;;  %v5370_v10 = vrot.slane %v5369_v43, 4  ;;  %v4137_v20 = vrot.slane %v11199_v21, 4 }
 0xfc1   :  { %v11188_v23 = vld.sshfl [vmem:[#allocation1] sm:$0xff pattern:$0x73625140]  ;;  %4382 = vrot.lane.b32.xlu2 %v10981_v3, %s8626_s0  ;;  %v11228_v37 = vperm.slane %v10939_v9, %v10806_v61 }
 0xfc2   :  { %13438 = vst [vmem:[#allocation63_spill] sm:$0xff] %v11188_v23  ;;  %v11203_v23 = vperm.slane %v3957_v22, %v10806_v61  ;;  %v11205_v59 = vld.sshfl [vmem:[#allocation1 + $0x20] sm:$0xff pattern:$0x73625140]  ;;  %v11208_v7 = vpop.permute.xlu1 %3733  ;;  %v11210_v62 = vpop.permute.xlu0 %3687  ;;  %v5274_v22 = vrot.slane %v5273_v47, 4 }
 0xfc3   :  { %5709 = vst [vmem:[#allocation1] ss:$4 sm:$0xff] %v4108_v32  ;;  %v11213_v3 = vpop.permute.xlu2 %3781  ;;  %v5042_v19 = vrot.slane %v11210_v62, 2 }
 0xfc4   :  { %13439 = vst [vmem:[#allocation62_spill] sm:$0xff] %v11205_v59  ;;  %v4118_v32 = vsel %vm3820_vm2, %v11193_v2, %v11203_v23  ;;  %v5306_v59 = vrot.slane %v5305_v13, 4  ;;  %v5275_v9 = vsel %vm3820_vm2, 0.0, %v5274_v22 }
 0xfc5   :  { %5714 = vst [vmem:[#allocation1 + $0x20] ss:$4 sm:$0xff] %v4110_v40  ;;  %v4122_v16 = vperm.slane %v4118_v32, %v10806_v61  ;;  %v8017_v40 = vrot.slane %v11058_v28, 6 }
 0xfc6   :  { %5715 = vst [vmem:[#allocation1 + $0x21] ss:$4 sm:$0xff] %v4117_v51  ;;  %v4021_v51 = vsel %vm3820_vm2, %v4020_v38, %v11210_v62  ;;  %v5307_v43 = vsel %vm3820_vm2, 0.0, %v5306_v59  ;;  %v11232_v32 = vsel %vm3820_vm2, %v5306_v59, %v5273_v47  ;;  %v5371_v59 = vsel %vm3820_vm2, 0.0, %v5370_v10 }
 0xfc7   :  { %5710 = vst [vmem:[#allocation1 + $0x1] ss:$4 sm:$0xff] %v4115_v11  ;;  %v4123_v63 = vrot.slane %v4122_v16, 4  ;;  %v11234_v11 = vrot.slane %v4057_v18, 4  ;;  %v5548_v13 = vrot.slane %v5307_v43, 4  ;;  %v11237_v34 = vperm.slane %v4021_v51, %v10806_v61 }
 0xfc8   :  { %13440 = vst [vmem:[#allocation21_spill] sm:$0xff] %v11232_v32  ;;  %v5333_v38 = vsel %vm3820_vm2, %v8017_v40, %v5042_v19  ;;  %4362 = vrot.lane.b32.xlu0 %v10885_v31, %s8626_s0  ;;  %4414 = vrot.lane.b32.xlu1 %v10997_v54, %s8626_s0  ;;  %v3964_v32 = vrot.slane %v10965_v33, 4  ;;  %v5281_v40 = vperm.slane %v11016_v12, %v10806_v61  ;;  %v5073_v33 = vrot.slane %v11208_v7, 2 }
 0xfc9   :  { %5711 = vst [vmem:[#allocation1 + $0x2] ss:$4 sm:$0xff] %v4122_v16  ;;  %v4124_v47 = vsel %vm3820_vm2, 0.0, %v4123_v63  ;;  %v5337_v18 = vperm.slane %v5333_v38, %v10806_v61  ;;  %4394 = vrot.lane.b32.xlu2 %v11011_v17, %s8626_s0  ;;  %v11251_v16 = vsel %vm3820_vm2, %v5548_v13, %v5275_v9  ;;  %v4125_v19 = vsel %vm3820_vm2, %v11234_v11, %v11237_v34 }
 0xfca   :  { %13441 = vst [vmem:[#allocation67_spill] sm:$0xff] %v11234_v11  ;;  %v11256_v54 = vpop.permute.xlu1 %3735  ;;  %v11258_v22 = vpop.permute.xlu0 %3757  ;;  %v3876_v63 = vrot.slane %v10869_v0, 4  ;;  %v4129_v51 = vperm.slane %v4125_v19, %v10806_v61  ;;  %v4138_v13 = vsel %vm3820_vm2, 0.0, %v4137_v20  ;;  %v4144_v9 = vrot.slane %v11228_v37, 4 }
 0xfcb   :  { %13442 = vst [vmem:[#allocation61_spill] sm:$0xff] %v11251_v16  ;;  %v5338_v43 = vrot.slane %v5337_v18, 4  ;;  %v11263_v38 = vpop.permute.xlu2 %3783  ;;  %v11268_v16 = vsel %vm3820_vm2, %v5370_v10, %v5337_v18  ;;  %v5104_v19 = vrot.slane %v11009_v49, 2  ;;  %v8011_v11 = vrot.slane %v11011_v17, 6 }
 0xfcc   :  { %5716 = vst [vmem:[#allocation1 + $0x22] ss:$4 sm:$0xff] %v4124_v47  ;;  %v5556_v47 = vrot.slane %v5371_v59, 4  ;;  %v4130_v25 = vrot.slane %v4129_v51, 4  ;;  %v3996_v59 = vrot.slane %v11258_v22, 4  ;;  %v3965_v10 = vsel %vm3820_vm2, %v3964_v32, %v10995_v26 }
 0xfcd   :  { %13443 = vst [vmem:[#allocation15_spill] sm:$0xff] %v11268_v16  ;;  %v5339_v0 = vsel %vm3820_vm2, 0.0, %v5338_v43  ;;  %v8014_v18 = vrot.slane %v11258_v22, 6  ;;  %v4145_v43 = vsel %vm3820_vm2, 0.0, %v4144_v9  ;;  %v4060_v26 = vrot.slane %v11154_v27, 4 }
 0xfce   :  { %5712 = vst [vmem:[#allocation1 + $0x3] ss:$4 sm:$0xff] %v4129_v51  ;;  %v11277_v20 = vsel %vm3820_vm2, %v5556_v47, %v5339_v0  ;;  %v4131_v12 = vsel %vm3820_vm2, 0.0, %v4130_v25  ;;  %v3908_v51 = vrot.slane %v10885_v31, 4  ;;  %v3997_v0 = vsel %vm3820_vm2, %v3996_v59, %v11208_v7 }
 0xfcf   :  { %13444 = vst [vmem:[#allocation17_spill] sm:$0xff] %v11277_v20  ;;  %v3877_v25 = vsel %vm3820_vm2, %v3876_v63, %v10960_v14  ;;  %v4001_v32 = vperm.slane %v3997_v0, %v10806_v61  ;;  %v5309_v9 = vsel %vm3820_vm2, %v8014_v18, %v5073_v33  ;;  %v11303_v47 = vperm.slane %v3965_v10, %v10806_v61 }
 0xfd0   :  { %5717 = vst [vmem:[#allocation1 + $0x23] ss:$4 sm:$0xff] %v4131_v12  ;;  %4386 = vrot.lane.b32.xlu0 %v10993_v29, %s8626_s0  ;;  %4434 = vrot.lane.b32.xlu1 %v11105_v5, %s8626_s0  ;;  %v5282_v59 = vrot.slane %v5281_v40, 4  ;;  %v5285_v29 = vsel %vm3820_vm2, %v8011_v11, %v5104_v19  ;;  %v5313_v5 = vperm.slane %v5309_v9, %v10806_v61  ;;  %v5105_v16 = vrot.slane %v11213_v3, 2 }
 0xfd1   :  { %4398 = vrot.lane.b32.xlu2 %v11050_v55, %s8626_s0  ;;  %13445 = vst [vmem:[#allocation35_spill] sm:$0xff] %v11303_v47  ;;  %v11312_v0 = vrot.slane %v4001_v32, 4  ;;  %v3881_v10 = vperm.slane %v3877_v25, %v10806_v61  ;;  %v5289_v31 = vperm.slane %v5285_v29, %v10806_v61  ;;  %v4061_v32 = vsel %vm3820_vm2, %v4060_v26, %v11109_v4 }
 0xfd2   :  { %v11307_v12 = vpop.permute.xlu1 %3805  ;;  %v11309_v63 = vpop.permute.xlu0 %3759  ;;  %v5314_v20 = vrot.slane %v5313_v5, 4  ;;  %v5074_v25 = vrot.slane %v11256_v54, 2  ;;  %v3909_v26 = vsel %vm3820_vm2, %v3908_v51, %v10983_v50  ;;  %v5283_v29 = vsel %vm3820_vm2, 0.0, %v5282_v59 }
 0xfd3   :  { %13446 = vst [vmem:[#allocation68_spill] sm:$0xff] %v11307_v12  ;;  %v4004_v33 = vrot.slane %v11307_v12, 4  ;;  %v8015_v55 = vrot.slane %v11307_v12, 6  ;;  %v11316_v18 = vpop.permute.xlu2 %4428  ;;  %v4028_v11 = vrot.slane %v11309_v63, 4  ;;  %v8018_v19 = vrot.slane %v11309_v63, 6 }
 0xfd4   :  { %13447 = vst [vmem:[#allocation22_spill] sm:$0xff] %v11316_v18  ;;  %v4146_v14 = vsel %vm3820_vm2, %v11312_v0, %v11303_v47  ;;  %v5315_v12 = vsel %vm3820_vm2, 0.0, %v5314_v20  ;;  %v5377_v51 = vperm.slane %v11179_v30, %v10806_v61  ;;  %v3972_v59 = vrot.slane %v11011_v17, 4 }
 0xfd5   :  { %v11321_v9 = vld.sshfl [vmem:[#allocation1] sm:$0xff pattern:$0x73625140]  ;;  %v5317_v18 = vsel %vm3820_vm2, %v8015_v55, %v5105_v16  ;;  %v4150_v5 = vperm.slane %v4146_v14, %v10806_v61  ;;  %v5580_v16 = vrot.slane %v5315_v12, 4  ;;  %v4005_v14 = vsel %vm3820_vm2, %v4004_v33, %v11213_v3 }
 0xfd6   :  { %13448 = vst [vmem:[#allocation66_spill] sm:$0xff] %v11321_v9  ;;  %v11335_v9 = vsel %vm3820_vm2, %v5314_v20, %v5281_v40  ;;  %v4029_v40 = vsel %vm3820_vm2, %v4028_v11, %v11256_v54  ;;  %v4065_v20 = vperm.slane %v4061_v32, %v10806_v61  ;;  %v5290_v12 = vrot.slane %v5289_v31, 4 }
 0xfd7   :  { %5719 = vst [vmem:[#allocation1] ss:$4 sm:$0xff] %v11199_v21  ;;  %v11341_v47 = vld.sshfl [vmem:[#allocation1 + $0x20] sm:$0xff pattern:$0x73625140]  ;;  %v5321_v21 = vperm.slane %v5317_v18, %v10806_v61  ;;  %v4151_v55 = vrot.slane %v4150_v5, 4  ;;  %v11380_v32 = vperm.slane %v3909_v26, %v10806_v61  ;;  %v3973_v26 = vsel %vm3820_vm2, %v3972_v59, %v11009_v49 }
 0xfd8   :  { %13449 = vst [vmem:[#allocation28_spill] sm:$0xff] %v11335_v9  ;;  %4384 = vrot.lane.b32.xlu0 %v10929_v41, %s8626_s0  ;;  %4400 = vrot.lane.b32.xlu1 %v11156_v42, %s8626_s0  ;;  %v13451_v30 = vrot.slane %v10787_v53, 4  ;;  %v4009_v42 = vperm.slane %v4005_v14, %v10806_v61  ;;  %v13453_v14 = vperm.slane %v10950_v44, %v10806_v61 }
 0xfd9   :  { %5720 = vst [vmem:[#allocation1 + $0x1] ss:$4 sm:$0xff] %v11228_v37  ;;  %v5341_v37 = vsel %vm3820_vm2, %v8018_v19, %v5074_v25  ;;  %4418 = vrot.lane.b32.xlu2 %v11058_v28, %s8626_s0  ;;  %v4152_v41 = vsel %vm3820_vm2, 0.0, %v4151_v55  ;;  %v5322_v33 = vrot.slane %v5321_v21, 4  ;;  %v11373_v28 = vperm.slane %v4029_v40, %v10806_v61 }
 0xfda   :  { %5724 = vst [vmem:[#allocation1 + $0x20] ss:$4 sm:$0xff] %v4138_v13  ;;  %v11355_v13 = vsel %vm3820_vm2, %v5580_v16, %v5283_v29  ;;  %v11363_v18 = vpop.permute.xlu1 %3807  ;;  %v11365_v11 = vpop.permute.xlu0 %3785  ;;  %v11377_v19 = vrot.slane %v3881_v10, 4  ;;  %v5378_v29 = vrot.slane %v5377_v51, 4  ;;  %v11394_v10 = vrot.slane %v13453_v14, 4 }
 0xfdb   :  { %5725 = vst [vmem:[#allocation1 + $0x21] ss:$4 sm:$0xff] %v4145_v43  ;;  %v3845_v43 = vsel %vm3820_vm2, %v13451_v30, %v10765_v45  ;;  %v11375_v17 = vpop.permute.xlu2 %4322  ;;  %v5323_v25 = vsel %vm3820_vm2, 0.0, %v5322_v33  ;;  %v11386_v16 = vsel %vm3820_vm2, %v5322_v33, %v5289_v31  ;;  %v5291_v40 = vsel %vm3820_vm2, 0.0, %v5290_v12 }
 0xfdc   :  { %13450 = vst [vmem:[#allocation29_spill] sm:$0xff] %v11355_v13  ;;  %v5612_v21 = vrot.slane %v5323_v25, 4  ;;  %v11389_v55 = vperm.slane %v3845_v43, %v10806_v61  ;;  %v11417_v12 = vperm.slane %v3973_v26, %v10806_v61  ;;  %v5379_v33 = vsel %vm3820_vm2, 0.0, %v5378_v29 }
 0xfdd   :  { %5721 = vst [vmem:[#allocation1 + $0x2] ss:$4 sm:$0xff] %v4150_v5  ;;  %v11383_v5 = vrot.slane %v4065_v20, 4  ;;  %v11399_v20 = vrot.slane %v4009_v42, 4  ;;  %v5345_v30 = vperm.slane %v5341_v37, %v10806_v61  ;;  %v4036_v43 = vrot.slane %v11363_v18, 4 }
 0xfde   :  { %5726 = vst [vmem:[#allocation1 + $0x22] ss:$4 sm:$0xff] %v4152_v41  ;;  %v11402_v51 = vsel %vm3820_vm2, %v5612_v21, %v5291_v40  ;;  %v4160_v44 = vsel %vm3820_vm2, %v11377_v19, %v11389_v55  ;;  %v4167_v41 = vsel %vm3820_vm2, %v11394_v10, %v11380_v32  ;;  %v4068_v25 = vrot.slane %v11160_v48, 4 }
 0xfdf   :  { %13452 = vst [vmem:[#allocation25_spill] sm:$0xff] %v11386_v16  ;;  %v4153_v31 = vsel %vm3820_vm2, %v11383_v5, %v11373_v28  ;;  %v4174_v37 = vsel %vm3820_vm2, %v11399_v20, %v11417_v12  ;;  %v5346_v26 = vrot.slane %v5345_v30, 4  ;;  %v4171_v42 = vperm.slane %v4167_v41, %v10806_v61 }
 0xfe0   :  { %13454 = vst [vmem:[#allocation31_spill] sm:$0xff] %v11402_v51  ;;  %v4157_v59 = vperm.slane %v4153_v31, %v10806_v61  ;;  %4430 = vrot.lane.b32.xlu0 %v11052_v8, %s8626_s0  ;;  %4416 = vrot.lane.b32.xlu1 %v11210_v62, %s8626_s0  ;;  %v11436_v62 = vsel %vm3820_vm2, %v5378_v29, %v5345_v30  ;;  %v5588_v51 = vrot.slane %v5379_v33, 4  ;;  %v5106_v13 = vrot.slane %v11263_v38, 2 }
 0xfe1   :  { %4438 = vrot.lane.b32.xlu2 %v11154_v27, %s8626_s0  ;;  %13455 = vst [vmem:[#allocation69_spill] sm:$0xff] %v11436_v62  ;;  %v4037_v27 = vsel %vm3820_vm2, %v4036_v43, %v11263_v38  ;;  %v4164_v31 = vperm.slane %v4160_v44, %v10806_v61  ;;  %v5347_v16 = vsel %vm3820_vm2, 0.0, %v5346_v26  ;;  %v8019_v29 = vrot.slane %v11363_v18, 6 }
 0xfe2   :  { %v4158_v8 = vrot.slane %v4157_v59, 4  ;;  %v11428_v21 = vpop.permute.xlu0 %4396  ;;  %v11430_v14 = vpop.permute.xlu1 %4318  ;;  %5722 = vst [vmem:[#allocation1 + $0x3] ss:$4 sm:$0xff] %v4157_v59  ;;  %v4069_v30 = vsel %vm3820_vm2, %v4068_v25, %v11365_v11  ;;  %v11451_v43 = vperm.slane %v4174_v37, %v10806_v61  ;;  %v11454_v44 = vsel %vm3820_vm2, %v5588_v51, %v5347_v16 }
 0xfe3   :  { %v11440_v40 = vpop.permute.xlu2 %4324  ;;  %13456 = vst [vmem:[#allocation23_spill] sm:$0xff] %v11454_v44  ;;  %v11457_v41 = vperm.slane %v4037_v27, %v10806_v61  ;;  %v4073_v33 = vperm.slane %v4069_v30, %v10806_v61  ;;  %v8023_v26 = vrot.slane %v11160_v48, 6  ;;  %v5107_v62 = vrot.slane %v11365_v11, 2 }
 0xfe4   :  { %v4159_v59 = vsel %vm3820_vm2, 0.0, %v4158_v8  ;;  %v3842_v8 = vrot.slane %v11163_v36, 4  ;;  %v4165_v25 = vrot.slane %v4164_v31, 4  ;;  %v4051_v37 = vsel %vm3820_vm2, 0.0, %v11093_v24 }
 0xfe5   :  { %5727 = vst [vmem:[#allocation1 + $0x23] ss:$4 sm:$0xff] %v4159_v59  ;;  %v5349_v59 = vsel %vm3820_vm2, %v8019_v29, %v5106_v13  ;;  %v11467_v51 = vrot.slane %v4073_v33, 4  ;;  %v11473_v36 = vsel %vm3820_vm2, 0.0, %v11061_v52  ;;  %v4172_v27 = vrot.slane %v4171_v42, 4 }
 0xfe6   :  { %v5353_v16 = vperm.slane %v5349_v59, %v10806_v61  ;;  %v4018_v13 = vrot.slane %v11091_v6, 4  ;;  %v5381_v29 = vsel %vm3820_vm2, %v8023_v26, %v5107_v62  ;;  %v4179_v30 = vrot.slane %v11451_v43, 4 }
 0xfe7   :  { %v4181_v52 = vsel %vm3820_vm2, %v11467_v51, %v11457_v41  ;;  %v4516_v6 = vrot.slane %v11375_v17, 4  ;;  %v4212_v26 = vrot.slane %v4051_v37, 4  ;;  %v4173_v37 = vsel %vm3820_vm2, 0.0, %v4172_v27 }
 0xfe8   :  { %4402 = vrot.lane.b32.xlu0 %v11018_v60, %s8626_s0  ;;  %4406 = vrot.lane.b32.xlu1 %v11258_v22, %s8626_s0  ;;  %v5385_v60 = vperm.slane %v5381_v29, %v10806_v61  ;;  %v11493_v22 = vperm.slane %v10849_v35, %v10806_v61  ;;  %v4185_v59 = vperm.slane %v4181_v52, %v10806_v61  ;;  %v4166_v29 = vsel %vm3820_vm2, 0.0, %v4165_v25 }
 0xfe9   :  { %4404 = vrot.lane.b32.xlu2 %v11208_v7, %s8626_s0  ;;  %v11481_v24 = vld.sshfl [vmem:[#allocation1] sm:$0xff pattern:$0x73625140]  ;;  %v11497_v7 = vperm.slane %v10872_v1, %v10806_v61  ;;  %v5354_v9 = vrot.slane %v5353_v16, 4  ;;  %v3875_v35 = vsel %vm3820_vm2, 0.0, %v11141_v46  ;;  %v3867_v1 = vsel %vm3820_vm2, 0.0, %v11076_v58 }
 0xfea   :  { %v11489_v33 = vpop.permute.xlu0 %4412  ;;  %v4321_v62 = vpop.permute.xlu1 %4320  ;;  %5729 = vst [vmem:[#allocation1] ss:$4 sm:$0xff] %v4164_v31  ;;  %v5386_v45 = vrot.slane %v5385_v60, 4  ;;  %v4186_v52 = vrot.slane %v4185_v59, 4  ;;  %v4180_v25 = vsel %vm3820_vm2, 0.0, %v4179_v30  ;;  %v4252_v53 = vrot.slane %v3875_v35, 4 }
 0xfeb   :  { %v4371_v44 = vpop.permute.xlu2 %4370  ;;  %5730 = vst [vmem:[#allocation1 + $0x1] ss:$4 sm:$0xff] %v4171_v42  ;;  %v11504_v31 = vsel %vm3820_vm2, %v4516_v6, %v4321_v62  ;;  %v4019_v42 = vsel %vm3820_vm2, 0.0, %v4018_v13  ;;  %v3898_v62 = vrot.slane %v11082_v39, 4  ;;  %v11525_v30 = vperm.slane %v11120_v56, %v10806_v61 }
 0xfec   :  { %v11501_v17 = vld.sshfl [vmem:[#allocation1 + $0x20] sm:$0xff pattern:$0x73625140]  ;;  %v5387_v60 = vsel %vm3820_vm2, 0.0, %v5386_v45  ;;  %v11515_v6 = vsel %vm3820_vm2, %v5386_v45, %v5353_v16  ;;  %v4213_v46 = vsel %vm3820_vm2, %v4212_v26, %v4019_v42  ;;  %v4187_v58 = vsel %vm3820_vm2, 0.0, %v4186_v52 }
 0xfed   :  { %5734 = vst [vmem:[#allocation1 + $0x20] ss:$4 sm:$0xff] %v4166_v29  ;;  %v5620_v27 = vrot.slane %v5387_v60, 4  ;;  %v13457_v29 = vrot.slane %v11039_v15, 4  ;;  %v5355_v45 = vsel %vm3820_vm2, 0.0, %v5354_v9  ;;  %v3843_v39 = vsel %vm3820_vm2, 0.0, %v3842_v8 }
 0xfee   :  { %5735 = vst [vmem:[#allocation1 + $0x21] ss:$4 sm:$0xff] %v4173_v37  ;;  %v4228_v16 = vrot.slane %v11473_v36, 4  ;;  %v4220_v26 = vrot.slane %v3867_v1, 4  ;;  %v4194_v56 = vrot.slane %v11493_v22, 4  ;;  %v3995_v9 = vsel %vm3820_vm2, 0.0, %v11193_v2 }
 0xfef   :  { %5736 = vst [vmem:[#allocation1 + $0x22] ss:$4 sm:$0xff] %v4180_v25  ;;  %v3835_v13 = vsel %vm3820_vm2, 0.0, %v13457_v29  ;;  %v11533_v15 = vsel %vm3820_vm2, %v5620_v27, %v5355_v45  ;;  %v4612_v8 = vrot.slane %v4371_v44, 4  ;;  %v4202_v1 = vrot.slane %v11497_v7, 4 }
 0xff0   :  { %5737 = vst [vmem:[#allocation1 + $0x23] ss:$4 sm:$0xff] %v4187_v58  ;;  %4432 = vrot.lane.b32.xlu0 %v11103_v57, %s8626_s0  ;;  %4436 = vrot.lane.b32.xlu1 %v11109_v4, %s8626_s0  ;;  %v11542_v57 = vperm.slane %v4213_v46, %v10806_v61  ;;  %v4026_v4 = vrot.slane %v11237_v34, 4  ;;  %v4253_v52 = vsel %vm3820_vm2, %v4252_v53, %v3843_v39  ;;  %v3962_v42 = vrot.slane %v11203_v23, 4 }
 0xff1   :  { %4420 = vrot.lane.b32.xlu2 %v11256_v54, %s8626_s0  ;;  %5731 = vst [vmem:[#allocation1 + $0x2] ss:$4 sm:$0xff] %v11451_v43  ;;  %v3899_v54 = vsel %vm3820_vm2, 0.0, %v3898_v62  ;;  %v4210_v25 = vrot.slane %v11525_v30, 4  ;;  %v4221_v44 = vsel %vm3820_vm2, %v4220_v26, %v3835_v13  ;;  %v4236_v46 = vrot.slane %v3995_v9, 4 }
 0xff2   :  { %v4327_v36 = vpop.permute.xlu0 %4326  ;;  %v4331_v35 = vpop.permute.xlu1 %4330  ;;  %5732 = vst [vmem:[#allocation1 + $0x3] ss:$4 sm:$0xff] %v4185_v59  ;;  %v13458_v59 = vld [vmem:[#allocation67_spill] sm:$0xff]  ;;  %v4229_v62 = vsel %vm3820_vm2, %v4228_v16, %v3899_v54  ;;  %v4218_v53 = vrot.slane %v11542_v57, 4  ;;  %v4195_v23 = vsel %vm3820_vm2, 0.0, %v4194_v56  ;;  %v4203_v58 = vsel %vm3820_vm2, 0.0, %v4202_v1 }
 0xff3   :  { %v4524_v37 = vrot.slane %v4327_v36, 4  ;;  %v4369_v43 = vpop.permute.xlu2 %4368  ;;  %v4059_v60 = vsel %vm3820_vm2, 0.0, %v13458_v59  ;;  %v11567_v27 = vperm.slane %v4253_v52, %v10806_v61  ;;  %v4027_v29 = vsel %vm3820_vm2, 0.0, %v4026_v4 }
 0xff4   :  { %v11553_v2 = vsel %vm3820_vm2, %v4612_v8, %v4369_v43  ;;  %v11573_v45 = vperm.slane %v4221_v44, %v10806_v61  ;;  %v4211_v39 = vsel %vm3820_vm2, 0.0, %v4210_v25  ;;  %v4244_v16 = vrot.slane %v4059_v60, 4  ;;  %v13459_v8 = vld [vmem:[#allocation68_spill] sm:$0xff] }
 0xff5   :  { %v11560_v34 = vsel %vm3820_vm2, %v4524_v37, %v11440_v40  ;;  %v3963_v40 = vsel %vm3820_vm2, 0.0, %v3962_v42  ;;  %v11580_v26 = vperm.slane %v4229_v62, %v10806_v61  ;;  %v4532_v9 = vrot.slane %v4331_v35, 4 }
 0xff6   :  { %v4237_v56 = vsel %vm3820_vm2, %v4236_v46, %v3963_v40  ;;  %v4219_v1 = vsel %vm3820_vm2, 0.0, %v4218_v53  ;;  %v4245_v54 = vsel %vm3820_vm2, %v4244_v16, %v4027_v29  ;;  %v3850_v37 = vrot.slane %v11389_v55, 4  ;;  %v13460_v46 = vld [vmem:[#allocation35_spill] sm:$0xff]  ;;  %v13462_v16 = vld [vmem:[#allocation40_spill] sm:$0xff] }
 0xff7   :  { %v11570_v13 = vld.sshfl [vmem:[#allocation1 + $0x20] sm:$0xff pattern:$0x73625140]  ;;  %v4258_v43 = vrot.slane %v11567_v27, 4  ;;  %v11600_v42 = vperm.slane %v4237_v56, %v10806_v61  ;;  %v4003_v25 = vsel %vm3820_vm2, 0.0, %v11312_v0  ;;  %v4034_v44 = vrot.slane %v11373_v28, 4 }
 0xff8   :  { %5744 = vst [vmem:[#allocation1 + $0x20] ss:$4 sm:$0xff] %v4195_v23  ;;  %4422 = vrot.lane.b32.xlu0 %v11309_v63, %s8626_s0  ;;  %4426 = vrot.lane.b32.xlu1 %v11363_v18, %s8626_s0  ;;  %v4226_v18 = vrot.slane %v11573_v45, 4  ;;  %v4234_v55 = vrot.slane %v11580_v26, 4  ;;  %v11608_v59 = vperm.slane %v4245_v54, %v10806_v61  ;;  %v4508_v60 = vrot.slane %v11430_v14, 4  ;;  %v13461_v0 = vld [vmem:[#allocation56_spill] sm:$0xff] }
 0xff9   :  { %5745 = vst [vmem:[#allocation1 + $0x21] ss:$4 sm:$0xff] %v4203_v58  ;;  %4410 = vrot.lane.b32.xlu2 %v13459_v8, %s8626_s0  ;;  %v11587_v36 = vld.sshfl [vmem:[#allocation1] sm:$0xff pattern:$0x73625140]  ;;  %v3970_v62 = vrot.slane %v13460_v46, 4  ;;  %v11618_v28 = vperm.slane %v13461_v0, %v10806_v61 }
 0xffa   :  { %5746 = vst [vmem:[#allocation1 + $0x22] ss:$4 sm:$0xff] %v4211_v39  ;;  %v4329_v63 = vpop.permute.xlu0 %4328  ;;  %v4367_v4 = vpop.permute.xlu1 %4366  ;;  %v4067_v53 = vsel %vm3820_vm2, 0.0, %v11383_v5  ;;  %v4268_v58 = vrot.slane %v4003_v25, 4  ;;  %v11623_v14 = vsel %vm3820_vm2, 0.0, %v4258_v43  ;;  %v4242_v29 = vrot.slane %v11600_v42, 4 }
 0xffb   :  { %5747 = vst [vmem:[#allocation1 + $0x23] ss:$4 sm:$0xff] %v4219_v1  ;;  %v11594_v35 = vsel %vm3820_vm2, %v4532_v9, %v4329_v63  ;;  %v11596_v52 = vpop.permute.xlu2 %4352  ;;  %v4604_v23 = vrot.slane %v4367_v4, 4  ;;  %v4035_v5 = vsel %vm3820_vm2, 0.0, %v4034_v44  ;;  %v4276_v40 = vrot.slane %v4067_v53, 4  ;;  %v13463_v1 = vld [vmem:[#allocation26_spill] sm:$0xff] }
 0xffc   :  { %5739 = vst [vmem:[#allocation1] ss:$4 sm:$0xff] %v11493_v22  ;;  %v3851_v22 = vsel %vm3820_vm2, 0.0, %v3850_v37  ;;  %v4250_v39 = vrot.slane %v11608_v59, 4  ;;  %v3883_v56 = vsel %vm3820_vm2, 0.0, %v11377_v19  ;;  %v3914_v9 = vrot.slane %v11380_v32, 4 }
 0xffd   :  { %5740 = vst [vmem:[#allocation1 + $0x1] ss:$4 sm:$0xff] %v11497_v7  ;;  %v4227_v7 = vsel %vm3820_vm2, 0.0, %v4226_v18  ;;  %v4605_v54 = vsel %vm3820_vm2, %v4604_v23, %v13463_v1  ;;  %v4277_v43 = vsel %vm3820_vm2, %v4276_v40, %v4035_v5  ;;  %v3947_v32 = vsel %vm3820_vm2, 0.0, %v11394_v10  ;;  %v13464_v53 = vld [vmem:[#allocation50_spill] sm:$0xff] }
 0xffe   :  { %5741 = vst [vmem:[#allocation1 + $0x2] ss:$4 sm:$0xff] %v11525_v30  ;;  %v4235_v30 = vsel %vm3820_vm2, 0.0, %v4234_v55  ;;  %v4243_v25 = vsel %vm3820_vm2, 0.0, %v4242_v29  ;;  %v4617_v55 = vperm.slane %v11553_v2, %v10806_v61  ;;  %v4251_v46 = vsel %vm3820_vm2, 0.0, %v4250_v39 }
 0xfff   :  { %5742 = vst [vmem:[#allocation1 + $0x3] ss:$4 sm:$0xff] %v11542_v57  ;;  %v4509_v57 = vsel %vm3820_vm2, %v4508_v60, %v13462_v16  ;;  %v4284_v60 = vrot.slane %v3883_v56, 4  ;;  %v3915_v10 = vsel %vm3820_vm2, 0.0, %v3914_v9  ;;  %v4292_v29 = vrot.slane %v3947_v32, 4 }
0x1000   :  { %4442 = vrot.lane.b32.xlu0 %v11160_v48, %s8626_s0  ;;  %4360 = vrot.lane.b32.xlu1 %v10983_v50, %s8626_s0  ;;  %v3971_v48 = vsel %vm3820_vm2, 0.0, %v3970_v62  ;;  %v11657_v44 = vperm.slane %v4509_v57, %v10806_v61  ;;  %v4609_v62 = vperm.slane %v4605_v54, %v10806_v61  ;;  %v3978_v5 = vrot.slane %v11417_v12, 4 }
0x1001   :  { %4440 = vrot.lane.b32.xlu2 %v11365_v11, %s8626_s0  ;;  %v4266_v11 = vrot.slane %v11618_v28, 4  ;;  %v4269_v37 = vsel %vm3820_vm2, %v4268_v58, %v3971_v48  ;;  %v11670_v58 = vperm.slane %v4277_v43, %v10806_v61  ;;  %v4042_v40 = vrot.slane %v11457_v41, 4 }
0x1002   :  { %v11642_v8 = vld.sshfl [vmem:[#allocation1 + $0x20] sm:$0xff pattern:$0x73625140]  ;;  %v4335_v63 = vpop.permute.xlu0 %4334  ;;  %v11646_v4 = vpop.permute.xlu1 %4338  ;;  %v11667_v0 = vperm.slane %v4269_v37, %v10806_v61  ;;  %v4075_v39 = vsel %vm3820_vm2, 0.0, %v11467_v51  ;;  %v4514_v16 = vrot.slane %v11657_v44, 4  ;;  %v4618_v57 = vrot.slane %v4617_v55, 4 }
0x1003   :  { %5754 = vst [vmem:[#allocation1 + $0x20] ss:$4 sm:$0xff] %v4227_v7  ;;  %v4540_v19 = vrot.slane %v4335_v63, 4  ;;  %v11651_v18 = vpop.permute.xlu2 %4342  ;;  %v4267_v12 = vsel %vm3820_vm2, 0.0, %v4266_v11  ;;  %v4293_v41 = vsel %vm3820_vm2, %v4292_v29, %v3915_v10  ;;  %v13465_v55 = vld [vmem:[#allocation53_spill] sm:$0xff] }
0x1004   :  { %5755 = vst [vmem:[#allocation1 + $0x21] ss:$4 sm:$0xff] %v4235_v30  ;;  %v4011_v30 = vsel %vm3820_vm2, 0.0, %v11399_v20  ;;  %v4285_v20 = vsel %vm3820_vm2, %v4284_v60, %v3851_v22  ;;  %v4274_v51 = vrot.slane %v11667_v0, 4  ;;  %v4308_v22 = vrot.slane %v4075_v39, 4 }
0x1005   :  { %5756 = vst [vmem:[#allocation1 + $0x22] ss:$4 sm:$0xff] %v4243_v25  ;;  %v4541_v23 = vsel %vm3820_vm2, %v4540_v19, %v13464_v53  ;;  %v4300_v9 = vrot.slane %v4011_v30, 4  ;;  %v4515_v43 = vsel %vm3820_vm2, 0.0, %v4514_v16  ;;  %v4619_v19 = vsel %vm3820_vm2, 0.0, %v4618_v57 }
0x1006   :  { %5757 = vst [vmem:[#allocation1 + $0x23] ss:$4 sm:$0xff] %v4251_v46  ;;  %v4545_v2 = vperm.slane %v4541_v23, %v10806_v61  ;;  %v11673_v7 = vld.sshfl [vmem:[#allocation1] sm:$0xff pattern:$0x73625140]  ;;  %v4275_v29 = vsel %vm3820_vm2, 0.0, %v4274_v51 }
0x1007   :  { %5749 = vst [vmem:[#allocation1] ss:$4 sm:$0xff] %v11573_v45  ;;  %v11691_v45 = vrot.slane %v4609_v62, 4  ;;  %v11719_v62 = vperm.slane %v4285_v20, %v10806_v61  ;;  %v4916_v30 = vrot.slane %v4619_v19, 4  ;;  %v4548_v20 = vrot.slane %v11646_v4, 4 }
0x1008   :  { %v11683_v56 = vrot.slane %v4545_v2, 4  ;;  %4408 = vrot.lane.b32.xlu0 %v11213_v3, %s8626_s0  ;;  %5750 = vst [vmem:[#allocation1 + $0x1] ss:$4 sm:$0xff] %v11580_v26  ;;  %v4282_v3 = vrot.slane %v11670_v58, 4  ;;  %v11726_v2 = vperm.slane %v4293_v41, %v10806_v61  ;;  %v4556_v4 = vrot.slane %v11651_v18, 4 }
0x1009   :  { %4392 = vrot.lane.b32.xlu2 %v11009_v49, %s8626_s0  ;;  %5751 = vst [vmem:[#allocation1 + $0x2] ss:$4 sm:$0xff] %v11600_v42  ;;  %v3979_v49 = vsel %vm3820_vm2, 0.0, %v3978_v5  ;;  %v4043_v42 = vsel %vm3820_vm2, 0.0, %v4042_v40  ;;  %v4611_v25 = vsel %vm3820_vm2, 0.0, %v11691_v45  ;;  %v4529_v18 = vperm.slane %v11560_v34, %v10806_v61 }
0x100a   :  { %v4547_v26 = vsel %vm3820_vm2, 0.0, %v11683_v56  ;;  %v4351_v48 = vpop.permute.xlu0 %4350  ;;  %v4355_v1 = vpop.permute.xlu1 %4354  ;;  %5752 = vst [vmem:[#allocation1 + $0x3] ss:$4 sm:$0xff] %v11608_v59  ;;  %v4301_v53 = vsel %vm3820_vm2, %v4300_v9, %v3979_v49  ;;  %v4283_v5 = vsel %vm3820_vm2, 0.0, %v4282_v3  ;;  %v4884_v40 = vrot.slane %v4611_v25, 4 }
0x100b   :  { %v4876_v54 = vrot.slane %v4547_v26, 4  ;;  %v4572_v63 = vrot.slane %v4351_v48, 4  ;;  %v4580_v11 = vrot.slane %v4355_v1, 4  ;;  %v11701_v37 = vpop.permute.xlu2 %4358  ;;  %v4521_v9 = vperm.slane %v11504_v31, %v10806_v61 }
0x100c   :  { %v4290_v31 = vrot.slane %v11719_v62, 4 }
0x100d   :  { %v11707_v32 = vld.sshfl [vmem:[#allocation1 + $0x20] sm:$0xff pattern:$0x73625140]  ;;  %v11712_v59 = vsel %vm3820_vm2, %v4876_v54, %v4515_v43  ;;  %v4573_v60 = vsel %vm3820_vm2, %v4572_v63, %v13465_v55  ;;  %v4581_v46 = vsel %vm3820_vm2, %v4580_v11, %v11596_v52  ;;  %v4309_v52 = vsel %vm3820_vm2, %v4308_v22, %v4043_v42 }
0x100e   :  { %5764 = vst [vmem:[#allocation1 + $0x20] ss:$4 sm:$0xff] %v11623_v14  ;;  %v4577_v23 = vperm.slane %v4573_v60, %v10806_v61  ;;  %v4585_v10 = vperm.slane %v4581_v46, %v10806_v61  ;;  %v4305_v14 = vperm.slane %v4301_v53, %v10806_v61  ;;  %v4298_v63 = vrot.slane %v11726_v2, 4 }
0x100f   :  { %5765 = vst [vmem:[#allocation1 + $0x21] ss:$4 sm:$0xff] %v4267_v12  ;;  %v4313_v12 = vperm.slane %v4309_v52, %v10806_v61  ;;  %v4522_v42 = vrot.slane %v4521_v9, 4  ;;  %v4291_v55 = vsel %vm3820_vm2, 0.0, %v4290_v31 }
0x1010   :  { %5766 = vst [vmem:[#allocation1 + $0x22] ss:$4 sm:$0xff] %v4275_v29  ;;  %v4578_v39 = vrot.slane %v4577_v23, 4  ;;  %v4586_v16 = vrot.slane %v4585_v10, 4  ;;  %4424 = vrot.lane.b32.xlu0 %v11263_v38, %s8626_s0  ;;  %v11736_v41 = vsel %vm3820_vm2, %v4618_v57, %v4585_v10  ;;  %v4306_v49 = vrot.slane %v4305_v14, 4 }
0x1011   :  { %5767 = vst [vmem:[#allocation1 + $0x23] ss:$4 sm:$0xff] %v4283_v5  ;;  %v11738_v51 = vld.sshfl [vmem:[#allocation1] sm:$0xff pattern:$0x73625140]  ;;  %v4314_v19 = vrot.slane %v4313_v12, 4  ;;  %v4771_v25 = vsel %vm3820_vm2, %v11691_v45, %v4577_v23 }
0x1012   :  { %v4579_v3 = vsel %vm3820_vm2, 0.0, %v4578_v39  ;;  %v4587_v26 = vsel %vm3820_vm2, 0.0, %v4586_v16  ;;  %v4337_v38 = vpop.permute.xlu0 %4336  ;;  %v4341_v48 = vpop.permute.xlu1 %4340  ;;  %5759 = vst [vmem:[#allocation1] ss:$4 sm:$0xff] %v11567_v27  ;;  %v4299_v34 = vsel %vm3820_vm2, 0.0, %v4298_v63  ;;  %v4307_v45 = vsel %vm3820_vm2, 0.0, %v4306_v49 }
0x1013   :  { %v11748_v57 = vsel %vm3820_vm2, %v4884_v40, %v4579_v3  ;;  %v11751_v1 = vsel %vm3820_vm2, %v4916_v30, %v4587_v26  ;;  %v4549_v22 = vsel %vm3820_vm2, %v4548_v20, %v4337_v38  ;;  %v11754_v54 = vpop.permute.xlu2 %4344  ;;  %5760 = vst [vmem:[#allocation1 + $0x1] ss:$4 sm:$0xff] %v11618_v28  ;;  %v4557_v11 = vsel %vm3820_vm2, %v4556_v4, %v4341_v48 }
0x1014   :  { %v4553_v27 = vperm.slane %v4549_v22, %v10806_v61  ;;  %5761 = vst [vmem:[#allocation1 + $0x2] ss:$4 sm:$0xff] %v11667_v0  ;;  %v4764_v28 = vsel %vm3820_vm2, %v11683_v56, %v11657_v44  ;;  %v4561_v0 = vperm.slane %v4557_v11, %v10806_v61  ;;  %v4530_v44 = vrot.slane %v4529_v18, 4 }
0x1015   :  { %5762 = vst [vmem:[#allocation1 + $0x3] ss:$4 sm:$0xff] %v11670_v58  ;;  %v4768_v56 = vperm.slane %v4764_v28, %v10806_v61  ;;  %v4523_v23 = vsel %vm3820_vm2, 0.0, %v4522_v42  ;;  %v4775_v29 = vperm.slane %v4771_v25, %v10806_v61  ;;  %v4315_v30 = vsel %vm3820_vm2, 0.0, %v4314_v19  ;;  %v13466_v25 = vld [vmem:[#allocation60_spill] sm:$0xff] }
0x1016   :  { %v4554_v43 = vrot.slane %v4553_v27, 4  ;;  %v4562_v10 = vrot.slane %v4561_v0, 4  ;;  %v4531_v3 = vsel %vm3820_vm2, 0.0, %v4530_v44  ;;  %v4588_v19 = vrot.slane %v11701_v37, 4 }
0x1017   :  { %v4769_v26 = vrot.slane %v4768_v56, 4  ;;  %v4776_v48 = vrot.slane %v4775_v29, 4 }
0x1018   :  { %v11773_v60 = vld.sshfl [vmem:[#allocation1 + $0x20] sm:$0xff pattern:$0x73625140]  ;;  %v4555_v58 = vsel %vm3820_vm2, 0.0, %v4554_v43  ;;  %v11777_v46 = vsel %vm3820_vm2, %v4554_v43, %v4521_v9  ;;  %v4563_v39 = vsel %vm3820_vm2, 0.0, %v4562_v10  ;;  %v11789_v16 = vsel %vm3820_vm2, %v4562_v10, %v4529_v18 }
0x1019   :  { %5774 = vst [vmem:[#allocation1 + $0x20] ss:$4 sm:$0xff] %v4291_v55  ;;  %v4908_v53 = vrot.slane %v4555_v58, 4  ;;  %v4940_v9 = vrot.slane %v4563_v39, 4  ;;  %v4770_v22 = vsel %vm3820_vm2, 0.0, %v4769_v26  ;;  %v4777_v27 = vsel %vm3820_vm2, 0.0, %v4776_v48 }
0x101a   :  { %5775 = vst [vmem:[#allocation1 + $0x21] ss:$4 sm:$0xff] %v4299_v34  ;;  %v4375_v5 = vpop.permute.xlu0 %4374  ;;  %v4379_v52 = vpop.permute.xlu1 %4378 }
0x101b   :  { %5776 = vst [vmem:[#allocation1 + $0x22] ss:$4 sm:$0xff] %v4307_v45  ;;  %v11785_v40 = vsel %vm3820_vm2, %v4908_v53, %v4523_v23  ;;  %v4383_v20 = vpop.permute.xlu2 %4382  ;;  %v11795_v4 = vsel %vm3820_vm2, %v4940_v9, %v4531_v3  ;;  %v4620_v31 = vrot.slane %v4375_v5, 4  ;;  %v4628_v63 = vrot.slane %v4379_v52, 4 }
0x101c   :  { %5777 = vst [vmem:[#allocation1 + $0x23] ss:$4 sm:$0xff] %v4315_v30  ;;  %v11792_v38 = vld.sshfl [vmem:[#allocation1] sm:$0xff pattern:$0x73625140] }
0x101d   :  { %5769 = vst [vmem:[#allocation1] ss:$4 sm:$0xff] %v11719_v62 }
0x101e   :  { %5770 = vst [vmem:[#allocation1 + $0x1] ss:$4 sm:$0xff] %v11726_v2 }
0x101f   :  { %5771 = vst [vmem:[#allocation1 + $0x2] ss:$4 sm:$0xff] %v4305_v14  ;;  %v4636_v14 = vrot.slane %v4383_v20, 4 }
0x1020   :  { %5772 = vst [vmem:[#allocation1 + $0x3] ss:$4 sm:$0xff] %v4313_v12 }
0x1021   :  { %v4637_v0 = vsel %vm3820_vm2, %v4636_v14, %v13466_v25 }
0x1022   :  { %v4373_v18 = vpop.permute.xlu0 %4372  ;;  %v4377_v11 = vpop.permute.xlu1 %4376  ;;  %v4641_v23 = vperm.slane %v4637_v0, %v10806_v61 }
0x1023   :  { %v11801_v49 = vld.sshfl [vmem:[#allocation1 + $0x20] sm:$0xff pattern:$0x73625140]  ;;  %v4621_v42 = vsel %vm3820_vm2, %v4620_v31, %v4373_v18  ;;  %v11805_v28 = vsel %vm3820_vm2, %v4628_v63, %v4377_v11  ;;  %v11807_v62 = vpop.permute.xlu2 %4394 }
0x1024   :  { %5884 = vst [vmem:[#allocation1 + $0x20] ss:$4 sm:$0xff] %v4770_v22  ;;  %v4625_v2 = vperm.slane %v4621_v42, %v10806_v61  ;;  %v4642_v39 = vrot.slane %v4641_v23, 4 }
0x1025   :  { %5886 = vst [vmem:[#allocation1 + $0x21] ss:$4 sm:$0xff] %v4777_v27 }
0x1026   :  { %v4626_v43 = vrot.slane %v4625_v2, 4  ;;  %v4643_v18 = vsel %vm3820_vm2, 0.0, %v4642_v39 }
0x1027   :  { %v11810_v12 = vld.sshfl [vmem:[#allocation1] sm:$0xff pattern:$0x73625140] }
0x1028   :  { %5875 = vst [vmem:[#allocation1] ss:$4 sm:$0xff] %v4768_v56  ;;  %v4627_v53 = vsel %vm3820_vm2, 0.0, %v4626_v43 }
0x1029   :  { %5877 = vst [vmem:[#allocation1 + $0x1] ss:$4 sm:$0xff] %v4775_v29  ;;  %v4948_v52 = vrot.slane %v4627_v53, 4 }
0x102a   :  { %v4357_v55 = vpop.permute.xlu0 %4356  ;;  %v11815_v34 = vpop.permute.xlu1 %4390 }
0x102b   :  { %v4589_v58 = vsel %vm3820_vm2, %v4588_v19, %v4357_v55  ;;  %v4399_v44 = vpop.permute.xlu2 %4398 }
0x102c   :  { %v4593_v10 = vperm.slane %v4589_v58, %v10806_v61  ;;  %v4668_v45 = vrot.slane %v4399_v44, 4 }
0x102e   :  { %v4594_v5 = vrot.slane %v4593_v10, 4  ;;  %v11822_v37 = vsel %vm3820_vm2, %v4626_v43, %v4593_v10  ;;  %v4669_v56 = vsel %vm3820_vm2, %v4668_v45, %v11428_v21  ;;  %v4537_v21 = vperm.slane %v11594_v35, %v10806_v61 }
0x102f   :  { %v4673_v29 = vperm.slane %v4669_v56, %v10806_v61 }
0x1030   :  { %v4595_v30 = vsel %vm3820_vm2, 0.0, %v4594_v5  ;;  %v4538_v43 = vrot.slane %v4537_v21, 4 }
0x1031   :  { %v11829_v20 = vsel %vm3820_vm2, %v4948_v52, %v4595_v30  ;;  %v4674_v9 = vrot.slane %v4673_v29, 4 }
0x1032   :  { %v4347_v3 = vpop.permute.xlu0 %4346  ;;  %v11831_v26 = vpop.permute.xlu1 %4388  ;;  %v4539_v44 = vsel %vm3820_vm2, 0.0, %v4538_v43 }
0x1033   :  { %v4675_v48 = vsel %vm3820_vm2, 0.0, %v4674_v9  ;;  %v4778_v22 = vsel %vm3820_vm2, %v4674_v9, %v4641_v23  ;;  %v4564_v31 = vrot.slane %v4347_v3, 4  ;;  %v4419_v53 = vpop.permute.xlu2 %4418 }
0x1034   :  { %v4782_v63 = vperm.slane %v4778_v22, %v10806_v61  ;;  %v4892_v27 = vrot.slane %v4675_v48, 4  ;;  %v13467_v22 = vld [vmem:[#allocation22_spill] sm:$0xff] }
0x1035   :  { %v4565_v11 = vsel %vm3820_vm2, %v4564_v31, %v11754_v54 }
0x1036   :  { %v4783_v42 = vrot.slane %v4782_v63, 4  ;;  %v11842_v2 = vsel %vm3820_vm2, %v4892_v27, %v4643_v18  ;;  %v4569_v14 = vperm.slane %v4565_v11, %v10806_v61  ;;  %5879 = vst [vmem:[#allocation1 + $0x2] ss:$4 sm:$0xff] %v4782_v63 }
0x1038   :  { %v4784_v19 = vsel %vm3820_vm2, 0.0, %v4783_v42  ;;  %v4570_v25 = vrot.slane %v4569_v14, 4 }
0x1039   :  { %5888 = vst [vmem:[#allocation1 + $0x22] ss:$4 sm:$0xff] %v4784_v19 }
0x103a   :  { %v4571_v35 = vsel %vm3820_vm2, 0.0, %v4570_v25  ;;  %v11848_v0 = vsel %vm3820_vm2, %v4570_v25, %v4537_v21  ;;  %v11850_v55 = vpop.permute.xlu0 %4362  ;;  %v4415_v54 = vpop.permute.xlu1 %4414  ;;  %v4796_v25 = vperm.slane %v11777_v46, %v10806_v61 }
0x103b   :  { %v4972_v58 = vrot.slane %v4571_v35, 4  ;;  %v4439_v5 = vpop.permute.xlu2 %4438  ;;  %v4700_v30 = vrot.slane %v4415_v54, 4 }
0x103c   :  { %v4797_v46 = vrot.slane %v4796_v25, 4 }
0x103d   :  { %v11854_v10 = vsel %vm3820_vm2, %v4972_v58, %v4539_v44  ;;  %v4701_v48 = vsel %vm3820_vm2, %v4700_v30, %v11489_v33 }
0x103e   :  { %v11862_v63 = vperm.slane %v4701_v48, %v10806_v61 }
0x1042   :  { %v4387_v45 = vpop.permute.xlu0 %4386  ;;  %v4435_v23 = vpop.permute.xlu1 %4434 }
0x1043   :  { %v4405_v29 = vpop.permute.xlu2 %4404  ;;  %v4644_v14 = vrot.slane %v4387_v45, 4  ;;  %v4803_v45 = vperm.slane %v11736_v41, %v10806_v61 }
0x1045   :  { %v4804_v41 = vrot.slane %v4803_v45, 4 }
0x104a   :  { %v4385_v56 = vpop.permute.xlu0 %4384  ;;  %v4401_v52 = vpop.permute.xlu1 %4400 }
0x104b   :  { %v11866_v18 = vpop.permute.xlu2 %4420  ;;  %v4645_v35 = vsel %vm3820_vm2, %v4644_v14, %v4385_v56  ;;  %v4708_v56 = vrot.slane %v4419_v53, 4  ;;  %v4748_v53 = vrot.slane %v4439_v5, 4 }
0x1052   :  { %v4431_v39 = vpop.permute.xlu0 %4430  ;;  %v4417_v3 = vpop.permute.xlu1 %4416 }
0x1053   :  { %v4732_v9 = vrot.slane %v4431_v39, 4  ;;  %v4709_v14 = vsel %vm3820_vm2, %v4708_v56, %v4417_v3  ;;  %v4805_v56 = vsel %vm3820_vm2, 0.0, %v4804_v41 }
0x1054   :  { %v11899_v3 = vperm.slane %v4709_v14, %v10806_v61 }
0x1055   :  { %v4733_v31 = vsel %vm3820_vm2, %v4732_v9, %v13467_v22  ;;  %v11881_v9 = vperm.slane %v4645_v35, %v10806_v61  ;;  %v4740_v22 = vrot.slane %v4435_v23, 4 }
0x1056   :  { %v4737_v21 = vperm.slane %v4733_v31, %v10806_v61 }
0x1058   :  { %v11864_v27 = vrot.slane %v4737_v21, 4 }
0x105a   :  { %v4785_v11 = vsel %vm3820_vm2, %v11864_v27, %v11862_v63  ;;  %v4403_v42 = vpop.permute.xlu0 %4402  ;;  %v4407_v43 = vpop.permute.xlu1 %4406 }
0x105b   :  { %v4789_v33 = vperm.slane %v4785_v11, %v10806_v61  ;;  %v4676_v19 = vrot.slane %v4403_v42, 4  ;;  %v4684_v44 = vrot.slane %v4407_v43, 4 }
0x105d   :  { %v4790_v54 = vrot.slane %v4789_v33, 4  ;;  %v4677_v58 = vsel %vm3820_vm2, %v4676_v19, %v4401_v52  ;;  %5881 = vst [vmem:[#allocation1 + $0x3] ss:$4 sm:$0xff] %v4789_v33  ;;  %v4685_v52 = vsel %vm3820_vm2, %v4684_v44, %v4405_v29  ;;  %v11891_v33 = vpop.permute.xlu2 %4410 }
0x105e   :  { %v4681_v30 = vperm.slane %v4677_v58, %v10806_v61  ;;  %v4689_v23 = vperm.slane %v4685_v52, %v10806_v61  ;;  %v4652_v58 = vrot.slane %v11815_v34, 4 }
0x105f   :  { %v4791_v39 = vsel %vm3820_vm2, 0.0, %v4790_v54  ;;  %v4798_v54 = vsel %vm3820_vm2, 0.0, %v4797_v46 }
0x1060   :  { %5890 = vst [vmem:[#allocation1 + $0x23] ss:$4 sm:$0xff] %v4791_v39  ;;  %v11883_v48 = vrot.slane %v4681_v30, 4  ;;  %v11908_v34 = vrot.slane %v4689_v23, 4 }
0x1062   :  { %v4806_v31 = vsel %vm3820_vm2, %v11883_v48, %v11881_v9  ;;  %v4433_v21 = vpop.permute.xlu0 %4432  ;;  %v4437_v42 = vpop.permute.xlu1 %4436 }
0x1063   :  { %v4810_v11 = vperm.slane %v4806_v31, %v10806_v61  ;;  %v4741_v43 = vsel %vm3820_vm2, %v4740_v22, %v4433_v21  ;;  %v4749_v5 = vsel %vm3820_vm2, %v4748_v53, %v4437_v42 }
0x1064   :  { %v5882_v19 = vld.sshfl [vmem:[#allocation1] sm:$0xff pattern:$0x73625140]  ;;  %v4745_v35 = vperm.slane %v4741_v43, %v10806_v61  ;;  %v4753_v52 = vperm.slane %v4749_v5, %v10806_v61 }
0x1065   :  { %v4811_v29 = vrot.slane %v4810_v11, 4  ;;  %5892 = vst [vmem:[#allocation1] ss:$4 sm:$0xff] %v4796_v25  ;;  %v4653_v25 = vsel %vm3820_vm2, %v4652_v58, %v11831_v26  ;;  %v5978_v46 = vpack.c.bf16 %v5882_v19, %v5882_v19  ;;  %v4824_v19 = vperm.slane %v11789_v16, %v10806_v61 }
0x1066   :  { %5893 = vst [vmem:[#allocation1 + $0x1] ss:$4 sm:$0xff] %v4803_v45  ;;  %v11902_v39 = vrot.slane %v4745_v35, 4  ;;  %v11916_v21 = vperm.slane %v4653_v25, %v10806_v61  ;;  %v11929_v35 = vrot.slane %v4753_v52, 4  ;;  %v4831_v16 = vperm.slane %v11822_v37, %v10806_v61 }
0x1067   :  { %v5891_v44 = vld.sshfl [vmem:[#allocation1 + $0x20] sm:$0xff pattern:$0x73625140]  ;;  %v4812_v30 = vsel %vm3820_vm2, 0.0, %v4811_v29  ;;  %v5999_v26 = vsel %vm5994_vm15, %v5978_v46, 0  ;;  %v4441_v29 = vpop.permute.xlu2 %4440  ;;  %v4825_v46 = vrot.slane %v4824_v19, 4 }
0x1068   :  { %5897 = vst [vmem:[#allocation1 + $0x20] ss:$4 sm:$0xff] %v4798_v54  ;;  %v4813_v45 = vsel %vm3820_vm2, %v11902_v39, %v11899_v3  ;;  %6008 = vmatpush.bf16.xpose.msra.mxu2 %v5999_v26  ;;  %v5979_v43 = vpack.c.bf16 %v5891_v44, %v5891_v44  ;;  %v4834_v53 = vsel %vm3820_vm2, %v11908_v34, %v11916_v21 }
0x1069   :  { %5898 = vst [vmem:[#allocation1 + $0x21] ss:$4 sm:$0xff] %v4805_v56  ;;  %v4817_v22 = vperm.slane %v4813_v45, %v10806_v61  ;;  %v4838_v44 = vperm.slane %v4834_v53, %v10806_v61  ;;  %v13468_v56 = vld [vmem:[#allocation63_spill] sm:$0xff]  ;;  %v4596_v45 = vrot.slane %v11850_v55, 4  ;;  %v4826_v55 = vsel %vm3820_vm2, 0.0, %v4825_v46 }
0x106a   :  { %5899 = vst [vmem:[#allocation1 + $0x22] ss:$4 sm:$0xff] %v4812_v30  ;;  %v4423_v31 = vpop.permute.xlu0 %4422  ;;  %v11919_v41 = vpop.permute.xlu1 %4426  ;;  %v6018_v58 = vsel %vm5994_vm15, %v5979_v43, 0  ;;  %v4633_v30 = vperm.slane %v11805_v28, %v10806_v61  ;;  %v5795_v25 = vpack.c.bf16 %v13468_v56, %v13468_v56  ;;  %v13469_v43 = vld [vmem:[#allocation62_spill] sm:$0xff] }
0x106b   :  { %5894 = vst [vmem:[#allocation1 + $0x2] ss:$4 sm:$0xff] %v4810_v11  ;;  %v4716_v42 = vrot.slane %v4423_v31, 4  ;;  %v4818_v14 = vrot.slane %v4817_v22, 4  ;;  %6027 = vmatpush.bf16.xpose.msra.mxu3 %v6018_v58  ;;  %v5796_v28 = vpack.c.bf16 %v13469_v43, %v13469_v43 }
0x106c   :  { %5895 = vst [vmem:[#allocation1 + $0x3] ss:$4 sm:$0xff] %v4817_v22  ;;  %v4832_v22 = vrot.slane %v4831_v16, 4 }
0x106d   :  { %v4717_v23 = vsel %vm3820_vm2, %v4716_v42, %v11866_v18  ;;  %v4819_v11 = vsel %vm3820_vm2, 0.0, %v4818_v14  ;;  %v4839_v42 = vrot.slane %v4838_v44, 4 }
0x106e   :  { %v11932_v54 = vperm.slane %v4717_v23, %v10806_v61  ;;  %5900 = vst [vmem:[#allocation1 + $0x23] ss:$4 sm:$0xff] %v4819_v11  ;;  %v11951_v23 = vrot.slane %v4633_v30, 4  ;;  %v4833_v56 = vsel %vm3820_vm2, 0.0, %v4832_v22  ;;  %v4692_v22 = vrot.slane %v11891_v33, 4 }
0x106f   :  { %8024 = vmatmul.msk.bf16.vlgmr.msra.gmra.mxu2 %vm5994_vm15, %v5795_v25  ;;  %v4840_v46 = vsel %vm3820_vm2, 0.0, %v4839_v42 }
0x1070   :  { %v4841_v18 = vsel %vm3820_vm2, %v11929_v35, %v11932_v54 }
0x1071   :  { %v4845_v5 = vperm.slane %v4841_v18, %v10806_v61 }
0x1072   :  { %v4443_v37 = vpop.permute.xlu0 %4442  ;;  %v4361_v31 = vpop.permute.xlu1 %4360  ;;  %8025 = vmatmul.msk.bf16.vlgmr.msra.gmra.mxu3 %vm5994_vm15, %v5796_v28 }
0x1073   :  { %v4846_v52 = vrot.slane %v4845_v5, 4  ;;  %v5896_v26 = vld.sshfl [vmem:[#allocation1] sm:$0xff pattern:$0x73625140]  ;;  %v4597_v14 = vsel %vm3820_vm2, %v4596_v45, %v4361_v31  ;;  %v4393_v45 = vpop.permute.xlu2 %4392  ;;  %v4852_v31 = vperm.slane %v11848_v0, %v10806_v61 }
0x1074   :  { %v5980_v53 = vpack.c.bf16 %v5896_v26, %v5896_v26  ;;  %5902 = vst [vmem:[#allocation1] ss:$4 sm:$0xff] %v4824_v19  ;;  %v11954_v11 = vperm.slane %v4597_v14, %v10806_v61  ;;  %v4756_v26 = vrot.slane %v4443_v37, 4  ;;  %v13470_v0 = vld [vmem:[#allocation66_spill] sm:$0xff] }
0x1075   :  { %5903 = vst [vmem:[#allocation1 + $0x1] ss:$4 sm:$0xff] %v4831_v16  ;;  %v5901_v58 = vld.sshfl [vmem:[#allocation1 + $0x20] sm:$0xff pattern:$0x73625140]  ;;  %v4847_v25 = vsel %vm3820_vm2, 0.0, %v4846_v52  ;;  %v5797_v33 = vpack.c.bf16 %v13470_v0, %v13470_v0 }
0x1076   :  { %v6037_v18 = vsel %vm5994_vm15, %v5980_v53, 0  ;;  %5907 = vst [vmem:[#allocation1 + $0x20] ss:$4 sm:$0xff] %v4826_v55  ;;  %v4855_v19 = vsel %vm3820_vm2, %v11951_v23, %v11954_v11  ;;  %v5981_v30 = vpack.c.bf16 %v5901_v58, %v5901_v58  ;;  %v4660_v16 = vrot.slane %v11807_v62, 4 }
0x1077   :  { %6046 = vmatpush.bf16.xpose.msrb.mxu0 %v6037_v18  ;;  %5908 = vst [vmem:[#allocation1 + $0x21] ss:$4 sm:$0xff] %v4833_v56  ;;  %v4859_v14 = vperm.slane %v4855_v19, %v10806_v61  ;;  %v4853_v53 = vrot.slane %v4852_v31, 4  ;;  %v4757_v37 = vsel %vm3820_vm2, %v4756_v26, %v4441_v29  ;;  %v4724_v19 = vrot.slane %v11919_v41, 4 }
0x1078   :  { %5909 = vst [vmem:[#allocation1 + $0x22] ss:$4 sm:$0xff] %v4840_v46  ;;  %v6056_v52 = vsel %vm5994_vm15, %v5981_v30, 0  ;;  %v4661_v62 = vsel %vm3820_vm2, %v4660_v16, %v4393_v45  ;;  %v4739_v16 = vsel %vm3820_vm2, 0.0, %v11864_v27 }
0x1079   :  { %5910 = vst [vmem:[#allocation1 + $0x23] ss:$4 sm:$0xff] %v4847_v25  ;;  %6065 = vmatpush.bf16.xpose.msrb.mxu1 %v6056_v52  ;;  %v11978_v55 = vperm.slane %v4661_v62, %v10806_v61  ;;  %v4860_v58 = vrot.slane %v4859_v14, 4  ;;  %v4854_v25 = vsel %vm3820_vm2, 0.0, %v4853_v53  ;;  %v4900_v53 = vrot.slane %v4739_v16, 4 }
0x107a   :  { %v4409_v43 = vpop.permute.xlu0 %4408  ;;  %5904 = vst [vmem:[#allocation1 + $0x2] ss:$4 sm:$0xff] %v4838_v44  ;;  %v5798_v44 = vpack.c.bf16 %v11341_v47, %v11341_v47  ;;  %v4650_v16 = vrot.slane %v11881_v9, 4 }
0x107b   :  { %v4693_v42 = vsel %vm3820_vm2, %v4692_v22, %v4409_v43  ;;  %5905 = vst [vmem:[#allocation1 + $0x3] ss:$4 sm:$0xff] %v4845_v5  ;;  %v4761_v5 = vperm.slane %v4757_v37, %v10806_v61  ;;  %v4861_v47 = vsel %vm3820_vm2, 0.0, %v4860_v58 }
0x107c   :  { %v4697_v28 = vperm.slane %v4693_v42, %v10806_v61  ;;  %v4651_v9 = vsel %vm3820_vm2, 0.0, %v4650_v16 }
0x107d   :  { %v11997_v43 = vrot.slane %v4761_v5, 4 }
0x107e   :  { %v11980_v18 = vrot.slane %v4697_v28, 4  ;;  %8026 = vmatmul.msk.bf16.vlgmr.msrb.gmra.mxu0 %vm5994_vm15, %v5797_v33  ;;  %v4706_v28 = vrot.slane %v11862_v63, 4  ;;  %v5800_v63 = vpack.c.bf16 %v11501_v17, %v11501_v17  ;;  %v4683_v17 = vsel %vm3820_vm2, 0.0, %v11883_v48 }
0x1080   :  { %v4862_v56 = vsel %vm3820_vm2, %v11980_v18, %v11978_v55  ;;  %v5911_v29 = vld.sshfl [vmem:[#allocation1 + $0x20] sm:$0xff pattern:$0x73625140]  ;;  %8027 = vmatmul.msk.bf16.vlgmr.msrb.gmra.mxu1 %vm5994_vm15, %v5798_v44  ;;  %v4707_v58 = vsel %vm3820_vm2, 0.0, %v4706_v28 }
0x1081   :  { %v4866_v30 = vperm.slane %v4862_v56, %v10806_v61  ;;  %5917 = vst [vmem:[#allocation1 + $0x20] ss:$4 sm:$0xff] %v4854_v25  ;;  %v5983_v46 = vpack.c.bf16 %v5911_v29, %v5911_v29  ;;  %v4901_v44 = vsel %vm3820_vm2, %v4900_v53, %v4707_v58  ;;  %v4889_v56 = vperm.slane %v11748_v57, %v10806_v61 }
0x1082   :  { %v4425_v45 = vpop.permute.xlu0 %4424  ;;  %5918 = vst [vmem:[#allocation1 + $0x21] ss:$4 sm:$0xff] %v4861_v47  ;;  %v5906_v26 = vld.sshfl [vmem:[#allocation1] sm:$0xff pattern:$0x73625140]  ;;  %v5799_v25 = vpack.c.bf16 %v11481_v24, %v11481_v24  ;;  %v4747_v57 = vsel %vm3820_vm2, 0.0, %v11902_v39 }
0x1083   :  { %v4867_v22 = vrot.slane %v4866_v30, 4  ;;  %v4725_v52 = vsel %vm3820_vm2, %v4724_v19, %v4425_v45  ;;  %v5982_v41 = vpack.c.bf16 %v5906_v26, %v5906_v26  ;;  %5912 = vst [vmem:[#allocation1] ss:$4 sm:$0xff] %v4852_v31  ;;  %v6094_v62 = vsel %vm5994_vm15, %v5983_v46, 0 }
0x1084   :  { %v12001_v42 = vperm.slane %v4725_v52, %v10806_v61  ;;  %5913 = vst [vmem:[#allocation1 + $0x1] ss:$4 sm:$0xff] %v4859_v14  ;;  %6103 = vmatpush.bf16.xpose.msrb.mxu3 %v6094_v62  ;;  %v4881_v14 = vperm.slane %v11712_v59, %v10806_v61  ;;  %v4897_v59 = vperm.slane %v11842_v2, %v10806_v61  ;;  %v4714_v46 = vrot.slane %v11899_v3, 4 }
0x1085   :  { %v4868_v27 = vsel %vm3820_vm2, 0.0, %v4867_v22  ;;  %v6075_v0 = vsel %vm5994_vm15, %v5982_v41, 0  ;;  %5914 = vst [vmem:[#allocation1 + $0x2] ss:$4 sm:$0xff] %v4866_v30  ;;  %v4905_v19 = vperm.slane %v4901_v44, %v10806_v61  ;;  %v4890_v30 = vrot.slane %v4889_v56, 4 }
0x1086   :  { %5919 = vst [vmem:[#allocation1 + $0x22] ss:$4 sm:$0xff] %v4868_v27  ;;  %v4869_v33 = vsel %vm3820_vm2, %v11997_v43, %v12001_v42  ;;  %6084 = vmatpush.bf16.xpose.msrb.mxu2 %v6075_v0  ;;  %v4882_v29 = vrot.slane %v4881_v14, 4  ;;  %v4898_v47 = vrot.slane %v4897_v59, 4  ;;  %v4924_v45 = vrot.slane %v4683_v17, 4 }
0x1087   :  { %v4873_v31 = vperm.slane %v4869_v33, %v10806_v61  ;;  %v4906_v26 = vrot.slane %v4905_v19, 4  ;;  %v4932_v52 = vrot.slane %v4747_v57, 4  ;;  %v4891_v39 = vsel %vm3820_vm2, 0.0, %v4890_v30 }
0x1088   :  { %v4883_v22 = vsel %vm3820_vm2, 0.0, %v4882_v29  ;;  %v4921_v3 = vperm.slane %v11751_v1, %v10806_v61  ;;  %v4899_v27 = vsel %vm3820_vm2, 0.0, %v4898_v47  ;;  %v4715_v28 = vsel %vm3820_vm2, 0.0, %v4714_v46 }
0x1089   :  { %v4874_v37 = vrot.slane %v4873_v31, 4  ;;  %5915 = vst [vmem:[#allocation1 + $0x3] ss:$4 sm:$0xff] %v4873_v31  ;;  %v4925_v0 = vsel %vm3820_vm2, %v4924_v45, %v4651_v9  ;;  %v4913_v33 = vperm.slane %v11785_v40, %v10806_v61  ;;  %v4907_v53 = vsel %vm3820_vm2, 0.0, %v4906_v26 }
0x108a   :  { %v4933_v31 = vsel %vm3820_vm2, %v4932_v52, %v4715_v28  ;;  %v4929_v1 = vperm.slane %v4925_v0, %v10806_v61  ;;  %v4691_v58 = vsel %vm3820_vm2, 0.0, %v11908_v34  ;;  %v5801_v40 = vpack.c.bf16 %v11587_v36, %v11587_v36 }
0x108b   :  { %v4875_v5 = vsel %vm3820_vm2, 0.0, %v4874_v37  ;;  %8029 = vmatmul.msk.bf16.vlgmr.msrb.gmra.mxu3 %vm5994_vm15, %v5800_v63  ;;  %v4937_v63 = vperm.slane %v4933_v31, %v10806_v61  ;;  %v4914_v44 = vrot.slane %v4913_v33, 4  ;;  %v4755_v29 = vsel %vm3820_vm2, 0.0, %v11929_v35 }
0x108c   :  { %5920 = vst [vmem:[#allocation1 + $0x23] ss:$4 sm:$0xff] %v4875_v5  ;;  %v4658_v5 = vrot.slane %v11916_v21, 4  ;;  %v5802_v34 = vpack.c.bf16 %v11570_v13, %v11570_v13  ;;  %v4964_v30 = vrot.slane %v4755_v29, 4  ;;  %v12066_v35 = vperm.slane %v11795_v4, %v10806_v61 }
0x108d   :  { %8028 = vmatmul.msk.bf16.vlgmr.msrb.gmra.mxu2 %vm5994_vm15, %v5799_v25  ;;  %v4956_v25 = vrot.slane %v4691_v58, 4  ;;  %v4938_v17 = vrot.slane %v4937_v63, 4  ;;  %v4915_v36 = vsel %vm3820_vm2, 0.0, %v4914_v44  ;;  %v12072_v45 = vperm.slane %v11829_v20, %v10806_v61  ;;  %v13471_v20 = vld [vmem:[#allocation34_spill] sm:$0xff] }
0x108e   :  { %v4659_v57 = vsel %vm3820_vm2, 0.0, %v4658_v5  ;;  %v4946_v28 = vrot.slane %v12066_v35, 4  ;;  %v4635_v0 = vsel %vm3820_vm2, 0.0, %v11951_v23  ;;  %v4666_v58 = vrot.slane %v11978_v55, 4 }
0x108f   :  { %v4957_v13 = vsel %vm3820_vm2, %v4956_v25, %v4659_v57  ;;  %v4763_v23 = vsel %vm3820_vm2, 0.0, %v11997_v43  ;;  %v4980_v5 = vrot.slane %v4635_v0, 4  ;;  %v5803_v55 = vpack.c.bf16 %v11673_v7, %v11673_v7  ;;  %v13477_v57 = vld [vmem:[#allocation48_spill] sm:$0xff]  ;;  %v13479_v0 = vld [vmem:[#allocation47_spill] sm:$0xff] }
0x1090   :  { %v5916_v24 = vld.sshfl [vmem:[#allocation1] sm:$0xff pattern:$0x73625140]  ;;  %v12079_v52 = vperm.slane %v4957_v13, %v10806_v61  ;;  %v4667_v43 = vsel %vm3820_vm2, 0.0, %v4666_v58 }
0x1091   :  { %v5984_v2 = vpack.c.bf16 %v5916_v24, %v5916_v24  ;;  %5922 = vst [vmem:[#allocation1] ss:$4 sm:$0xff] %v4881_v14  ;;  %v4922_v14 = vrot.slane %v4921_v3, 4 }
0x1092   :  { %5923 = vst [vmem:[#allocation1 + $0x1] ss:$4 sm:$0xff] %v4889_v56  ;;  %v4722_v56 = vrot.slane %v11932_v54, 4 }
0x1093   :  { %v5921_v48 = vld.sshfl [vmem:[#allocation1 + $0x20] sm:$0xff pattern:$0x73625140]  ;;  %v6113_v41 = vsel %vm5994_vm15, %v5984_v2, 0  ;;  %5924 = vst [vmem:[#allocation1 + $0x2] ss:$4 sm:$0xff] %v4897_v59 }
0x1094   :  { %5927 = vst [vmem:[#allocation1 + $0x20] ss:$4 sm:$0xff] %v4883_v22  ;;  %6122 = vmatpush.bf16.xpose.msra.mxu0 %v6113_v41  ;;  %v5985_v62 = vpack.c.bf16 %v5921_v48, %v5921_v48  ;;  %v4930_v59 = vrot.slane %v4929_v1, 4  ;;  %v4723_v21 = vsel %vm3820_vm2, 0.0, %v4722_v56  ;;  %v4939_v2 = vsel %vm3820_vm2, 0.0, %v4938_v17  ;;  %v13476_v17 = vld [vmem:[#allocation24_spill] sm:$0xff] }
0x1095   :  { %5928 = vst [vmem:[#allocation1 + $0x21] ss:$4 sm:$0xff] %v4891_v39  ;;  %v4965_v22 = vsel %vm3820_vm2, %v4964_v30, %v4723_v21  ;;  %v4602_v48 = vrot.slane %v11954_v11, 4  ;;  %v5004_v41 = vrot.slane %v13471_v20, 2  ;;  %v13472_v39 = vld [vmem:[#allocation52_spill] sm:$0xff]  ;;  %v4954_v11 = vrot.slane %v12072_v45, 4 }
0x1096   :  { %5929 = vst [vmem:[#allocation1 + $0x22] ss:$4 sm:$0xff] %v4899_v27  ;;  %v6132_v37 = vsel %vm5994_vm15, %v5985_v62, 0  ;;  %v4931_v47 = vsel %vm3820_vm2, 0.0, %v4930_v59  ;;  %v7996_v9 = vrot.slane %v13472_v39, 6  ;;  %v12085_v62 = vperm.slane %v4965_v22, %v10806_v61  ;;  %v13478_v22 = vld [vmem:[#allocation41_spill] sm:$0xff] }
0x1097   :  { %5930 = vst [vmem:[#allocation1 + $0x23] ss:$4 sm:$0xff] %v4907_v53  ;;  %6141 = vmatpush.bf16.xpose.msra.mxu1 %v6132_v37  ;;  %v4699_v27 = vsel %vm3820_vm2, 0.0, %v11980_v18  ;;  %v13473_v53 = vld [vmem:[#allocation30_spill] sm:$0xff]  ;;  %v13474_v37 = vld [vmem:[#allocation16_spill] sm:$0xff]  ;;  %v5804_v18 = vpack.c.bf16 %v11642_v8, %v11642_v8  ;;  %v4947_v8 = vsel %vm3820_vm2, 0.0, %v4946_v28 }
0x1098   :  { %5925 = vst [vmem:[#allocation1 + $0x3] ss:$4 sm:$0xff] %v4905_v19  ;;  %v4923_v19 = vsel %vm3820_vm2, 0.0, %v4922_v14  ;;  %v5007_v31 = vrot.slane %v13473_v53, 2  ;;  %v5005_v14 = vrot.slane %v13474_v37, 2  ;;  %v4988_v44 = vrot.slane %v4699_v27, 4 }
0x1099   :  { %v4970_v56 = vrot.slane %v12085_v62, 4  ;;  %v4955_v25 = vsel %vm3820_vm2, 0.0, %v4954_v11  ;;  %v8000_v21 = vrot.slane %v13477_v57, 6  ;;  %v7997_v11 = vrot.slane %v13479_v0, 6  ;;  %v13485_v57 = vld [vmem:[#allocation19_spill] sm:$0xff] }
0x109a   :  { %v4989_v30 = vsel %vm3820_vm2, %v4988_v44, %v4667_v43  ;;  %v13482_v44 = vld [vmem:[#allocation20_spill] sm:$0xff]  ;;  %v5805_v43 = vpack.c.bf16 %v11738_v51, %v11738_v51  ;;  %v13489_v0 = vld [vmem:[#allocation59_spill] sm:$0xff] }
0x109b   :  { %8030 = vmatmul.msk.bf16.vlgmr.msra.gmra.mxu0 %vm5994_vm15, %v5801_v40  ;;  %v4603_v40 = vsel %vm3820_vm2, 0.0, %v4602_v48 }
0x109e   :  { %v5931_v54 = vld.sshfl [vmem:[#allocation1 + $0x20] sm:$0xff pattern:$0x73625140]  ;;  %8031 = vmatmul.msk.bf16.vlgmr.msra.gmra.mxu1 %vm5994_vm15, %v5802_v34  ;;  %v4981_v34 = vsel %vm3820_vm2, %v4980_v5, %v4603_v40 }
0x109f   :  { %5937 = vst [vmem:[#allocation1 + $0x20] ss:$4 sm:$0xff] %v4915_v36  ;;  %v5926_v16 = vld.sshfl [vmem:[#allocation1] sm:$0xff pattern:$0x73625140]  ;;  %v5987_v24 = vpack.c.bf16 %v5931_v54, %v5931_v54  ;;  %v7992_v36 = vrot.slane %v13476_v17, 6 }
0x10a0   :  { %5938 = vst [vmem:[#allocation1 + $0x21] ss:$4 sm:$0xff] %v4923_v19  ;;  %v5986_v46 = vpack.c.bf16 %v5926_v16, %v5926_v16  ;;  %v4996_v19 = vrot.slane %v4763_v23, 4  ;;  %v12121_v16 = vperm.slane %v11854_v10, %v10806_v61  ;;  %v4993_v10 = vperm.slane %v4989_v30, %v10806_v61 }
0x10a1   :  { %5939 = vst [vmem:[#allocation1 + $0x22] ss:$4 sm:$0xff] %v4931_v47  ;;  %v6170_v26 = vsel %vm5994_vm15, %v5987_v24, 0  ;;  %v4971_v24 = vsel %vm3820_vm2, 0.0, %v4970_v56  ;;  %v5133_v39 = vsel %vm3820_vm2, %v7992_v36, %v5004_v41  ;;  %v13483_v56 = vld [vmem:[#allocation37_spill] sm:$0xff] }
0x10a2   :  { %5940 = vst [vmem:[#allocation1 + $0x23] ss:$4 sm:$0xff] %v4939_v2  ;;  %v6151_v4 = vsel %vm5994_vm15, %v5986_v46, 0  ;;  %6179 = vmatpush.bf16.xpose.msra.mxu3 %v6170_v26  ;;  %v5006_v26 = vrot.slane %v13478_v22, 2  ;;  %v12152_v40 = vperm.slane %v5133_v39, %v10806_v61  ;;  %v13487_v22 = vld [vmem:[#allocation36_spill] sm:$0xff] }
0x10a3   :  { %6160 = vmatpush.bf16.xpose.msra.mxu2 %v6151_v4  ;;  %5932 = vst [vmem:[#allocation1] ss:$4 sm:$0xff] %v4913_v33  ;;  %v4730_v33 = vrot.slane %v12001_v42, 4  ;;  %v13475_v42 = vld [vmem:[#allocation32_spill] sm:$0xff]  ;;  %v4985_v4 = vperm.slane %v4981_v34, %v10806_v61 }
0x10a4   :  { %5933 = vst [vmem:[#allocation1 + $0x1] ss:$4 sm:$0xff] %v4921_v3  ;;  %v4962_v3 = vrot.slane %v12079_v52, 4 }
0x10a5   :  { %5934 = vst [vmem:[#allocation1 + $0x2] ss:$4 sm:$0xff] %v4929_v1  ;;  %v8004_v1 = vrot.slane %v13475_v42, 6  ;;  %v4731_v59 = vsel %vm3820_vm2, 0.0, %v4730_v33  ;;  %v4978_v33 = vrot.slane %v12121_v16, 4  ;;  %v4986_v41 = vrot.slane %v4985_v4, 4 }
0x10a6   :  { %5935 = vst [vmem:[#allocation1 + $0x3] ss:$4 sm:$0xff] %v4937_v63  ;;  %v5165_v63 = vsel %vm3820_vm2, %v7996_v9, %v5005_v14  ;;  %v4963_v54 = vsel %vm3820_vm2, 0.0, %v4962_v3  ;;  %v4997_v13 = vsel %vm3820_vm2, %v4996_v19, %v4731_v59  ;;  %v5197_v9 = vsel %vm3820_vm2, %v8000_v21, %v5006_v26  ;;  %v13481_v14 = vld [vmem:[#allocation27_spill] sm:$0xff]  ;;  %v13484_v19 = vld [vmem:[#allocation65_spill] sm:$0xff] }
0x10a7   :  { %v5229_v46 = vsel %vm3820_vm2, %v8004_v1, %v5007_v31  ;;  %v5169_v2 = vperm.slane %v5165_v63, %v10806_v61  ;;  %v5001_v27 = vperm.slane %v4997_v13, %v10806_v61  ;;  %v13480_v31 = vld [vmem:[#allocation43_spill] sm:$0xff]  ;;  %v12147_v58 = vperm.slane %v5197_v9, %v10806_v61 }
0x10a8   :  { %v5233_v28 = vperm.slane %v5229_v46, %v10806_v61  ;;  %v5806_v3 = vpack.c.bf16 %v11707_v32, %v11707_v32  ;;  %v5039_v42 = vrot.slane %v13482_v44, 2  ;;  %v4987_v63 = vsel %vm3820_vm2, 0.0, %v4986_v41  ;;  %v13486_v46 = vld [vmem:[#allocation45_spill] sm:$0xff] }
0x10a9   :  { %v5941_v29 = vld.sshfl [vmem:[#allocation1 + $0x20] sm:$0xff pattern:$0x73625140]  ;;  %8033 = vmatmul.msk.bf16.vlgmr.msra.gmra.mxu3 %vm5994_vm15, %v5804_v18  ;;  %v12142_v37 = vrot.slane %v5169_v2, 4  ;;  %v4994_v18 = vrot.slane %v4993_v10, 4  ;;  %v7993_v21 = vrot.slane %v13485_v57, 6  ;;  %v5406_v26 = vperm.slane %v13487_v22, %v10806_v61 }
0x10aa   :  { %5947 = vst [vmem:[#allocation1 + $0x20] ss:$4 sm:$0xff] %v4947_v8  ;;  %8032 = vmatmul.msk.bf16.vlgmr.msra.gmra.mxu2 %vm5994_vm15, %v5803_v55  ;;  %v5989_v7 = vpack.c.bf16 %v5941_v29, %v5941_v29  ;;  %v12154_v23 = vrot.slane %v5233_v28, 4  ;;  %v5036_v55 = vrot.slane %v13483_v56, 2  ;;  %v7998_v2 = vrot.slane %v13486_v46, 6  ;;  %v13488_v28 = vld [vmem:[#allocation49_spill] sm:$0xff] }
0x10ab   :  { %5948 = vst [vmem:[#allocation1 + $0x21] ss:$4 sm:$0xff] %v4955_v25  ;;  %v5388_v32 = vsel %vm3820_vm2, %v12142_v37, %v12152_v40  ;;  %v4995_v29 = vsel %vm3820_vm2, 0.0, %v4994_v18  ;;  %v5810_v46 = vpack.c.bf16 %v11801_v49, %v11801_v49 }
0x10ac   :  { %5949 = vst [vmem:[#allocation1 + $0x22] ss:$4 sm:$0xff] %v4963_v54  ;;  %v6208_v47 = vsel %vm5994_vm15, %v5989_v7, 0  ;;  %v5395_v59 = vsel %vm3820_vm2, %v12154_v23, %v12147_v58  ;;  %v12175_v7 = vperm.slane %v13484_v19, %v10806_v61  ;;  %v5392_v54 = vperm.slane %v5388_v32, %v10806_v61 }
0x10ad   :  { %5950 = vst [vmem:[#allocation1 + $0x23] ss:$4 sm:$0xff] %v4971_v24  ;;  %v5936_v48 = vld.sshfl [vmem:[#allocation1] sm:$0xff pattern:$0x73625140]  ;;  %6217 = vmatpush.bf16.xpose.msrb.mxu1 %v6208_v47  ;;  %v5399_v51 = vperm.slane %v5395_v59, %v10806_v61  ;;  %v5141_v13 = vsel %vm3820_vm2, %v7993_v21, %v5036_v55 }
0x10ae   :  { %v5988_v20 = vpack.c.bf16 %v5936_v48, %v5936_v48  ;;  %5942 = vst [vmem:[#allocation1] ss:$4 sm:$0xff] %v12066_v35  ;;  %v8005_v35 = vrot.slane %v13480_v31, 6  ;;  %v5393_v9 = vrot.slane %v5392_v54, 4 }
0x10af   :  { %5943 = vst [vmem:[#allocation1 + $0x1] ss:$4 sm:$0xff] %v12072_v45  ;;  %v5037_v45 = vrot.slane %v13481_v14, 2 }
0x10b0   :  { %v6189_v53 = vsel %vm5994_vm15, %v5988_v20, 0  ;;  %5944 = vst [vmem:[#allocation1 + $0x2] ss:$4 sm:$0xff] %v12079_v52  ;;  %v5002_v52 = vrot.slane %v5001_v27, 4  ;;  %v5237_v25 = vsel %vm3820_vm2, %v8005_v35, %v5039_v42  ;;  %v5414_v20 = vrot.slane %v12175_v7, 4 }
0x10b1   :  { %6198 = vmatpush.bf16.xpose.msrb.mxu0 %v6189_v53  ;;  %5945 = vst [vmem:[#allocation1 + $0x3] ss:$4 sm:$0xff] %v12085_v62  ;;  %v5173_v1 = vsel %vm3820_vm2, %v7997_v11, %v5037_v45  ;;  %v4979_v62 = vsel %vm3820_vm2, 0.0, %v4978_v33  ;;  %v5241_v47 = vperm.slane %v5237_v25, %v10806_v61  ;;  %v12196_v11 = vperm.slane %v13489_v0, %v10806_v61 }
0x10b2   :  { %v5177_v34 = vperm.slane %v5173_v1, %v10806_v61  ;;  %v5003_v17 = vsel %vm3820_vm2, 0.0, %v5002_v52  ;;  %v12199_v33 = vperm.slane %v5141_v13, %v10806_v61  ;;  %v5808_v53 = vpack.c.bf16 %v11773_v60, %v11773_v60 }
0x10b3   :  { %v12203_v31 = vrot.slane %v5241_v47, 4  ;;  %v5407_v35 = vrot.slane %v5406_v26, 4  ;;  %v5415_v14 = vsel %vm3820_vm2, 0.0, %v5414_v20  ;;  %v5807_v1 = vpack.c.bf16 %v11792_v38, %v11792_v38  ;;  %v13492_v38 = vld [vmem:[#allocation21_spill] sm:$0xff] }
0x10b4   :  { %v5951_v5 = vld.sshfl [vmem:[#allocation1 + $0x20] sm:$0xff pattern:$0x73625140]  ;;  %8035 = vmatmul.msk.bf16.vlgmr.msrb.gmra.mxu1 %vm5994_vm15, %v5806_v3  ;;  %v12189_v48 = vrot.slane %v5177_v34, 4  ;;  %v5394_v3 = vsel %vm3820_vm2, 0.0, %v5393_v9  ;;  %v5434_v59 = vperm.slane %v13492_v38, %v10806_v61  ;;  %v13493_v34 = vld [vmem:[#allocation15_spill] sm:$0xff] }
0x10b5   :  { %5957 = vst [vmem:[#allocation1 + $0x20] ss:$4 sm:$0xff] %v4979_v62  ;;  %v5991_v8 = vpack.c.bf16 %v5951_v5, %v5951_v5  ;;  %v5423_v60 = vsel %vm3820_vm2, %v12203_v31, %v12196_v11  ;;  %v13491_v62 = vld [vmem:[#allocation33_spill] sm:$0xff]  ;;  %v5408_v55 = vsel %vm3820_vm2, 0.0, %v5407_v35  ;;  %v5441_v19 = vperm.slane %v13493_v34, %v10806_v61 }
0x10b6   :  { %5958 = vst [vmem:[#allocation1 + $0x21] ss:$4 sm:$0xff] %v4987_v63  ;;  %v5416_v41 = vsel %vm3820_vm2, %v12189_v48, %v12199_v33  ;;  %v5068_v5 = vrot.slane %v13491_v62, 2  ;;  %v5427_v63 = vperm.slane %v5423_v60, %v10806_v61  ;;  %v5435_v47 = vrot.slane %v5434_v59, 4  ;;  %v13501_v60 = vld [vmem:[#allocation28_spill] sm:$0xff] }
0x10b7   :  { %5959 = vst [vmem:[#allocation1 + $0x22] ss:$4 sm:$0xff] %v4995_v29  ;;  %v6246_v36 = vsel %vm5994_vm15, %v5991_v8, 0  ;;  %v5420_v56 = vperm.slane %v5416_v41, %v10806_v61 }
0x10b8   :  { %5960 = vst [vmem:[#allocation1 + $0x23] ss:$4 sm:$0xff] %v5003_v17  ;;  %8034 = vmatmul.msk.bf16.vlgmr.msrb.gmra.mxu0 %vm5994_vm15, %v5805_v43  ;;  %v5946_v30 = vld.sshfl [vmem:[#allocation1] sm:$0xff pattern:$0x73625140]  ;;  %6255 = vmatpush.bf16.xpose.msrb.mxu3 %v6246_v36  ;;  %v13494_v36 = vld [vmem:[#allocation55_spill] sm:$0xff] }
0x10b9   :  { %v5990_v24 = vpack.c.bf16 %v5946_v30, %v5946_v30  ;;  %5952 = vst [vmem:[#allocation1] ss:$4 sm:$0xff] %v12121_v16  ;;  %v5069_v16 = vrot.slane %v13488_v28, 2  ;;  %v5421_v17 = vrot.slane %v5420_v56, 4  ;;  %v5101_v57 = vrot.slane %v13494_v36, 2  ;;  %v13496_v28 = vld [vmem:[#allocation38_spill] sm:$0xff] }
0x10ba   :  { %5953 = vst [vmem:[#allocation1 + $0x1] ss:$4 sm:$0xff] %v4985_v4  ;;  %v5400_v4 = vrot.slane %v5399_v51, 4  ;;  %v7995_v49 = vrot.slane %v13496_v28, 6  ;;  %v5436_v0 = vsel %vm3820_vm2, 0.0, %v5435_v47  ;;  %v5497_v28 = vperm.slane %v11515_v6, %v10806_v61 }
0x10bb   :  { %v6227_v39 = vsel %vm5994_vm15, %v5990_v24, 0  ;;  %5954 = vst [vmem:[#allocation1 + $0x2] ss:$4 sm:$0xff] %v4993_v10  ;;  %v5181_v10 = vsel %vm3820_vm2, %v7998_v2, %v5069_v16  ;;  %v5428_v24 = vrot.slane %v5427_v63, 4  ;;  %v5442_v2 = vrot.slane %v5441_v19, 4 }
0x10bc   :  { %6236 = vmatpush.bf16.xpose.msrb.mxu2 %v6227_v39  ;;  %5955 = vst [vmem:[#allocation1 + $0x3] ss:$4 sm:$0xff] %v5001_v27  ;;  %v13490_v27 = vld [vmem:[#allocation44_spill] sm:$0xff]  ;;  %v5401_v44 = vsel %vm3820_vm2, 0.0, %v5400_v4  ;;  %v5185_v42 = vperm.slane %v5181_v10, %v10806_v61  ;;  %v5422_v22 = vsel %vm3820_vm2, 0.0, %v5421_v17  ;;  %v5102_v39 = vrot.slane %v10983_v50, 2 }
0x10bd   :  { %v7994_v18 = vrot.slane %v13490_v27, 6  ;;  %v5809_v4 = vpack.c.bf16 %v11810_v12, %v11810_v12  ;;  %v5443_v41 = vsel %vm3820_vm2, 0.0, %v5442_v2  ;;  %v13500_v27 = vld [vmem:[#allocation58_spill] sm:$0xff] }
0x10be   :  { %v12229_v43 = vrot.slane %v5185_v42, 4 }
0x10bf   :  { %v5961_v45 = vld.sshfl [vmem:[#allocation1 + $0x20] sm:$0xff pattern:$0x73625140]  ;;  %8037 = vmatmul.msk.bf16.vlgmr.msrb.gmra.mxu3 %vm5994_vm15, %v5808_v53  ;;  %v5149_v25 = vsel %vm3820_vm2, %v7994_v18, %v5068_v5  ;;  %v13497_v53 = vld [vmem:[#allocation51_spill] sm:$0xff]  ;;  %v5455_v18 = vperm.slane %v13500_v27, %v10806_v61 }
0x10c0   :  { %6794 = vst [vmem:[#allocation1 + $0x23] ss:$4 sm:$0xff] %v5415_v14  ;;  %v5993_v52 = vpack.c.bf16 %v5961_v45, %v5961_v45  ;;  %v12236_v30 = vperm.slane %v5149_v25, %v10806_v61  ;;  %v8003_v10 = vrot.slane %v13497_v53, 6  ;;  %v13499_v14 = vld [vmem:[#allocation42_spill] sm:$0xff]  ;;  %v13503_v5 = vld [vmem:[#allocation69_spill] sm:$0xff] }
0x10c1   :  { %6788 = vst [vmem:[#allocation1 + $0x20] ss:$4 sm:$0xff] %v5394_v3  ;;  %v5100_v45 = vrot.slane %v13499_v14, 2  ;;  %v5456_v38 = vrot.slane %v5455_v18, 4 }
0x10c2   :  { %6790 = vst [vmem:[#allocation1 + $0x21] ss:$4 sm:$0xff] %v5401_v44  ;;  %v6284_v32 = vsel %vm5994_vm15, %v5993_v52, 0  ;;  %v5221_v12 = vsel %vm3820_vm2, %v8003_v10, %v5102_v39  ;;  %v5462_v52 = vperm.slane %v13501_v60, %v10806_v61 }
0x10c3   :  { %6792 = vst [vmem:[#allocation1 + $0x22] ss:$4 sm:$0xff] %v5408_v55  ;;  %8036 = vmatmul.msk.bf16.vlgmr.msrb.gmra.mxu2 %vm5994_vm15, %v5807_v1  ;;  %v5956_v8 = vld.sshfl [vmem:[#allocation1] sm:$0xff pattern:$0x73625140]  ;;  %6293 = vmatpush.bf16.xpose.msra.mxu1 %v6284_v32  ;;  %v5157_v42 = vsel %vm3820_vm2, %v7995_v49, %v5100_v45  ;;  %v5469_v55 = vperm.slane %v13503_v5, %v10806_v61 }
0x10c4   :  { %v5992_v29 = vpack.c.bf16 %v5956_v8, %v5956_v8  ;;  %6779 = vst [vmem:[#allocation1] ss:$4 sm:$0xff] %v5392_v54  ;;  %v13495_v54 = vld [vmem:[#allocation46_spill] sm:$0xff]  ;;  %v5463_v34 = vrot.slane %v5462_v52, 4 }
0x10c5   :  { %6781 = vst [vmem:[#allocation1 + $0x1] ss:$4 sm:$0xff] %v5399_v51  ;;  %v7999_v13 = vrot.slane %v13495_v54, 6  ;;  %v5444_v51 = vsel %vm3820_vm2, %v12229_v43, %v12236_v30  ;;  %v13502_v1 = vld [vmem:[#allocation54_spill] sm:$0xff]  ;;  %v5470_v36 = vrot.slane %v5469_v55, 4 }
0x10c6   :  { %v6265_v21 = vsel %vm5994_vm15, %v5992_v29, 0  ;;  %6783 = vst [vmem:[#allocation1 + $0x2] ss:$4 sm:$0xff] %v5406_v26  ;;  %v5448_v16 = vperm.slane %v5444_v51, %v10806_v61  ;;  %v5257_v62 = vperm.slane %v13502_v1, %v10806_v61  ;;  %v12275_v29 = vperm.slane %v5221_v12, %v10806_v61  ;;  %v13509_v1 = vld [vmem:[#allocation18_spill] sm:$0xff] }
0x10c7   :  { %6274 = vmatpush.bf16.xpose.msra.mxu0 %v6265_v21  ;;  %6785 = vst [vmem:[#allocation1 + $0x3] ss:$4 sm:$0xff] %v12175_v7  ;;  %v5189_v26 = vsel %vm3820_vm2, %v7999_v13, %v5101_v57  ;;  %v5429_v7 = vsel %vm3820_vm2, 0.0, %v5428_v24  ;;  %v5457_v21 = vsel %vm3820_vm2, 0.0, %v5456_v38  ;;  %v5464_v54 = vsel %vm3820_vm2, 0.0, %v5463_v34 }
0x10c8   :  { %v5193_v35 = vperm.slane %v5189_v26, %v10806_v61  ;;  %v5449_v32 = vrot.slane %v5448_v16, 4  ;;  %v12280_v17 = vrot.slane %v5257_v62, 4  ;;  %v5471_v47 = vsel %vm3820_vm2, 0.0, %v5470_v36 }
0x10c9   :  { %v5171_v51 = vsel %vm3820_vm2, 0.0, %v12142_v37  ;;  %v5202_v26 = vrot.slane %v12147_v58, 4  ;;  %v5235_v37 = vsel %vm3820_vm2, 0.0, %v12154_v23  ;;  %v5521_v62 = vperm.slane %v13509_v1, %v10806_v61 }
0x10ca   :  { %8039 = vmatmul.msk.bf16.vlgmr.msra.gmra.mxu1 %vm5994_vm15, %v5810_v46  ;;  %v6795_v20 = vld.sshfl [vmem:[#allocation1 + $0x20] sm:$0xff pattern:$0x73625140]  ;;  %v12271_v8 = vrot.slane %v5193_v35, 4  ;;  %v5500_v49 = vrot.slane %v5171_v51, 4  ;;  %v5508_v10 = vrot.slane %v5235_v37, 4 }
0x10cb   :  { %v6883_v9 = vpack.c.bf16 %v6795_v20, %v6795_v20  ;;  %6801 = vst [vmem:[#allocation1 + $0x20] ss:$4 sm:$0xff] %v5422_v22  ;;  %v13506_v20 = vld [vmem:[#allocation25_spill] sm:$0xff]  ;;  %v5203_v53 = vsel %vm3820_vm2, 0.0, %v5202_v26  ;;  %v5498_v35 = vrot.slane %v5497_v28, 4  ;;  %v5243_v38 = vsel %vm3820_vm2, 0.0, %v12203_v31 }
0x10cc   :  { %6802 = vst [vmem:[#allocation1 + $0x21] ss:$4 sm:$0xff] %v5429_v7  ;;  %v5490_v7 = vperm.slane %v13506_v20, %v10806_v61 }
0x10cd   :  { %v6921_v50 = vsel %vm13498_vm6, %v6883_v9, 0  ;;  %6803 = vst [vmem:[#allocation1 + $0x22] ss:$4 sm:$0xff] %v5436_v0  ;;  %v5138_v9 = vrot.slane %v12152_v40, 4 }
0x10ce   :  { %8038 = vmatmul.msk.bf16.vlgmr.msra.gmra.mxu0 %vm5994_vm15, %v5809_v4  ;;  %v6786_v3 = vld.sshfl [vmem:[#allocation1] sm:$0xff pattern:$0x73625140]  ;;  %6930 = vmatpush.bf16.msra.mxu3 %v6921_v50  ;;  %6804 = vst [vmem:[#allocation1 + $0x23] ss:$4 sm:$0xff] %v5443_v41  ;;  %v5509_v50 = vsel %vm3820_vm2, %v5508_v10, %v5203_v53 }
0x10cf   :  { %v6882_v44 = vpack.c.bf16 %v6786_v3, %v6786_v3  ;;  %6796 = vst [vmem:[#allocation1] ss:$4 sm:$0xff] %v5420_v56  ;;  %v12278_v56 = vperm.slane %v5157_v42, %v10806_v61  ;;  %v5139_v40 = vsel %vm3820_vm2, 0.0, %v5138_v9  ;;  %v5499_v3 = vsel %vm3820_vm2, 0.0, %v5498_v35  ;;  %v13515_v53 = vld [vmem:[#allocation17_spill] sm:$0xff] }
0x10d0   :  { %6797 = vst [vmem:[#allocation1 + $0x1] ss:$4 sm:$0xff] %v5427_v63  ;;  %v5450_v63 = vsel %vm3820_vm2, 0.0, %v5449_v32  ;;  %v5501_v6 = vsel %vm3820_vm2, %v5500_v49, %v5139_v40  ;;  %v5513_v60 = vperm.slane %v5509_v50, %v10806_v61  ;;  %v5210_v42 = vrot.slane %v12196_v11, 4  ;;  %v13510_v32 = vld [vmem:[#allocation64_spill] sm:$0xff] }
0x10d1   :  { %v6902_v25 = vsel %vm13504_vm7, %v6882_v44, 0  ;;  %6798 = vst [vmem:[#allocation1 + $0x2] ss:$4 sm:$0xff] %v5434_v59  ;;  %v5472_v57 = vsel %vm3820_vm2, %v12271_v8, %v12278_v56 }
0x10d2   :  { %6911 = vmatpush.bf16.msra.mxu2 %v6902_v25  ;;  %6799 = vst [vmem:[#allocation1 + $0x3] ss:$4 sm:$0xff] %v5441_v19  ;;  %v5479_v19 = vsel %vm3820_vm2, %v12280_v17, %v12275_v29  ;;  %v5476_v13 = vperm.slane %v5472_v57, %v10806_v61  ;;  %v5529_v25 = vperm.slane %v13510_v32, %v10806_v61  ;;  %v5514_v11 = vrot.slane %v5513_v60, 4 }
0x10d3   :  { %v5483_v2 = vperm.slane %v5479_v19, %v10806_v61  ;;  %v5522_v57 = vrot.slane %v5521_v62, 4 }
0x10d4   :  { %v5477_v0 = vrot.slane %v5476_v13, 4 }
0x10d5   :  { %v6805_v59 = vld.sshfl [vmem:[#allocation1 + $0x20] sm:$0xff pattern:$0x73625140]  ;;  %v5484_v58 = vrot.slane %v5483_v2, 4 }
0x10d6   :  { %v6885_v24 = vpack.c.bf16 %v6805_v59, %v6805_v59  ;;  %6811 = vst [vmem:[#allocation1 + $0x20] ss:$4 sm:$0xff] %v5450_v63  ;;  %v5478_v41 = vsel %vm3820_vm2, 0.0, %v5477_v0  ;;  %v5211_v63 = vsel %vm3820_vm2, 0.0, %v5210_v42  ;;  %v5540_v59 = vrot.slane %v5243_v38, 4 }
0x10d7   :  { %6812 = vst [vmem:[#allocation1 + $0x21] ss:$4 sm:$0xff] %v5457_v21  ;;  %v5485_v14 = vsel %vm3820_vm2, 0.0, %v5484_v58  ;;  %v5530_v21 = vrot.slane %v5529_v25, 4  ;;  %v5162_v38 = vrot.slane %v12278_v56, 4  ;;  %v5259_v56 = vsel %vm3820_vm2, 0.0, %v12280_v17 }
0x10d8   :  { %v6959_v46 = vsel %vm13505_vm8, %v6885_v24, 0  ;;  %6813 = vst [vmem:[#allocation1 + $0x22] ss:$4 sm:$0xff] %v5464_v54  ;;  %v5515_v54 = vsel %vm3820_vm2, 0.0, %v5514_v11  ;;  %v13517_v11 = vld [vmem:[#allocation29_spill] sm:$0xff] }
0x10d9   :  { %v6800_v22 = vld.sshfl [vmem:[#allocation1] sm:$0xff pattern:$0x73625140]  ;;  %6968 = vmatpush.bf16.msrb.mxu1 %v6959_v46  ;;  %6814 = vst [vmem:[#allocation1 + $0x23] ss:$4 sm:$0xff] %v5471_v47  ;;  %v5523_v46 = vsel %vm3820_vm2, 0.0, %v5522_v57 }
0x10da   :  { %v6884_v39 = vpack.c.bf16 %v6800_v22, %v6800_v22  ;;  %6806 = vst [vmem:[#allocation1] ss:$4 sm:$0xff] %v5448_v16  ;;  %v5491_v16 = vrot.slane %v5490_v7, 4 }
0x10db   :  { %6807 = vst [vmem:[#allocation1 + $0x1] ss:$4 sm:$0xff] %v5455_v18  ;;  %v5505_v18 = vperm.slane %v5501_v6, %v10806_v61 }
0x10dc   :  { %v6940_v4 = vsel %vm13507_vm9, %v6884_v39, 0  ;;  %6808 = vst [vmem:[#allocation1 + $0x2] ss:$4 sm:$0xff] %v5462_v52  ;;  %v5492_v27 = vsel %vm3820_vm2, 0.0, %v5491_v16  ;;  %v5179_v52 = vsel %vm3820_vm2, 0.0, %v12189_v48  ;;  %v5561_v16 = vperm.slane %v13515_v53, %v10806_v61 }
0x10dd   :  { %6949 = vmatpush.bf16.msrb.mxu0 %v6940_v4  ;;  %6809 = vst [vmem:[#allocation1 + $0x3] ss:$4 sm:$0xff] %v5469_v55  ;;  %v5146_v55 = vrot.slane %v12199_v33, 4  ;;  %v5506_v48 = vrot.slane %v5505_v18, 4  ;;  %v5532_v34 = vrot.slane %v5179_v52, 4  ;;  %v5187_v4 = vsel %vm3820_vm2, 0.0, %v12229_v43 }
0x10de   :  { %v5564_v50 = vrot.slane %v5187_v4, 4  ;;  %v5625_v4 = vperm.slane %v11533_v15, %v10806_v61 }
0x10df   :  { %v5147_v33 = vsel %vm3820_vm2, 0.0, %v5146_v55  ;;  %v5507_v19 = vsel %vm3820_vm2, 0.0, %v5506_v48  ;;  %v5195_v55 = vsel %vm3820_vm2, 0.0, %v12271_v8  ;;  %v13516_v48 = vld [vmem:[#allocation57_spill] sm:$0xff] }
0x10e0   :  { %v6815_v23 = vld.sshfl [vmem:[#allocation1 + $0x20] sm:$0xff pattern:$0x73625140]  ;;  %v5533_v24 = vsel %vm3820_vm2, %v5532_v34, %v5147_v33  ;;  %v5577_v34 = vperm.slane %v13516_v48, %v10806_v61  ;;  %v5596_v33 = vrot.slane %v5195_v55, 4 }
0x10e1   :  { %v6887_v45 = vpack.c.bf16 %v6815_v23, %v6815_v23  ;;  %6821 = vst [vmem:[#allocation1 + $0x20] ss:$4 sm:$0xff] %v5478_v41  ;;  %v5537_v51 = vperm.slane %v5533_v24, %v10806_v61  ;;  %v5154_v23 = vrot.slane %v12236_v30, 4 }
0x10e2   :  { %6822 = vst [vmem:[#allocation1 + $0x21] ss:$4 sm:$0xff] %v5485_v14 }
0x10e3   :  { %v6997_v12 = vsel %vm13508_vm10, %v6887_v45, 0  ;;  %6823 = vst [vmem:[#allocation1 + $0x22] ss:$4 sm:$0xff] %v5492_v27  ;;  %v5562_v45 = vrot.slane %v5561_v16, 4  ;;  %v5155_v30 = vsel %vm3820_vm2, 0.0, %v5154_v23  ;;  %vm13520_vm10 = vmmov %vm13514_vm0 }
0x10e4   :  { %v6810_v44 = vld.sshfl [vmem:[#allocation1] sm:$0xff pattern:$0x73625140]  ;;  %7006 = vmatpush.bf16.msrb.mxu3 %v6997_v12  ;;  %6824 = vst [vmem:[#allocation1 + $0x23] ss:$4 sm:$0xff] %v5499_v3 }
0x10e5   :  { %v6886_v5 = vpack.c.bf16 %v6810_v44, %v6810_v44  ;;  %6816 = vst [vmem:[#allocation1] ss:$4 sm:$0xff] %v5476_v13  ;;  %v5541_v13 = vsel %vm3820_vm2, %v5540_v59, %v5211_v63  ;;  %v5563_v52 = vsel %vm3820_vm2, 0.0, %v5562_v45  ;;  %v5585_v63 = vperm.slane %v13517_v11, %v10806_v61  ;;  %v13518_v59 = vld [vmem:[#allocation23_spill] sm:$0xff] }
0x10e6   :  { %6817 = vst [vmem:[#allocation1 + $0x1] ss:$4 sm:$0xff] %v5483_v2  ;;  %v5531_v2 = vsel %vm3820_vm2, 0.0, %v5530_v21  ;;  %v5545_v26 = vperm.slane %v5541_v13, %v10806_v61  ;;  %v5593_v8 = vperm.slane %v13518_v59, %v10806_v61 }
0x10e7   :  { %v6978_v36 = vsel %vm13511_vm3, %v6886_v5, 0  ;;  %6818 = vst [vmem:[#allocation1 + $0x2] ss:$4 sm:$0xff] %v5490_v7  ;;  %v13513_v7 = vld [vmem:[#allocation61_spill] sm:$0xff] }
0x10e8   :  { %6987 = vmatpush.bf16.msrb.mxu2 %v6978_v36  ;;  %6819 = vst [vmem:[#allocation1 + $0x3] ss:$4 sm:$0xff] %v5497_v28  ;;  %v5553_v39 = vperm.slane %v13513_v7, %v10806_v61  ;;  %v5538_v28 = vrot.slane %v5537_v51, 4  ;;  %v5546_v49 = vrot.slane %v5545_v26, 4  ;;  %v5226_v36 = vrot.slane %v12275_v29, 4 }
0x10e9   :  { %v5163_v29 = vsel %vm3820_vm2, 0.0, %v5162_v38 }
0x10ea   :  { %v5554_v0 = vrot.slane %v5553_v39, 4  ;;  %v5539_v58 = vsel %vm3820_vm2, 0.0, %v5538_v28  ;;  %v5547_v35 = vsel %vm3820_vm2, 0.0, %v5546_v49 }
0x10eb   :  { %v6825_v31 = vld.sshfl [vmem:[#allocation1 + $0x20] sm:$0xff pattern:$0x73625140] }
0x10ec   :  { %v6889_v47 = vpack.c.bf16 %v6825_v31, %v6825_v31  ;;  %6831 = vst [vmem:[#allocation1 + $0x20] ss:$4 sm:$0xff] %v5507_v19  ;;  %v5555_v41 = vsel %vm3820_vm2, 0.0, %v5554_v0  ;;  %v5578_v31 = vrot.slane %v5577_v34, 4 }
0x10ed   :  { %6832 = vst [vmem:[#allocation1 + $0x21] ss:$4 sm:$0xff] %v5515_v54  ;;  %v5227_v54 = vsel %vm3820_vm2, 0.0, %v5226_v36 }
0x10ee   :  { %v7035_v22 = vsel %vm13512_vm11, %v6889_v47, 0  ;;  %6833 = vst [vmem:[#allocation1 + $0x22] ss:$4 sm:$0xff] %v5523_v46  ;;  %v5586_v47 = vrot.slane %v5585_v63, 4 }
0x10ef   :  { %v6820_v20 = vld.sshfl [vmem:[#allocation1] sm:$0xff pattern:$0x73625140]  ;;  %7044 = vmatpush.bf16.msra.mxu1 %v7035_v22  ;;  %6834 = vst [vmem:[#allocation1 + $0x23] ss:$4 sm:$0xff] %v5531_v2  ;;  %v5597_v2 = vsel %vm3820_vm2, %v5596_v33, %v5163_v29  ;;  %v5594_v22 = vrot.slane %v5593_v8, 4 }
0x10f0   :  { %v6888_v9 = vpack.c.bf16 %v6820_v20, %v6820_v20  ;;  %6826 = vst [vmem:[#allocation1] ss:$4 sm:$0xff] %v5505_v18  ;;  %v5601_v7 = vperm.slane %v5597_v2, %v10806_v61 }
0x10f1   :  { %6827 = vst [vmem:[#allocation1 + $0x1] ss:$4 sm:$0xff] %v5513_v60  ;;  %v5565_v60 = vsel %vm3820_vm2, %v5564_v50, %v5155_v30 }
0x10f2   :  { %v7016_v37 = vsel %vm13514_vm0, %v6888_v9, 0  ;;  %6828 = vst [vmem:[#allocation1 + $0x2] ss:$4 sm:$0xff] %v5521_v62  ;;  %v6010_v40 = vpop.f32.mrf.mxu2  ;;  %v5569_v5 = vperm.slane %v5565_v60, %v10806_v61  ;;  %v5595_v9 = vsel %vm3820_vm2, 0.0, %v5594_v22  ;;  %v5602_v0 = vrot.slane %v5601_v7, 4 }
0x10f3   :  { %7025 = vmatpush.bf16.msra.mxu0 %v7016_v37  ;;  %6829 = vst [vmem:[#allocation1 + $0x3] ss:$4 sm:$0xff] %v5529_v25  ;;  %v12350_v6 = vmul.f32 0.35355338, %v6010_v40  ;;  %v13519_v37 = vld [vmem:[#allocation31_spill] sm:$0xff] }
0x10f4   :  { %v5570_v19 = vrot.slane %v5569_v5, 4  ;;  %v5617_v49 = vperm.slane %v13519_v37, %v10806_v61 }
0x10f5   :  { %v6029_v43 = vpop.f32.mrf.mxu3  ;;  %v6315_v14 = vsel %vm5994_vm15, %v12350_v6, -inf }
0x10f6   :  { %v12347_v10 = vld.sshfl [vmem:[#allocation1 + $0x20] sm:$0xff pattern:$0x73625140]  ;;  %v12356_v27 = vmul.f32 0.35355338, %v6029_v43  ;;  %6316 = vmax.xlane.f32.xlu2 %v6315_v14  ;;  %v5571_v17 = vsel %vm3820_vm2, 0.0, %v5570_v19 }
0x10f7   :  { %6841 = vst [vmem:[#allocation1 + $0x20] ss:$4 sm:$0xff] %v5539_v58  ;;  %v5603_v43 = vsel %vm3820_vm2, 0.0, %v5602_v0  ;;  %v5626_v14 = vrot.slane %v5625_v4, 4 }
0x10f8   :  { %6842 = vst [vmem:[#allocation1 + $0x21] ss:$4 sm:$0xff] %v5547_v35  ;;  %v6318_v12 = vsel %vm5994_vm15, %v12356_v27, -inf }
0x10f9   :  { %6843 = vst [vmem:[#allocation1 + $0x22] ss:$4 sm:$0xff] %v5555_v41  ;;  %6319 = vmax.xlane.f32.xlu1 %v6318_v12  ;;  %v5618_v41 = vrot.slane %v5617_v49, 4  ;;  %v5627_v30 = vsel %vm3820_vm2, 0.0, %v5626_v14 }
0x10fa   :  { %v12358_v18 = vld.sshfl [vmem:[#allocation1] sm:$0xff pattern:$0x73625140]  ;;  %v6012_v44 = vpop.f32.mrf.mxu2  ;;  %6844 = vst [vmem:[#allocation1 + $0x23] ss:$4 sm:$0xff] %v5563_v52 }
0x10fb   :  { %v6048_v3 = vpop.f32.mrf.mxu0  ;;  %6836 = vst [vmem:[#allocation1] ss:$4 sm:$0xff] %v5537_v51  ;;  %v5604_v51 = vrot.slane %v5259_v56, 4  ;;  %v5619_v12 = vsel %vm3820_vm2, 0.0, %v5618_v41 }
0x10fc   :  { %6837 = vst [vmem:[#allocation1 + $0x1] ss:$4 sm:$0xff] %v5545_v26  ;;  %v12367_v62 = vmul.f32 0.35355338, %v6048_v3  ;;  %v5579_v26 = vsel %vm3820_vm2, 0.0, %v5578_v31 }
0x10fd   :  { %6838 = vst [vmem:[#allocation1 + $0x2] ss:$4 sm:$0xff] %v5553_v39  ;;  %v6067_v42 = vpop.f32.mrf.mxu1  ;;  %v6031_v32 = vpop.f32.mrf.mxu3  ;;  %v5605_v20 = vsel %vm3820_vm2, %v5604_v51, %v5227_v54  ;;  %v5587_v39 = vsel %vm3820_vm2, 0.0, %v5586_v47 }
0x10fe   :  { %6839 = vst [vmem:[#allocation1 + $0x3] ss:$4 sm:$0xff] %v5561_v16  ;;  %v12365_v1 = vmul.f32 0.35355338, %v6067_v42  ;;  %v6321_v21 = vsel %vm5994_vm15, %v12367_v62, -inf  ;;  %v5609_v28 = vperm.slane %v5605_v20, %v10806_v61 }
0x1100   :  { %v6324_v25 = vsel %vm5994_vm15, %v12365_v1, -inf  ;;  %v5610_v40 = vrot.slane %v5609_v28, 4 }
0x1101   :  { %6325 = vmax.xlane.f32.xlu0 %v6324_v25  ;;  %6322 = vmax.xlane.f32.xlu1 %v6321_v21  ;;  %v12390_v46 = vld.sshfl [vmem:[#allocation1 + $0x20] sm:$0xff pattern:$0x73625140] }
0x1102   :  { %6851 = vst [vmem:[#allocation1 + $0x20] ss:$4 sm:$0xff] %v5571_v17  ;;  %v5611_v3 = vsel %vm3820_vm2, 0.0, %v5610_v40 }
0x1103   :  { %v6050_v57 = vpop.f32.mrf.mxu0  ;;  %6852 = vst [vmem:[#allocation1 + $0x21] ss:$4 sm:$0xff] %v5579_v26 }
0x1104   :  { %6853 = vst [vmem:[#allocation1 + $0x22] ss:$4 sm:$0xff] %v5587_v39 }
0x1105   :  { %v12386_v24 = vld.sshfl [vmem:[#allocation1] sm:$0xff pattern:$0x73625140]  ;;  %v6069_v13 = vpop.f32.mrf.mxu1  ;;  %6854 = vst [vmem:[#allocation1 + $0x23] ss:$4 sm:$0xff] %v5595_v9 }
0x1106   :  { %6846 = vst [vmem:[#allocation1] ss:$4 sm:$0xff] %v5569_v5 }
0x1107   :  { %6847 = vst [vmem:[#allocation1 + $0x1] ss:$4 sm:$0xff] %v5577_v34 }
0x1108   :  { %6848 = vst [vmem:[#allocation1 + $0x2] ss:$4 sm:$0xff] %v5585_v63 }
0x1109   :  { %6849 = vst [vmem:[#allocation1 + $0x3] ss:$4 sm:$0xff] %v5593_v8 }
0x110c   :  { %v12415_v45 = vld.sshfl [vmem:[#allocation1 + $0x20] sm:$0xff pattern:$0x73625140] }
0x110d   :  { %6861 = vst [vmem:[#allocation1 + $0x20] ss:$4 sm:$0xff] %v5603_v43 }
0x110e   :  { %v6105_v58 = vpop.f32.mrf.mxu3  ;;  %6862 = vst [vmem:[#allocation1 + $0x21] ss:$4 sm:$0xff] %v5611_v3 }
0x110f   :  { %v12404_v53 = vmul.f32 0.35355338, %v6105_v58  ;;  %6863 = vst [vmem:[#allocation1 + $0x22] ss:$4 sm:$0xff] %v5619_v12 }
0x1110   :  { %v12406_v16 = vld.sshfl [vmem:[#allocation1] sm:$0xff pattern:$0x73625140]  ;;  %v6086_v35 = vpop.f32.mrf.mxu2  ;;  %6864 = vst [vmem:[#allocation1 + $0x23] ss:$4 sm:$0xff] %v5627_v30 }
0x1111   :  { %6856 = vst [vmem:[#allocation1] ss:$4 sm:$0xff] %v5601_v7  ;;  %v12408_v23 = vmul.f32 0.35355338, %v6086_v35  ;;  %v6330_v50 = vsel %vm5994_vm15, %v12404_v53, -inf }
0x1112   :  { %6857 = vst [vmem:[#allocation1 + $0x1] ss:$4 sm:$0xff] %v5609_v28  ;;  %6331 = vmax.xlane.f32.xlu2 %v6330_v50 }
0x1113   :  { %6858 = vst [vmem:[#allocation1 + $0x2] ss:$4 sm:$0xff] %v5617_v49  ;;  %v6327_v15 = vsel %vm5994_vm15, %v12408_v23, -inf }
0x1114   :  { %6859 = vst [vmem:[#allocation1 + $0x3] ss:$4 sm:$0xff] %v5625_v4  ;;  %6328 = vmax.xlane.f32.xlu0 %v6327_v15 }
0x1116   :  { %v6107_v60 = vpop.f32.mrf.mxu3 }
0x1118   :  { %v6124_v52 = vpop.f32.mrf.mxu0  ;;  %v6088_v44 = vpop.f32.mrf.mxu2 }
0x1119   :  { %v12420_v42 = vmul.f32 0.35355338, %v6124_v52 }
0x111b   :  { %v6143_v5 = vpop.f32.mrf.mxu1  ;;  %v6333_v55 = vsel %vm5994_vm15, %v12420_v42, -inf }
0x111c   :  { %v12424_v32 = vmul.f32 0.35355338, %v6143_v5  ;;  %6334 = vmax.xlane.f32.xlu2 %v6333_v55 }
0x111e   :  { %v6336_v25 = vsel %vm5994_vm15, %v12424_v32, -inf }
0x111f   :  { %6337 = vmax.xlane.f32.xlu1 %v6336_v25 }
0x1120   :  { %v6126_v38 = vpop.f32.mrf.mxu0 }
0x1123   :  { %v6145_v48 = vpop.f32.mrf.mxu1 }
0x112c   :  { %v6181_v34 = vpop.f32.mrf.mxu3 }
0x112d   :  { %v6162_v36 = vpop.f32.mrf.mxu2  ;;  %v12428_v11 = vmul.f32 0.35355338, %v6181_v34 }
0x112e   :  { %v12430_v63 = vmul.f32 0.35355338, %v6162_v36 }
0x112f   :  { %v6342_v57 = vsel %vm5994_vm15, %v12428_v11, -inf }
0x1130   :  { %v6339_v33 = vsel %vm5994_vm15, %v12430_v63, -inf  ;;  %6343 = vmax.xlane.f32.xlu0 %v6342_v57 }
0x1131   :  { %6340 = vmax.xlane.f32.xlu1 %v6339_v33  ;;  %v6219_v59 = vpop.f32.mrf.mxu1 }
0x1132   :  { %v12436_v8 = vmul.f32 0.35355338, %v6219_v59 }
0x1134   :  { %v6348_v21 = vsel %vm5994_vm15, %v12436_v8, -inf  ;;  %v6183_v19 = vpop.f32.mrf.mxu3 }
0x1135   :  { %v6200_v56 = vpop.f32.mrf.mxu0  ;;  %v6164_v29 = vpop.f32.mrf.mxu2  ;;  %6349 = vmax.xlane.f32.xlu2 %v6348_v21 }
0x1136   :  { %v12440_v31 = vmul.f32 0.35355338, %v6200_v56 }
0x1138   :  { %v6345_v54 = vsel %vm5994_vm15, %v12440_v31, -inf }
0x1139   :  { %v6221_v13 = vpop.f32.mrf.mxu1  ;;  %6346 = vmax.xlane.f32.xlu0 %v6345_v54 }
0x113d   :  { %v6202_v47 = vpop.f32.mrf.mxu0 }
0x1142   :  { %v6257_v51 = vpop.f32.mrf.mxu3 }
0x1143   :  { %v12444_v2 = vmul.f32 0.35355338, %v6257_v51 }
0x1145   :  { %v6354_v22 = vsel %vm5994_vm15, %v12444_v2, -inf }
0x1146   :  { %v6238_v17 = vpop.f32.mrf.mxu2  ;;  %6355 = vmax.xlane.f32.xlu1 %v6354_v22 }
0x1147   :  { %v12448_v26 = vmul.f32 0.35355338, %v6238_v17  ;;  %v6295_v20 = vpop.f32.mrf.mxu1 }
0x1148   :  { %v12452_v28 = vmul.f32 0.35355338, %v6295_v20 }
0x1149   :  { %v6351_v7 = vsel %vm5994_vm15, %v12448_v26, -inf }
0x114a   :  { %6352 = vmax.xlane.f32.xlu2 %v6351_v7  ;;  %v6259_v39 = vpop.f32.mrf.mxu3  ;;  %v6360_v0 = vsel %vm5994_vm15, %v12452_v28, -inf }
0x114b   :  { %v6276_v9 = vpop.f32.mrf.mxu0 }
0x114c   :  { %v12470_v5 = vmul.f32 0.35355338, %v6276_v9 }
0x114e   :  { %v6240_v37 = vpop.f32.mrf.mxu2  ;;  %v6357_v25 = vsel %vm5994_vm15, %v12470_v5, -inf }
0x114f   :  { %v6297_v49 = vpop.f32.mrf.mxu1 }
0x1152   :  { %6361 = vmax.xlane.f32.xlu2 %v6360_v0 }
0x1153   :  { %v6278_v4 = vpop.f32.mrf.mxu0 }
0x1169   :  { %v6317_v58 = vpop.xlane.xlu2 %6316 }
0x116a   :  { %v6363_v40 = vsub.f32 %v12350_v6, %v6317_v58 }
0x116c   :  { %v6379_v35 = vmul.f32 1.442695, %v6363_v40  ;;  %v6320_v41 = vpop.xlane.xlu1 %6319 }
0x116d   :  { %v6364_v50 = vsub.f32 %v12356_v27, %v6320_v41 }
0x116e   :  { %8418 = vpow2.f32 %v6379_v35 }
0x116f   :  { %v6381_v43 = vmul.f32 1.442695, %v6364_v50 }
0x1171   :  { %8420 = vpow2.f32 %v6381_v43 }
0x1174   :  { %v6326_v14 = vpop.xlane.xlu0 %6325  ;;  %v12459_v3 = vpop.eup %8418 }
0x1175   :  { %v6366_v15 = vsub.f32 %v12365_v1, %v6326_v14  ;;  %v6323_v12 = vpop.xlane.xlu1 %6322  ;;  %v6411_v52 = vsel %vm5994_vm15, %v12459_v3, 0.0 }
0x1176   :  { %v6365_v60 = vsub.f32 %v12367_v62, %v6323_v12  ;;  %6412 = vadd.xlane.f32.xlu1 %v6411_v52 }
0x1177   :  { %v6385_v30 = vmul.f32 1.442695, %v6366_v15  ;;  %v12464_v6 = vpop.eup %8420 }
0x1178   :  { %v6383_v27 = vmul.f32 1.442695, %v6365_v60  ;;  %v6414_v44 = vsel %vm5994_vm15, %v12464_v6, 0.0 }
0x1179   :  { %8422 = vpow2.f32 %v6385_v30  ;;  %6415 = vadd.xlane.f32.xlu0 %v6414_v44 }
0x117a   :  { %8424 = vpow2.f32 %v6383_v27 }
0x117f   :  { %v12468_v1 = vpop.eup %8422 }
0x1180   :  { %v6420_v62 = vsel %vm5994_vm15, %v12468_v1, 0.0  ;;  %v12474_v55 = vpop.eup %8424 }
0x1181   :  { %6421 = vadd.xlane.f32.xlu1 %v6420_v62  ;;  %v6417_v38 = vsel %vm5994_vm15, %v12474_v55, 0.0  ;;  %6358 = vmax.xlane.f32.xlu0 %v6357_v25 }
0x1182   :  { %6418 = vadd.xlane.f32.xlu2 %v6417_v38 }
0x1185   :  { %v6332_v48 = vpop.xlane.xlu2 %6331 }
0x1186   :  { %v6368_v34 = vsub.f32 %v12404_v53, %v6332_v48 }
0x1187   :  { %v6329_v36 = vpop.xlane.xlu0 %6328 }
0x1188   :  { %v6367_v57 = vsub.f32 %v12408_v23, %v6329_v36  ;;  %v6389_v33 = vmul.f32 1.442695, %v6368_v34 }
0x118a   :  { %v6387_v59 = vmul.f32 1.442695, %v6367_v57  ;;  %8426 = vpow2.f32 %v6389_v33 }
0x118c   :  { %8428 = vpow2.f32 %v6387_v59 }
0x118f   :  { %v6335_v21 = vpop.xlane.xlu2 %6334 }
0x1190   :  { %v6369_v19 = vsub.f32 %v12420_v42, %v6335_v21  ;;  %v12483_v56 = vpop.eup %8426 }
0x1191   :  { %v6426_v29 = vsel %vm5994_vm15, %v12483_v56, 0.0 }
0x1192   :  { %v6391_v54 = vmul.f32 1.442695, %v6369_v19  ;;  %v6338_v13 = vpop.xlane.xlu1 %6337  ;;  %v12487_v47 = vpop.eup %8428  ;;  %6427 = vadd.xlane.f32.xlu0 %v6426_v29 }
0x1193   :  { %v6370_v53 = vsub.f32 %v12424_v32, %v6338_v13  ;;  %v6423_v23 = vsel %vm5994_vm15, %v12487_v47, 0.0 }
0x1194   :  { %8430 = vpow2.f32 %v6391_v54  ;;  %6424 = vadd.xlane.f32.xlu1 %v6423_v23 }
0x1195   :  { %v6393_v51 = vmul.f32 1.442695, %v6370_v53 }
0x1197   :  { %8432 = vpow2.f32 %v6393_v51 }
0x119a   :  { %v12492_v42 = vpop.eup %8430 }
0x119b   :  { %v6429_v22 = vsel %vm5994_vm15, %v12492_v42, 0.0 }
0x119c   :  { %6430 = vadd.xlane.f32.xlu0 %v6429_v22 }
0x119d   :  { %v12496_v17 = vpop.eup %8432 }
0x119e   :  { %v6432_v20 = vsel %vm5994_vm15, %v12496_v17, 0.0 }
0x119f   :  { %6433 = vadd.xlane.f32.xlu2 %v6432_v20 }
0x11a3   :  { %v6344_v32 = vpop.xlane.xlu0 %6343 }
0x11a4   :  { %v6341_v7 = vpop.xlane.xlu1 %6340  ;;  %v6372_v39 = vsub.f32 %v12428_v11, %v6344_v32 }
0x11a5   :  { %v6371_v9 = vsub.f32 %v12430_v63, %v6341_v7 }
0x11a6   :  { %v6397_v37 = vmul.f32 1.442695, %v6372_v39  ;;  %v6891_v39 = vpack.c.bf16 %v12347_v10, %v12347_v10  ;;  %v6890_v10 = vpack.c.bf16 %v12358_v18, %v12358_v18 }
0x11a7   :  { %v6395_v49 = vmul.f32 1.442695, %v6371_v9 }
0x11a8   :  { %8434 = vpow2.f32 %v6397_v37  ;;  %v6350_v0 = vpop.xlane.xlu2 %6349 }
0x11a9   :  { %8436 = vpow2.f32 %v6395_v49  ;;  %v6374_v4 = vsub.f32 %v12436_v8, %v6350_v0 }
0x11ab   :  { %v6401_v58 = vmul.f32 1.442695, %v6374_v4 }
0x11ac   :  { %v6347_v40 = vpop.xlane.xlu0 %6346 }
0x11ad   :  { %8438 = vpow2.f32 %v6401_v58  ;;  %v6373_v35 = vsub.f32 %v12440_v31, %v6347_v40 }
0x11ae   :  { %v12504_v41 = vpop.eup %8434 }
0x11af   :  { %v12506_v50 = vpop.eup %8436  ;;  %v6399_v43 = vmul.f32 1.442695, %v6373_v35  ;;  %v6438_v11 = vsel %vm5994_vm15, %v12504_v41, 0.0 }
0x11b0   :  { %v6435_v63 = vsel %vm5994_vm15, %v12506_v50, 0.0  ;;  %6439 = vadd.xlane.f32.xlu1 %v6438_v11 }
0x11b1   :  { %8440 = vpow2.f32 %v6399_v43  ;;  %6436 = vadd.xlane.f32.xlu2 %v6435_v63 }
0x11b3   :  { %v12512_v8 = vpop.eup %8438 }
0x11b4   :  { %v6444_v14 = vsel %vm5994_vm15, %v12512_v8, 0.0 }
0x11b5   :  { %6445 = vadd.xlane.f32.xlu0 %v6444_v14 }
0x11b7   :  { %v12516_v31 = vpop.eup %8440 }
0x11b8   :  { %v6441_v15 = vsel %vm5994_vm15, %v12516_v31, 0.0 }
0x11b9   :  { %v6356_v12 = vpop.xlane.xlu1 %6355  ;;  %6442 = vadd.xlane.f32.xlu1 %v6441_v15 }
0x11ba   :  { %v6376_v30 = vsub.f32 %v12444_v2, %v6356_v12 }
0x11bc   :  { %v6405_v60 = vmul.f32 1.442695, %v6376_v30 }
0x11bd   :  { %v6353_v52 = vpop.xlane.xlu2 %6352 }
0x11be   :  { %v6375_v27 = vsub.f32 %v12448_v26, %v6353_v52  ;;  %8442 = vpow2.f32 %v6405_v60 }
0x11c0   :  { %v6403_v44 = vmul.f32 1.442695, %v6375_v27 }
0x11c2   :  { %8444 = vpow2.f32 %v6403_v44 }
0x11c4   :  { %v12522_v62 = vpop.eup %8442 }
0x11c5   :  { %v6362_v25 = vpop.xlane.xlu2 %6361  ;;  %v6450_v38 = vsel %vm5994_vm15, %v12522_v62, 0.0 }
0x11c6   :  { %v6378_v48 = vsub.f32 %v12452_v28, %v6362_v25  ;;  %6451 = vadd.xlane.f32.xlu2 %v6450_v38 }
0x11c8   :  { %v12527_v34 = vpop.eup %8444  ;;  %v6409_v36 = vmul.f32 1.442695, %v6378_v48  ;;  %v7054_v48 = vsel %vm13520_vm10, %v6890_v10, 0 }
0x11c9   :  { %v6447_v2 = vsel %vm5994_vm15, %v12527_v34, 0.0 }
0x11ca   :  { %8446 = vpow2.f32 %v6409_v36  ;;  %6448 = vadd.xlane.f32.xlu0 %v6447_v2 }
0x11d0   :  { %v12531_v26 = vpop.eup %8446 }
0x11d1   :  { %v6456_v57 = vsel %vm5994_vm15, %v12531_v26, 0.0 }
0x11d2   :  { %6457 = vadd.xlane.f32.xlu1 %v6456_v57 }
0x11e9   :  { %v6413_v33 = vpop.xlane.xlu1 %6412 }
0x11ea   :  { %8448 = vrcp.f32 %v6413_v33  ;;  %v6468_v13 = vand.u32 2147483647, %v6413_v33  ;;  %v6470_v53 = vand.u32 2147483648, %v6413_v33  ;;  %vm6464_vm13 = vweird.f32 %v6413_v33 }
0x11ec   :  { %v6416_v59 = vpop.xlane.xlu0 %6415  ;;  %v6471_v4 = vor.u32 1.1754944e-38, %v6470_v53  ;;  %vm6469_vm1 = vcmp.eq.f32.partialorder %v6468_v13, 8.507059e+37 }
0x11ed   :  { %8450 = vrcp.f32 %v6416_v59  ;;  %v6485_v37 = vand.u32 2147483648, %v6416_v59  ;;  %v6483_v40 = vand.u32 2147483647, %v6416_v59  ;;  %vm6479_vm5 = vweird.f32 %v6416_v59 }
0x11ef   :  { %v6486_v15 = vor.u32 1.1754944e-38, %v6485_v37  ;;  %vm6484_vm7 = vcmp.eq.f32.partialorder %v6483_v40, 8.507059e+37 }
0x11f0   :  { %v8449_v28 = vpop.eup %8448 }
0x11f1   :  { %v6460_v21 = vmul.f32 %v8449_v28, %v6413_v33  ;;  %vm6465_vm12 = vweird.f32 %v8449_v28 }
0x11f2   :  { %vm6466_vm4 = vmor %vm6464_vm13, %vm6465_vm12 }
0x11f3   :  { %v8451_v29 = vpop.eup %8450  ;;  %v6461_v54 = vsub.f32 1.0, %v6460_v21  ;;  %vm13521_vm13 = vmmov %vm13520_vm10 }
0x11f4   :  { %v12535_v19 = vpop.xlane.xlu1 %6421  ;;  %v6475_v23 = vmul.f32 %v8451_v29, %v6416_v59  ;;  %v6359_v51 = vpop.xlane.xlu0 %6358  ;;  %vm6480_vm14 = vweird.f32 %v8451_v29  ;;  %v7073_v53 = vsel %vm13521_vm13, %v6891_v39, 0  ;;  %v6892_v39 = vpack.c.bf16 %v12386_v24, %v12386_v24 }
0x11f5   :  { %8452 = vrcp.f32 %v12535_v19  ;;  %v12538_v22 = vpop.xlane.xlu2 %6418  ;;  %v6462_v20 = vmul.f32 %v8449_v28, %v6461_v54  ;;  %v6377_v32 = vsub.f32 %v12470_v5, %v6359_v51  ;;  %vm6481_vm6 = vmor %vm6479_vm5, %vm6480_vm14  ;;  %v6515_v30 = vand.u32 2147483648, %v12535_v19 }
0x11f6   :  { %8454 = vrcp.f32 %v12538_v22  ;;  %v6476_v7 = vsub.f32 1.0, %v6475_v23  ;;  %v6513_v52 = vand.u32 2147483647, %v12535_v19  ;;  %vm6509_vm9 = vweird.f32 %v12535_v19 }
0x11f7   :  { %v6463_v9 = vadd.f32 %v8449_v28, %v6462_v20  ;;  %v6407_v49 = vmul.f32 1.442695, %v6377_v32  ;;  %v6516_v57 = vor.u32 1.1754944e-38, %v6515_v30  ;;  %v6498_v33 = vand.u32 2147483647, %v12538_v22 }
0x11f8   :  { %v6477_v58 = vmul.f32 %v8451_v29, %v6476_v7  ;;  %v6500_v59 = vand.u32 2147483648, %v12538_v22  ;;  %vm6514_vm0 = vcmp.eq.f32.partialorder %v6513_v52, 8.507059e+37  ;;  %vm6494_vm12 = vweird.f32 %v12538_v22 }
0x11f9   :  { %v6467_v35 = vsel %vm6466_vm4, %v8449_v28, %v6463_v9  ;;  %8456 = vpow2.f32 %v6407_v49  ;;  %v6893_v20 = vpack.c.bf16 %v12390_v46, %v12390_v46  ;;  %vm6499_vm14 = vcmp.eq.f32.partialorder %v6498_v33, 8.507059e+37 }
0x11fa   :  { %v6472_v43 = vsel %vm6469_vm1, %v6471_v4, %v6467_v35  ;;  %v6478_v11 = vadd.f32 %v8451_v29, %v6477_v58  ;;  %v6501_v51 = vor.u32 1.1754944e-38, %v6500_v59  ;;  %vm13522_vm1 = vmmov %vm13520_vm10  ;;  %v6894_v59 = vpack.c.bf16 %v12406_v16, %v12406_v16 }
0x11fb   :  { %v8453_v0 = vpop.eup %8452  ;;  %v6473_v14 = vmul.f32 %v12459_v3, %v6472_v43  ;;  %vm13523_vm5 = vmmov %vm13522_vm1 }
0x11fc   :  { %v6505_v5 = vmul.f32 %v8453_v0, %v12535_v19  ;;  %v8455_v63 = vpop.eup %8454  ;;  %v6482_v60 = vsel %vm6481_vm6, %v8451_v29, %v6478_v11  ;;  %vm6510_vm8 = vweird.f32 %v8453_v0  ;;  %v7092_v46 = vsel %vm13523_vm5, %v6892_v39, 0  ;;  %vm13524_vm13 = vmmov %vm13522_vm1 }
0x11fd   :  { %v6490_v27 = vmul.f32 %v8455_v63, %v12538_v22  ;;  %v6699_v44 = vpack.c.bf16 %v6473_v14, %v6473_v14  ;;  %v6487_v25 = vsel %vm6484_vm7, %v6486_v15, %v6482_v60  ;;  %vm6511_vm3 = vmor %vm6509_vm9, %vm6510_vm8  ;;  %vm6495_vm11 = vweird.f32 %v8455_v63 }
0x11fe   :  { %v6506_v12 = vsub.f32 1.0, %v6505_v5  ;;  %v6488_v18 = vmul.f32 %v12464_v6, %v6487_v25  ;;  %vm6496_vm4 = vmor %vm6494_vm12, %vm6495_vm11 }
0x11ff   :  { %v6491_v3 = vsub.f32 1.0, %v6490_v27  ;;  %v12554_v36 = vpop.eup %8456  ;;  %8040 = vmatmul.msk.bf16.vlgmr.msra.gmra.mxu2 %vm5994_vm15, %v6699_v44 }
0x1200   :  { %v6507_v38 = vmul.f32 %v8453_v0, %v6506_v12  ;;  %v6700_v28 = vpack.c.bf16 %v6488_v18, %v6488_v18  ;;  %7063 = vmatpush.bf16.msra.mxu2 %v7054_v48  ;;  %v6453_v6 = vsel %vm5994_vm15, %v12554_v36, 0.0  ;;  %v6895_v48 = vpack.c.bf16 %v12415_v45, %v12415_v45 }
0x1201   :  { %v6492_v21 = vmul.f32 %v8455_v63, %v6491_v3  ;;  %6454 = vadd.xlane.f32.xlu2 %v6453_v6 }
0x1202   :  { %v6508_v2 = vadd.f32 %v8453_v0, %v6507_v38  ;;  %8041 = vmatmul.msk.bf16.vlgmr.msra.gmra.mxu3 %vm5994_vm15, %v6700_v28  ;;  %v7149_v45 = vsel %vm13524_vm13, %v6895_v48, 0 }
0x1203   :  { %v6493_v54 = vadd.f32 %v8455_v63, %v6492_v21  ;;  %7082 = vmatpush.bf16.msra.mxu3 %v7073_v53 }
0x1204   :  { %v6512_v19 = vsel %vm6511_vm3, %v8453_v0, %v6508_v2 }
0x1205   :  { %v6517_v29 = vsel %vm6514_vm0, %v6516_v57, %v6512_v19  ;;  %v6428_v13 = vpop.xlane.xlu0 %6427  ;;  %v6497_v32 = vsel %vm6496_vm4, %v8455_v63, %v6493_v54 }
0x1206   :  { %v6518_v23 = vmul.f32 %v12468_v1, %v6517_v29  ;;  %8458 = vrcp.f32 %v6428_v13  ;;  %v6502_v37 = vsel %vm6499_vm14, %v6501_v51, %v6497_v32  ;;  %v7111_v1 = vsel %vm13522_vm1, %v6893_v20, 0  ;;  %vm13525_vm14 = vmmov %vm13522_vm1  ;;  %v6860_v32 = vld.sshfl [vmem:[#allocation1] sm:$0xff pattern:$0x73625140] }
0x1207   :  { %v6425_v7 = vpop.xlane.xlu1 %6424  ;;  %v6503_v22 = vmul.f32 %v12474_v55, %v6502_v37  ;;  %v6545_v5 = vand.u32 2147483648, %v6428_v13  ;;  %v6543_v11 = vand.u32 2147483647, %v6428_v13  ;;  %vm6539_vm7 = vweird.f32 %v6428_v13 }
0x1208   :  { %v6702_v9 = vpack.c.bf16 %v6518_v23, %v6518_v23  ;;  %8460 = vrcp.f32 %v6425_v7  ;;  %v6530_v63 = vand.u32 2147483648, %v6425_v7  ;;  %v6528_v15 = vand.u32 2147483647, %v6425_v7 }
0x1209   :  { %v6701_v49 = vpack.c.bf16 %v6503_v22, %v6503_v22  ;;  %v6546_v30 = vor.u32 1.1754944e-38, %v6545_v5  ;;  %vm6524_vm10 = vweird.f32 %v6425_v7  ;;  %vm6544_vm3 = vcmp.eq.f32.partialorder %v6543_v11, 8.507059e+37 }
0x120a   :  { %8043 = vmatmul.msk.bf16.vlgmr.msrb.gmra.mxu1 %vm5994_vm15, %v6702_v9  ;;  %v6531_v44 = vor.u32 1.1754944e-38, %v6530_v63  ;;  %vm6529_vm0 = vcmp.eq.f32.partialorder %v6528_v15, 8.507059e+37  ;;  %v7130_v16 = vsel %vm13525_vm14, %v6894_v59, 0 }
0x120b   :  { %7120 = vmatpush.bf16.msrb.mxu1 %v7111_v1  ;;  %8042 = vmatmul.msk.bf16.vlgmr.msrb.gmra.mxu0 %vm5994_vm15, %v6701_v49  ;;  %v6896_v1 = vpack.c.bf16 %v6860_v32, %v6860_v32  ;;  %v6865_v49 = vld.sshfl [vmem:[#allocation1 + $0x20] sm:$0xff pattern:$0x73625140] }
0x120c   :  { %v8459_v0 = vpop.eup %8458  ;;  %7101 = vmatpush.bf16.msrb.mxu0 %v7092_v46 }
0x120d   :  { %v6535_v4 = vmul.f32 %v8459_v0, %v6428_v13  ;;  %vm6540_vm6 = vweird.f32 %v8459_v0 }
0x120e   :  { %v8461_v58 = vpop.eup %8460  ;;  %vm6541_vm9 = vmor %vm6539_vm7, %vm6540_vm6 }
0x120f   :  { %v6431_v40 = vpop.xlane.xlu0 %6430  ;;  %v6520_v35 = vmul.f32 %v8461_v58, %v6425_v7  ;;  %v6536_v55 = vsub.f32 1.0, %v6535_v4  ;;  %vm6525_vm8 = vweird.f32 %v8461_v58 }
0x1210   :  { %8462 = vrcp.f32 %v6431_v40  ;;  %vm6526_vm11 = vmor %vm6524_vm10, %vm6525_vm8  ;;  %v6560_v6 = vand.u32 2147483648, %v6431_v40  ;;  %v6558_v54 = vand.u32 2147483647, %v6431_v40  ;;  %vm6554_vm4 = vweird.f32 %v6431_v40 }
0x1211   :  { %v6521_v24 = vsub.f32 1.0, %v6520_v35  ;;  %v6537_v43 = vmul.f32 %v8459_v0, %v6536_v55  ;;  %v6897_v55 = vpack.c.bf16 %v6865_v49, %v6865_v49  ;;  %vm13526_vm10 = vmmov %vm13524_vm13 }
0x1212   :  { %v12574_v10 = vpop.xlane.xlu2 %6433  ;;  %vm6559_vm6 = vcmp.eq.f32.partialorder %v6558_v54, 8.507059e+37  ;;  %v7168_v5 = vsel %vm13526_vm10, %v6896_v1, 0 }
0x1213   :  { %8464 = vrcp.f32 %v12574_v10  ;;  %v6522_v14 = vmul.f32 %v8461_v58, %v6521_v24  ;;  %v6538_v12 = vadd.f32 %v8459_v0, %v6537_v43  ;;  %v6575_v23 = vand.u32 2147483648, %v12574_v10 }
0x1214   :  { %v6573_v20 = vand.u32 2147483647, %v12574_v10  ;;  %vm6569_vm7 = vweird.f32 %v12574_v10 }
0x1215   :  { %v6523_v52 = vadd.f32 %v8461_v58, %v6522_v14  ;;  %v6542_v27 = vsel %vm6541_vm9, %v8459_v0, %v6538_v12  ;;  %v6576_v39 = vor.u32 1.1754944e-38, %v6575_v23 }
0x1216   :  { %v8463_v60 = vpop.eup %8462  ;;  %v6547_v25 = vsel %vm6544_vm3, %v6546_v30, %v6542_v27  ;;  %vm6574_vm9 = vcmp.eq.f32.partialorder %v6573_v20, 8.507059e+37  ;;  %vm13527_vm3 = vmmov %vm13526_vm10 }
0x1217   :  { %v6550_v38 = vmul.f32 %v8463_v60, %v6431_v40  ;;  %v6527_v18 = vsel %vm6526_vm11, %v8461_v58, %v6523_v52  ;;  %v6548_v3 = vmul.f32 %v12483_v56, %v6547_v25  ;;  %vm6555_vm12 = vweird.f32 %v8463_v60 }
0x1218   :  { %v6532_v57 = vsel %vm6529_vm0, %v6531_v44, %v6527_v18  ;;  %vm6556_vm1 = vmor %vm6554_vm4, %vm6555_vm12  ;;  %v7187_v43 = vsel %vm13527_vm3, %v6897_v55, 0 }
0x1219   :  { %v8465_v2 = vpop.eup %8464  ;;  %v6551_v33 = vsub.f32 1.0, %v6550_v38  ;;  %v6533_v28 = vmul.f32 %v12487_v47, %v6532_v57  ;;  %v6704_v21 = vpack.c.bf16 %v6548_v3, %v6548_v3  ;;  %v6561_v47 = vor.u32 1.1754944e-38, %v6560_v6 }
0x121a   :  { %v6565_v19 = vmul.f32 %v8465_v2, %v12574_v10  ;;  %vm6570_vm5 = vweird.f32 %v8465_v2 }
0x121b   :  { %v6552_v29 = vmul.f32 %v8463_v60, %v6551_v33  ;;  %v6703_v13 = vpack.c.bf16 %v6533_v28, %v6533_v28  ;;  %8045 = vmatmul.msk.bf16.vlgmr.msrb.gmra.mxu3 %vm5994_vm15, %v6704_v21  ;;  %vm6571_vm8 = vmor %vm6569_vm7, %vm6570_vm5 }
0x121c   :  { %v6566_v56 = vsub.f32 1.0, %v6565_v19  ;;  %7158 = vmatpush.bf16.msrb.mxu3 %v7149_v45 }
0x121d   :  { %v6553_v53 = vadd.f32 %v8463_v60, %v6552_v29  ;;  %8044 = vmatmul.msk.bf16.vlgmr.msrb.gmra.mxu2 %vm5994_vm15, %v6703_v13 }
0x121e   :  { %v6567_v51 = vmul.f32 %v8465_v2, %v6566_v56  ;;  %7139 = vmatpush.bf16.msrb.mxu2 %v7130_v16 }
0x121f   :  { %v6557_v7 = vsel %vm6556_vm1, %v8463_v60, %v6553_v53 }
0x1220   :  { %v6562_v9 = vsel %vm6559_vm6, %v6561_v47, %v6557_v7  ;;  %v6568_v37 = vadd.f32 %v8465_v2, %v6567_v51 }
0x1221   :  { %v6563_v22 = vmul.f32 %v12492_v42, %v6562_v9 }
0x1222   :  { %v6572_v0 = vsel %vm6571_vm8, %v8465_v2, %v6568_v37 }
0x1223   :  { %v6705_v4 = vpack.c.bf16 %v6563_v22, %v6563_v22  ;;  %v6577_v46 = vsel %vm6574_vm9, %v6576_v39, %v6572_v0  ;;  %v6440_v58 = vpop.xlane.xlu1 %6439 }
0x1224   :  { %v6578_v40 = vmul.f32 %v12496_v17, %v6577_v46  ;;  %v6437_v35 = vpop.xlane.xlu2 %6436  ;;  %8466 = vrcp.f32 %v6440_v58  ;;  %v6603_v30 = vand.u32 2147483647, %v6440_v58  ;;  %v6605_v52 = vand.u32 2147483648, %v6440_v58 }
0x1225   :  { %8468 = vrcp.f32 %v6437_v35  ;;  %8046 = vmatmul.msk.bf16.vlgmr.msra.gmra.mxu0 %vm5994_vm15, %v6705_v4  ;;  %v6588_v15 = vand.u32 2147483647, %v6437_v35  ;;  %v6590_v44 = vand.u32 2147483648, %v6437_v35  ;;  %vm6599_vm12 = vweird.f32 %v6440_v58 }
0x1226   :  { %v6706_v42 = vpack.c.bf16 %v6578_v40, %v6578_v40  ;;  %7177 = vmatpush.bf16.msra.mxu0 %v7168_v5  ;;  %vm6584_vm13 = vweird.f32 %v6437_v35  ;;  %vm6604_vm14 = vcmp.eq.f32.partialorder %v6603_v30, 8.507059e+37  ;;  %v6606_v57 = vor.u32 1.1754944e-38, %v6605_v52 }
0x1227   :  { %vm12600_vm4 = vcmp.eq.f32.partialorder %v6588_v15, 8.507059e+37  ;;  %v6591_v21 = vor.u32 1.1754944e-38, %v6590_v44 }
0x1228   :  { %v6446_v24 = vpop.xlane.xlu0 %6445  ;;  %8047 = vmatmul.msk.bf16.vlgmr.msra.gmra.mxu1 %vm5994_vm15, %v6706_v42 }
0x1229   :  { %8470 = vrcp.f32 %v6446_v24  ;;  %7196 = vmatpush.bf16.msra.mxu1 %v7187_v43  ;;  %v6633_v59 = vand.u32 2147483647, %v6446_v24  ;;  %v6635_v19 = vand.u32 2147483648, %v6446_v24  ;;  %vm6629_vm7 = vweird.f32 %v6446_v24 }
0x122a   :  { %v8467_v11 = vpop.eup %8466 }
0x122b   :  { %v8469_v10 = vpop.eup %8468  ;;  %v6595_v17 = vmul.f32 %v8467_v11, %v6440_v58  ;;  %vm6600_vm11 = vweird.f32 %v8467_v11  ;;  %vm6634_vm8 = vcmp.eq.f32.partialorder %v6633_v59, 8.507059e+37  ;;  %v6636_v20 = vor.u32 1.1754944e-38, %v6635_v19 }
0x122c   :  { %v6580_v63 = vmul.f32 %v8469_v10, %v6437_v35  ;;  %v12597_v14 = vpop.xlane.xlu1 %6442  ;;  %vm6585_vm0 = vweird.f32 %v8469_v10  ;;  %vm6601_vm1 = vmor %vm6599_vm12, %vm6600_vm11 }
0x122d   :  { %v6596_v12 = vsub.f32 1.0, %v6595_v17  ;;  %8472 = vrcp.f32 %v12597_v14  ;;  %vm6586_vm5 = vmor %vm6584_vm13, %vm6585_vm0  ;;  %v6618_v32 = vand.u32 2147483647, %v12597_v14  ;;  %v6620_v7 = vand.u32 2147483648, %v12597_v14 }
0x122e   :  { %v6581_v60 = vsub.f32 1.0, %v6580_v63  ;;  %vm6614_vm3 = vweird.f32 %v12597_v14 }
0x122f   :  { %v8471_v27 = vpop.eup %8470  ;;  %v6597_v25 = vmul.f32 %v8467_v11, %v6596_v12  ;;  %v6621_v49 = vor.u32 1.1754944e-38, %v6620_v7  ;;  %vm6619_vm0 = vcmp.eq.f32.partialorder %v6618_v32, 8.507059e+37 }
0x1230   :  { %v6582_v38 = vmul.f32 %v8469_v10, %v6581_v60  ;;  %v6625_v18 = vmul.f32 %v8471_v27, %v6446_v24  ;;  %vm6630_vm6 = vweird.f32 %v8471_v27 }
0x1231   :  { %v6598_v48 = vadd.f32 %v8467_v11, %v6597_v25  ;;  %vm6631_vm9 = vmor %vm6629_vm7, %vm6630_vm6 }
0x1232   :  { %v6583_v2 = vadd.f32 %v8469_v10, %v6582_v38  ;;  %v6626_v33 = vsub.f32 1.0, %v6625_v18 }
0x1233   :  { %v8473_v28 = vpop.eup %8472  ;;  %v6602_v6 = vsel %vm6601_vm1, %v8467_v11, %v6598_v48 }
0x1234   :  { %v6587_v29 = vsel %vm6586_vm5, %v8469_v10, %v6583_v2  ;;  %v6607_v54 = vsel %vm6604_vm14, %v6606_v57, %v6602_v6  ;;  %v6627_v13 = vmul.f32 %v8471_v27, %v6626_v33  ;;  %v6610_v56 = vmul.f32 %v8473_v28, %v12597_v14 }
0x1235   :  { %v6592_v45 = vsel %vm12600_vm4, %v6591_v21, %v6587_v29  ;;  %v6608_v53 = vmul.f32 %v12504_v41, %v6607_v54  ;;  %vm6615_vm10 = vweird.f32 %v8473_v28 }
0x1236   :  { %v6593_v23 = vmul.f32 %v12506_v50, %v6592_v45  ;;  %v6628_v16 = vadd.f32 %v8471_v27, %v6627_v13  ;;  %v6611_v47 = vsub.f32 1.0, %v6610_v56  ;;  %vm6616_vm11 = vmor %vm6614_vm3, %vm6615_vm10 }
0x1237   :  { %v6708_v51 = vpack.c.bf16 %v6608_v53, %v6608_v53 }
0x1238   :  { %v6707_v9 = vpack.c.bf16 %v6593_v23, %v6593_v23  ;;  %v6632_v37 = vsel %vm6631_vm9, %v8471_v27, %v6628_v16  ;;  %v6612_v22 = vmul.f32 %v8473_v28, %v6611_v47 }
0x1239   :  { %v6637_v39 = vsel %vm6634_vm8, %v6636_v20, %v6632_v37  ;;  %v6452_v1 = vpop.xlane.xlu2 %6451  ;;  %8049 = vmatmul.msk.bf16.vlgmr.msra.gmra.mxu3 %vm5994_vm15, %v6708_v51  ;;  %v8629_v20 = vmov 1983009808  }
0x123a   :  { %v6638_v41 = vmul.f32 %v12512_v8, %v6637_v39  ;;  %v6613_v50 = vadd.f32 %v8473_v28, %v6612_v22  ;;  %8474 = vrcp.f32 %v6452_v1  ;;  %8048 = vmatmul.msk.bf16.vlgmr.msra.gmra.mxu2 %vm5994_vm15, %v6707_v9  ;;  %v6663_v24 = vand.u32 2147483647, %v6452_v1 }
0x123b   :  { %v6665_v43 = vand.u32 2147483648, %v6452_v1  ;;  %vm6659_vm13 = vweird.f32 %v6452_v1  ;;  %v7207_v32 = vunpack.c.l.s4 %v8629_v20 }
0x123c   :  { %v6710_v0 = vpack.c.bf16 %v6638_v41, %v6638_v41  ;;  %v6617_v4 = vsel %vm6616_vm11, %v8473_v28, %v6613_v50  ;;  %vm6664_vm14 = vcmp.eq.f32.partialorder %v6663_v24, 8.507059e+37 }
0x123d   :  { %v6622_v46 = vsel %vm6619_vm0, %v6621_v49, %v6617_v4  ;;  %v6449_v58 = vpop.xlane.xlu0 %6448  ;;  %v6666_v15 = vor.u32 1.1754944e-38, %v6665_v43  ;;  %v12624_v41 = vunpack.c.0.s8 %v7207_v32 }
0x123e   :  { %v6623_v40 = vmul.f32 %v12516_v31, %v6622_v46  ;;  %8476 = vrcp.f32 %v6449_v58  ;;  %8051 = vmatmul.msk.bf16.vlgmr.msrb.gmra.mxu1 %vm5994_vm15, %v6710_v0  ;;  %v6650_v31 = vand.u32 2147483648, %v6449_v58  ;;  %v6648_v30 = vand.u32 2147483647, %v6449_v58 }
0x123f   :  { %vm6644_vm5 = vweird.f32 %v6449_v58 }
0x1240   :  { %v8475_v35 = vpop.eup %8474  ;;  %v6709_v8 = vpack.c.bf16 %v6623_v40, %v6623_v40  ;;  %v6651_v38 = vor.u32 1.1754944e-38, %v6650_v31  ;;  %vm6649_vm7 = vcmp.eq.f32.partialorder %v6648_v30, 8.507059e+37 }
0x1241   :  { %v6655_v55 = vmul.f32 %v8475_v35, %v6452_v1  ;;  %vm6660_vm12 = vweird.f32 %v8475_v35 }
0x1242   :  { %8050 = vmatmul.msk.bf16.vlgmr.msrb.gmra.mxu0 %vm5994_vm15, %v6709_v8  ;;  %vm6661_vm4 = vmor %vm6659_vm13, %vm6660_vm12 }
0x1243   :  { %v6656_v5 = vsub.f32 1.0, %v6655_v55 }
0x1244   :  { %v8477_v42 = vpop.eup %8476 }
0x1245   :  { %v6640_v11 = vmul.f32 %v8477_v42, %v6449_v58  ;;  %v6657_v10 = vmul.f32 %v8475_v35, %v6656_v5  ;;  %v6458_v17 = vpop.xlane.xlu1 %6457  ;;  %vm6645_vm1 = vweird.f32 %v8477_v42 }
0x1246   :  { %8478 = vrcp.f32 %v6458_v17  ;;  %vm6646_vm6 = vmor %vm6644_vm5, %vm6645_vm1  ;;  %v6695_v59 = vand.u32 2147483648, %v6458_v17  ;;  %v6693_v6 = vand.u32 2147483647, %v6458_v17  ;;  %vm6689_vm9 = vweird.f32 %v6458_v17 }
0x1247   :  { %v6641_v63 = vsub.f32 1.0, %v6640_v11  ;;  %v6658_v14 = vadd.f32 %v8475_v35, %v6657_v10  ;;  %vm7719_vm5 = vcmask 392192  }
0x1248   :  { %vm6694_vm3 = vcmp.eq.f32.partialorder %v6693_v6, 8.507059e+37 }
0x1249   :  { %v6642_v12 = vmul.f32 %v8477_v42, %v6641_v63  ;;  %v6662_v60 = vsel %vm6661_vm4, %v8475_v35, %v6658_v14  ;;  %vm7711_vm4 = vcmask 195584  }
0x124a   :  { %v6667_v52 = vsel %vm6664_vm14, %v6666_v15, %v6662_v60  ;;  %vm13530_vm14 = vcmask 261120  }
0x124b   :  { %v6643_v27 = vadd.f32 %v8477_v42, %v6642_v12  ;;  %v6668_v44 = vmul.f32 %v12522_v62, %v6667_v52  ;;  %v6696_v62 = vor.u32 1.1754944e-38, %v6695_v59  ;;  %vm13531_vm1 = vmmov %vm13530_vm14 }
0x124c   :  { %v8479_v25 = vpop.eup %8478 }
0x124d   :  { %v6647_v18 = vsel %vm6646_vm6, %v8477_v42, %v6643_v27  ;;  %v6712_v3 = vpack.c.bf16 %v6668_v44, %v6668_v44  ;;  %v6685_v48 = vmul.f32 %v8479_v25, %v6458_v17  ;;  %vm6690_vm8 = vweird.f32 %v8479_v25 }
0x124e   :  { %v6652_v2 = vsel %vm6649_vm7, %v6651_v38, %v6647_v18  ;;  %vm6691_vm10 = vmor %vm6689_vm9, %vm6690_vm8  ;;  %vm7722_vm6 = vcmask 457728   ;;  %vm13532_vm7 = vcmask 523264   ;;  %vm13533_vm8 = vcmask 517120  }
0x124f   :  { %v6653_v57 = vmul.f32 %v12527_v34, %v6652_v2  ;;  %v6686_v33 = vsub.f32 1.0, %v6685_v48  ;;  %8053 = vmatmul.msk.bf16.vlgmr.msrb.gmra.mxu3 %vm5994_vm15, %v6712_v3  ;;  %vm13534_vm9 = vmmov %vm13533_vm8 }
0x1251   :  { %v6711_v28 = vpack.c.bf16 %v6653_v57, %v6653_v57  ;;  %v6687_v21 = vmul.f32 %v8479_v25, %v6686_v33 }
0x1253   :  { %v6688_v19 = vadd.f32 %v8479_v25, %v6687_v21  ;;  %8052 = vmatmul.msk.bf16.vlgmr.msrb.gmra.mxu2 %vm5994_vm15, %v6711_v28 }
0x1255   :  { %v6692_v29 = vsel %vm6691_vm10, %v8479_v25, %v6688_v19  ;;  %vm13535_vm10 = vmmov %vm13533_vm8 }
0x1256   :  { %v6697_v54 = vsel %vm6694_vm3, %v6696_v62, %v6692_v29  ;;  %vm13536_vm3 = vmmov %vm13533_vm8 }
0x1257   :  { %v6698_v13 = vmul.f32 %v12531_v26, %v6697_v54 }
0x1259   :  { %v6714_v34 = vpack.c.bf16 %v6698_v13, %v6698_v13 }
0x125b   :  { %8055 = vmatmul.msk.bf16.vlgmr.msra.gmra.mxu1 %vm5994_vm15, %v6714_v34 }
0x1274   :  { %v6455_v56 = vpop.xlane.xlu2 %6454 }
0x1275   :  { %8480 = vrcp.f32 %v6455_v56  ;;  %v6680_v16 = vand.u32 2147483648, %v6455_v56  ;;  %v6678_v51 = vand.u32 2147483647, %v6455_v56  ;;  %vm6674_vm0 = vweird.f32 %v6455_v56 }
0x1277   :  { %v6681_v37 = vor.u32 1.1754944e-38, %v6680_v16  ;;  %vm6679_vm13 = vcmp.eq.f32.partialorder %v6678_v51, 8.507059e+37 }
0x127b   :  { %v8481_v45 = vpop.eup %8480 }
0x127c   :  { %v6670_v53 = vmul.f32 %v8481_v45, %v6455_v56  ;;  %vm6675_vm11 = vweird.f32 %v8481_v45 }
0x127d   :  { %vm6676_vm12 = vmor %vm6674_vm0, %vm6675_vm11 }
0x127e   :  { %v6671_v23 = vsub.f32 1.0, %v6670_v53  ;;  %vm13537_vm11 = vmmov %vm13536_vm3 }
0x127f   :  { %vm13538_vm0 = vmmov %vm13536_vm3 }
0x1280   :  { %v6672_v47 = vmul.f32 %v8481_v45, %v6671_v23 }
0x1282   :  { %v6673_v7 = vadd.f32 %v8481_v45, %v6672_v47  ;;  %v6913_v9 = vpop.f32.mrf.mxu2 }
0x1283   :  { %v7204_v0 = vrot.slane %v6913_v9, 4 }
0x1284   :  { %v6677_v26 = vsel %vm6676_vm12, %v8481_v45, %v6673_v7  ;;  %vm13539_vm12 = vmmov %vm13538_vm0 }
0x1285   :  { %v6682_v39 = vsel %vm6679_vm13, %v6681_v37, %v6677_v26  ;;  %v6932_v1 = vpop.f32.mrf.mxu3  ;;  %vm13540_vm13 = vmmov %vm13538_vm0 }
0x1286   :  { %v6683_v49 = vmul.f32 %v12554_v36, %v6682_v39  ;;  %v7216_v4 = vrot.slane %v6932_v1, 4 }
0x1287   :  { %v6970_v22 = vpop.f32.mrf.mxu1 }
0x1288   :  { %v7214_v50 = vrot.slane %v6970_v22, 4  ;;  %v6951_v46 = vpop.f32.mrf.mxu0  ;;  %v6713_v40 = vpack.c.bf16 %v6683_v49, %v6683_v49  ;;  %v7217_v55 = vsel %vm3820_vm2, %v6970_v22, %v7216_v4 }
0x1289   :  { %v7202_v35 = vrot.slane %v6951_v46, 4  ;;  %v7205_v8 = vsel %vm3820_vm2, %v6951_v46, %v7204_v0  ;;  %v7225_v24 = vperm.slane %v7217_v55, %v12624_v41 }
0x128a   :  { %v7215_v58 = vsel %vm3820_vm2, %v7214_v50, %v6932_v1  ;;  %v7213_v5 = vperm.slane %v7205_v8, %v12624_v41  ;;  %v6915_v36 = vpop.f32.mrf.mxu2  ;;  %8054 = vmatmul.msk.bf16.vlgmr.msra.gmra.mxu0 %vm5994_vm15, %v6713_v40 }
0x128b   :  { %v7221_v42 = vperm.slane %v7215_v58, %v12624_v41  ;;  %v7203_v43 = vsel %vm3820_vm2, %v7202_v35, %v6913_v9  ;;  %v7262_v63 = vrot.slane %v7225_v24, 4 }
0x128c   :  { %v7209_v11 = vperm.slane %v7203_v43, %v12624_v41  ;;  %v7264_v10 = vrot.slane %v7213_v5, 4 }
0x128d   :  { %v7250_v17 = vrot.slane %v7221_v42, 4  ;;  %v7263_v12 = vsel %vm3820_vm2, %v7262_v63, %v7213_v5  ;;  %v6934_v60 = vpop.f32.mrf.mxu3 }
0x128e   :  { %v7252_v31 = vrot.slane %v7209_v11, 4  ;;  %v7265_v30 = vsel %vm3820_vm2, %v7225_v24, %v7264_v10  ;;  %v7269_v53 = vperm.slane %v7263_v12, %v10806_v61 }
0x128f   :  { %v6972_v14 = vpop.f32.mrf.mxu1  ;;  %v7251_v15 = vsel %vm3820_vm2, %v7250_v17, %v7209_v11  ;;  %v7273_v28 = vperm.slane %v7265_v30, %v10806_v61 }
0x1290   :  { %v7253_v52 = vsel %vm3820_vm2, %v7221_v42, %v7252_v31  ;;  %v6953_v27 = vpop.f32.mrf.mxu0  ;;  %v7257_v34 = vperm.slane %v7251_v15, %v10806_v61  ;;  %v7308_v4 = vrot.slane %v7269_v53, 4 }
0x1291   :  { %v7261_v62 = vperm.slane %v7253_v52, %v10806_v61  ;;  %v7312_v20 = vrot.slane %v7273_v28, 4 }
0x1292   :  { %v7300_v0 = vrot.slane %v7257_v34, 4 }
0x1293   :  { %v7304_v9 = vrot.slane %v7261_v62, 4 }
0x129e   :  { %v7008_v44 = vpop.f32.mrf.mxu3 }
0x129f   :  { %v7240_v48 = vrot.slane %v7008_v44, 4 }
0x12a0   :  { %v6989_v25 = vpop.f32.mrf.mxu2 }
0x12a1   :  { %v7228_v38 = vrot.slane %v6989_v25, 4 }
0x12a2   :  { %v7027_v18 = vpop.f32.mrf.mxu0 }
0x12a3   :  { %v7226_v3 = vrot.slane %v7027_v18, 4  ;;  %v7229_v2 = vsel %vm3820_vm2, %v7027_v18, %v7228_v38 }
0x12a4   :  { %v7237_v33 = vperm.slane %v7229_v2, %v12624_v41 }
0x12a5   :  { %v7227_v57 = vsel %vm3820_vm2, %v7226_v3, %v6989_v25  ;;  %v7046_v59 = vpop.f32.mrf.mxu1 }
0x12a6   :  { %v7233_v21 = vperm.slane %v7227_v57, %v12624_v41  ;;  %v7238_v6 = vrot.slane %v7046_v59, 4  ;;  %v7241_v19 = vsel %vm3820_vm2, %v7046_v59, %v7240_v48  ;;  %v7288_v29 = vrot.slane %v7237_v33, 4  ;;  %v7010_v54 = vpop.f32.mrf.mxu3 }
0x12a7   :  { %v7249_v13 = vperm.slane %v7241_v19, %v12624_v41 }
0x12a8   :  { %v7276_v56 = vrot.slane %v7233_v21, 4  ;;  %v7239_v45 = vsel %vm3820_vm2, %v7238_v6, %v7008_v44  ;;  %v6991_v23 = vpop.f32.mrf.mxu2 }
0x12a9   :  { %v7245_v16 = vperm.slane %v7239_v45, %v12624_v41  ;;  %v7286_v47 = vrot.slane %v7249_v13, 4  ;;  %v7289_v51 = vsel %vm3820_vm2, %v7249_v13, %v7288_v29 }
0x12aa   :  { %v7297_v32 = vperm.slane %v7289_v51, %v10806_v61  ;;  %v7029_v7 = vpop.f32.mrf.mxu0 }
0x12ab   :  { %v7274_v37 = vrot.slane %v7245_v16, 4  ;;  %v7277_v26 = vsel %vm3820_vm2, %v7245_v16, %v7276_v56  ;;  %v7287_v22 = vsel %vm3820_vm2, %v7286_v47, %v7237_v33 }
0x12ac   :  { %v7285_v39 = vperm.slane %v7277_v26, %v10806_v61  ;;  %v7293_v1 = vperm.slane %v7287_v22, %v10806_v61  ;;  %v7310_v50 = vrot.slane %v7297_v32, 4  ;;  %v7313_v49 = vsel %vm3820_vm2, %v7297_v32, %v7312_v20 }
0x12ad   :  { %v7275_v46 = vsel %vm3820_vm2, %v7274_v37, %v7233_v21  ;;  %v7562_v58 = vrot.slane %v7313_v49, 4  ;;  %v7048_v40 = vpop.f32.mrf.mxu1 }
0x12ae   :  { %v7281_v35 = vperm.slane %v7275_v46, %v10806_v61  ;;  %v7302_v8 = vrot.slane %v7285_v39, 4  ;;  %v7305_v55 = vsel %vm3820_vm2, %v7285_v39, %v7304_v9  ;;  %v7306_v5 = vrot.slane %v7293_v1, 4 }
0x12af   :  { %v7309_v42 = vsel %vm3820_vm2, %v7293_v1, %v7308_v4  ;;  %v7311_v24 = vsel %vm3820_vm2, %v7310_v50, %v7273_v28  ;;  %v7450_v38 = vrot.slane %v7305_v55, 4 }
0x12b0   :  { %v7298_v43 = vrot.slane %v7281_v35, 4  ;;  %v7301_v36 = vsel %vm3820_vm2, %v7281_v35, %v7300_v0  ;;  %v7303_v11 = vsel %vm3820_vm2, %v7302_v8, %v7261_v62  ;;  %v7307_v10 = vsel %vm3820_vm2, %v7306_v5, %v7269_v53 }
0x12b1   :  { %v7452_v17 = vrot.slane %v7303_v11, 4  ;;  %v7538_v63 = vrot.slane %v7309_v42, 4  ;;  %v7540_v14 = vrot.slane %v7307_v10, 4  ;;  %v7563_v15 = vsel %vm3820_vm2, %v7562_v58, %v7311_v24 }
0x12b2   :  { %v7299_v31 = vsel %vm3820_vm2, %v7298_v43, %v7257_v34  ;;  %v7564_v12 = vrot.slane %v7311_v24, 4  ;;  %v7426_v18 = vrot.slane %v7301_v36, 4  ;;  %v7451_v59 = vsel %vm3820_vm2, %v7450_v38, %v7303_v11 }
0x12b3   :  { %v7428_v30 = vrot.slane %v7299_v31, 4  ;;  %v12670_v60 = vsel %vm3820_vm2, %v7305_v55, %v7452_v17  ;;  %v7539_v52 = vsel %vm3820_vm2, %v7538_v63, %v7307_v10  ;;  %v7541_v27 = vsel %vm3820_vm2, %v7309_v42, %v7540_v14 }
0x12b4   :  { %v7565_v44 = vsel %vm3820_vm2, %v7313_v49, %v7564_v12  ;;  %v7427_v29 = vsel %vm3820_vm2, %v7426_v18, %v7299_v31  ;;  %v12691_v35 = vperm.slane %v7541_v27, %v12624_v41  ;;  %v12698_v5 = vperm.slane %v7563_v15, %v12624_v41 }
0x12b5   :  { %v7429_v25 = vsel %vm3820_vm2, %v7301_v36, %v7428_v30  ;;  %v12694_v8 = vperm.slane %v7565_v44, %v12624_v41  ;;  %v12701_v42 = vperm.slane %v7451_v59, %v12624_v41  ;;  %v12705_v43 = vperm.slane %v7539_v52, %v12624_v41 }
0x12b6   :  { %v7600_v11 = vrot.slane %v12691_v35, 4  ;;  %v12711_v63 = vperm.slane %v7427_v29, %v12624_v41  ;;  %v7612_v12 = vrot.slane %v12698_v5, 4  ;;  %v12717_v30 = vperm.slane %v7429_v25, %v12624_v41 }
0x12b7   :  { %v7624_v10 = vrot.slane %v12694_v8, 4  ;;  %v7500_v15 = vrot.slane %v12701_v42, 4  ;;  %v12723_v38 = vperm.slane %v12670_v60, %v12624_v41 }
0x12b8   :  { %v7476_v59 = vrot.slane %v12711_v63, 4  ;;  %v7488_v29 = vrot.slane %v12717_v30, 4 }
0x12bb   :  { %v7122_v3 = vpop.f32.mrf.mxu1 }
0x12bc   :  { %v7326_v48 = vrot.slane %v7122_v3, 4  ;;  %v7084_v2 = vpop.f32.mrf.mxu3 }
0x12bd   :  { %v7065_v57 = vpop.f32.mrf.mxu2  ;;  %v7328_v33 = vrot.slane %v7084_v2, 4 }
0x12be   :  { %v7316_v28 = vrot.slane %v7065_v57, 4  ;;  %v7327_v21 = vsel %vm3820_vm2, %v7326_v48, %v7084_v2  ;;  %v7588_v2 = vrot.slane %v12705_v43, 4 }
0x12bf   :  { %v7329_v6 = vsel %vm3820_vm2, %v7122_v3, %v7328_v33  ;;  %v7333_v19 = vperm.slane %v7327_v21, %v12624_v41  ;;  %v7103_v62 = vpop.f32.mrf.mxu0 }
0x12c0   :  { %v7337_v54 = vperm.slane %v7329_v6, %v12624_v41  ;;  %v7314_v13 = vrot.slane %v7103_v62, 4  ;;  %v7317_v34 = vsel %vm3820_vm2, %v7103_v62, %v7316_v28 }
0x12c1   :  { %v7325_v56 = vperm.slane %v7317_v34, %v12624_v41  ;;  %v7362_v23 = vrot.slane %v7333_v19, 4 }
0x12c2   :  { %v7374_v45 = vrot.slane %v7337_v54, 4  ;;  %v7315_v53 = vsel %vm3820_vm2, %v7314_v13, %v7065_v57 }
0x12c3   :  { %v7321_v16 = vperm.slane %v7315_v53, %v12624_v41  ;;  %v7376_v47 = vrot.slane %v7325_v56, 4  ;;  %v7124_v51 = vpop.f32.mrf.mxu1 }
0x12c4   :  { %v7375_v20 = vsel %vm3820_vm2, %v7374_v45, %v7325_v56  ;;  %v7086_v32 = vpop.f32.mrf.mxu3 }
0x12c5   :  { %v7363_v7 = vsel %vm3820_vm2, %v7362_v23, %v7321_v16  ;;  %v7364_v9 = vrot.slane %v7321_v16, 4  ;;  %v7377_v37 = vsel %vm3820_vm2, %v7337_v54, %v7376_v47  ;;  %v7067_v26 = vpop.f32.mrf.mxu2  ;;  %v7381_v52 = vperm.slane %v7375_v20, %v10806_v61 }
0x12c6   :  { %v7369_v18 = vperm.slane %v7363_v7, %v10806_v61  ;;  %v7385_v25 = vperm.slane %v7377_v37, %v10806_v61  ;;  %v7512_v54 = vrot.slane %v12723_v38, 4 }
0x12c7   :  { %v7365_v22 = vsel %vm3820_vm2, %v7333_v19, %v7364_v9  ;;  %v7105_v39 = vpop.f32.mrf.mxu0  ;;  %v7420_v19 = vrot.slane %v7381_v52, 4 }
0x12c8   :  { %v7373_v57 = vperm.slane %v7365_v22, %v10806_v61  ;;  %v7412_v13 = vrot.slane %v7369_v18, 4  ;;  %v7424_v20 = vrot.slane %v7385_v25, 4 }
0x12ca   :  { %v7416_v51 = vrot.slane %v7373_v57, 4 }
0x12d2   :  { %v7160_v1 = vpop.f32.mrf.mxu3 }
0x12d3   :  { %v7352_v58 = vrot.slane %v7160_v1, 4 }
0x12d6   :  { %v7141_v50 = vpop.f32.mrf.mxu2 }
0x12d7   :  { %v7340_v17 = vrot.slane %v7141_v50, 4 }
0x12d8   :  { %v7198_v49 = vpop.f32.mrf.mxu1 }
0x12d9   :  { %v7350_v40 = vrot.slane %v7198_v49, 4  ;;  %v7353_v55 = vsel %vm3820_vm2, %v7198_v49, %v7352_v58 }
0x12da   :  { %v7162_v0 = vpop.f32.mrf.mxu3  ;;  %v7361_v36 = vperm.slane %v7353_v55, %v12624_v41 }
0x12db   :  { %v7351_v24 = vsel %vm3820_vm2, %v7350_v40, %v7160_v1 }
0x12dc   :  { %v7357_v14 = vperm.slane %v7351_v24, %v12624_v41  ;;  %v7398_v3 = vrot.slane %v7361_v36, 4 }
0x12de   :  { %v7143_v4 = vpop.f32.mrf.mxu2  ;;  %v7386_v28 = vrot.slane %v7357_v14, 4 }
0x12e0   :  { %v7200_v46 = vpop.f32.mrf.mxu1 }
0x1307   :  { %v7179_v31 = vpop.f32.mrf.mxu0 }
0x1308   :  { %v7338_v27 = vrot.slane %v7179_v31, 4  ;;  %v7341_v44 = vsel %vm3820_vm2, %v7179_v31, %v7340_v17 }
0x1309   :  { %v7349_v48 = vperm.slane %v7341_v44, %v12624_v41 }
0x130a   :  { %v7339_v33 = vsel %vm3820_vm2, %v7338_v27, %v7141_v50 }
0x130b   :  { %v7345_v21 = vperm.slane %v7339_v33, %v12624_v41  ;;  %v7399_v60 = vsel %vm3820_vm2, %v7398_v3, %v7349_v48  ;;  %v7400_v6 = vrot.slane %v7349_v48, 4 }
0x130c   :  { %v7405_v62 = vperm.slane %v7399_v60, %v10806_v61 }
0x130d   :  { %v7387_v34 = vsel %vm3820_vm2, %v7386_v28, %v7345_v21  ;;  %v7388_v56 = vrot.slane %v7345_v21, 4  ;;  %v7401_v45 = vsel %vm3820_vm2, %v7361_v36, %v7400_v6 }
0x130e   :  { %v7393_v53 = vperm.slane %v7387_v34, %v10806_v61  ;;  %v7409_v23 = vperm.slane %v7401_v45, %v10806_v61  ;;  %v7418_v16 = vrot.slane %v7405_v62, 4  ;;  %v7421_v47 = vsel %vm3820_vm2, %v7405_v62, %v7420_v19 }
0x130f   :  { %v7389_v32 = vsel %vm3820_vm2, %v7357_v14, %v7388_v56  ;;  %v7550_v7 = vrot.slane %v7421_v47, 4  ;;  %v7181_v9 = vpop.f32.mrf.mxu0 }
0x1310   :  { %v7397_v37 = vperm.slane %v7389_v32, %v10806_v61  ;;  %v7410_v26 = vrot.slane %v7393_v53, 4  ;;  %v7413_v22 = vsel %vm3820_vm2, %v7393_v53, %v7412_v13  ;;  %v7419_v39 = vsel %vm3820_vm2, %v7418_v16, %v7381_v52 }
0x1311   :  { %v7422_v1 = vrot.slane %v7409_v23, 4  ;;  %v7425_v50 = vsel %vm3820_vm2, %v7409_v23, %v7424_v20  ;;  %v7438_v49 = vrot.slane %v7413_v22, 4  ;;  %v7551_v0 = vsel %vm3820_vm2, %v7550_v7, %v7419_v39 }
0x1312   :  { %v7411_v4 = vsel %vm3820_vm2, %v7410_v26, %v7369_v18  ;;  %v7414_v46 = vrot.slane %v7397_v37, 4  ;;  %v7417_v58 = vsel %vm3820_vm2, %v7397_v37, %v7416_v51  ;;  %v7552_v40 = vrot.slane %v7419_v39, 4 }
0x1313   :  { %v7423_v55 = vsel %vm3820_vm2, %v7422_v1, %v7385_v25  ;;  %v7440_v24 = vrot.slane %v7411_v4, 4  ;;  %v7462_v36 = vrot.slane %v7417_v58, 4  ;;  %v7557_v17 = vperm.slane %v7551_v0, %v12624_v41 }
0x1314   :  { %v7415_v14 = vsel %vm3820_vm2, %v7414_v46, %v7373_v57  ;;  %v7553_v31 = vsel %vm3820_vm2, %v7421_v47, %v7552_v40  ;;  %v7574_v52 = vrot.slane %v7425_v50, 4  ;;  %v7576_v27 = vrot.slane %v7423_v55, 4 }
0x1315   :  { %v7441_v44 = vsel %vm3820_vm2, %v7413_v22, %v7440_v24  ;;  %v7464_v3 = vrot.slane %v7415_v14, 4  ;;  %v12756_v18 = vperm.slane %v7553_v31, %v12624_v41  ;;  %v7586_v48 = vrot.slane %v7557_v17, 4 }
0x1316   :  { %v7575_v33 = vsel %vm3820_vm2, %v7574_v52, %v7423_v55  ;;  %v7577_v25 = vsel %vm3820_vm2, %v7425_v50, %v7576_v27  ;;  %v7439_v28 = vsel %vm3820_vm2, %v7438_v49, %v7411_v4  ;;  %v7463_v21 = vsel %vm3820_vm2, %v7462_v36, %v7415_v14 }
0x1317   :  { %v12763_v57 = vperm.slane %v7577_v25, %v12624_v41  ;;  %v7598_v60 = vrot.slane %v12756_v18, 4  ;;  %v7445_v6 = vperm.slane %v7439_v28, %v12624_v41  ;;  %v7469_v19 = vperm.slane %v7463_v21, %v12624_v41 }
0x1318   :  { %v7581_v62 = vperm.slane %v7575_v33, %v12624_v41  ;;  %v7589_v13 = vsel %vm3820_vm2, %v7557_v17, %v7588_v2  ;;  %v7587_v34 = vsel %vm3820_vm2, %v7586_v48, %v12705_v43  ;;  %v7449_v56 = vperm.slane %v7441_v44, %v12624_v41 }
0x1319   :  { %v7477_v45 = vsel %vm3820_vm2, %v7445_v6, %v7476_v59  ;;  %v7501_v53 = vsel %vm3820_vm2, %v7469_v19, %v7500_v15  ;;  %v7597_v23 = vperm.slane %v7589_v13, %v10806_v61  ;;  %v7474_v16 = vrot.slane %v7445_v6, 4 }
0x131a   :  { %v7485_v47 = vperm.slane %v7477_v45, %v10806_v61  ;;  %v7509_v51 = vperm.slane %v7501_v53, %v10806_v61  ;;  %v7613_v2 = vsel %vm3820_vm2, %v7581_v62, %v7612_v12  ;;  %v7498_v43 = vrot.slane %v7469_v19, 4 }
0x131b   :  { %v7621_v20 = vperm.slane %v7613_v2, %v10806_v61  ;;  %v7640_v32 = vrot.slane %v7597_v23, 4  ;;  %v7475_v59 = vsel %vm3820_vm2, %v7474_v16, %v12711_v63  ;;  %v12787_v15 = vperm.slane %v7587_v34, %v10806_v61 }
0x131c   :  { %v7528_v7 = vrot.slane %v7485_v47, 4  ;;  %v7526_v9 = vrot.slane %v7509_v51, 4  ;;  %v12790_v37 = vperm.slane %v7475_v59, %v10806_v61  ;;  %v7499_v26 = vsel %vm3820_vm2, %v7498_v43, %v12701_v42 }
0x131d   :  { %v7641_v12 = vsel %vm3820_vm2, %v7621_v20, %v7640_v32  ;;  %v7638_v22 = vrot.slane %v7621_v20, 4  ;;  %v7505_v39 = vperm.slane %v7499_v26, %v10806_v61  ;;  %v7610_v1 = vrot.slane %v7581_v62, 4  ;;  %v7733_v26 = vld [vmem:[%s12997_s13 + $0x38] sm:$0xff] }
0x131e   :  { %v7529_v50 = vsel %vm3820_vm2, %v7509_v51, %v7528_v7  ;;  %v7527_v63 = vsel %vm3820_vm2, %v7526_v9, %v7485_v47  ;;  %v7524_v49 = vrot.slane %v12790_v37, 4  ;;  %v7636_v0 = vrot.slane %v12787_v15, 4 }
0x131f   :  { %v8090_v4 = vpack.i.bf16 %v7641_v12, %v7529_v50  ;;  %v7639_v46 = vsel %vm3820_vm2, %v7638_v22, %v7597_v23  ;;  %v7611_v42 = vsel %vm3820_vm2, %v7610_v1, %v12698_v5  ;;  %v7465_v40 = vsel %vm3820_vm2, %v7417_v58, %v7464_v3  ;;  %v7731_v22 = vld [vmem:[%s12997_s13 + $0x28] sm:$0xff]  ;;  %v7729_v50 = vld [vmem:[%s12997_s13 + $0x18] sm:$0xff] }
0x1320   :  { %v8085_v55 = vpack.i.bf16 %v7639_v46, %v7527_v63  ;;  %v7525_v24 = vsel %vm3820_vm2, %v7505_v39, %v7524_v49  ;;  %v7617_v36 = vperm.slane %v7611_v42, %v10806_v61  ;;  %v7473_v17 = vperm.slane %v7465_v40, %v12624_v41  ;;  %v7726_v49 = vld [vmem:[%s12997_s13] sm:$0xff] }
0x1321   :  { %8091 = vrot.lane.b32.xlu2 %v8090_v4, %s8630_s4  ;;  %v7489_v14 = vsel %vm3820_vm2, %v7449_v56, %v7488_v29  ;;  %v7601_v5 = vsel %vm3820_vm2, %v12756_v18, %v7600_v11  ;;  %v7625_v58 = vsel %vm3820_vm2, %v12763_v57, %v7624_v10  ;;  %v7486_v31 = vrot.slane %v7449_v56, 4 }
0x1322   :  { %8086 = vrot.lane.b32.xlu1 %v8085_v55, %s8631_s10  ;;  %v7637_v41 = vsel %vm3820_vm2, %v7617_v36, %v7636_v0  ;;  %v7497_v52 = vperm.slane %v7489_v14, %v10806_v61  ;;  %v7513_v29 = vsel %vm3820_vm2, %v7473_v17, %v7512_v54  ;;  %v7609_v27 = vperm.slane %v7601_v5, %v10806_v61  ;;  %v7727_v0 = vld [vmem:[%s12997_s13 + $0x8] sm:$0xff] }
0x1323   :  { %v8095_v44 = vpack.i.bf16 %v7637_v41, %v7525_v24  ;;  %v7521_v11 = vperm.slane %v7513_v29, %v10806_v61  ;;  %v7633_v3 = vperm.slane %v7625_v58, %v10806_v61  ;;  %v7487_v10 = vsel %vm3820_vm2, %v7486_v31, %v12717_v30 }
0x1324   :  { %v7536_v18 = vrot.slane %v7497_v52, 4  ;;  %v7648_v48 = vrot.slane %v7609_v27, 4  ;;  %v7493_v33 = vperm.slane %v7487_v10, %v10806_v61  ;;  %v7510_v25 = vrot.slane %v7473_v17, 4 }
0x1325   :  { %8096 = vrot.lane.b32.xlu0 %v8095_v44, %s8632_s27  ;;  %v7599_v54 = vsel %vm3820_vm2, %v7598_v60, %v12691_v35  ;;  %v7622_v28 = vrot.slane %v12763_v57, 4  ;;  %v7534_v21 = vrot.slane %v7521_v11, 4  ;;  %v7646_v6 = vrot.slane %v7633_v3, 4  ;;  %s13551_s27 = sld [smem:[#allocation76_spill]] }
0x1326   :  { %v7537_v19 = vsel %vm3820_vm2, %v7521_v11, %v7536_v18  ;;  %v7649_v62 = vsel %vm3820_vm2, %v7633_v3, %v7648_v48  ;;  %v7511_v30 = vsel %vm3820_vm2, %v7510_v25, %v12723_v38  ;;  %v7532_v13 = vrot.slane %v7493_v33, 4 }
0x1327   :  { %v8115_v34 = vpack.i.bf16 %v7649_v62, %v7537_v19  ;;  %v7517_v56 = vperm.slane %v7511_v30, %v10806_v61  ;;  %v7605_v45 = vperm.slane %v7599_v54, %v10806_v61  ;;  %v7623_v35 = vsel %vm3820_vm2, %v7622_v28, %v12694_v8 }
0x1328   :  { %v7629_v57 = vperm.slane %v7623_v35, %v10806_v61  ;;  %v7535_v60 = vsel %vm3820_vm2, %v7534_v21, %v7497_v52  ;;  %v7647_v53 = vsel %vm3820_vm2, %v7646_v6, %v7609_v27  ;;  %v7522_v23 = vrot.slane %v7505_v39, 4  ;;  %v7728_v39 = vld [vmem:[%s12997_s13 + $0x10] sm:$0xff] }
0x1329   :  { %8116 = vrot.lane.b32.xlu2 %v8115_v34, %s8633_s28  ;;  %v7533_v38 = vsel %vm3820_vm2, %v7517_v56, %v7532_v13  ;;  %v7644_v16 = vrot.slane %v7605_v45, 4  ;;  %v7530_v47 = vrot.slane %v7517_v56, 4  ;;  %v8110_v51 = vpack.i.bf16 %v7647_v53, %v7535_v60  ;;  %v7833_v60 = vld [vmem:[%s12999_s15 + $0x70] sm:$0xff]  ;;  %v7834_v53 = vld [vmem:[%s12999_s15 + $0x78] sm:$0xff] }
0x132a   :  { %v7642_v2 = vrot.slane %v7629_v57, 4  ;;  %v7634_v43 = vrot.slane %v7617_v36, 4  ;;  %v7523_v20 = vsel %vm3820_vm2, %v7522_v23, %v12790_v37  ;;  %v7732_v37 = vld [vmem:[%s12997_s13 + $0x30] sm:$0xff]  ;;  %v7735_v63 = vpack.c.bf16 %v7729_v50, %v7728_v39  ;;  %v7831_v23 = vld [vmem:[%s12999_s15 + $0x60] sm:$0xff]  ;;  %v7826_v50 = vld [vmem:[%s12999_s15 + $0x38] sm:$0xff] }
0x132b   :  { %v7645_v8 = vsel %vm3820_vm2, %v7629_v57, %v7644_v16  ;;  %v7531_v61 = vsel %vm3820_vm2, %v7530_v47, %v7493_v33  ;;  %v7737_v12 = vpack.c.bf16 %v7733_v26, %v7732_v37  ;;  %v7734_v4 = vpack.c.bf16 %v7727_v0, %v7726_v49  ;;  %v7832_v47 = vld [vmem:[%s12999_s15 + $0x68] sm:$0xff]  ;;  %s7922_s28 = sshll.u32 %s13551_s27, 4  ;;  %s7923_s28 = int_to_ptr.hbm [resolvable:$true] %s7922_s28 }
0x132c   :  { %v8105_v32 = vpack.i.bf16 %v7645_v8, %v7533_v38  ;;  %v7643_v59 = vsel %vm3820_vm2, %v7642_v2, %v7605_v45  ;;  %v7635_v7 = vsel %vm3820_vm2, %v7634_v43, %v12787_v15  ;;  %v7730_v15 = vld [vmem:[%s12997_s13 + $0x20] sm:$0xff]  ;;  %vm7708_vm2 = vcmask 130048   ;;  %v7829_v43 = vld [vmem:[%s12999_s15 + $0x50] sm:$0xff]  ;;  %s8637_s13 = smov [#allocation10]  }
0x132d   :  { %v8100_v9 = vpack.i.bf16 %v7643_v59, %v7531_v61  ;;  %7749 = vmatpush.bf16.msra.mxu2 %v7737_v12  ;;  %v7736_v1 = vpack.c.bf16 %v7731_v22, %v7730_v15  ;;  %v8124_v38 = vld [vmem:[%s12998_s14] ss:$0 sm:$0xff]  ;;  %v7842_v16 = vpack.c.bf16 %v7834_v53, %v7833_v60  ;;  %v7820_v60 = vld [vmem:[%s12999_s15 + $0x8] sm:$0xff]  ;;  %v8636_v53 = vmov 8.0   ;;  %s7920_s4 = sshll.u32 %s8637_s13, 4  ;;  %s7921_s4 = int_to_ptr.vmem [resolvable:$true] %s7920_s4 }
0x132e   :  { %8106 = vrot.lane.b32.xlu1 %v8105_v32, %s8634_s6  ;;  %8482 = vrcp.f32 %v8636_v53 }
0x132f   :  { %8101 = vrot.lane.b32.xlu0 %v8100_v9, %s8614_s22  ;;  %7847 = vmatpush.bf16.msra.mxu3 %v7842_v16  ;;  %v7828_v9 = vld [vmem:[%s12999_s15 + $0x48] sm:$0xff] }
0x1331   :  { %7750 = vmatpush.bf16.msra.mxu2 %v7736_v1  ;;  %v7825_v1 = vld [vmem:[%s12999_s15 + $0x30] sm:$0xff] }
0x1335   :  { %7751 = vmatpush.bf16.msra.mxu2 %v7735_v63 }
0x1337   :  { %8111 = vrot.lane.b32.xlu0 %v8110_v51, %s8635_s7  ;;  %v7841_v51 = vpack.c.bf16 %v7832_v47, %v7831_v23 }
0x1339   :  { %7752 = vmatpush.bf16.msra.mxu2 %v7734_v4  ;;  %7848 = vmatpush.bf16.msra.mxu3 %v7841_v51 }
0x137b   :  { %v8092_v24 = vpop.permute.xlu2 %8091 }
0x137c   :  { %v8094_v44 = vunpack.i.h.bf16 %v8092_v24  ;;  %v8093_v11 = vunpack.i.l.bf16 %v8092_v24 }
0x1383   :  { %v8117_v33 = vpop.permute.xlu2 %8116 }
0x1384   :  { %v8119_v19 = vunpack.i.h.bf16 %v8117_v33  ;;  %v8118_v62 = vunpack.i.l.bf16 %v8117_v33 }
0x1394   :  { %v8087_v42 = vpop.permute.xlu1 %8086 }
0x1395   :  { %v8089_v36 = vunpack.i.h.bf16 %v8087_v42  ;;  %v8088_v17 = vunpack.i.l.bf16 %v8087_v42 }
0x1397   :  { %v8097_v46 = vpop.permute.xlu0 %8096 }
0x1398   :  { %v8099_v40 = vunpack.i.h.bf16 %v8097_v46  ;;  %v8098_v55 = vunpack.i.l.bf16 %v8097_v46 }
0x139a   :  { %v7707_v14 = vsel %vm5994_vm15, %v7635_v7, %v8099_v40  ;;  %v7706_v5 = vsel %vm5994_vm15, %v7523_v20, %v8098_v55  ;;  %vm7716_vm15 = vcmask 326656   ;;  %v7830_v20 = vld [vmem:[%s12999_s15 + $0x58] sm:$0xff]  ;;  %v7827_v7 = vld [vmem:[%s12999_s15 + $0x40] sm:$0xff]  ;;  %v7838_v55 = vpack.c.bf16 %v7826_v50, %v7825_v1 }
0x139b   :  { %v7710_v31 = vsel %vm7708_vm2, %v7707_v14, %v8089_v36  ;;  %v7709_v41 = vsel %vm7708_vm2, %v7706_v5, %v8088_v17  ;;  %v7840_v59 = vpack.c.bf16 %v7830_v20, %v7829_v43  ;;  %v7839_v39 = vpack.c.bf16 %v7828_v9, %v7827_v7  ;;  %v7865_v7 = vld [vmem:[%s13001_s17 + $0x18] sm:$0xff]  ;;  %v7862_v9 = vld [vmem:[%s13001_s17] sm:$0xff] }
0x139c   :  { %v7712_v18 = vsel %vm7711_vm4, %v7709_v41, %v8093_v11  ;;  %v7713_v48 = vsel %vm7711_vm4, %v7710_v31, %v8094_v44  ;;  %vm13541_vm4 = vmmov %vm13538_vm0 }
0x139d   :  { %7849 = vmatpush.bf16.msra.mxu3 %v7840_v59  ;;  %v7864_v59 = vld [vmem:[%s13001_s17 + $0x10] sm:$0xff] }
0x13a0   :  { %v8107_v52 = vpop.permute.xlu1 %8106 }
0x13a1   :  { %v8102_v58 = vpop.permute.xlu0 %8101  ;;  %v8109_v3 = vunpack.i.h.bf16 %v8107_v52  ;;  %v8108_v10 = vunpack.i.l.bf16 %v8107_v52  ;;  %7850 = vmatpush.bf16.msra.mxu3 %v7839_v39  ;;  %v7823_v52 = vld [vmem:[%s12999_s15 + $0x20] sm:$0xff] }
0x13a2   :  { %v8104_v29 = vunpack.i.h.bf16 %v8102_v58  ;;  %v8103_v27 = vunpack.i.l.bf16 %v8102_v58 }
0x13a4   :  { %v7714_v25 = vsel %vm13530_vm14, %v7712_v18, %v8103_v27  ;;  %v7715_v54 = vsel %vm13531_vm1, %v7713_v48, %v8104_v29  ;;  %vm13542_vm14 = vmmov %vm13538_vm0  ;;  %v7824_v29 = vld [vmem:[%s12999_s15 + $0x28] sm:$0xff] }
0x13a5   :  { %v7717_v30 = vsel %vm7716_vm15, %v7714_v25, %v8108_v10  ;;  %v7718_v13 = vsel %vm7716_vm15, %v7715_v54, %v8109_v3  ;;  %vm13543_vm1 = vmmov %vm13538_vm0  ;;  %7851 = vmatpush.bf16.msra.mxu3 %v7838_v55  ;;  %v7837_v25 = vpack.c.bf16 %v7824_v29, %v7823_v52 }
0x13a6   :  { %vm13544_vm15 = vmmov %vm13538_vm0 }
0x13a9   :  { %v8112_v28 = vpop.permute.xlu0 %8111  ;;  %7852 = vmatpush.bf16.msra.mxu3 %v7837_v25 }
0x13aa   :  { %v8114_v21 = vunpack.i.h.bf16 %v8112_v28  ;;  %v8113_v6 = vunpack.i.l.bf16 %v8112_v28 }
0x13ac   :  { %v7720_v34 = vsel %vm7719_vm5, %v7717_v30, %v8113_v6  ;;  %v7721_v56 = vsel %vm7719_vm5, %v7718_v13, %v8114_v21  ;;  %vm13545_vm5 = vmmov %vm13538_vm0  ;;  %v7821_v6 = vld [vmem:[%s12999_s15 + $0x10] sm:$0xff] }
0x13ad   :  { %v7723_v45 = vsel %vm7722_vm6, %v7720_v34, %v8118_v62  ;;  %v7724_v35 = vsel %vm7722_vm6, %v7721_v56, %v8119_v19  ;;  %vm13546_vm6 = vmmov %vm13538_vm0  ;;  %v7822_v19 = vld [vmem:[%s12999_s15 + $0x18] sm:$0xff] }
0x13ae   :  { %v7725_v57 = vpack.c.bf16 %v7724_v35, %v7723_v45  ;;  %v7836_v56 = vpack.c.bf16 %v7822_v19, %v7821_v6 }
0x13b0   :  { %8056 = vmatmul.msk.bf16.vlgmr.msra.gmra.mxu2 %vm13532_vm7, %v7725_v57  ;;  %vm13547_vm7 = vmmov %vm13538_vm0  ;;  %7853 = vmatpush.bf16.msra.mxu3 %v7836_v56  ;;  %v7819_v57 = vld [vmem:[%s12999_s15] sm:$0xff] }
0x13b1   :  { %v7835_v23 = vpack.c.bf16 %v7820_v60, %v7819_v57 }
0x13b4   :  { %7854 = vmatpush.bf16.msra.mxu3 %v7835_v23 }
0x1433   :  { %v7754_v2 = vpop.f32.mrf.mxu2 }
0x1434   :  { %v7755_v8 = vadd.f32 %v8124_v38, %v7754_v2 }
0x1436   :  { %v7761_v61 = vrot.slane %v7755_v8, 2  ;;  %v7762_v32 = vrot.slane %v7755_v8, 4  ;;  %v7763_v37 = vrot.slane %v7755_v8, 6  ;;  %v7773_v26 = vsel %vm13533_vm8, %v7755_v8, 0.0  ;;  %vm13548_vm8 = vmmov %vm13538_vm0 }
0x1437   :  { %v7796_v46 = vsel %vm13537_vm11, %v7755_v8, -inf  ;;  %vm7913_vm11 = vcmask 9216  }
0x1438   :  { %v7774_v12 = vsel %vm13534_vm9, %v7761_v61, 0.0  ;;  %v7776_v22 = vsel %vm13535_vm10, %v7762_v32, 0.0  ;;  %v7778_v0 = vsel %vm13536_vm3, %v7763_v37, 0.0  ;;  %v7797_v42 = vsel %vm13538_vm0, %v7761_v61, -inf }
0x1439   :  { %v7775_v15 = vadd.f32 %v7774_v12, %v7773_v26  ;;  %v7798_v5 = vsel %vm13540_vm13, %v7762_v32, -inf  ;;  %v7799_v58 = vsel %vm13541_vm4, %v7763_v37, -inf  ;;  %vm13549_vm10 = vcmask 523264   ;;  %v7863_v26 = vld [vmem:[%s13001_s17 + $0x8] sm:$0xff] }
0x143a   :  { %v7867_v37 = vpack.c.bf16 %v7865_v7, %v7864_v59  ;;  %v7866_v12 = vpack.c.bf16 %v7863_v26, %v7862_v9  ;;  %vm13550_vm3 = vcmask 261120  }
0x143b   :  { %v7777_v63 = vadd.f32 %v7776_v22, %v7775_v15  ;;  %v7756_v49 = vpop.f32.mrf.mxu2  ;;  %v8125_v15 = vld [vmem:[%s13000_s16] ss:$0 sm:$0xff] }
0x143c   :  { %v7757_v4 = vadd.f32 %v8124_v38, %v7756_v49  ;;  %v8483_v38 = vpop.eup %8482  ;;  %7881 = vmatpush.bf16.msrb.mxu0 %v7867_v37  ;;  %v7890_v49 = vld [vmem:[%s13003_s19] sm:$0xff] }
0x143d   :  { %v7779_v40 = vadd.f32 %v7778_v0, %v7777_v63  ;;  %v7789_v16 = vmul.f32 8.0, %v8483_v38  ;;  %vm7793_vm9 = vweird.f32 %v8483_v38  ;;  %v7891_v0 = vld [vmem:[%s13003_s19 + $0x8] sm:$0xff] }
0x143e   :  { %v7764_v24 = vrot.slane %v7757_v4, 2  ;;  %v7765_v36 = vrot.slane %v7757_v4, 4  ;;  %v7766_v17 = vrot.slane %v7757_v4, 6  ;;  %v7780_v14 = vsel %vm13539_vm12, %v7757_v4, 0.0 }
0x143f   :  { %v7781_v31 = vadd.f32 %v7780_v14, %v7779_v40  ;;  %v7800_v41 = vsel %vm13542_vm14, %v7757_v4, -inf  ;;  %v7790_v47 = vsub.f32 1.0, %v7789_v16  ;;  %v7892_v4 = vpack.c.bf16 %v7891_v0, %v7890_v49 }
0x1440   :  { %v7801_v27 = vmax.f32 %v7796_v46, %v7800_v41  ;;  %v7802_v44 = vsel %vm13543_vm1, %v7764_v24, -inf  ;;  %v7804_v11 = vsel %vm13544_vm15, %v7765_v36, -inf  ;;  %v7806_v3 = vsel %vm13545_vm5, %v7766_v17, -inf  ;;  %7882 = vmatpush.bf16.msrb.mxu0 %v7866_v12  ;;  %v8126_v46 = vld [vmem:[%s13002_s18] ss:$0 sm:$0xff] }
0x1441   :  { %v7803_v10 = vmax.f32 %v7797_v42, %v7802_v44  ;;  %v7805_v18 = vmax.f32 %v7798_v5, %v7804_v11  ;;  %v7807_v48 = vmax.f32 %v7799_v58, %v7806_v3  ;;  %v7782_v33 = vsel %vm13546_vm6, %v7764_v24, 0.0  ;;  %7907 = vmatpush.bf16.msrb.mxu1 %v7892_v4 }
0x1442   :  { %v7783_v54 = vadd.f32 %v7782_v33, %v7781_v31  ;;  %v7784_v62 = vsel %vm13547_vm7, %v7765_v36, 0.0  ;;  %v7786_v34 = vsel %vm13548_vm8, %v7766_v17, 0.0  ;;  %v7791_v51 = vmul.f32 %v8483_v38, %v7790_v47  ;;  %v8127_v17 = vld [vmem:[%s13004_s20] ss:$0 sm:$0xff] }
0x1443   :  { %v7808_v28 = vmax.f32 %v7801_v27, %v7803_v10  ;;  %v7809_v21 = vmax.f32 %v7805_v18, %v7807_v48 }
0x1444   :  { %v7785_v30 = vadd.f32 %v7784_v62, %v7783_v54  ;;  %v7792_v2 = vadd.f32 %v8483_v38, %v7791_v51 }
0x1445   :  { %v7810_v13 = vmax.f32 %v7808_v28, %v7809_v21 }
0x1446   :  { %v7787_v45 = vadd.f32 %v7786_v34, %v7785_v30  ;;  %v7794_v43 = vsel %vm7793_vm9, %v8483_v38, %v7792_v2 }
0x1447   :  { %7812 = vst [vmem:[#allocation1] ss:$4 sm:$0xff] %v7810_v13 }
0x1448   :  { %v7795_v20 = vmul.f32 %v7794_v43, %v7787_v45 }
0x144e   :  { %v7813_v35 = vld.sshfl [vmem:[#allocation1] sm:$0xff pattern:$0x73625140] }
0x144f   :  { %7814 = vrot.lane.b32.xlu1 %v7813_v35, %s8626_s0 }
0x14c1   :  { %v7815_v8 = vpop.permute.xlu1 %7814 }
0x14c2   :  { %v7817_v61 = vsel %vm13549_vm10, %v7795_v20, %v7815_v8 }
0x14c3   :  { %v7818_v32 = vpack.c.bf16 %v7817_v61, %v7817_v61 }
0x14c5   :  { %7855 = vmatmul.bf16.vlgmr.msra.gmra.mxu3 %v7818_v32 }
0x1548   :  { %v7856_v22 = vpop.f32.mrf.mxu3 }
0x1549   :  { %v7857_v39 = vadd.f32 %v8125_v15, %v7856_v22 }
0x154b   :  { %v7860_v1 = vmax.f32 %v7857_v39, 0.0 }
0x154d   :  { %v7861_v50 = vpack.c.bf16 %v7860_v1, %v7860_v1 }
0x154f   :  { %8057 = vmatmul.msk.bf16.vlgmr.msrb.gmra.mxu0 %vm13550_vm3, %v7861_v50 }
0x1550   :  { %v7858_v63 = vpop.f32.mrf.mxu3 }
0x15cc   :  { %v7884_v42 = vpop.f32.mrf.mxu0 }
0x15cd   :  { %v7885_v40 = vadd.f32 %v8126_v46, %v7884_v42 }
0x15cf   :  { %v7888_v55 = vmax.f32 %v7885_v40, 0.0 }
0x15d1   :  { %v7889_v24 = vpack.c.bf16 %v7888_v55, %v7888_v55 }
0x15d3   :  { %8058 = vmatmul.msk.bf16.vlgmr.msrb.gmra.mxu1 %vm7708_vm2, %v7889_v24 }
0x15d4   :  { %v7886_v36 = vpop.f32.mrf.mxu0 }
0x1650   :  { %v7909_v14 = vpop.f32.mrf.mxu1 }
0x1651   :  { %v7910_v5 = vadd.f32 %v8127_v17, %v7909_v14 }
0x1653   :  { %7914 = vst.msk [vmem:[#allocation10] sm:$0x3] %vm7913_vm11, %v7910_v5 }
0x1654   :  { %7925 = dma.vmem_to_hbm [thread:$0]  %s7921_s4, 32, %s7923_s28, [#allocation4]  }
0x1658   :  { %v7911_v58 = vpop.f32.mrf.mxu1 }
0x1659   :  { %8610 = dma.done.wait [#allocation4], 32  }
0x165a   :  { %8611 = vsyncadd [#allocation4], 4294967264 }
0x165b   :  { %7930 = vsyncpa [#allocation3], 1 }
0x165c   :  { %7931 = vsyncpa [#allocation6], 1 }
0x165d   :  { %7932 = vsyncpa [#allocation9], 1 }
0x165e   :  { %7933 = vsyncpa [#allocation4], 1 }

</bundles_post_ra>
